<compile_context>
chip_gen: v7x
topology: tpu7x:2x2x1
jax: 0.10.0
libtpu: 0.0.40
codegen_flags: <defaults>
</compile_context>

<pallas_src>
import numpy as np
import jax
import jax.numpy as jnp
from jax.experimental import pallas as pl
from jax.experimental.pallas import tpu as pltpu

F32 = jnp.float32


# --------------------------- fused ResBlock kernel ---------------------------

def _make_resblock_kernel(R, CW, has_skip, identity_res, has_attn, heads, dh):
    """One kernel instance handles ONE batch element (grid=(B,), parallel)."""
    inv_r = 1.0 / R
    eps = 1e-5                       # nn.GroupNorm default eps
    HD = heads * dh

    def gn(y, gavg, gamma, beta, silu):
        # y: [R, CW]; gavg: [CW, CW] group-membership / (cols-per-group).
        # Two INDEPENDENT 1-row group matmuls (no mean->center->reduce chain);
        # var = E[y^2] - mean^2.
        mean = jnp.dot(jnp.sum(y, axis=0, keepdims=True), gavg,
                       preferred_element_type=F32) * inv_r           # [1, CW]
        ex2 = jnp.dot(jnp.sum(y * y, axis=0, keepdims=True), gavg,
                      preferred_element_type=F32) * inv_r            # [1, CW]
        var = ex2 - mean * mean
        out = (y - mean) * jax.lax.rsqrt(var + eps) * gamma + beta
        if silu:
            out = out * jax.nn.sigmoid(out)
        return out

    def kernel(*refs):
        it = iter(refs)
        x1_ref = next(it)
        wcat = next(it)[...]            # [K1, CW] (identity) or [K1, 2*CW]
        if has_skip:
            x2_ref = next(it)
            wcat_b = next(it)[...]      # [K2, 2*CW]
        demb = next(it)[0]              # [1, CW]  (Dense(embed), precomputed)
        gavg = next(it)[...]            # [CW, CW]
        gb = next(it)[...]              # [4 or 7, CW] packed gamma/beta(/bias)
        w2 = next(it)[...]              # [CW, CW] (block-diag for transposed)
        if has_attn:
            wqkv = next(it)[...]        # [C, 3*heads*dh]
            wo = next(it)[...]          # [heads*dh, C]
        o_ref = next(it)

        x1 = x1_ref[0]                                             # [R, K1]
        # ---- block1 conv + residual conv: ONE fused matmul ------------------
        y_cat = jnp.dot(x1, wcat, preferred_element_type=F32)
        if has_skip:                                               # fused concat
            y_cat = y_cat + jnp.dot(x2_ref[0], wcat_b,
                                    preferred_element_type=F32)
        if identity_res:
            y, res = y_cat, x1
        else:
            y, res = y_cat[:, :CW], y_cat[:, CW:]
        # ---- GN + SiLU, + Dense(time-embed) broadcast add --------------------
        h = gn(y, gavg, gb[0:1, :], gb[1:2, :], silu=True)
        h = h + demb
        # ---- block2: 1x1 conv + GN + SiLU ------------------------------------
        h = gn(jnp.dot(h, w2, preferred_element_type=F32), gavg,
               gb[2:3, :], gb[3:4, :], silu=True)
        h = h + res
        if not has_attn:
            o_ref[0] = h
            return
        # ---- ResBlock_attn tail: h = norm(h); h = h + to_out(attn(h)) -------
        hn = gn(h, gavg, gb[4:5, :], gb[5:6, :], silu=False)       # [R, C]
        qkv = jnp.dot(hn, wqkv, preferred_element_type=F32)        # [R, 3*HD]
        scale = dh ** (-0.5)
        heads_out = []
        for hh in range(heads):                                    # static, small
            q = qkv[:, hh * dh:(hh + 1) * dh] * scale
            k = qkv[:, HD + hh * dh: HD + (hh + 1) * dh]
            v = qkv[:, 2 * HD + hh * dh: 2 * HD + (hh + 1) * dh]
            sim = jax.lax.dot_general(q, k, (((1,), (1,)), ((), ())),
                                      preferred_element_type=F32)  # [R, R]
            p_ = jnp.exp(sim - jnp.max(sim, axis=-1, keepdims=True))
            attn = p_ / jnp.sum(p_, axis=-1, keepdims=True)        # exact softmax
            heads_out.append(jnp.dot(attn, v, preferred_element_type=F32))
        o_cat = jnp.concatenate(heads_out, axis=-1)                # [R, HD]
        proj = jnp.dot(o_cat, wo, preferred_element_type=F32) + gb[6:7, :]
        o_ref[0] = hn + proj

    return kernel


# ------------------------------ wrapper / glue -------------------------------

def _im2col(x, k):
    """NHWC non-overlapping k x k patches -> [B, OH*OW, k*k*Cin]."""
    B, H, W, Cin = x.shape
    if k == 1:
        return x.reshape(B, H * W, Cin)
    OH, OW = H // k, W // k
    p = x.reshape(B, OH, k, OW, k, Cin).transpose(0, 1, 3, 2, 4, 5)
    return p.reshape(B, OH * OW, k * k * Cin)


def fused_resblock(x, skip, p, demb):
    """x, skip: NHWC. demb: [B, CW] precomputed Dense(embed) row per block."""
    B, H, W, Cx = x.shape
    k, C = p['k'], p['out_cn']
    transpose, identity_res = p['transpose'], p['identity_res']
    has_attn = p['attn'] is not None
    has_skip = skip is not None

    if transpose:
        x1 = x.reshape(B, H * W, Cx)
        x2 = skip.reshape(B, H * W, skip.shape[-1]) if has_skip else None
        R, CW = H * W, k * k * C          # "wide" pre-col2im layout
    else:
        if has_skip and k > 1:
            # TODO(synk): forward k>1 conv consuming a skip would interleave
            # channels inside im2col; concat in XLA instead (not hit here).
            x = jnp.concatenate([x, skip], axis=-1)
            skip, has_skip = None, False
            Cx = x.shape[-1]
        x1 = _im2col(x, k)
        x2 = skip.reshape(B, H * W, skip.shape[-1]) if has_skip else None
        R, CW = (H // k) * (W // k), C

    wcat = p['wcat']                      # [Cin_total, CW or 2*CW]
    if has_skip:
        w_a, w_b = wcat[:Cx], wcat[Cx:]   # row-split = fused channel concat
    else:
        w_a, w_b = wcat, None

    inputs, specs = [], []

    def add_b(arr):                       # per-batch-sliced input
        inputs.append(arr)
        nd = arr.ndim
        specs.append(pl.BlockSpec((1,) + arr.shape[1:],
                                  lambda b, _nd=nd: (b,) + (0,) * (_nd - 1)))

    def add_f(arr):                       # replicated (whole-array) input
        inputs.append(arr)
        nd = arr.ndim
        specs.append(pl.BlockSpec(arr.shape, lambda b, _nd=nd: (0,) * _nd))

    add_b(x1)
    add_f(w_a)
    if has_skip:
        add_b(x2)
        add_f(w_b)
    add_b(demb.reshape(B, 1, CW))
    add_f(p['gavg'])
    add_f(p['gb'])
    add_f(p['w2'])
    heads = dh = 0
    if has_attn:
        a = p['attn']
        heads, dh = a['heads'], a['dh']
        add_f(a['wqkv'])
        add_f(a['wo'])

    out = pl.pallas_call(
        _make_resblock_kernel(R, CW, has_skip, identity_res, has_attn, heads, dh),
        out_shape=jax.ShapeDtypeStruct((B, R, CW), F32),
        grid=(B,),
        in_specs=specs,
        out_specs=pl.BlockSpec((1, R, CW), lambda b: (b, 0, 0)),
        compiler_params=pltpu.CompilerParams(
            dimension_semantics=("parallel",)),   # v7x: one batch per TensorCore
    )(*inputs)

    if transpose:
        if k == 1:
            return out.reshape(B, H, W, C)
        out = out.reshape(B, H, W, k, k, C).transpose(0, 1, 3, 2, 4, 5)
        return out.reshape(B, H * k, W * k, C)            # col2im (XLA, cheap)
    OH, OW = H // k, W // k
    return out.reshape(B, OH, OW, C)


# --------------------------------- params ------------------------------------

def _groups_for(out_cn, gn):
    return gn if out_cn % 16 == 0 else out_cn


def _normal(key, shape, scale=0.1):
    return scale * jax.random.normal(key, shape, dtype=F32)


def init_resblock(key, in_cn, out_cn, ks, st, gn_groups, embed_dim, attn):
    del st                              # stride == kernel_size in every config
    keys = jax.random.split(key, 6)
    transpose = in_cn > out_cn
    C, kk = out_cn, ks * ks
    CW = kk * C if transpose else C
    identity_res = (in_cn == out_cn)
    groups = _groups_for(C, gn_groups)

    if transpose:
        # torch ConvTranspose2d weight [Cin, Cout, k, k] -> matmul [Cin, (ky,kx,Cout)]
        w1 = _normal(keys[0], (in_cn, kk * C))
        res_w = None if identity_res else _normal(keys[1], (in_cn, kk * C))
    else:
        # torch Conv2d weight [Cout, Cin, k, k] -> matmul [(ky,kx,Cin), Cout]
        w1 = _normal(keys[0], (kk * in_cn, C))
        res_w = None if identity_res else _normal(keys[1], (kk * in_cn, C))
    # block1 + residual fused along output columns
    wcat = w1 if identity_res else jnp.concatenate([w1, res_w], axis=1)

    # block2 1x1 conv, lifted to the "wide" layout for transposed blocks
    w2_small = _normal(keys[2], (C, C))
    w2 = jnp.kron(jnp.eye(kk, dtype=F32), w2_small) if CW != C else w2_small

    # [CW, CW] group-averaging matrix: 1/(cols-per-group) inside the group
    cid = np.arange(CW) % C
    gid = cid // (C // groups)
    gavg = jnp.asarray((gid[:, None] == gid[None, :]).astype(np.float32)
                       / (CW // groups))

    def widen(v):                        # [*, C] -> [*, CW] over the patch axis
        return jnp.tile(v, (1, kk)) if CW != C else v

    gb_rows = [widen(jnp.ones((1, C), F32)), widen(jnp.zeros((1, C), F32)),   # GN1
               widen(jnp.ones((1, C), F32)), widen(jnp.zeros((1, C), F32))]   # GN2

    p = dict(
        k=ks, out_cn=C, transpose=transpose, identity_res=identity_res,
        wcat=wcat, w2=w2, gavg=gavg,
        dense_w=widen(_normal(keys[3], (embed_dim, C))),
        dense_b=widen(jnp.zeros((1, C), F32)),
        attn=None)

    if attn:
        assert not transpose  # attention blocks are forward convs in this config
        heads, dh = 4, 32
        gb_rows += [jnp.ones((1, C), F32), jnp.zeros((1, C), F32),  # attn GN
                    jnp.zeros((1, C), F32)]                         # to_out bias
        p['attn'] = dict(
            heads=heads, dh=dh,
            wqkv=_normal(keys[4], (C, 3 * heads * dh)),   # packed to_qkv (no bias)
            wo=_normal(keys[5], (heads * dh, C)))          # stacked to_out weight
    p['gb'] = jnp.concatenate(gb_rows, axis=0)             # packed tiny params
    return p


# --------------------------------- forward -----------------------------------

def unet_forward(params, x, a, t, nt):
    # Time embedding (Fourier + Linear + SiLU) and ALL per-block Dense
    # projections hoisted into one tiny XLA matmul chain (overhead-dominated).
    tt = (t.astype(F32) / nt)[:, None]
    proj = tt * params['W'][None, :] * (2.0 * np.pi)
    gfp = jnp.concatenate([jnp.sin(proj), jnp.cos(proj)], axis=-1)    # [B, E]
    e = gfp @ params['embed_w'] + params['embed_b']
    embed = e * jax.nn.sigmoid(e)                                      # SiLU

    blocks = list(params['down']) + list(params['mid']) + list(params['up'])
    dw = jnp.concatenate([p['dense_w'] for p in blocks], axis=1)       # [E, sum(CW)]
    db = jnp.concatenate([p['dense_b'] for p in blocks], axis=1)
    demb_all = embed @ dw + db                                         # [B, sum(CW)]
    widths = [p['dense_w'].shape[1] for p in blocks]
    offs = np.concatenate([[0], np.cumsum(widths)])
    dembs = iter([demb_all[:, offs[i]:offs[i + 1]] for i in range(len(blocks))])

    h = jnp.concatenate([x, a], axis=-1)                  # NHWC end-to-end
    h_ls = [h]
    for p in params['down']:
        h = fused_resblock(h, None, p, next(dembs))
        h_ls.append(h)
    for p in params['mid']:
        h = fused_resblock(h, None, p, next(dembs))
    h_ls.pop()
    h = fused_resblock(h, None, params['up'][0], next(dembs))
    for p in params['up'][1:]:
        bh = h_ls.pop()
        h = fused_resblock(h, bh, p, next(dembs))         # skip fused in-kernel
    return h                                              # already NHWC


# ----------------------------------- main -------------------------------------

if __name__ == "__main__":
    key = jax.random.PRNGKey(0)
    embed_dim = 32
    Nt = 100.0
    # (in_cn, out_cn, kernel, stride, gn, embed_dim, type)
    Down_config = [(4, 16, 2, 2, 4, embed_dim, 'res'),
                   (16, 32, 2, 2, 4, embed_dim, 'attn')]
    Mid_config = [(32, 32, 1, 1, 4, embed_dim, 'attn')]
    Up_config = [(32, 16, 2, 2, 4, embed_dim, 'res'),
                 (32, 8, 2, 2, 8, embed_dim, 'res'),
                 (12, 2, 1, 1, 2, embed_dim, 'res')]

    kW, kemb, kdown, kmid, kup, kx, ka, kt = jax.random.split(key, 8)
    params = dict(
        W=jax.random.normal(kW, (embed_dim // 2,), F32),
        embed_w=_normal(kemb, (embed_dim, embed_dim)),
        embed_b=jnp.zeros((1, embed_dim), F32),
        down=[init_resblock(k_, *cfg[:6], attn=(cfg[6] == 'attn'))
              for k_, cfg in zip(jax.random.split(kdown, len(Down_config)),
                                 Down_config)],
        mid=[init_resblock(k_, *cfg[:6], attn=(cfg[6] == 'attn'))
             for k_, cfg in zip(jax.random.split(kmid, len(Mid_config)),
                                Mid_config)],
        up=[init_resblock(k_, *cfg[:6], attn=(cfg[6] == 'attn'))
            for k_, cfg in zip(jax.random.split(kup, len(Up_config)),
                               Up_config)],
    )

    x = jax.random.normal(kx, (2, 16, 16, 2), F32)
    a = jax.random.normal(ka, (2, 16, 16, 2), F32)
    t = jax.random.uniform(kt, (2,), F32, 1.0, float(Nt))

    fwd = jax.jit(lambda x_, a_, t_: unet_forward(params, x_, a_, t_, Nt))
    out = jax.block_until_ready(fwd(x, a, t))
    assert out.shape == (2, 16, 16, 2), out.shape
    assert bool(jnp.all(jnp.isfinite(out)))
    print("KERNEL_OK")
</pallas_src>

<mosaic_0001>
module attributes {stable_mosaic.version = 11 : i64} {
  func.func @kernel(%arg0: i32, %arg1: memref<1x64x16xf32, #tpu.memory_space<vmem>>, %arg2: memref<16x32xf32, #tpu.memory_space<vmem>>, %arg3: memref<1x1x16xf32, #tpu.memory_space<vmem>>, %arg4: memref<16x16xf32, #tpu.memory_space<vmem>>, %arg5: memref<4x16xf32, #tpu.memory_space<vmem>>, %arg6: memref<16x16xf32, #tpu.memory_space<vmem>>, %arg7: memref<1x64x16xf32, #tpu.memory_space<vmem>>) attributes {dimension_semantics = [#tpu.dimension_semantics<parallel>], iteration_bounds = array<i64: 2>, scalar_prefetch = 0 : i64, scratch_operands = 0 : i64, tpu.core_type = #tpu.core_type<tc>, window_params = [{transform_indices = @transform_0, window_bounds = array<i64: 1, 64, 16>}, {pipeline_mode = #tpu.pipeline_mode<synchronous>, transform_indices = @transform_1, window_bounds = array<i64: 16, 32>}, {transform_indices = @transform_2, window_bounds = array<i64: 1, 1, 16>}, {pipeline_mode = #tpu.pipeline_mode<synchronous>, transform_indices = @transform_3, window_bounds = array<i64: 16, 16>}, {pipeline_mode = #tpu.pipeline_mode<synchronous>, transform_indices = @transform_4, window_bounds = array<i64: 4, 16>}, {pipeline_mode = #tpu.pipeline_mode<synchronous>, transform_indices = @transform_5, window_bounds = array<i64: 16, 16>}, {transform_indices = @transform_6, window_bounds = array<i64: 1, 64, 16>}]} {
    %c0 = arith.constant 0 : index
    %c0_0 = arith.constant 0 : index
    %0 = vector.load %arg2[%c0, %c0_0] : memref<16x32xf32, #tpu.memory_space<vmem>>, vector<16x32xf32>
    %c0_1 = arith.constant 0 : index
    %c0_2 = arith.constant 0 : index
    %c0_3 = arith.constant 0 : index
    %1 = vector.load %arg3[%c0_1, %c0_2, %c0_3] : memref<1x1x16xf32, #tpu.memory_space<vmem>>, vector<1x1x16xf32>
    %2 = vector.shape_cast %1 : vector<1x1x16xf32> to vector<1x16xf32>
    %c0_4 = arith.constant 0 : index
    %c0_5 = arith.constant 0 : index
    %3 = vector.load %arg4[%c0_4, %c0_5] : memref<16x16xf32, #tpu.memory_space<vmem>>, vector<16x16xf32>
    %c0_6 = arith.constant 0 : index
    %c0_7 = arith.constant 0 : index
    %4 = vector.load %arg5[%c0_6, %c0_7] : memref<4x16xf32, #tpu.memory_space<vmem>>, vector<4x16xf32>
    %c0_8 = arith.constant 0 : index
    %c0_9 = arith.constant 0 : index
    %5 = vector.load %arg6[%c0_8, %c0_9] : memref<16x16xf32, #tpu.memory_space<vmem>>, vector<16x16xf32>
    %c0_10 = arith.constant 0 : index
    %c0_11 = arith.constant 0 : index
    %c0_12 = arith.constant 0 : index
    %6 = vector.load %arg1[%c0_10, %c0_11, %c0_12] : memref<1x64x16xf32, #tpu.memory_space<vmem>>, vector<1x64x16xf32>
    %7 = vector.shape_cast %6 : vector<1x64x16xf32> to vector<64x16xf32>
    %cst = arith.constant dense<0.000000e+00> : vector<64x32xf32>
    %8 = tpu.matmul %7, %0, %cst {dimension_numbers = #tpu.dot_dimension_numbers<[1], [0], [0], [1], [0, 0, 1, 1], [], []>} : vector<64x16xf32>, vector<16x32xf32>, vector<64x32xf32> -> vector<64x32xf32>
    %9 = vector.extract_strided_slice %8 {offsets = [0, 0], sizes = [64, 16], strides = [1, 1]} : vector<64x32xf32> to vector<64x16xf32>
    %10 = vector.extract_strided_slice %8 {offsets = [0, 16], sizes = [64, 16], strides = [1, 1]} : vector<64x32xf32> to vector<64x16xf32>
    %11 = vector.extract_strided_slice %4 {offsets = [0, 0], sizes = [1, 16], strides = [1, 1]} : vector<4x16xf32> to vector<1x16xf32>
    %12 = vector.extract_strided_slice %4 {offsets = [1, 0], sizes = [1, 16], strides = [1, 1]} : vector<4x16xf32> to vector<1x16xf32>
    %cst_13 = arith.constant dense<0.000000e+00> : vector<16xf32>
    %13 = vector.multi_reduction <add>, %9, %cst_13 [0] : vector<64x16xf32> to vector<16xf32>
    %14 = vector.shape_cast %13 : vector<16xf32> to vector<1x16xf32>
    %cst_14 = arith.constant dense<0.000000e+00> : vector<1x16xf32>
    %15 = tpu.matmul %14, %3, %cst_14 {dimension_numbers = #tpu.dot_dimension_numbers<[1], [0], [0], [1], [0, 0, 1, 1], [], []>} : vector<1x16xf32>, vector<16x16xf32>, vector<1x16xf32> -> vector<1x16xf32>
    %cst_15 = arith.constant 1.562500e-02 : f32
    %16 = vector.broadcast %cst_15 : f32 to vector<1x16xf32>
    %17 = arith.mulf %15, %16 : vector<1x16xf32>
    %18 = arith.mulf %9, %9 : vector<64x16xf32>
    %cst_16 = arith.constant dense<0.000000e+00> : vector<16xf32>
    %19 = vector.multi_reduction <add>, %18, %cst_16 [0] : vector<64x16xf32> to vector<16xf32>
    %20 = vector.shape_cast %19 : vector<16xf32> to vector<1x16xf32>
    %cst_17 = arith.constant dense<0.000000e+00> : vector<1x16xf32>
    %21 = tpu.matmul %20, %3, %cst_17 {dimension_numbers = #tpu.dot_dimension_numbers<[1], [0], [0], [1], [0, 0, 1, 1], [], []>} : vector<1x16xf32>, vector<16x16xf32>, vector<1x16xf32> -> vector<1x16xf32>
    %cst_18 = arith.constant 1.562500e-02 : f32
    %22 = vector.broadcast %cst_18 : f32 to vector<1x16xf32>
    %23 = arith.mulf %21, %22 : vector<1x16xf32>
    %24 = arith.mulf %17, %17 : vector<1x16xf32>
    %25 = arith.subf %23, %24 : vector<1x16xf32>
    %26 = vector.broadcast %17 : vector<1x16xf32> to vector<64x16xf32>
    %27 = arith.subf %9, %26 : vector<64x16xf32>
    %cst_19 = arith.constant 9.99999974E-6 : f32
    %28 = vector.broadcast %cst_19 : f32 to vector<1x16xf32>
    %29 = arith.addf %25, %28 : vector<1x16xf32>
    %30 = math.rsqrt %29 : vector<1x16xf32>
    %31 = vector.broadcast %30 : vector<1x16xf32> to vector<64x16xf32>
    %32 = arith.mulf %27, %31 : vector<64x16xf32>
    %33 = vector.broadcast %11 : vector<1x16xf32> to vector<64x16xf32>
    %34 = arith.mulf %32, %33 : vector<64x16xf32>
    %35 = vector.broadcast %12 : vector<1x16xf32> to vector<64x16xf32>
    %36 = arith.addf %34, %35 : vector<64x16xf32>
    %37 = arith.negf %36 : vector<64x16xf32>
    %38 = math.exp %37 : vector<64x16xf32>
    %cst_20 = arith.constant 1.000000e+00 : f32
    %39 = vector.broadcast %cst_20 : f32 to vector<64x16xf32>
    %40 = arith.addf %39, %38 : vector<64x16xf32>
    %41 = arith.divf %39, %40 : vector<64x16xf32>
    %42 = arith.mulf %36, %41 : vector<64x16xf32>
    %43 = vector.broadcast %2 : vector<1x16xf32> to vector<64x16xf32>
    %44 = arith.addf %42, %43 : vector<64x16xf32>
    %cst_21 = arith.constant dense<0.000000e+00> : vector<64x16xf32>
    %45 = tpu.matmul %44, %5, %cst_21 {dimension_numbers = #tpu.dot_dimension_numbers<[1], [0], [0], [1], [0, 0, 1, 1], [], []>} : vector<64x16xf32>, vector<16x16xf32>, vector<64x16xf32> -> vector<64x16xf32>
    %46 = vector.extract_strided_slice %4 {offsets = [2, 0], sizes = [1, 16], strides = [1, 1]} : vector<4x16xf32> to vector<1x16xf32>
    %47 = vector.extract_strided_slice %4 {offsets = [3, 0], sizes = [1, 16], strides = [1, 1]} : vector<4x16xf32> to vector<1x16xf32>
    %cst_22 = arith.constant dense<0.000000e+00> : vector<16xf32>
    %48 = vector.multi_reduction <add>, %45, %cst_22 [0] : vector<64x16xf32> to vector<16xf32>
    %49 = vector.shape_cast %48 : vector<16xf32> to vector<1x16xf32>
    %cst_23 = arith.constant dense<0.000000e+00> : vector<1x16xf32>
    %50 = tpu.matmul %49, %3, %cst_23 {dimension_numbers = #tpu.dot_dimension_numbers<[1], [0], [0], [1], [0, 0, 1, 1], [], []>} : vector<1x16xf32>, vector<16x16xf32>, vector<1x16xf32> -> vector<1x16xf32>
    %cst_24 = arith.constant 1.562500e-02 : f32
    %51 = vector.broadcast %cst_24 : f32 to vector<1x16xf32>
    %52 = arith.mulf %50, %51 : vector<1x16xf32>
    %53 = arith.mulf %45, %45 : vector<64x16xf32>
    %cst_25 = arith.constant dense<0.000000e+00> : vector<16xf32>
    %54 = vector.multi_reduction <add>, %53, %cst_25 [0] : vector<64x16xf32> to vector<16xf32>
    %55 = vector.shape_cast %54 : vector<16xf32> to vector<1x16xf32>
    %cst_26 = arith.constant dense<0.000000e+00> : vector<1x16xf32>
    %56 = tpu.matmul %55, %3, %cst_26 {dimension_numbers = #tpu.dot_dimension_numbers<[1], [0], [0], [1], [0, 0, 1, 1], [], []>} : vector<1x16xf32>, vector<16x16xf32>, vector<1x16xf32> -> vector<1x16xf32>
    %cst_27 = arith.constant 1.562500e-02 : f32
    %57 = vector.broadcast %cst_27 : f32 to vector<1x16xf32>
    %58 = arith.mulf %56, %57 : vector<1x16xf32>
    %59 = arith.mulf %52, %52 : vector<1x16xf32>
    %60 = arith.subf %58, %59 : vector<1x16xf32>
    %61 = vector.broadcast %52 : vector<1x16xf32> to vector<64x16xf32>
    %62 = arith.subf %45, %61 : vector<64x16xf32>
    %cst_28 = arith.constant 9.99999974E-6 : f32
    %63 = vector.broadcast %cst_28 : f32 to vector<1x16xf32>
    %64 = arith.addf %60, %63 : vector<1x16xf32>
    %65 = math.rsqrt %64 : vector<1x16xf32>
    %66 = vector.broadcast %65 : vector<1x16xf32> to vector<64x16xf32>
    %67 = arith.mulf %62, %66 : vector<64x16xf32>
    %68 = vector.broadcast %46 : vector<1x16xf32> to vector<64x16xf32>
    %69 = arith.mulf %67, %68 : vector<64x16xf32>
    %70 = vector.broadcast %47 : vector<1x16xf32> to vector<64x16xf32>
    %71 = arith.addf %69, %70 : vector<64x16xf32>
    %72 = arith.negf %71 : vector<64x16xf32>
    %73 = math.exp %72 : vector<64x16xf32>
    %cst_29 = arith.constant 1.000000e+00 : f32
    %74 = vector.broadcast %cst_29 : f32 to vector<64x16xf32>
    %75 = arith.addf %74, %73 : vector<64x16xf32>
    %76 = arith.divf %74, %75 : vector<64x16xf32>
    %77 = arith.mulf %71, %76 : vector<64x16xf32>
    %78 = arith.addf %77, %10 : vector<64x16xf32>
    %c0_30 = arith.constant 0 : index
    %c0_31 = arith.constant 0 : index
    %c0_32 = arith.constant 0 : index
    %79 = vector.load %arg7[%c0_30, %c0_31, %c0_32] : memref<1x64x16xf32, #tpu.memory_space<vmem>>, vector<1x64x16xf32>
    %80 = vector.shape_cast %79 : vector<1x64x16xf32> to vector<64x16xf32>
    %81 = vector.shape_cast %78 : vector<64x16xf32> to vector<1x64x16xf32>
    tpu.vector_store %arg7[%c0_30, %c0_31, %c0_32], %81 {strides = array<i32>} : memref<1x64x16xf32, #tpu.memory_space<vmem>>, vector<1x64x16xf32>,
    return
  }
  func.func @transform_0(%arg0: i32) -> (i32, i32, i32) {
    %c0_i32 = arith.constant 0 : i32
    %c0_i32_0 = arith.constant 0 : i32
    %c0_i32_1 = arith.constant 0 : i32
    return %arg0, %c0_i32, %c0_i32_0 : i32, i32, i32
  }
  func.func @transform_1(%arg0: i32) -> (i32, i32) {
    %c0_i32 = arith.constant 0 : i32
    %c0_i32_0 = arith.constant 0 : i32
    %c0_i32_1 = arith.constant 0 : i32
    return %c0_i32, %c0_i32_0 : i32, i32
  }
  func.func @transform_2(%arg0: i32) -> (i32, i32, i32) {
    %c0_i32 = arith.constant 0 : i32
    %c0_i32_0 = arith.constant 0 : i32
    %c0_i32_1 = arith.constant 0 : i32
    return %arg0, %c0_i32, %c0_i32_0 : i32, i32, i32
  }
  func.func @transform_3(%arg0: i32) -> (i32, i32) {
    %c0_i32 = arith.constant 0 : i32
    %c0_i32_0 = arith.constant 0 : i32
    %c0_i32_1 = arith.constant 0 : i32
    return %c0_i32, %c0_i32_0 : i32, i32
  }
  func.func @transform_4(%arg0: i32) -> (i32, i32) {
    %c0_i32 = arith.constant 0 : i32
    %c0_i32_0 = arith.constant 0 : i32
    %c0_i32_1 = arith.constant 0 : i32
    return %c0_i32, %c0_i32_0 : i32, i32
  }
  func.func @transform_5(%arg0: i32) -> (i32, i32) {
    %c0_i32 = arith.constant 0 : i32
    %c0_i32_0 = arith.constant 0 : i32
    %c0_i32_1 = arith.constant 0 : i32
    return %c0_i32, %c0_i32_0 : i32, i32
  }
  func.func @transform_6(%arg0: i32) -> (i32, i32, i32) {
    %c0_i32 = arith.constant 0 : i32
    %c0_i32_0 = arith.constant 0 : i32
    %c0_i32_1 = arith.constant 0 : i32
    return %arg0, %c0_i32, %c0_i32_0 : i32, i32, i32
  }
}

module attributes {stable_mosaic.version = 11 : i64} {
  func.func @kernel(%arg0: i32, %arg1: memref<1x16x64xf32, #tpu.memory_space<vmem>>, %arg2: memref<64x64xf32, #tpu.memory_space<vmem>>, %arg3: memref<1x1x32xf32, #tpu.memory_space<vmem>>, %arg4: memref<32x32xf32, #tpu.memory_space<vmem>>, %arg5: memref<7x32xf32, #tpu.memory_space<vmem>>, %arg6: memref<32x32xf32, #tpu.memory_space<vmem>>, %arg7: memref<32x384xf32, #tpu.memory_space<vmem>>, %arg8: memref<128x32xf32, #tpu.memory_space<vmem>>, %arg9: memref<1x16x32xf32, #tpu.memory_space<vmem>>) attributes {dimension_semantics = [#tpu.dimension_semantics<parallel>], iteration_bounds = array<i64: 2>, scalar_prefetch = 0 : i64, scratch_operands = 0 : i64, tpu.core_type = #tpu.core_type<tc>, window_params = [{transform_indices = @transform_0, window_bounds = array<i64: 1, 16, 64>}, {pipeline_mode = #tpu.pipeline_mode<synchronous>, transform_indices = @transform_1, window_bounds = array<i64: 64, 64>}, {transform_indices = @transform_2, window_bounds = array<i64: 1, 1, 32>}, {pipeline_mode = #tpu.pipeline_mode<synchronous>, transform_indices = @transform_3, window_bounds = array<i64: 32, 32>}, {pipeline_mode = #tpu.pipeline_mode<synchronous>, transform_indices = @transform_4, window_bounds = array<i64: 7, 32>}, {pipeline_mode = #tpu.pipeline_mode<synchronous>, transform_indices = @transform_5, window_bounds = array<i64: 32, 32>}, {pipeline_mode = #tpu.pipeline_mode<synchronous>, transform_indices = @transform_6, window_bounds = array<i64: 32, 384>}, {pipeline_mode = #tpu.pipeline_mode<synchronous>, transform_indices = @transform_7, window_bounds = array<i64: 128, 32>}, {transform_indices = @transform_8, window_bounds = array<i64: 1, 16, 32>}]} {
    %c0 = arith.constant 0 : index
    %c0_0 = arith.constant 0 : index
    %0 = vector.load %arg2[%c0, %c0_0] : memref<64x64xf32, #tpu.memory_space<vmem>>, vector<64x64xf32>
    %c0_1 = arith.constant 0 : index
    %c0_2 = arith.constant 0 : index
    %c0_3 = arith.constant 0 : index
    %1 = vector.load %arg3[%c0_1, %c0_2, %c0_3] : memref<1x1x32xf32, #tpu.memory_space<vmem>>, vector<1x1x32xf32>
    %2 = vector.shape_cast %1 : vector<1x1x32xf32> to vector<1x32xf32>
    %c0_4 = arith.constant 0 : index
    %c0_5 = arith.constant 0 : index
    %3 = vector.load %arg4[%c0_4, %c0_5] : memref<32x32xf32, #tpu.memory_space<vmem>>, vector<32x32xf32>
    %c0_6 = arith.constant 0 : index
    %c0_7 = arith.constant 0 : index
    %4 = vector.load %arg5[%c0_6, %c0_7] : memref<7x32xf32, #tpu.memory_space<vmem>>, vector<7x32xf32>
    %c0_8 = arith.constant 0 : index
    %c0_9 = arith.constant 0 : index
    %5 = vector.load %arg6[%c0_8, %c0_9] : memref<32x32xf32, #tpu.memory_space<vmem>>, vector<32x32xf32>
    %c0_10 = arith.constant 0 : index
    %c0_11 = arith.constant 0 : index
    %6 = vector.load %arg7[%c0_10, %c0_11] : memref<32x384xf32, #tpu.memory_space<vmem>>, vector<32x384xf32>
    %c0_12 = arith.constant 0 : index
    %c0_13 = arith.constant 0 : index
    %7 = vector.load %arg8[%c0_12, %c0_13] : memref<128x32xf32, #tpu.memory_space<vmem>>, vector<128x32xf32>
    %c0_14 = arith.constant 0 : index
    %c0_15 = arith.constant 0 : index
    %c0_16 = arith.constant 0 : index
    %8 = vector.load %arg1[%c0_14, %c0_15, %c0_16] : memref<1x16x64xf32, #tpu.memory_space<vmem>>, vector<1x16x64xf32>
    %9 = vector.shape_cast %8 : vector<1x16x64xf32> to vector<16x64xf32>
    %cst = arith.constant dense<0.000000e+00> : vector<16x64xf32>
    %10 = tpu.matmul %9, %0, %cst {dimension_numbers = #tpu.dot_dimension_numbers<[1], [0], [0], [1], [0, 0, 1, 1], [], []>} : vector<16x64xf32>, vector<64x64xf32>, vector<16x64xf32> -> vector<16x64xf32>
    %11 = vector.extract_strided_slice %10 {offsets = [0, 0], sizes = [16, 32], strides = [1, 1]} : vector<16x64xf32> to vector<16x32xf32>
    %12 = vector.extract_strided_slice %10 {offsets = [0, 32], sizes = [16, 32], strides = [1, 1]} : vector<16x64xf32> to vector<16x32xf32>
    %13 = vector.extract_strided_slice %4 {offsets = [0, 0], sizes = [1, 32], strides = [1, 1]} : vector<7x32xf32> to vector<1x32xf32>
    %14 = vector.extract_strided_slice %4 {offsets = [1, 0], sizes = [1, 32], strides = [1, 1]} : vector<7x32xf32> to vector<1x32xf32>
    %cst_17 = arith.constant dense<0.000000e+00> : vector<32xf32>
    %15 = vector.multi_reduction <add>, %11, %cst_17 [0] : vector<16x32xf32> to vector<32xf32>
    %16 = vector.shape_cast %15 : vector<32xf32> to vector<1x32xf32>
    %cst_18 = arith.constant dense<0.000000e+00> : vector<1x32xf32>
    %17 = tpu.matmul %16, %3, %cst_18 {dimension_numbers = #tpu.dot_dimension_numbers<[1], [0], [0], [1], [0, 0, 1, 1], [], []>} : vector<1x32xf32>, vector<32x32xf32>, vector<1x32xf32> -> vector<1x32xf32>
    %cst_19 = arith.constant 6.250000e-02 : f32
    %18 = vector.broadcast %cst_19 : f32 to vector<1x32xf32>
    %19 = arith.mulf %17, %18 : vector<1x32xf32>
    %20 = arith.mulf %11, %11 : vector<16x32xf32>
    %cst_20 = arith.constant dense<0.000000e+00> : vector<32xf32>
    %21 = vector.multi_reduction <add>, %20, %cst_20 [0] : vector<16x32xf32> to vector<32xf32>
    %22 = vector.shape_cast %21 : vector<32xf32> to vector<1x32xf32>
    %cst_21 = arith.constant dense<0.000000e+00> : vector<1x32xf32>
    %23 = tpu.matmul %22, %3, %cst_21 {dimension_numbers = #tpu.dot_dimension_numbers<[1], [0], [0], [1], [0, 0, 1, 1], [], []>} : vector<1x32xf32>, vector<32x32xf32>, vector<1x32xf32> -> vector<1x32xf32>
    %cst_22 = arith.constant 6.250000e-02 : f32
    %24 = vector.broadcast %cst_22 : f32 to vector<1x32xf32>
    %25 = arith.mulf %23, %24 : vector<1x32xf32>
    %26 = arith.mulf %19, %19 : vector<1x32xf32>
    %27 = arith.subf %25, %26 : vector<1x32xf32>
    %28 = vector.broadcast %19 : vector<1x32xf32> to vector<16x32xf32>
    %29 = arith.subf %11, %28 : vector<16x32xf32>
    %cst_23 = arith.constant 9.99999974E-6 : f32
    %30 = vector.broadcast %cst_23 : f32 to vector<1x32xf32>
    %31 = arith.addf %27, %30 : vector<1x32xf32>
    %32 = math.rsqrt %31 : vector<1x32xf32>
    %33 = vector.broadcast %32 : vector<1x32xf32> to vector<16x32xf32>
    %34 = arith.mulf %29, %33 : vector<16x32xf32>
    %35 = vector.broadcast %13 : vector<1x32xf32> to vector<16x32xf32>
    %36 = arith.mulf %34, %35 : vector<16x32xf32>
    %37 = vector.broadcast %14 : vector<1x32xf32> to vector<16x32xf32>
    %38 = arith.addf %36, %37 : vector<16x32xf32>
    %39 = arith.negf %38 : vector<16x32xf32>
    %40 = math.exp %39 : vector<16x32xf32>
    %cst_24 = arith.constant 1.000000e+00 : f32
    %41 = vector.broadcast %cst_24 : f32 to vector<16x32xf32>
    %42 = arith.addf %41, %40 : vector<16x32xf32>
    %43 = arith.divf %41, %42 : vector<16x32xf32>
    %44 = arith.mulf %38, %43 : vector<16x32xf32>
    %45 = vector.broadcast %2 : vector<1x32xf32> to vector<16x32xf32>
    %46 = arith.addf %44, %45 : vector<16x32xf32>
    %cst_25 = arith.constant dense<0.000000e+00> : vector<16x32xf32>
    %47 = tpu.matmul %46, %5, %cst_25 {dimension_numbers = #tpu.dot_dimension_numbers<[1], [0], [0], [1], [0, 0, 1, 1], [], []>} : vector<16x32xf32>, vector<32x32xf32>, vector<16x32xf32> -> vector<16x32xf32>
    %48 = vector.extract_strided_slice %4 {offsets = [2, 0], sizes = [1, 32], strides = [1, 1]} : vector<7x32xf32> to vector<1x32xf32>
    %49 = vector.extract_strided_slice %4 {offsets = [3, 0], sizes = [1, 32], strides = [1, 1]} : vector<7x32xf32> to vector<1x32xf32>
    %cst_26 = arith.constant dense<0.000000e+00> : vector<32xf32>
    %50 = vector.multi_reduction <add>, %47, %cst_26 [0] : vector<16x32xf32> to vector<32xf32>
    %51 = vector.shape_cast %50 : vector<32xf32> to vector<1x32xf32>
    %cst_27 = arith.constant dense<0.000000e+00> : vector<1x32xf32>
    %52 = tpu.matmul %51, %3, %cst_27 {dimension_numbers = #tpu.dot_dimension_numbers<[1], [0], [0], [1], [0, 0, 1, 1], [], []>} : vector<1x32xf32>, vector<32x32xf32>, vector<1x32xf32> -> vector<1x32xf32>
    %cst_28 = arith.constant 6.250000e-02 : f32
    %53 = vector.broadcast %cst_28 : f32 to vector<1x32xf32>
    %54 = arith.mulf %52, %53 : vector<1x32xf32>
    %55 = arith.mulf %47, %47 : vector<16x32xf32>
    %cst_29 = arith.constant dense<0.000000e+00> : vector<32xf32>
    %56 = vector.multi_reduction <add>, %55, %cst_29 [0] : vector<16x32xf32> to vector<32xf32>
    %57 = vector.shape_cast %56 : vector<32xf32> to vector<1x32xf32>
    %cst_30 = arith.constant dense<0.000000e+00> : vector<1x32xf32>
    %58 = tpu.matmul %57, %3, %cst_30 {dimension_numbers = #tpu.dot_dimension_numbers<[1], [0], [0], [1], [0, 0, 1, 1], [], []>} : vector<1x32xf32>, vector<32x32xf32>, vector<1x32xf32> -> vector<1x32xf32>
    %cst_31 = arith.constant 6.250000e-02 : f32
    %59 = vector.broadcast %cst_31 : f32 to vector<1x32xf32>
    %60 = arith.mulf %58, %59 : vector<1x32xf32>
    %61 = arith.mulf %54, %54 : vector<1x32xf32>
    %62 = arith.subf %60, %61 : vector<1x32xf32>
    %63 = vector.broadcast %54 : vector<1x32xf32> to vector<16x32xf32>
    %64 = arith.subf %47, %63 : vector<16x32xf32>
    %cst_32 = arith.constant 9.99999974E-6 : f32
    %65 = vector.broadcast %cst_32 : f32 to vector<1x32xf32>
    %66 = arith.addf %62, %65 : vector<1x32xf32>
    %67 = math.rsqrt %66 : vector<1x32xf32>
    %68 = vector.broadcast %67 : vector<1x32xf32> to vector<16x32xf32>
    %69 = arith.mulf %64, %68 : vector<16x32xf32>
    %70 = vector.broadcast %48 : vector<1x32xf32> to vector<16x32xf32>
    %71 = arith.mulf %69, %70 : vector<16x32xf32>
    %72 = vector.broadcast %49 : vector<1x32xf32> to vector<16x32xf32>
    %73 = arith.addf %71, %72 : vector<16x32xf32>
    %74 = arith.negf %73 : vector<16x32xf32>
    %75 = math.exp %74 : vector<16x32xf32>
    %cst_33 = arith.constant 1.000000e+00 : f32
    %76 = vector.broadcast %cst_33 : f32 to vector<16x32xf32>
    %77 = arith.addf %76, %75 : vector<16x32xf32>
    %78 = arith.divf %76, %77 : vector<16x32xf32>
    %79 = arith.mulf %73, %78 : vector<16x32xf32>
    %80 = arith.addf %79, %12 : vector<16x32xf32>
    %81 = vector.extract_strided_slice %4 {offsets = [4, 0], sizes = [1, 32], strides = [1, 1]} : vector<7x32xf32> to vector<1x32xf32>
    %82 = vector.extract_strided_slice %4 {offsets = [5, 0], sizes = [1, 32], strides = [1, 1]} : vector<7x32xf32> to vector<1x32xf32>
    %cst_34 = arith.constant dense<0.000000e+00> : vector<32xf32>
    %83 = vector.multi_reduction <add>, %80, %cst_34 [0] : vector<16x32xf32> to vector<32xf32>
    %84 = vector.shape_cast %83 : vector<32xf32> to vector<1x32xf32>
    %cst_35 = arith.constant dense<0.000000e+00> : vector<1x32xf32>
    %85 = tpu.matmul %84, %3, %cst_35 {dimension_numbers = #tpu.dot_dimension_numbers<[1], [0], [0], [1], [0, 0, 1, 1], [], []>} : vector<1x32xf32>, vector<32x32xf32>, vector<1x32xf32> -> vector<1x32xf32>
    %cst_36 = arith.constant 6.250000e-02 : f32
    %86 = vector.broadcast %cst_36 : f32 to vector<1x32xf32>
    %87 = arith.mulf %85, %86 : vector<1x32xf32>
    %88 = arith.mulf %80, %80 : vector<16x32xf32>
    %cst_37 = arith.constant dense<0.000000e+00> : vector<32xf32>
    %89 = vector.multi_reduction <add>, %88, %cst_37 [0] : vector<16x32xf32> to vector<32xf32>
    %90 = vector.shape_cast %89 : vector<32xf32> to vector<1x32xf32>
    %cst_38 = arith.constant dense<0.000000e+00> : vector<1x32xf32>
    %91 = tpu.matmul %90, %3, %cst_38 {dimension_numbers = #tpu.dot_dimension_numbers<[1], [0], [0], [1], [0, 0, 1, 1], [], []>} : vector<1x32xf32>, vector<32x32xf32>, vector<1x32xf32> -> vector<1x32xf32>
    %cst_39 = arith.constant 6.250000e-02 : f32
    %92 = vector.broadcast %cst_39 : f32 to vector<1x32xf32>
    %93 = arith.mulf %91, %92 : vector<1x32xf32>
    %94 = arith.mulf %87, %87 : vector<1x32xf32>
    %95 = arith.subf %93, %94 : vector<1x32xf32>
    %96 = vector.broadcast %87 : vector<1x32xf32> to vector<16x32xf32>
    %97 = arith.subf %80, %96 : vector<16x32xf32>
    %cst_40 = arith.constant 9.99999974E-6 : f32
    %98 = vector.broadcast %cst_40 : f32 to vector<1x32xf32>
    %99 = arith.addf %95, %98 : vector<1x32xf32>
    %100 = math.rsqrt %99 : vector<1x32xf32>
    %101 = vector.broadcast %100 : vector<1x32xf32> to vector<16x32xf32>
    %102 = arith.mulf %97, %101 : vector<16x32xf32>
    %103 = vector.broadcast %81 : vector<1x32xf32> to vector<16x32xf32>
    %104 = arith.mulf %102, %103 : vector<16x32xf32>
    %105 = vector.broadcast %82 : vector<1x32xf32> to vector<16x32xf32>
    %106 = arith.addf %104, %105 : vector<16x32xf32>
    %cst_41 = arith.constant dense<0.000000e+00> : vector<16x384xf32>
    %107 = tpu.matmul %106, %6, %cst_41 {dimension_numbers = #tpu.dot_dimension_numbers<[1], [0], [0], [1], [0, 0, 1, 1], [], []>} : vector<16x32xf32>, vector<32x384xf32>, vector<16x384xf32> -> vector<16x384xf32>
    %108 = vector.extract_strided_slice %107 {offsets = [0, 0], sizes = [16, 32], strides = [1, 1]} : vector<16x384xf32> to vector<16x32xf32>
    %cst_42 = arith.constant 0.176776692 : f32
    %109 = vector.broadcast %cst_42 : f32 to vector<16x32xf32>
    %110 = arith.mulf %108, %109 : vector<16x32xf32>
    %111 = vector.extract_strided_slice %107 {offsets = [0, 128], sizes = [16, 32], strides = [1, 1]} : vector<16x384xf32> to vector<16x32xf32>
    %112 = vector.extract_strided_slice %107 {offsets = [0, 256], sizes = [16, 32], strides = [1, 1]} : vector<16x384xf32> to vector<16x32xf32>
    %cst_43 = arith.constant dense<0.000000e+00> : vector<16x16xf32>
    %113 = tpu.matmul %110, %111, %cst_43 {dimension_numbers = #tpu.dot_dimension_numbers<[1], [1], [0], [0], [0, 0, 1, 0], [], []>} : vector<16x32xf32>, vector<16x32xf32>, vector<16x16xf32> -> vector<16x16xf32>
    %cst_44 = arith.constant dense<0xFF800000> : vector<16xf32>
    %114 = vector.multi_reduction <maximumf>, %113, %cst_44 [1] : vector<16x16xf32> to vector<16xf32>
    %115 = vector.shape_cast %114 : vector<16xf32> to vector<16x1xf32>
    %116 = vector.broadcast %115 : vector<16x1xf32> to vector<16x16xf32>
    %117 = arith.subf %113, %116 : vector<16x16xf32>
    %118 = math.exp %117 : vector<16x16xf32>
    %cst_45 = arith.constant dense<0.000000e+00> : vector<16xf32>
    %119 = vector.multi_reduction <add>, %118, %cst_45 [1] : vector<16x16xf32> to vector<16xf32>
    %120 = vector.shape_cast %119 : vector<16xf32> to vector<16x1xf32>
    %121 = vector.broadcast %120 : vector<16x1xf32> to vector<16x16xf32>
    %122 = arith.divf %118, %121 : vector<16x16xf32>
    %cst_46 = arith.constant dense<0.000000e+00> : vector<16x32xf32>
    %123 = tpu.matmul %122, %112, %cst_46 {dimension_numbers = #tpu.dot_dimension_numbers<[1], [0], [0], [1], [0, 0, 1, 1], [], []>} : vector<16x16xf32>, vector<16x32xf32>, vector<16x32xf32> -> vector<16x32xf32>
    %124 = vector.extract_strided_slice %107 {offsets = [0, 32], sizes = [16, 32], strides = [1, 1]} : vector<16x384xf32> to vector<16x32xf32>
    %cst_47 = arith.constant 0.176776692 : f32
    %125 = vector.broadcast %cst_47 : f32 to vector<16x32xf32>
    %126 = arith.mulf %124, %125 : vector<16x32xf32>
    %127 = vector.extract_strided_slice %107 {offsets = [0, 160], sizes = [16, 32], strides = [1, 1]} : vector<16x384xf32> to vector<16x32xf32>
    %128 = vector.extract_strided_slice %107 {offsets = [0, 288], sizes = [16, 32], strides = [1, 1]} : vector<16x384xf32> to vector<16x32xf32>
    %cst_48 = arith.constant dense<0.000000e+00> : vector<16x16xf32>
    %129 = tpu.matmul %126, %127, %cst_48 {dimension_numbers = #tpu.dot_dimension_numbers<[1], [1], [0], [0], [0, 0, 1, 0], [], []>} : vector<16x32xf32>, vector<16x32xf32>, vector<16x16xf32> -> vector<16x16xf32>
    %cst_49 = arith.constant dense<0xFF800000> : vector<16xf32>
    %130 = vector.multi_reduction <maximumf>, %129, %cst_49 [1] : vector<16x16xf32> to vector<16xf32>
    %131 = vector.shape_cast %130 : vector<16xf32> to vector<16x1xf32>
    %132 = vector.broadcast %131 : vector<16x1xf32> to vector<16x16xf32>
    %133 = arith.subf %129, %132 : vector<16x16xf32>
    %134 = math.exp %133 : vector<16x16xf32>
    %cst_50 = arith.constant dense<0.000000e+00> : vector<16xf32>
    %135 = vector.multi_reduction <add>, %134, %cst_50 [1] : vector<16x16xf32> to vector<16xf32>
    %136 = vector.shape_cast %135 : vector<16xf32> to vector<16x1xf32>
    %137 = vector.broadcast %136 : vector<16x1xf32> to vector<16x16xf32>
    %138 = arith.divf %134, %137 : vector<16x16xf32>
    %cst_51 = arith.constant dense<0.000000e+00> : vector<16x32xf32>
    %139 = tpu.matmul %138, %128, %cst_51 {dimension_numbers = #tpu.dot_dimension_numbers<[1], [0], [0], [1], [0, 0, 1, 1], [], []>} : vector<16x16xf32>, vector<16x32xf32>, vector<16x32xf32> -> vector<16x32xf32>
    %140 = vector.extract_strided_slice %107 {offsets = [0, 64], sizes = [16, 32], strides = [1, 1]} : vector<16x384xf32> to vector<16x32xf32>
    %cst_52 = arith.constant 0.176776692 : f32
    %141 = vector.broadcast %cst_52 : f32 to vector<16x32xf32>
    %142 = arith.mulf %140, %141 : vector<16x32xf32>
    %143 = vector.extract_strided_slice %107 {offsets = [0, 192], sizes = [16, 32], strides = [1, 1]} : vector<16x384xf32> to vector<16x32xf32>
    %144 = vector.extract_strided_slice %107 {offsets = [0, 320], sizes = [16, 32], strides = [1, 1]} : vector<16x384xf32> to vector<16x32xf32>
    %cst_53 = arith.constant dense<0.000000e+00> : vector<16x16xf32>
    %145 = tpu.matmul %142, %143, %cst_53 {dimension_numbers = #tpu.dot_dimension_numbers<[1], [1], [0], [0], [0, 0, 1, 0], [], []>} : vector<16x32xf32>, vector<16x32xf32>, vector<16x16xf32> -> vector<16x16xf32>
    %cst_54 = arith.constant dense<0xFF800000> : vector<16xf32>
    %146 = vector.multi_reduction <maximumf>, %145, %cst_54 [1] : vector<16x16xf32> to vector<16xf32>
    %147 = vector.shape_cast %146 : vector<16xf32> to vector<16x1xf32>
    %148 = vector.broadcast %147 : vector<16x1xf32> to vector<16x16xf32>
    %149 = arith.subf %145, %148 : vector<16x16xf32>
    %150 = math.exp %149 : vector<16x16xf32>
    %cst_55 = arith.constant dense<0.000000e+00> : vector<16xf32>
    %151 = vector.multi_reduction <add>, %150, %cst_55 [1] : vector<16x16xf32> to vector<16xf32>
    %152 = vector.shape_cast %151 : vector<16xf32> to vector<16x1xf32>
    %153 = vector.broadcast %152 : vector<16x1xf32> to vector<16x16xf32>
    %154 = arith.divf %150, %153 : vector<16x16xf32>
    %cst_56 = arith.constant dense<0.000000e+00> : vector<16x32xf32>
    %155 = tpu.matmul %154, %144, %cst_56 {dimension_numbers = #tpu.dot_dimension_numbers<[1], [0], [0], [1], [0, 0, 1, 1], [], []>} : vector<16x16xf32>, vector<16x32xf32>, vector<16x32xf32> -> vector<16x32xf32>
    %156 = vector.extract_strided_slice %107 {offsets = [0, 96], sizes = [16, 32], strides = [1, 1]} : vector<16x384xf32> to vector<16x32xf32>
    %cst_57 = arith.constant 0.176776692 : f32
    %157 = vector.broadcast %cst_57 : f32 to vector<16x32xf32>
    %158 = arith.mulf %156, %157 : vector<16x32xf32>
    %159 = vector.extract_strided_slice %107 {offsets = [0, 224], sizes = [16, 32], strides = [1, 1]} : vector<16x384xf32> to vector<16x32xf32>
    %160 = vector.extract_strided_slice %107 {offsets = [0, 352], sizes = [16, 32], strides = [1, 1]} : vector<16x384xf32> to vector<16x32xf32>
    %cst_58 = arith.constant dense<0.000000e+00> : vector<16x16xf32>
    %161 = tpu.matmul %158, %159, %cst_58 {dimension_numbers = #tpu.dot_dimension_numbers<[1], [1], [0], [0], [0, 0, 1, 0], [], []>} : vector<16x32xf32>, vector<16x32xf32>, vector<16x16xf32> -> vector<16x16xf32>
    %cst_59 = arith.constant dense<0xFF800000> : vector<16xf32>
    %162 = vector.multi_reduction <maximumf>, %161, %cst_59 [1] : vector<16x16xf32> to vector<16xf32>
    %163 = vector.shape_cast %162 : vector<16xf32> to vector<16x1xf32>
    %164 = vector.broadcast %163 : vector<16x1xf32> to vector<16x16xf32>
    %165 = arith.subf %161, %164 : vector<16x16xf32>
    %166 = math.exp %165 : vector<16x16xf32>
    %cst_60 = arith.constant dense<0.000000e+00> : vector<16xf32>
    %167 = vector.multi_reduction <add>, %166, %cst_60 [1] : vector<16x16xf32> to vector<16xf32>
    %168 = vector.shape_cast %167 : vector<16xf32> to vector<16x1xf32>
    %169 = vector.broadcast %168 : vector<16x1xf32> to vector<16x16xf32>
    %170 = arith.divf %166, %169 : vector<16x16xf32>
    %cst_61 = arith.constant dense<0.000000e+00> : vector<16x32xf32>
    %171 = tpu.matmul %170, %160, %cst_61 {dimension_numbers = #tpu.dot_dimension_numbers<[1], [0], [0], [1], [0, 0, 1, 1], [], []>} : vector<16x16xf32>, vector<16x32xf32>, vector<16x32xf32> -> vector<16x32xf32>
    %172 = tpu.concatenate %123, %139, %155, %171 in 1 : vector<16x32xf32>, vector<16x32xf32>, vector<16x32xf32>, vector<16x32xf32> -> vector<16x128xf32>
    %cst_62 = arith.constant dense<0.000000e+00> : vector<16x32xf32>
    %173 = tpu.matmul %172, %7, %cst_62 {dimension_numbers = #tpu.dot_dimension_numbers<[1], [0], [0], [1], [0, 0, 1, 1], [], []>} : vector<16x128xf32>, vector<128x32xf32>, vector<16x32xf32> -> vector<16x32xf32>
    %174 = vector.extract_strided_slice %4 {offsets = [6, 0], sizes = [1, 32], strides = [1, 1]} : vector<7x32xf32> to vector<1x32xf32>
    %175 = vector.broadcast %174 : vector<1x32xf32> to vector<16x32xf32>
    %176 = arith.addf %173, %175 : vector<16x32xf32>
    %177 = arith.addf %106, %176 : vector<16x32xf32>
    %c0_63 = arith.constant 0 : index
    %c0_64 = arith.constant 0 : index
    %c0_65 = arith.constant 0 : index
    %178 = vector.load %arg9[%c0_63, %c0_64, %c0_65] : memref<1x16x32xf32, #tpu.memory_space<vmem>>, vector<1x16x32xf32>
    %179 = vector.shape_cast %178 : vector<1x16x32xf32> to vector<16x32xf32>
    %180 = vector.shape_cast %177 : vector<16x32xf32> to vector<1x16x32xf32>
    tpu.vector_store %arg9[%c0_63, %c0_64, %c0_65], %180 {strides = array<i32>} : memref<1x16x32xf32, #tpu.memory_space<vmem>>, vector<1x16x32xf32>,
    return
  }
  func.func @transform_0(%arg0: i32) -> (i32, i32, i32) {
    %c0_i32 = arith.constant 0 : i32
    %c0_i32_0 = arith.constant 0 : i32
    %c0_i32_1 = arith.constant 0 : i32
    return %arg0, %c0_i32, %c0_i32_0 : i32, i32, i32
  }
  func.func @transform_1(%arg0: i32) -> (i32, i32) {
    %c0_i32 = arith.constant 0 : i32
    %c0_i32_0 = arith.constant 0 : i32
    %c0_i32_1 = arith.constant 0 : i32
    return %c0_i32, %c0_i32_0 : i32, i32
  }
  func.func @transform_2(%arg0: i32) -> (i32, i32, i32) {
    %c0_i32 = arith.constant 0 : i32
    %c0_i32_0 = arith.constant 0 : i32
    %c0_i32_1 = arith.constant 0 : i32
    return %arg0, %c0_i32, %c0_i32_0 : i32, i32, i32
  }
  func.func @transform_3(%arg0: i32) -> (i32, i32) {
    %c0_i32 = arith.constant 0 : i32
    %c0_i32_0 = arith.constant 0 : i32
    %c0_i32_1 = arith.constant 0 : i32
    return %c0_i32, %c0_i32_0 : i32, i32
  }
  func.func @transform_4(%arg0: i32) -> (i32, i32) {
    %c0_i32 = arith.constant 0 : i32
    %c0_i32_0 = arith.constant 0 : i32
    %c0_i32_1 = arith.constant 0 : i32
    return %c0_i32, %c0_i32_0 : i32, i32
  }
  func.func @transform_5(%arg0: i32) -> (i32, i32) {
    %c0_i32 = arith.constant 0 : i32
    %c0_i32_0 = arith.constant 0 : i32
    %c0_i32_1 = arith.constant 0 : i32
    return %c0_i32, %c0_i32_0 : i32, i32
  }
  func.func @transform_6(%arg0: i32) -> (i32, i32) {
    %c0_i32 = arith.constant 0 : i32
    %c0_i32_0 = arith.constant 0 : i32
    %c0_i32_1 = arith.constant 0 : i32
    return %c0_i32, %c0_i32_0 : i32, i32
  }
  func.func @transform_7(%arg0: i32) -> (i32, i32) {
    %c0_i32 = arith.constant 0 : i32
    %c0_i32_0 = arith.constant 0 : i32
    %c0_i32_1 = arith.constant 0 : i32
    return %c0_i32, %c0_i32_0 : i32, i32
  }
  func.func @transform_8(%arg0: i32) -> (i32, i32, i32) {
    %c0_i32 = arith.constant 0 : i32
    %c0_i32_0 = arith.constant 0 : i32
    %c0_i32_1 = arith.constant 0 : i32
    return %arg0, %c0_i32, %c0_i32_0 : i32, i32, i32
  }
}

module attributes {stable_mosaic.version = 11 : i64} {
  func.func @kernel(%arg0: i32, %arg1: memref<1x16x32xf32, #tpu.memory_space<vmem>>, %arg2: memref<32x32xf32, #tpu.memory_space<vmem>>, %arg3: memref<1x1x32xf32, #tpu.memory_space<vmem>>, %arg4: memref<32x32xf32, #tpu.memory_space<vmem>>, %arg5: memref<7x32xf32, #tpu.memory_space<vmem>>, %arg6: memref<32x32xf32, #tpu.memory_space<vmem>>, %arg7: memref<32x384xf32, #tpu.memory_space<vmem>>, %arg8: memref<128x32xf32, #tpu.memory_space<vmem>>, %arg9: memref<1x16x32xf32, #tpu.memory_space<vmem>>) attributes {dimension_semantics = [#tpu.dimension_semantics<parallel>], iteration_bounds = array<i64: 2>, scalar_prefetch = 0 : i64, scratch_operands = 0 : i64, tpu.core_type = #tpu.core_type<tc>, window_params = [{transform_indices = @transform_0, window_bounds = array<i64: 1, 16, 32>}, {pipeline_mode = #tpu.pipeline_mode<synchronous>, transform_indices = @transform_1, window_bounds = array<i64: 32, 32>}, {transform_indices = @transform_2, window_bounds = array<i64: 1, 1, 32>}, {pipeline_mode = #tpu.pipeline_mode<synchronous>, transform_indices = @transform_3, window_bounds = array<i64: 32, 32>}, {pipeline_mode = #tpu.pipeline_mode<synchronous>, transform_indices = @transform_4, window_bounds = array<i64: 7, 32>}, {pipeline_mode = #tpu.pipeline_mode<synchronous>, transform_indices = @transform_5, window_bounds = array<i64: 32, 32>}, {pipeline_mode = #tpu.pipeline_mode<synchronous>, transform_indices = @transform_6, window_bounds = array<i64: 32, 384>}, {pipeline_mode = #tpu.pipeline_mode<synchronous>, transform_indices = @transform_7, window_bounds = array<i64: 128, 32>}, {transform_indices = @transform_8, window_bounds = array<i64: 1, 16, 32>}]} {
    %c0 = arith.constant 0 : index
    %c0_0 = arith.constant 0 : index
    %0 = vector.load %arg2[%c0, %c0_0] : memref<32x32xf32, #tpu.memory_space<vmem>>, vector<32x32xf32>
    %c0_1 = arith.constant 0 : index
    %c0_2 = arith.constant 0 : index
    %c0_3 = arith.constant 0 : index
    %1 = vector.load %arg3[%c0_1, %c0_2, %c0_3] : memref<1x1x32xf32, #tpu.memory_space<vmem>>, vector<1x1x32xf32>
    %2 = vector.shape_cast %1 : vector<1x1x32xf32> to vector<1x32xf32>
    %c0_4 = arith.constant 0 : index
    %c0_5 = arith.constant 0 : index
    %3 = vector.load %arg4[%c0_4, %c0_5] : memref<32x32xf32, #tpu.memory_space<vmem>>, vector<32x32xf32>
    %c0_6 = arith.constant 0 : index
    %c0_7 = arith.constant 0 : index
    %4 = vector.load %arg5[%c0_6, %c0_7] : memref<7x32xf32, #tpu.memory_space<vmem>>, vector<7x32xf32>
    %c0_8 = arith.constant 0 : index
    %c0_9 = arith.constant 0 : index
    %5 = vector.load %arg6[%c0_8, %c0_9] : memref<32x32xf32, #tpu.memory_space<vmem>>, vector<32x32xf32>
    %c0_10 = arith.constant 0 : index
    %c0_11 = arith.constant 0 : index
    %6 = vector.load %arg7[%c0_10, %c0_11] : memref<32x384xf32, #tpu.memory_space<vmem>>, vector<32x384xf32>
    %c0_12 = arith.constant 0 : index
    %c0_13 = arith.constant 0 : index
    %7 = vector.load %arg8[%c0_12, %c0_13] : memref<128x32xf32, #tpu.memory_space<vmem>>, vector<128x32xf32>
    %c0_14 = arith.constant 0 : index
    %c0_15 = arith.constant 0 : index
    %c0_16 = arith.constant 0 : index
    %8 = vector.load %arg1[%c0_14, %c0_15, %c0_16] : memref<1x16x32xf32, #tpu.memory_space<vmem>>, vector<1x16x32xf32>
    %9 = vector.shape_cast %8 : vector<1x16x32xf32> to vector<16x32xf32>
    %cst = arith.constant dense<0.000000e+00> : vector<16x32xf32>
    %10 = tpu.matmul %9, %0, %cst {dimension_numbers = #tpu.dot_dimension_numbers<[1], [0], [0], [1], [0, 0, 1, 1], [], []>} : vector<16x32xf32>, vector<32x32xf32>, vector<16x32xf32> -> vector<16x32xf32>
    %11 = vector.extract_strided_slice %4 {offsets = [0, 0], sizes = [1, 32], strides = [1, 1]} : vector<7x32xf32> to vector<1x32xf32>
    %12 = vector.extract_strided_slice %4 {offsets = [1, 0], sizes = [1, 32], strides = [1, 1]} : vector<7x32xf32> to vector<1x32xf32>
    %cst_17 = arith.constant dense<0.000000e+00> : vector<32xf32>
    %13 = vector.multi_reduction <add>, %10, %cst_17 [0] : vector<16x32xf32> to vector<32xf32>
    %14 = vector.shape_cast %13 : vector<32xf32> to vector<1x32xf32>
    %cst_18 = arith.constant dense<0.000000e+00> : vector<1x32xf32>
    %15 = tpu.matmul %14, %3, %cst_18 {dimension_numbers = #tpu.dot_dimension_numbers<[1], [0], [0], [1], [0, 0, 1, 1], [], []>} : vector<1x32xf32>, vector<32x32xf32>, vector<1x32xf32> -> vector<1x32xf32>
    %cst_19 = arith.constant 6.250000e-02 : f32
    %16 = vector.broadcast %cst_19 : f32 to vector<1x32xf32>
    %17 = arith.mulf %15, %16 : vector<1x32xf32>
    %18 = arith.mulf %10, %10 : vector<16x32xf32>
    %cst_20 = arith.constant dense<0.000000e+00> : vector<32xf32>
    %19 = vector.multi_reduction <add>, %18, %cst_20 [0] : vector<16x32xf32> to vector<32xf32>
    %20 = vector.shape_cast %19 : vector<32xf32> to vector<1x32xf32>
    %cst_21 = arith.constant dense<0.000000e+00> : vector<1x32xf32>
    %21 = tpu.matmul %20, %3, %cst_21 {dimension_numbers = #tpu.dot_dimension_numbers<[1], [0], [0], [1], [0, 0, 1, 1], [], []>} : vector<1x32xf32>, vector<32x32xf32>, vector<1x32xf32> -> vector<1x32xf32>
    %cst_22 = arith.constant 6.250000e-02 : f32
    %22 = vector.broadcast %cst_22 : f32 to vector<1x32xf32>
    %23 = arith.mulf %21, %22 : vector<1x32xf32>
    %24 = arith.mulf %17, %17 : vector<1x32xf32>
    %25 = arith.subf %23, %24 : vector<1x32xf32>
    %26 = vector.broadcast %17 : vector<1x32xf32> to vector<16x32xf32>
    %27 = arith.subf %10, %26 : vector<16x32xf32>
    %cst_23 = arith.constant 9.99999974E-6 : f32
    %28 = vector.broadcast %cst_23 : f32 to vector<1x32xf32>
    %29 = arith.addf %25, %28 : vector<1x32xf32>
    %30 = math.rsqrt %29 : vector<1x32xf32>
    %31 = vector.broadcast %30 : vector<1x32xf32> to vector<16x32xf32>
    %32 = arith.mulf %27, %31 : vector<16x32xf32>
    %33 = vector.broadcast %11 : vector<1x32xf32> to vector<16x32xf32>
    %34 = arith.mulf %32, %33 : vector<16x32xf32>
    %35 = vector.broadcast %12 : vector<1x32xf32> to vector<16x32xf32>
    %36 = arith.addf %34, %35 : vector<16x32xf32>
    %37 = arith.negf %36 : vector<16x32xf32>
    %38 = math.exp %37 : vector<16x32xf32>
    %cst_24 = arith.constant 1.000000e+00 : f32
    %39 = vector.broadcast %cst_24 : f32 to vector<16x32xf32>
    %40 = arith.addf %39, %38 : vector<16x32xf32>
    %41 = arith.divf %39, %40 : vector<16x32xf32>
    %42 = arith.mulf %36, %41 : vector<16x32xf32>
    %43 = vector.broadcast %2 : vector<1x32xf32> to vector<16x32xf32>
    %44 = arith.addf %42, %43 : vector<16x32xf32>
    %cst_25 = arith.constant dense<0.000000e+00> : vector<16x32xf32>
    %45 = tpu.matmul %44, %5, %cst_25 {dimension_numbers = #tpu.dot_dimension_numbers<[1], [0], [0], [1], [0, 0, 1, 1], [], []>} : vector<16x32xf32>, vector<32x32xf32>, vector<16x32xf32> -> vector<16x32xf32>
    %46 = vector.extract_strided_slice %4 {offsets = [2, 0], sizes = [1, 32], strides = [1, 1]} : vector<7x32xf32> to vector<1x32xf32>
    %47 = vector.extract_strided_slice %4 {offsets = [3, 0], sizes = [1, 32], strides = [1, 1]} : vector<7x32xf32> to vector<1x32xf32>
    %cst_26 = arith.constant dense<0.000000e+00> : vector<32xf32>
    %48 = vector.multi_reduction <add>, %45, %cst_26 [0] : vector<16x32xf32> to vector<32xf32>
    %49 = vector.shape_cast %48 : vector<32xf32> to vector<1x32xf32>
    %cst_27 = arith.constant dense<0.000000e+00> : vector<1x32xf32>
    %50 = tpu.matmul %49, %3, %cst_27 {dimension_numbers = #tpu.dot_dimension_numbers<[1], [0], [0], [1], [0, 0, 1, 1], [], []>} : vector<1x32xf32>, vector<32x32xf32>, vector<1x32xf32> -> vector<1x32xf32>
    %cst_28 = arith.constant 6.250000e-02 : f32
    %51 = vector.broadcast %cst_28 : f32 to vector<1x32xf32>
    %52 = arith.mulf %50, %51 : vector<1x32xf32>
    %53 = arith.mulf %45, %45 : vector<16x32xf32>
    %cst_29 = arith.constant dense<0.000000e+00> : vector<32xf32>
    %54 = vector.multi_reduction <add>, %53, %cst_29 [0] : vector<16x32xf32> to vector<32xf32>
    %55 = vector.shape_cast %54 : vector<32xf32> to vector<1x32xf32>
    %cst_30 = arith.constant dense<0.000000e+00> : vector<1x32xf32>
    %56 = tpu.matmul %55, %3, %cst_30 {dimension_numbers = #tpu.dot_dimension_numbers<[1], [0], [0], [1], [0, 0, 1, 1], [], []>} : vector<1x32xf32>, vector<32x32xf32>, vector<1x32xf32> -> vector<1x32xf32>
    %cst_31 = arith.constant 6.250000e-02 : f32
    %57 = vector.broadcast %cst_31 : f32 to vector<1x32xf32>
    %58 = arith.mulf %56, %57 : vector<1x32xf32>
    %59 = arith.mulf %52, %52 : vector<1x32xf32>
    %60 = arith.subf %58, %59 : vector<1x32xf32>
    %61 = vector.broadcast %52 : vector<1x32xf32> to vector<16x32xf32>
    %62 = arith.subf %45, %61 : vector<16x32xf32>
    %cst_32 = arith.constant 9.99999974E-6 : f32
    %63 = vector.broadcast %cst_32 : f32 to vector<1x32xf32>
    %64 = arith.addf %60, %63 : vector<1x32xf32>
    %65 = math.rsqrt %64 : vector<1x32xf32>
    %66 = vector.broadcast %65 : vector<1x32xf32> to vector<16x32xf32>
    %67 = arith.mulf %62, %66 : vector<16x32xf32>
    %68 = vector.broadcast %46 : vector<1x32xf32> to vector<16x32xf32>
    %69 = arith.mulf %67, %68 : vector<16x32xf32>
    %70 = vector.broadcast %47 : vector<1x32xf32> to vector<16x32xf32>
    %71 = arith.addf %69, %70 : vector<16x32xf32>
    %72 = arith.negf %71 : vector<16x32xf32>
    %73 = math.exp %72 : vector<16x32xf32>
    %cst_33 = arith.constant 1.000000e+00 : f32
    %74 = vector.broadcast %cst_33 : f32 to vector<16x32xf32>
    %75 = arith.addf %74, %73 : vector<16x32xf32>
    %76 = arith.divf %74, %75 : vector<16x32xf32>
    %77 = arith.mulf %71, %76 : vector<16x32xf32>
    %78 = arith.addf %77, %9 : vector<16x32xf32>
    %79 = vector.extract_strided_slice %4 {offsets = [4, 0], sizes = [1, 32], strides = [1, 1]} : vector<7x32xf32> to vector<1x32xf32>
    %80 = vector.extract_strided_slice %4 {offsets = [5, 0], sizes = [1, 32], strides = [1, 1]} : vector<7x32xf32> to vector<1x32xf32>
    %cst_34 = arith.constant dense<0.000000e+00> : vector<32xf32>
    %81 = vector.multi_reduction <add>, %78, %cst_34 [0] : vector<16x32xf32> to vector<32xf32>
    %82 = vector.shape_cast %81 : vector<32xf32> to vector<1x32xf32>
    %cst_35 = arith.constant dense<0.000000e+00> : vector<1x32xf32>
    %83 = tpu.matmul %82, %3, %cst_35 {dimension_numbers = #tpu.dot_dimension_numbers<[1], [0], [0], [1], [0, 0, 1, 1], [], []>} : vector<1x32xf32>, vector<32x32xf32>, vector<1x32xf32> -> vector<1x32xf32>
    %cst_36 = arith.constant 6.250000e-02 : f32
    %84 = vector.broadcast %cst_36 : f32 to vector<1x32xf32>
    %85 = arith.mulf %83, %84 : vector<1x32xf32>
    %86 = arith.mulf %78, %78 : vector<16x32xf32>
    %cst_37 = arith.constant dense<0.000000e+00> : vector<32xf32>
    %87 = vector.multi_reduction <add>, %86, %cst_37 [0] : vector<16x32xf32> to vector<32xf32>
    %88 = vector.shape_cast %87 : vector<32xf32> to vector<1x32xf32>
    %cst_38 = arith.constant dense<0.000000e+00> : vector<1x32xf32>
    %89 = tpu.matmul %88, %3, %cst_38 {dimension_numbers = #tpu.dot_dimension_numbers<[1], [0], [0], [1], [0, 0, 1, 1], [], []>} : vector<1x32xf32>, vector<32x32xf32>, vector<1x32xf32> -> vector<1x32xf32>
    %cst_39 = arith.constant 6.250000e-02 : f32
    %90 = vector.broadcast %cst_39 : f32 to vector<1x32xf32>
    %91 = arith.mulf %89, %90 : vector<1x32xf32>
    %92 = arith.mulf %85, %85 : vector<1x32xf32>
    %93 = arith.subf %91, %92 : vector<1x32xf32>
    %94 = vector.broadcast %85 : vector<1x32xf32> to vector<16x32xf32>
    %95 = arith.subf %78, %94 : vector<16x32xf32>
    %cst_40 = arith.constant 9.99999974E-6 : f32
    %96 = vector.broadcast %cst_40 : f32 to vector<1x32xf32>
    %97 = arith.addf %93, %96 : vector<1x32xf32>
    %98 = math.rsqrt %97 : vector<1x32xf32>
    %99 = vector.broadcast %98 : vector<1x32xf32> to vector<16x32xf32>
    %100 = arith.mulf %95, %99 : vector<16x32xf32>
    %101 = vector.broadcast %79 : vector<1x32xf32> to vector<16x32xf32>
    %102 = arith.mulf %100, %101 : vector<16x32xf32>
    %103 = vector.broadcast %80 : vector<1x32xf32> to vector<16x32xf32>
    %104 = arith.addf %102, %103 : vector<16x32xf32>
    %cst_41 = arith.constant dense<0.000000e+00> : vector<16x384xf32>
    %105 = tpu.matmul %104, %6, %cst_41 {dimension_numbers = #tpu.dot_dimension_numbers<[1], [0], [0], [1], [0, 0, 1, 1], [], []>} : vector<16x32xf32>, vector<32x384xf32>, vector<16x384xf32> -> vector<16x384xf32>
    %106 = vector.extract_strided_slice %105 {offsets = [0, 0], sizes = [16, 32], strides = [1, 1]} : vector<16x384xf32> to vector<16x32xf32>
    %cst_42 = arith.constant 0.176776692 : f32
    %107 = vector.broadcast %cst_42 : f32 to vector<16x32xf32>
    %108 = arith.mulf %106, %107 : vector<16x32xf32>
    %109 = vector.extract_strided_slice %105 {offsets = [0, 128], sizes = [16, 32], strides = [1, 1]} : vector<16x384xf32> to vector<16x32xf32>
    %110 = vector.extract_strided_slice %105 {offsets = [0, 256], sizes = [16, 32], strides = [1, 1]} : vector<16x384xf32> to vector<16x32xf32>
    %cst_43 = arith.constant dense<0.000000e+00> : vector<16x16xf32>
    %111 = tpu.matmul %108, %109, %cst_43 {dimension_numbers = #tpu.dot_dimension_numbers<[1], [1], [0], [0], [0, 0, 1, 0], [], []>} : vector<16x32xf32>, vector<16x32xf32>, vector<16x16xf32> -> vector<16x16xf32>
    %cst_44 = arith.constant dense<0xFF800000> : vector<16xf32>
    %112 = vector.multi_reduction <maximumf>, %111, %cst_44 [1] : vector<16x16xf32> to vector<16xf32>
    %113 = vector.shape_cast %112 : vector<16xf32> to vector<16x1xf32>
    %114 = vector.broadcast %113 : vector<16x1xf32> to vector<16x16xf32>
    %115 = arith.subf %111, %114 : vector<16x16xf32>
    %116 = math.exp %115 : vector<16x16xf32>
    %cst_45 = arith.constant dense<0.000000e+00> : vector<16xf32>
    %117 = vector.multi_reduction <add>, %116, %cst_45 [1] : vector<16x16xf32> to vector<16xf32>
    %118 = vector.shape_cast %117 : vector<16xf32> to vector<16x1xf32>
    %119 = vector.broadcast %118 : vector<16x1xf32> to vector<16x16xf32>
    %120 = arith.divf %116, %119 : vector<16x16xf32>
    %cst_46 = arith.constant dense<0.000000e+00> : vector<16x32xf32>
    %121 = tpu.matmul %120, %110, %cst_46 {dimension_numbers = #tpu.dot_dimension_numbers<[1], [0], [0], [1], [0, 0, 1, 1], [], []>} : vector<16x16xf32>, vector<16x32xf32>, vector<16x32xf32> -> vector<16x32xf32>
    %122 = vector.extract_strided_slice %105 {offsets = [0, 32], sizes = [16, 32], strides = [1, 1]} : vector<16x384xf32> to vector<16x32xf32>
    %cst_47 = arith.constant 0.176776692 : f32
    %123 = vector.broadcast %cst_47 : f32 to vector<16x32xf32>
    %124 = arith.mulf %122, %123 : vector<16x32xf32>
    %125 = vector.extract_strided_slice %105 {offsets = [0, 160], sizes = [16, 32], strides = [1, 1]} : vector<16x384xf32> to vector<16x32xf32>
    %126 = vector.extract_strided_slice %105 {offsets = [0, 288], sizes = [16, 32], strides = [1, 1]} : vector<16x384xf32> to vector<16x32xf32>
    %cst_48 = arith.constant dense<0.000000e+00> : vector<16x16xf32>
    %127 = tpu.matmul %124, %125, %cst_48 {dimension_numbers = #tpu.dot_dimension_numbers<[1], [1], [0], [0], [0, 0, 1, 0], [], []>} : vector<16x32xf32>, vector<16x32xf32>, vector<16x16xf32> -> vector<16x16xf32>
    %cst_49 = arith.constant dense<0xFF800000> : vector<16xf32>
    %128 = vector.multi_reduction <maximumf>, %127, %cst_49 [1] : vector<16x16xf32> to vector<16xf32>
    %129 = vector.shape_cast %128 : vector<16xf32> to vector<16x1xf32>
    %130 = vector.broadcast %129 : vector<16x1xf32> to vector<16x16xf32>
    %131 = arith.subf %127, %130 : vector<16x16xf32>
    %132 = math.exp %131 : vector<16x16xf32>
    %cst_50 = arith.constant dense<0.000000e+00> : vector<16xf32>
    %133 = vector.multi_reduction <add>, %132, %cst_50 [1] : vector<16x16xf32> to vector<16xf32>
    %134 = vector.shape_cast %133 : vector<16xf32> to vector<16x1xf32>
    %135 = vector.broadcast %134 : vector<16x1xf32> to vector<16x16xf32>
    %136 = arith.divf %132, %135 : vector<16x16xf32>
    %cst_51 = arith.constant dense<0.000000e+00> : vector<16x32xf32>
    %137 = tpu.matmul %136, %126, %cst_51 {dimension_numbers = #tpu.dot_dimension_numbers<[1], [0], [0], [1], [0, 0, 1, 1], [], []>} : vector<16x16xf32>, vector<16x32xf32>, vector<16x32xf32> -> vector<16x32xf32>
    %138 = vector.extract_strided_slice %105 {offsets = [0, 64], sizes = [16, 32], strides = [1, 1]} : vector<16x384xf32> to vector<16x32xf32>
    %cst_52 = arith.constant 0.176776692 : f32
    %139 = vector.broadcast %cst_52 : f32 to vector<16x32xf32>
    %140 = arith.mulf %138, %139 : vector<16x32xf32>
    %141 = vector.extract_strided_slice %105 {offsets = [0, 192], sizes = [16, 32], strides = [1, 1]} : vector<16x384xf32> to vector<16x32xf32>
    %142 = vector.extract_strided_slice %105 {offsets = [0, 320], sizes = [16, 32], strides = [1, 1]} : vector<16x384xf32> to vector<16x32xf32>
    %cst_53 = arith.constant dense<0.000000e+00> : vector<16x16xf32>
    %143 = tpu.matmul %140, %141, %cst_53 {dimension_numbers = #tpu.dot_dimension_numbers<[1], [1], [0], [0], [0, 0, 1, 0], [], []>} : vector<16x32xf32>, vector<16x32xf32>, vector<16x16xf32> -> vector<16x16xf32>
    %cst_54 = arith.constant dense<0xFF800000> : vector<16xf32>
    %144 = vector.multi_reduction <maximumf>, %143, %cst_54 [1] : vector<16x16xf32> to vector<16xf32>
    %145 = vector.shape_cast %144 : vector<16xf32> to vector<16x1xf32>
    %146 = vector.broadcast %145 : vector<16x1xf32> to vector<16x16xf32>
    %147 = arith.subf %143, %146 : vector<16x16xf32>
    %148 = math.exp %147 : vector<16x16xf32>
    %cst_55 = arith.constant dense<0.000000e+00> : vector<16xf32>
    %149 = vector.multi_reduction <add>, %148, %cst_55 [1] : vector<16x16xf32> to vector<16xf32>
    %150 = vector.shape_cast %149 : vector<16xf32> to vector<16x1xf32>
    %151 = vector.broadcast %150 : vector<16x1xf32> to vector<16x16xf32>
    %152 = arith.divf %148, %151 : vector<16x16xf32>
    %cst_56 = arith.constant dense<0.000000e+00> : vector<16x32xf32>
    %153 = tpu.matmul %152, %142, %cst_56 {dimension_numbers = #tpu.dot_dimension_numbers<[1], [0], [0], [1], [0, 0, 1, 1], [], []>} : vector<16x16xf32>, vector<16x32xf32>, vector<16x32xf32> -> vector<16x32xf32>
    %154 = vector.extract_strided_slice %105 {offsets = [0, 96], sizes = [16, 32], strides = [1, 1]} : vector<16x384xf32> to vector<16x32xf32>
    %cst_57 = arith.constant 0.176776692 : f32
    %155 = vector.broadcast %cst_57 : f32 to vector<16x32xf32>
    %156 = arith.mulf %154, %155 : vector<16x32xf32>
    %157 = vector.extract_strided_slice %105 {offsets = [0, 224], sizes = [16, 32], strides = [1, 1]} : vector<16x384xf32> to vector<16x32xf32>
    %158 = vector.extract_strided_slice %105 {offsets = [0, 352], sizes = [16, 32], strides = [1, 1]} : vector<16x384xf32> to vector<16x32xf32>
    %cst_58 = arith.constant dense<0.000000e+00> : vector<16x16xf32>
    %159 = tpu.matmul %156, %157, %cst_58 {dimension_numbers = #tpu.dot_dimension_numbers<[1], [1], [0], [0], [0, 0, 1, 0], [], []>} : vector<16x32xf32>, vector<16x32xf32>, vector<16x16xf32> -> vector<16x16xf32>
    %cst_59 = arith.constant dense<0xFF800000> : vector<16xf32>
    %160 = vector.multi_reduction <maximumf>, %159, %cst_59 [1] : vector<16x16xf32> to vector<16xf32>
    %161 = vector.shape_cast %160 : vector<16xf32> to vector<16x1xf32>
    %162 = vector.broadcast %161 : vector<16x1xf32> to vector<16x16xf32>
    %163 = arith.subf %159, %162 : vector<16x16xf32>
    %164 = math.exp %163 : vector<16x16xf32>
    %cst_60 = arith.constant dense<0.000000e+00> : vector<16xf32>
    %165 = vector.multi_reduction <add>, %164, %cst_60 [1] : vector<16x16xf32> to vector<16xf32>
    %166 = vector.shape_cast %165 : vector<16xf32> to vector<16x1xf32>
    %167 = vector.broadcast %166 : vector<16x1xf32> to vector<16x16xf32>
    %168 = arith.divf %164, %167 : vector<16x16xf32>
    %cst_61 = arith.constant dense<0.000000e+00> : vector<16x32xf32>
    %169 = tpu.matmul %168, %158, %cst_61 {dimension_numbers = #tpu.dot_dimension_numbers<[1], [0], [0], [1], [0, 0, 1, 1], [], []>} : vector<16x16xf32>, vector<16x32xf32>, vector<16x32xf32> -> vector<16x32xf32>
    %170 = tpu.concatenate %121, %137, %153, %169 in 1 : vector<16x32xf32>, vector<16x32xf32>, vector<16x32xf32>, vector<16x32xf32> -> vector<16x128xf32>
    %cst_62 = arith.constant dense<0.000000e+00> : vector<16x32xf32>
    %171 = tpu.matmul %170, %7, %cst_62 {dimension_numbers = #tpu.dot_dimension_numbers<[1], [0], [0], [1], [0, 0, 1, 1], [], []>} : vector<16x128xf32>, vector<128x32xf32>, vector<16x32xf32> -> vector<16x32xf32>
    %172 = vector.extract_strided_slice %4 {offsets = [6, 0], sizes = [1, 32], strides = [1, 1]} : vector<7x32xf32> to vector<1x32xf32>
    %173 = vector.broadcast %172 : vector<1x32xf32> to vector<16x32xf32>
    %174 = arith.addf %171, %173 : vector<16x32xf32>
    %175 = arith.addf %104, %174 : vector<16x32xf32>
    %c0_63 = arith.constant 0 : index
    %c0_64 = arith.constant 0 : index
    %c0_65 = arith.constant 0 : index
    %176 = vector.load %arg9[%c0_63, %c0_64, %c0_65] : memref<1x16x32xf32, #tpu.memory_space<vmem>>, vector<1x16x32xf32>
    %177 = vector.shape_cast %176 : vector<1x16x32xf32> to vector<16x32xf32>
    %178 = vector.shape_cast %175 : vector<16x32xf32> to vector<1x16x32xf32>
    tpu.vector_store %arg9[%c0_63, %c0_64, %c0_65], %178 {strides = array<i32>} : memref<1x16x32xf32, #tpu.memory_space<vmem>>, vector<1x16x32xf32>,
    return
  }
  func.func @transform_0(%arg0: i32) -> (i32, i32, i32) {
    %c0_i32 = arith.constant 0 : i32
    %c0_i32_0 = arith.constant 0 : i32
    %c0_i32_1 = arith.constant 0 : i32
    return %arg0, %c0_i32, %c0_i32_0 : i32, i32, i32
  }
  func.func @transform_1(%arg0: i32) -> (i32, i32) {
    %c0_i32 = arith.constant 0 : i32
    %c0_i32_0 = arith.constant 0 : i32
    %c0_i32_1 = arith.constant 0 : i32
    return %c0_i32, %c0_i32_0 : i32, i32
  }
  func.func @transform_2(%arg0: i32) -> (i32, i32, i32) {
    %c0_i32 = arith.constant 0 : i32
    %c0_i32_0 = arith.constant 0 : i32
    %c0_i32_1 = arith.constant 0 : i32
    return %arg0, %c0_i32, %c0_i32_0 : i32, i32, i32
  }
  func.func @transform_3(%arg0: i32) -> (i32, i32) {
    %c0_i32 = arith.constant 0 : i32
    %c0_i32_0 = arith.constant 0 : i32
    %c0_i32_1 = arith.constant 0 : i32
    return %c0_i32, %c0_i32_0 : i32, i32
  }
  func.func @transform_4(%arg0: i32) -> (i32, i32) {
    %c0_i32 = arith.constant 0 : i32
    %c0_i32_0 = arith.constant 0 : i32
    %c0_i32_1 = arith.constant 0 : i32
    return %c0_i32, %c0_i32_0 : i32, i32
  }
  func.func @transform_5(%arg0: i32) -> (i32, i32) {
    %c0_i32 = arith.constant 0 : i32
    %c0_i32_0 = arith.constant 0 : i32
    %c0_i32_1 = arith.constant 0 : i32
    return %c0_i32, %c0_i32_0 : i32, i32
  }
  func.func @transform_6(%arg0: i32) -> (i32, i32) {
    %c0_i32 = arith.constant 0 : i32
    %c0_i32_0 = arith.constant 0 : i32
    %c0_i32_1 = arith.constant 0 : i32
    return %c0_i32, %c0_i32_0 : i32, i32
  }
  func.func @transform_7(%arg0: i32) -> (i32, i32) {
    %c0_i32 = arith.constant 0 : i32
    %c0_i32_0 = arith.constant 0 : i32
    %c0_i32_1 = arith.constant 0 : i32
    return %c0_i32, %c0_i32_0 : i32, i32
  }
  func.func @transform_8(%arg0: i32) -> (i32, i32, i32) {
    %c0_i32 = arith.constant 0 : i32
    %c0_i32_0 = arith.constant 0 : i32
    %c0_i32_1 = arith.constant 0 : i32
    return %arg0, %c0_i32, %c0_i32_0 : i32, i32, i32
  }
}

module attributes {stable_mosaic.version = 11 : i64} {
  func.func @kernel(%arg0: i32, %arg1: memref<1x16x32xf32, #tpu.memory_space<vmem>>, %arg2: memref<32x128xf32, #tpu.memory_space<vmem>>, %arg3: memref<1x1x64xf32, #tpu.memory_space<vmem>>, %arg4: memref<64x64xf32, #tpu.memory_space<vmem>>, %arg5: memref<4x64xf32, #tpu.memory_space<vmem>>, %arg6: memref<64x64xf32, #tpu.memory_space<vmem>>, %arg7: memref<1x16x64xf32, #tpu.memory_space<vmem>>) attributes {dimension_semantics = [#tpu.dimension_semantics<parallel>], iteration_bounds = array<i64: 2>, scalar_prefetch = 0 : i64, scratch_operands = 0 : i64, tpu.core_type = #tpu.core_type<tc>, window_params = [{transform_indices = @transform_0, window_bounds = array<i64: 1, 16, 32>}, {pipeline_mode = #tpu.pipeline_mode<synchronous>, transform_indices = @transform_1, window_bounds = array<i64: 32, 128>}, {transform_indices = @transform_2, window_bounds = array<i64: 1, 1, 64>}, {pipeline_mode = #tpu.pipeline_mode<synchronous>, transform_indices = @transform_3, window_bounds = array<i64: 64, 64>}, {pipeline_mode = #tpu.pipeline_mode<synchronous>, transform_indices = @transform_4, window_bounds = array<i64: 4, 64>}, {pipeline_mode = #tpu.pipeline_mode<synchronous>, transform_indices = @transform_5, window_bounds = array<i64: 64, 64>}, {transform_indices = @transform_6, window_bounds = array<i64: 1, 16, 64>}]} {
    %c0 = arith.constant 0 : index
    %c0_0 = arith.constant 0 : index
    %0 = vector.load %arg2[%c0, %c0_0] : memref<32x128xf32, #tpu.memory_space<vmem>>, vector<32x128xf32>
    %c0_1 = arith.constant 0 : index
    %c0_2 = arith.constant 0 : index
    %c0_3 = arith.constant 0 : index
    %1 = vector.load %arg3[%c0_1, %c0_2, %c0_3] : memref<1x1x64xf32, #tpu.memory_space<vmem>>, vector<1x1x64xf32>
    %2 = vector.shape_cast %1 : vector<1x1x64xf32> to vector<1x64xf32>
    %c0_4 = arith.constant 0 : index
    %c0_5 = arith.constant 0 : index
    %3 = vector.load %arg4[%c0_4, %c0_5] : memref<64x64xf32, #tpu.memory_space<vmem>>, vector<64x64xf32>
    %c0_6 = arith.constant 0 : index
    %c0_7 = arith.constant 0 : index
    %4 = vector.load %arg5[%c0_6, %c0_7] : memref<4x64xf32, #tpu.memory_space<vmem>>, vector<4x64xf32>
    %c0_8 = arith.constant 0 : index
    %c0_9 = arith.constant 0 : index
    %5 = vector.load %arg6[%c0_8, %c0_9] : memref<64x64xf32, #tpu.memory_space<vmem>>, vector<64x64xf32>
    %c0_10 = arith.constant 0 : index
    %c0_11 = arith.constant 0 : index
    %c0_12 = arith.constant 0 : index
    %6 = vector.load %arg1[%c0_10, %c0_11, %c0_12] : memref<1x16x32xf32, #tpu.memory_space<vmem>>, vector<1x16x32xf32>
    %7 = vector.shape_cast %6 : vector<1x16x32xf32> to vector<16x32xf32>
    %cst = arith.constant dense<0.000000e+00> : vector<16x128xf32>
    %8 = tpu.matmul %7, %0, %cst {dimension_numbers = #tpu.dot_dimension_numbers<[1], [0], [0], [1], [0, 0, 1, 1], [], []>} : vector<16x32xf32>, vector<32x128xf32>, vector<16x128xf32> -> vector<16x128xf32>
    %9 = vector.extract_strided_slice %8 {offsets = [0, 0], sizes = [16, 64], strides = [1, 1]} : vector<16x128xf32> to vector<16x64xf32>
    %10 = vector.extract_strided_slice %8 {offsets = [0, 64], sizes = [16, 64], strides = [1, 1]} : vector<16x128xf32> to vector<16x64xf32>
    %11 = vector.extract_strided_slice %4 {offsets = [0, 0], sizes = [1, 64], strides = [1, 1]} : vector<4x64xf32> to vector<1x64xf32>
    %12 = vector.extract_strided_slice %4 {offsets = [1, 0], sizes = [1, 64], strides = [1, 1]} : vector<4x64xf32> to vector<1x64xf32>
    %cst_13 = arith.constant dense<0.000000e+00> : vector<64xf32>
    %13 = vector.multi_reduction <add>, %9, %cst_13 [0] : vector<16x64xf32> to vector<64xf32>
    %14 = vector.shape_cast %13 : vector<64xf32> to vector<1x64xf32>
    %cst_14 = arith.constant dense<0.000000e+00> : vector<1x64xf32>
    %15 = tpu.matmul %14, %3, %cst_14 {dimension_numbers = #tpu.dot_dimension_numbers<[1], [0], [0], [1], [0, 0, 1, 1], [], []>} : vector<1x64xf32>, vector<64x64xf32>, vector<1x64xf32> -> vector<1x64xf32>
    %cst_15 = arith.constant 6.250000e-02 : f32
    %16 = vector.broadcast %cst_15 : f32 to vector<1x64xf32>
    %17 = arith.mulf %15, %16 : vector<1x64xf32>
    %18 = arith.mulf %9, %9 : vector<16x64xf32>
    %cst_16 = arith.constant dense<0.000000e+00> : vector<64xf32>
    %19 = vector.multi_reduction <add>, %18, %cst_16 [0] : vector<16x64xf32> to vector<64xf32>
    %20 = vector.shape_cast %19 : vector<64xf32> to vector<1x64xf32>
    %cst_17 = arith.constant dense<0.000000e+00> : vector<1x64xf32>
    %21 = tpu.matmul %20, %3, %cst_17 {dimension_numbers = #tpu.dot_dimension_numbers<[1], [0], [0], [1], [0, 0, 1, 1], [], []>} : vector<1x64xf32>, vector<64x64xf32>, vector<1x64xf32> -> vector<1x64xf32>
    %cst_18 = arith.constant 6.250000e-02 : f32
    %22 = vector.broadcast %cst_18 : f32 to vector<1x64xf32>
    %23 = arith.mulf %21, %22 : vector<1x64xf32>
    %24 = arith.mulf %17, %17 : vector<1x64xf32>
    %25 = arith.subf %23, %24 : vector<1x64xf32>
    %26 = vector.broadcast %17 : vector<1x64xf32> to vector<16x64xf32>
    %27 = arith.subf %9, %26 : vector<16x64xf32>
    %cst_19 = arith.constant 9.99999974E-6 : f32
    %28 = vector.broadcast %cst_19 : f32 to vector<1x64xf32>
    %29 = arith.addf %25, %28 : vector<1x64xf32>
    %30 = math.rsqrt %29 : vector<1x64xf32>
    %31 = vector.broadcast %30 : vector<1x64xf32> to vector<16x64xf32>
    %32 = arith.mulf %27, %31 : vector<16x64xf32>
    %33 = vector.broadcast %11 : vector<1x64xf32> to vector<16x64xf32>
    %34 = arith.mulf %32, %33 : vector<16x64xf32>
    %35 = vector.broadcast %12 : vector<1x64xf32> to vector<16x64xf32>
    %36 = arith.addf %34, %35 : vector<16x64xf32>
    %37 = arith.negf %36 : vector<16x64xf32>
    %38 = math.exp %37 : vector<16x64xf32>
    %cst_20 = arith.constant 1.000000e+00 : f32
    %39 = vector.broadcast %cst_20 : f32 to vector<16x64xf32>
    %40 = arith.addf %39, %38 : vector<16x64xf32>
    %41 = arith.divf %39, %40 : vector<16x64xf32>
    %42 = arith.mulf %36, %41 : vector<16x64xf32>
    %43 = vector.broadcast %2 : vector<1x64xf32> to vector<16x64xf32>
    %44 = arith.addf %42, %43 : vector<16x64xf32>
    %cst_21 = arith.constant dense<0.000000e+00> : vector<16x64xf32>
    %45 = tpu.matmul %44, %5, %cst_21 {dimension_numbers = #tpu.dot_dimension_numbers<[1], [0], [0], [1], [0, 0, 1, 1], [], []>} : vector<16x64xf32>, vector<64x64xf32>, vector<16x64xf32> -> vector<16x64xf32>
    %46 = vector.extract_strided_slice %4 {offsets = [2, 0], sizes = [1, 64], strides = [1, 1]} : vector<4x64xf32> to vector<1x64xf32>
    %47 = vector.extract_strided_slice %4 {offsets = [3, 0], sizes = [1, 64], strides = [1, 1]} : vector<4x64xf32> to vector<1x64xf32>
    %cst_22 = arith.constant dense<0.000000e+00> : vector<64xf32>
    %48 = vector.multi_reduction <add>, %45, %cst_22 [0] : vector<16x64xf32> to vector<64xf32>
    %49 = vector.shape_cast %48 : vector<64xf32> to vector<1x64xf32>
    %cst_23 = arith.constant dense<0.000000e+00> : vector<1x64xf32>
    %50 = tpu.matmul %49, %3, %cst_23 {dimension_numbers = #tpu.dot_dimension_numbers<[1], [0], [0], [1], [0, 0, 1, 1], [], []>} : vector<1x64xf32>, vector<64x64xf32>, vector<1x64xf32> -> vector<1x64xf32>
    %cst_24 = arith.constant 6.250000e-02 : f32
    %51 = vector.broadcast %cst_24 : f32 to vector<1x64xf32>
    %52 = arith.mulf %50, %51 : vector<1x64xf32>
    %53 = arith.mulf %45, %45 : vector<16x64xf32>
    %cst_25 = arith.constant dense<0.000000e+00> : vector<64xf32>
    %54 = vector.multi_reduction <add>, %53, %cst_25 [0] : vector<16x64xf32> to vector<64xf32>
    %55 = vector.shape_cast %54 : vector<64xf32> to vector<1x64xf32>
    %cst_26 = arith.constant dense<0.000000e+00> : vector<1x64xf32>
    %56 = tpu.matmul %55, %3, %cst_26 {dimension_numbers = #tpu.dot_dimension_numbers<[1], [0], [0], [1], [0, 0, 1, 1], [], []>} : vector<1x64xf32>, vector<64x64xf32>, vector<1x64xf32> -> vector<1x64xf32>
    %cst_27 = arith.constant 6.250000e-02 : f32
    %57 = vector.broadcast %cst_27 : f32 to vector<1x64xf32>
    %58 = arith.mulf %56, %57 : vector<1x64xf32>
    %59 = arith.mulf %52, %52 : vector<1x64xf32>
    %60 = arith.subf %58, %59 : vector<1x64xf32>
    %61 = vector.broadcast %52 : vector<1x64xf32> to vector<16x64xf32>
    %62 = arith.subf %45, %61 : vector<16x64xf32>
    %cst_28 = arith.constant 9.99999974E-6 : f32
    %63 = vector.broadcast %cst_28 : f32 to vector<1x64xf32>
    %64 = arith.addf %60, %63 : vector<1x64xf32>
    %65 = math.rsqrt %64 : vector<1x64xf32>
    %66 = vector.broadcast %65 : vector<1x64xf32> to vector<16x64xf32>
    %67 = arith.mulf %62, %66 : vector<16x64xf32>
    %68 = vector.broadcast %46 : vector<1x64xf32> to vector<16x64xf32>
    %69 = arith.mulf %67, %68 : vector<16x64xf32>
    %70 = vector.broadcast %47 : vector<1x64xf32> to vector<16x64xf32>
    %71 = arith.addf %69, %70 : vector<16x64xf32>
    %72 = arith.negf %71 : vector<16x64xf32>
    %73 = math.exp %72 : vector<16x64xf32>
    %cst_29 = arith.constant 1.000000e+00 : f32
    %74 = vector.broadcast %cst_29 : f32 to vector<16x64xf32>
    %75 = arith.addf %74, %73 : vector<16x64xf32>
    %76 = arith.divf %74, %75 : vector<16x64xf32>
    %77 = arith.mulf %71, %76 : vector<16x64xf32>
    %78 = arith.addf %77, %10 : vector<16x64xf32>
    %c0_30 = arith.constant 0 : index
    %c0_31 = arith.constant 0 : index
    %c0_32 = arith.constant 0 : index
    %79 = vector.load %arg7[%c0_30, %c0_31, %c0_32] : memref<1x16x64xf32, #tpu.memory_space<vmem>>, vector<1x16x64xf32>
    %80 = vector.shape_cast %79 : vector<1x16x64xf32> to vector<16x64xf32>
    %81 = vector.shape_cast %78 : vector<16x64xf32> to vector<1x16x64xf32>
    tpu.vector_store %arg7[%c0_30, %c0_31, %c0_32], %81 {strides = array<i32>} : memref<1x16x64xf32, #tpu.memory_space<vmem>>, vector<1x16x64xf32>,
    return
  }
  func.func @transform_0(%arg0: i32) -> (i32, i32, i32) {
    %c0_i32 = arith.constant 0 : i32
    %c0_i32_0 = arith.constant 0 : i32
    %c0_i32_1 = arith.constant 0 : i32
    return %arg0, %c0_i32, %c0_i32_0 : i32, i32, i32
  }
  func.func @transform_1(%arg0: i32) -> (i32, i32) {
    %c0_i32 = arith.constant 0 : i32
    %c0_i32_0 = arith.constant 0 : i32
    %c0_i32_1 = arith.constant 0 : i32
    return %c0_i32, %c0_i32_0 : i32, i32
  }
  func.func @transform_2(%arg0: i32) -> (i32, i32, i32) {
    %c0_i32 = arith.constant 0 : i32
    %c0_i32_0 = arith.constant 0 : i32
    %c0_i32_1 = arith.constant 0 : i32
    return %arg0, %c0_i32, %c0_i32_0 : i32, i32, i32
  }
  func.func @transform_3(%arg0: i32) -> (i32, i32) {
    %c0_i32 = arith.constant 0 : i32
    %c0_i32_0 = arith.constant 0 : i32
    %c0_i32_1 = arith.constant 0 : i32
    return %c0_i32, %c0_i32_0 : i32, i32
  }
  func.func @transform_4(%arg0: i32) -> (i32, i32) {
    %c0_i32 = arith.constant 0 : i32
    %c0_i32_0 = arith.constant 0 : i32
    %c0_i32_1 = arith.constant 0 : i32
    return %c0_i32, %c0_i32_0 : i32, i32
  }
  func.func @transform_5(%arg0: i32) -> (i32, i32) {
    %c0_i32 = arith.constant 0 : i32
    %c0_i32_0 = arith.constant 0 : i32
    %c0_i32_1 = arith.constant 0 : i32
    return %c0_i32, %c0_i32_0 : i32, i32
  }
  func.func @transform_6(%arg0: i32) -> (i32, i32, i32) {
    %c0_i32 = arith.constant 0 : i32
    %c0_i32_0 = arith.constant 0 : i32
    %c0_i32_1 = arith.constant 0 : i32
    return %arg0, %c0_i32, %c0_i32_0 : i32, i32, i32
  }
}

module attributes {stable_mosaic.version = 11 : i64} {
  func.func @kernel(%arg0: i32, %arg1: memref<1x64x16xf32, #tpu.memory_space<vmem>>, %arg2: memref<16x64xf32, #tpu.memory_space<vmem>>, %arg3: memref<1x64x16xf32, #tpu.memory_space<vmem>>, %arg4: memref<16x64xf32, #tpu.memory_space<vmem>>, %arg5: memref<1x1x32xf32, #tpu.memory_space<vmem>>, %arg6: memref<32x32xf32, #tpu.memory_space<vmem>>, %arg7: memref<4x32xf32, #tpu.memory_space<vmem>>, %arg8: memref<32x32xf32, #tpu.memory_space<vmem>>, %arg9: memref<1x64x32xf32, #tpu.memory_space<vmem>>) attributes {dimension_semantics = [#tpu.dimension_semantics<parallel>], iteration_bounds = array<i64: 2>, scalar_prefetch = 0 : i64, scratch_operands = 0 : i64, tpu.core_type = #tpu.core_type<tc>, window_params = [{transform_indices = @transform_0, window_bounds = array<i64: 1, 64, 16>}, {pipeline_mode = #tpu.pipeline_mode<synchronous>, transform_indices = @transform_1, window_bounds = array<i64: 16, 64>}, {transform_indices = @transform_2, window_bounds = array<i64: 1, 64, 16>}, {pipeline_mode = #tpu.pipeline_mode<synchronous>, transform_indices = @transform_3, window_bounds = array<i64: 16, 64>}, {transform_indices = @transform_4, window_bounds = array<i64: 1, 1, 32>}, {pipeline_mode = #tpu.pipeline_mode<synchronous>, transform_indices = @transform_5, window_bounds = array<i64: 32, 32>}, {pipeline_mode = #tpu.pipeline_mode<synchronous>, transform_indices = @transform_6, window_bounds = array<i64: 4, 32>}, {pipeline_mode = #tpu.pipeline_mode<synchronous>, transform_indices = @transform_7, window_bounds = array<i64: 32, 32>}, {transform_indices = @transform_8, window_bounds = array<i64: 1, 64, 32>}]} {
    %c0 = arith.constant 0 : index
    %c0_0 = arith.constant 0 : index
    %0 = vector.load %arg2[%c0, %c0_0] : memref<16x64xf32, #tpu.memory_space<vmem>>, vector<16x64xf32>
    %c0_1 = arith.constant 0 : index
    %c0_2 = arith.constant 0 : index
    %1 = vector.load %arg4[%c0_1, %c0_2] : memref<16x64xf32, #tpu.memory_space<vmem>>, vector<16x64xf32>
    %c0_3 = arith.constant 0 : index
    %c0_4 = arith.constant 0 : index
    %c0_5 = arith.constant 0 : index
    %2 = vector.load %arg5[%c0_3, %c0_4, %c0_5] : memref<1x1x32xf32, #tpu.memory_space<vmem>>, vector<1x1x32xf32>
    %3 = vector.shape_cast %2 : vector<1x1x32xf32> to vector<1x32xf32>
    %c0_6 = arith.constant 0 : index
    %c0_7 = arith.constant 0 : index
    %4 = vector.load %arg6[%c0_6, %c0_7] : memref<32x32xf32, #tpu.memory_space<vmem>>, vector<32x32xf32>
    %c0_8 = arith.constant 0 : index
    %c0_9 = arith.constant 0 : index
    %5 = vector.load %arg7[%c0_8, %c0_9] : memref<4x32xf32, #tpu.memory_space<vmem>>, vector<4x32xf32>
    %c0_10 = arith.constant 0 : index
    %c0_11 = arith.constant 0 : index
    %6 = vector.load %arg8[%c0_10, %c0_11] : memref<32x32xf32, #tpu.memory_space<vmem>>, vector<32x32xf32>
    %c0_12 = arith.constant 0 : index
    %c0_13 = arith.constant 0 : index
    %c0_14 = arith.constant 0 : index
    %7 = vector.load %arg1[%c0_12, %c0_13, %c0_14] : memref<1x64x16xf32, #tpu.memory_space<vmem>>, vector<1x64x16xf32>
    %8 = vector.shape_cast %7 : vector<1x64x16xf32> to vector<64x16xf32>
    %cst = arith.constant dense<0.000000e+00> : vector<64x64xf32>
    %9 = tpu.matmul %8, %0, %cst {dimension_numbers = #tpu.dot_dimension_numbers<[1], [0], [0], [1], [0, 0, 1, 1], [], []>} : vector<64x16xf32>, vector<16x64xf32>, vector<64x64xf32> -> vector<64x64xf32>
    %c0_15 = arith.constant 0 : index
    %c0_16 = arith.constant 0 : index
    %c0_17 = arith.constant 0 : index
    %10 = vector.load %arg3[%c0_15, %c0_16, %c0_17] : memref<1x64x16xf32, #tpu.memory_space<vmem>>, vector<1x64x16xf32>
    %11 = vector.shape_cast %10 : vector<1x64x16xf32> to vector<64x16xf32>
    %cst_18 = arith.constant dense<0.000000e+00> : vector<64x64xf32>
    %12 = tpu.matmul %11, %1, %cst_18 {dimension_numbers = #tpu.dot_dimension_numbers<[1], [0], [0], [1], [0, 0, 1, 1], [], []>} : vector<64x16xf32>, vector<16x64xf32>, vector<64x64xf32> -> vector<64x64xf32>
    %13 = arith.addf %9, %12 : vector<64x64xf32>
    %14 = vector.extract_strided_slice %13 {offsets = [0, 0], sizes = [64, 32], strides = [1, 1]} : vector<64x64xf32> to vector<64x32xf32>
    %15 = vector.extract_strided_slice %13 {offsets = [0, 32], sizes = [64, 32], strides = [1, 1]} : vector<64x64xf32> to vector<64x32xf32>
    %16 = vector.extract_strided_slice %5 {offsets = [0, 0], sizes = [1, 32], strides = [1, 1]} : vector<4x32xf32> to vector<1x32xf32>
    %17 = vector.extract_strided_slice %5 {offsets = [1, 0], sizes = [1, 32], strides = [1, 1]} : vector<4x32xf32> to vector<1x32xf32>
    %cst_19 = arith.constant dense<0.000000e+00> : vector<32xf32>
    %18 = vector.multi_reduction <add>, %14, %cst_19 [0] : vector<64x32xf32> to vector<32xf32>
    %19 = vector.shape_cast %18 : vector<32xf32> to vector<1x32xf32>
    %cst_20 = arith.constant dense<0.000000e+00> : vector<1x32xf32>
    %20 = tpu.matmul %19, %4, %cst_20 {dimension_numbers = #tpu.dot_dimension_numbers<[1], [0], [0], [1], [0, 0, 1, 1], [], []>} : vector<1x32xf32>, vector<32x32xf32>, vector<1x32xf32> -> vector<1x32xf32>
    %cst_21 = arith.constant 1.562500e-02 : f32
    %21 = vector.broadcast %cst_21 : f32 to vector<1x32xf32>
    %22 = arith.mulf %20, %21 : vector<1x32xf32>
    %23 = arith.mulf %14, %14 : vector<64x32xf32>
    %cst_22 = arith.constant dense<0.000000e+00> : vector<32xf32>
    %24 = vector.multi_reduction <add>, %23, %cst_22 [0] : vector<64x32xf32> to vector<32xf32>
    %25 = vector.shape_cast %24 : vector<32xf32> to vector<1x32xf32>
    %cst_23 = arith.constant dense<0.000000e+00> : vector<1x32xf32>
    %26 = tpu.matmul %25, %4, %cst_23 {dimension_numbers = #tpu.dot_dimension_numbers<[1], [0], [0], [1], [0, 0, 1, 1], [], []>} : vector<1x32xf32>, vector<32x32xf32>, vector<1x32xf32> -> vector<1x32xf32>
    %cst_24 = arith.constant 1.562500e-02 : f32
    %27 = vector.broadcast %cst_24 : f32 to vector<1x32xf32>
    %28 = arith.mulf %26, %27 : vector<1x32xf32>
    %29 = arith.mulf %22, %22 : vector<1x32xf32>
    %30 = arith.subf %28, %29 : vector<1x32xf32>
    %31 = vector.broadcast %22 : vector<1x32xf32> to vector<64x32xf32>
    %32 = arith.subf %14, %31 : vector<64x32xf32>
    %cst_25 = arith.constant 9.99999974E-6 : f32
    %33 = vector.broadcast %cst_25 : f32 to vector<1x32xf32>
    %34 = arith.addf %30, %33 : vector<1x32xf32>
    %35 = math.rsqrt %34 : vector<1x32xf32>
    %36 = vector.broadcast %35 : vector<1x32xf32> to vector<64x32xf32>
    %37 = arith.mulf %32, %36 : vector<64x32xf32>
    %38 = vector.broadcast %16 : vector<1x32xf32> to vector<64x32xf32>
    %39 = arith.mulf %37, %38 : vector<64x32xf32>
    %40 = vector.broadcast %17 : vector<1x32xf32> to vector<64x32xf32>
    %41 = arith.addf %39, %40 : vector<64x32xf32>
    %42 = arith.negf %41 : vector<64x32xf32>
    %43 = math.exp %42 : vector<64x32xf32>
    %cst_26 = arith.constant 1.000000e+00 : f32
    %44 = vector.broadcast %cst_26 : f32 to vector<64x32xf32>
    %45 = arith.addf %44, %43 : vector<64x32xf32>
    %46 = arith.divf %44, %45 : vector<64x32xf32>
    %47 = arith.mulf %41, %46 : vector<64x32xf32>
    %48 = vector.broadcast %3 : vector<1x32xf32> to vector<64x32xf32>
    %49 = arith.addf %47, %48 : vector<64x32xf32>
    %cst_27 = arith.constant dense<0.000000e+00> : vector<64x32xf32>
    %50 = tpu.matmul %49, %6, %cst_27 {dimension_numbers = #tpu.dot_dimension_numbers<[1], [0], [0], [1], [0, 0, 1, 1], [], []>} : vector<64x32xf32>, vector<32x32xf32>, vector<64x32xf32> -> vector<64x32xf32>
    %51 = vector.extract_strided_slice %5 {offsets = [2, 0], sizes = [1, 32], strides = [1, 1]} : vector<4x32xf32> to vector<1x32xf32>
    %52 = vector.extract_strided_slice %5 {offsets = [3, 0], sizes = [1, 32], strides = [1, 1]} : vector<4x32xf32> to vector<1x32xf32>
    %cst_28 = arith.constant dense<0.000000e+00> : vector<32xf32>
    %53 = vector.multi_reduction <add>, %50, %cst_28 [0] : vector<64x32xf32> to vector<32xf32>
    %54 = vector.shape_cast %53 : vector<32xf32> to vector<1x32xf32>
    %cst_29 = arith.constant dense<0.000000e+00> : vector<1x32xf32>
    %55 = tpu.matmul %54, %4, %cst_29 {dimension_numbers = #tpu.dot_dimension_numbers<[1], [0], [0], [1], [0, 0, 1, 1], [], []>} : vector<1x32xf32>, vector<32x32xf32>, vector<1x32xf32> -> vector<1x32xf32>
    %cst_30 = arith.constant 1.562500e-02 : f32
    %56 = vector.broadcast %cst_30 : f32 to vector<1x32xf32>
    %57 = arith.mulf %55, %56 : vector<1x32xf32>
    %58 = arith.mulf %50, %50 : vector<64x32xf32>
    %cst_31 = arith.constant dense<0.000000e+00> : vector<32xf32>
    %59 = vector.multi_reduction <add>, %58, %cst_31 [0] : vector<64x32xf32> to vector<32xf32>
    %60 = vector.shape_cast %59 : vector<32xf32> to vector<1x32xf32>
    %cst_32 = arith.constant dense<0.000000e+00> : vector<1x32xf32>
    %61 = tpu.matmul %60, %4, %cst_32 {dimension_numbers = #tpu.dot_dimension_numbers<[1], [0], [0], [1], [0, 0, 1, 1], [], []>} : vector<1x32xf32>, vector<32x32xf32>, vector<1x32xf32> -> vector<1x32xf32>
    %cst_33 = arith.constant 1.562500e-02 : f32
    %62 = vector.broadcast %cst_33 : f32 to vector<1x32xf32>
    %63 = arith.mulf %61, %62 : vector<1x32xf32>
    %64 = arith.mulf %57, %57 : vector<1x32xf32>
    %65 = arith.subf %63, %64 : vector<1x32xf32>
    %66 = vector.broadcast %57 : vector<1x32xf32> to vector<64x32xf32>
    %67 = arith.subf %50, %66 : vector<64x32xf32>
    %cst_34 = arith.constant 9.99999974E-6 : f32
    %68 = vector.broadcast %cst_34 : f32 to vector<1x32xf32>
    %69 = arith.addf %65, %68 : vector<1x32xf32>
    %70 = math.rsqrt %69 : vector<1x32xf32>
    %71 = vector.broadcast %70 : vector<1x32xf32> to vector<64x32xf32>
    %72 = arith.mulf %67, %71 : vector<64x32xf32>
    %73 = vector.broadcast %51 : vector<1x32xf32> to vector<64x32xf32>
    %74 = arith.mulf %72, %73 : vector<64x32xf32>
    %75 = vector.broadcast %52 : vector<1x32xf32> to vector<64x32xf32>
    %76 = arith.addf %74, %75 : vector<64x32xf32>
    %77 = arith.negf %76 : vector<64x32xf32>
    %78 = math.exp %77 : vector<64x32xf32>
    %cst_35 = arith.constant 1.000000e+00 : f32
    %79 = vector.broadcast %cst_35 : f32 to vector<64x32xf32>
    %80 = arith.addf %79, %78 : vector<64x32xf32>
    %81 = arith.divf %79, %80 : vector<64x32xf32>
    %82 = arith.mulf %76, %81 : vector<64x32xf32>
    %83 = arith.addf %82, %15 : vector<64x32xf32>
    %c0_36 = arith.constant 0 : index
    %c0_37 = arith.constant 0 : index
    %c0_38 = arith.constant 0 : index
    %84 = vector.load %arg9[%c0_36, %c0_37, %c0_38] : memref<1x64x32xf32, #tpu.memory_space<vmem>>, vector<1x64x32xf32>
    %85 = vector.shape_cast %84 : vector<1x64x32xf32> to vector<64x32xf32>
    %86 = vector.shape_cast %83 : vector<64x32xf32> to vector<1x64x32xf32>
    tpu.vector_store %arg9[%c0_36, %c0_37, %c0_38], %86 {strides = array<i32>} : memref<1x64x32xf32, #tpu.memory_space<vmem>>, vector<1x64x32xf32>,
    return
  }
  func.func @transform_0(%arg0: i32) -> (i32, i32, i32) {
    %c0_i32 = arith.constant 0 : i32
    %c0_i32_0 = arith.constant 0 : i32
    %c0_i32_1 = arith.constant 0 : i32
    return %arg0, %c0_i32, %c0_i32_0 : i32, i32, i32
  }
  func.func @transform_1(%arg0: i32) -> (i32, i32) {
    %c0_i32 = arith.constant 0 : i32
    %c0_i32_0 = arith.constant 0 : i32
    %c0_i32_1 = arith.constant 0 : i32
    return %c0_i32, %c0_i32_0 : i32, i32
  }
  func.func @transform_2(%arg0: i32) -> (i32, i32, i32) {
    %c0_i32 = arith.constant 0 : i32
    %c0_i32_0 = arith.constant 0 : i32
    %c0_i32_1 = arith.constant 0 : i32
    return %arg0, %c0_i32, %c0_i32_0 : i32, i32, i32
  }
  func.func @transform_3(%arg0: i32) -> (i32, i32) {
    %c0_i32 = arith.constant 0 : i32
    %c0_i32_0 = arith.constant 0 : i32
    %c0_i32_1 = arith.constant 0 : i32
    return %c0_i32, %c0_i32_0 : i32, i32
  }
  func.func @transform_4(%arg0: i32) -> (i32, i32, i32) {
    %c0_i32 = arith.constant 0 : i32
    %c0_i32_0 = arith.constant 0 : i32
    %c0_i32_1 = arith.constant 0 : i32
    return %arg0, %c0_i32, %c0_i32_0 : i32, i32, i32
  }
  func.func @transform_5(%arg0: i32) -> (i32, i32) {
    %c0_i32 = arith.constant 0 : i32
    %c0_i32_0 = arith.constant 0 : i32
    %c0_i32_1 = arith.constant 0 : i32
    return %c0_i32, %c0_i32_0 : i32, i32
  }
  func.func @transform_6(%arg0: i32) -> (i32, i32) {
    %c0_i32 = arith.constant 0 : i32
    %c0_i32_0 = arith.constant 0 : i32
    %c0_i32_1 = arith.constant 0 : i32
    return %c0_i32, %c0_i32_0 : i32, i32
  }
  func.func @transform_7(%arg0: i32) -> (i32, i32) {
    %c0_i32 = arith.constant 0 : i32
    %c0_i32_0 = arith.constant 0 : i32
    %c0_i32_1 = arith.constant 0 : i32
    return %c0_i32, %c0_i32_0 : i32, i32
  }
  func.func @transform_8(%arg0: i32) -> (i32, i32, i32) {
    %c0_i32 = arith.constant 0 : i32
    %c0_i32_0 = arith.constant 0 : i32
    %c0_i32_1 = arith.constant 0 : i32
    return %arg0, %c0_i32, %c0_i32_0 : i32, i32, i32
  }
}

module attributes {stable_mosaic.version = 11 : i64} {
  func.func @kernel(%arg0: i32, %arg1: memref<1x256x8xf32, #tpu.memory_space<vmem>>, %arg2: memref<8x4xf32, #tpu.memory_space<vmem>>, %arg3: memref<1x256x4xf32, #tpu.memory_space<vmem>>, %arg4: memref<4x4xf32, #tpu.memory_space<vmem>>, %arg5: memref<1x1x2xf32, #tpu.memory_space<vmem>>, %arg6: memref<2x2xf32, #tpu.memory_space<vmem>>, %arg7: memref<4x2xf32, #tpu.memory_space<vmem>>, %arg8: memref<2x2xf32, #tpu.memory_space<vmem>>, %arg9: memref<1x256x2xf32, #tpu.memory_space<vmem>>) attributes {dimension_semantics = [#tpu.dimension_semantics<parallel>], iteration_bounds = array<i64: 2>, scalar_prefetch = 0 : i64, scratch_operands = 0 : i64, tpu.core_type = #tpu.core_type<tc>, window_params = [{transform_indices = @transform_0, window_bounds = array<i64: 1, 256, 8>}, {pipeline_mode = #tpu.pipeline_mode<synchronous>, transform_indices = @transform_1, window_bounds = array<i64: 8, 4>}, {transform_indices = @transform_2, window_bounds = array<i64: 1, 256, 4>}, {pipeline_mode = #tpu.pipeline_mode<synchronous>, transform_indices = @transform_3, window_bounds = array<i64: 4, 4>}, {transform_indices = @transform_4, window_bounds = array<i64: 1, 1, 2>}, {pipeline_mode = #tpu.pipeline_mode<synchronous>, transform_indices = @transform_5, window_bounds = array<i64: 2, 2>}, {pipeline_mode = #tpu.pipeline_mode<synchronous>, transform_indices = @transform_6, window_bounds = array<i64: 4, 2>}, {pipeline_mode = #tpu.pipeline_mode<synchronous>, transform_indices = @transform_7, window_bounds = array<i64: 2, 2>}, {transform_indices = @transform_8, window_bounds = array<i64: 1, 256, 2>}]} {
    %c0 = arith.constant 0 : index
    %c0_0 = arith.constant 0 : index
    %0 = vector.load %arg2[%c0, %c0_0] : memref<8x4xf32, #tpu.memory_space<vmem>>, vector<8x4xf32>
    %c0_1 = arith.constant 0 : index
    %c0_2 = arith.constant 0 : index
    %1 = vector.load %arg4[%c0_1, %c0_2] : memref<4x4xf32, #tpu.memory_space<vmem>>, vector<4x4xf32>
    %c0_3 = arith.constant 0 : index
    %c0_4 = arith.constant 0 : index
    %c0_5 = arith.constant 0 : index
    %2 = vector.load %arg5[%c0_3, %c0_4, %c0_5] : memref<1x1x2xf32, #tpu.memory_space<vmem>>, vector<1x1x2xf32>
    %3 = vector.shape_cast %2 : vector<1x1x2xf32> to vector<1x2xf32>
    %c0_6 = arith.constant 0 : index
    %c0_7 = arith.constant 0 : index
    %4 = vector.load %arg6[%c0_6, %c0_7] : memref<2x2xf32, #tpu.memory_space<vmem>>, vector<2x2xf32>
    %c0_8 = arith.constant 0 : index
    %c0_9 = arith.constant 0 : index
    %5 = vector.load %arg7[%c0_8, %c0_9] : memref<4x2xf32, #tpu.memory_space<vmem>>, vector<4x2xf32>
    %c0_10 = arith.constant 0 : index
    %c0_11 = arith.constant 0 : index
    %6 = vector.load %arg8[%c0_10, %c0_11] : memref<2x2xf32, #tpu.memory_space<vmem>>, vector<2x2xf32>
    %c0_12 = arith.constant 0 : index
    %c0_13 = arith.constant 0 : index
    %c0_14 = arith.constant 0 : index
    %7 = vector.load %arg1[%c0_12, %c0_13, %c0_14] : memref<1x256x8xf32, #tpu.memory_space<vmem>>, vector<1x256x8xf32>
    %8 = vector.shape_cast %7 : vector<1x256x8xf32> to vector<256x8xf32>
    %cst = arith.constant dense<0.000000e+00> : vector<256x4xf32>
    %9 = tpu.matmul %8, %0, %cst {dimension_numbers = #tpu.dot_dimension_numbers<[1], [0], [0], [1], [0, 0, 1, 1], [], []>} : vector<256x8xf32>, vector<8x4xf32>, vector<256x4xf32> -> vector<256x4xf32>
    %c0_15 = arith.constant 0 : index
    %c0_16 = arith.constant 0 : index
    %c0_17 = arith.constant 0 : index
    %10 = vector.load %arg3[%c0_15, %c0_16, %c0_17] : memref<1x256x4xf32, #tpu.memory_space<vmem>>, vector<1x256x4xf32>
    %11 = vector.shape_cast %10 : vector<1x256x4xf32> to vector<256x4xf32>
    %cst_18 = arith.constant dense<0.000000e+00> : vector<256x4xf32>
    %12 = tpu.matmul %11, %1, %cst_18 {dimension_numbers = #tpu.dot_dimension_numbers<[1], [0], [0], [1], [0, 0, 1, 1], [], []>} : vector<256x4xf32>, vector<4x4xf32>, vector<256x4xf32> -> vector<256x4xf32>
    %13 = arith.addf %9, %12 : vector<256x4xf32>
    %14 = vector.extract_strided_slice %13 {offsets = [0, 0], sizes = [256, 2], strides = [1, 1]} : vector<256x4xf32> to vector<256x2xf32>
    %15 = vector.extract_strided_slice %13 {offsets = [0, 2], sizes = [256, 2], strides = [1, 1]} : vector<256x4xf32> to vector<256x2xf32>
    %16 = vector.extract_strided_slice %5 {offsets = [0, 0], sizes = [1, 2], strides = [1, 1]} : vector<4x2xf32> to vector<1x2xf32>
    %17 = vector.extract_strided_slice %5 {offsets = [1, 0], sizes = [1, 2], strides = [1, 1]} : vector<4x2xf32> to vector<1x2xf32>
    %cst_19 = arith.constant dense<0.000000e+00> : vector<2xf32>
    %18 = vector.multi_reduction <add>, %14, %cst_19 [0] : vector<256x2xf32> to vector<2xf32>
    %19 = vector.shape_cast %18 : vector<2xf32> to vector<1x2xf32>
    %cst_20 = arith.constant dense<0.000000e+00> : vector<1x2xf32>
    %20 = tpu.matmul %19, %4, %cst_20 {dimension_numbers = #tpu.dot_dimension_numbers<[1], [0], [0], [1], [0, 0, 1, 1], [], []>} : vector<1x2xf32>, vector<2x2xf32>, vector<1x2xf32> -> vector<1x2xf32>
    %cst_21 = arith.constant 3.906250e-03 : f32
    %21 = vector.broadcast %cst_21 : f32 to vector<1x2xf32>
    %22 = arith.mulf %20, %21 : vector<1x2xf32>
    %23 = arith.mulf %14, %14 : vector<256x2xf32>
    %cst_22 = arith.constant dense<0.000000e+00> : vector<2xf32>
    %24 = vector.multi_reduction <add>, %23, %cst_22 [0] : vector<256x2xf32> to vector<2xf32>
    %25 = vector.shape_cast %24 : vector<2xf32> to vector<1x2xf32>
    %cst_23 = arith.constant dense<0.000000e+00> : vector<1x2xf32>
    %26 = tpu.matmul %25, %4, %cst_23 {dimension_numbers = #tpu.dot_dimension_numbers<[1], [0], [0], [1], [0, 0, 1, 1], [], []>} : vector<1x2xf32>, vector<2x2xf32>, vector<1x2xf32> -> vector<1x2xf32>
    %cst_24 = arith.constant 3.906250e-03 : f32
    %27 = vector.broadcast %cst_24 : f32 to vector<1x2xf32>
    %28 = arith.mulf %26, %27 : vector<1x2xf32>
    %29 = arith.mulf %22, %22 : vector<1x2xf32>
    %30 = arith.subf %28, %29 : vector<1x2xf32>
    %31 = vector.broadcast %22 : vector<1x2xf32> to vector<256x2xf32>
    %32 = arith.subf %14, %31 : vector<256x2xf32>
    %cst_25 = arith.constant 9.99999974E-6 : f32
    %33 = vector.broadcast %cst_25 : f32 to vector<1x2xf32>
    %34 = arith.addf %30, %33 : vector<1x2xf32>
    %35 = math.rsqrt %34 : vector<1x2xf32>
    %36 = vector.broadcast %35 : vector<1x2xf32> to vector<256x2xf32>
    %37 = arith.mulf %32, %36 : vector<256x2xf32>
    %38 = vector.broadcast %16 : vector<1x2xf32> to vector<256x2xf32>
    %39 = arith.mulf %37, %38 : vector<256x2xf32>
    %40 = vector.broadcast %17 : vector<1x2xf32> to vector<256x2xf32>
    %41 = arith.addf %39, %40 : vector<256x2xf32>
    %42 = arith.negf %41 : vector<256x2xf32>
    %43 = math.exp %42 : vector<256x2xf32>
    %cst_26 = arith.constant 1.000000e+00 : f32
    %44 = vector.broadcast %cst_26 : f32 to vector<256x2xf32>
    %45 = arith.addf %44, %43 : vector<256x2xf32>
    %46 = arith.divf %44, %45 : vector<256x2xf32>
    %47 = arith.mulf %41, %46 : vector<256x2xf32>
    %48 = vector.broadcast %3 : vector<1x2xf32> to vector<256x2xf32>
    %49 = arith.addf %47, %48 : vector<256x2xf32>
    %cst_27 = arith.constant dense<0.000000e+00> : vector<256x2xf32>
    %50 = tpu.matmul %49, %6, %cst_27 {dimension_numbers = #tpu.dot_dimension_numbers<[1], [0], [0], [1], [0, 0, 1, 1], [], []>} : vector<256x2xf32>, vector<2x2xf32>, vector<256x2xf32> -> vector<256x2xf32>
    %51 = vector.extract_strided_slice %5 {offsets = [2, 0], sizes = [1, 2], strides = [1, 1]} : vector<4x2xf32> to vector<1x2xf32>
    %52 = vector.extract_strided_slice %5 {offsets = [3, 0], sizes = [1, 2], strides = [1, 1]} : vector<4x2xf32> to vector<1x2xf32>
    %cst_28 = arith.constant dense<0.000000e+00> : vector<2xf32>
    %53 = vector.multi_reduction <add>, %50, %cst_28 [0] : vector<256x2xf32> to vector<2xf32>
    %54 = vector.shape_cast %53 : vector<2xf32> to vector<1x2xf32>
    %cst_29 = arith.constant dense<0.000000e+00> : vector<1x2xf32>
    %55 = tpu.matmul %54, %4, %cst_29 {dimension_numbers = #tpu.dot_dimension_numbers<[1], [0], [0], [1], [0, 0, 1, 1], [], []>} : vector<1x2xf32>, vector<2x2xf32>, vector<1x2xf32> -> vector<1x2xf32>
    %cst_30 = arith.constant 3.906250e-03 : f32
    %56 = vector.broadcast %cst_30 : f32 to vector<1x2xf32>
    %57 = arith.mulf %55, %56 : vector<1x2xf32>
    %58 = arith.mulf %50, %50 : vector<256x2xf32>
    %cst_31 = arith.constant dense<0.000000e+00> : vector<2xf32>
    %59 = vector.multi_reduction <add>, %58, %cst_31 [0] : vector<256x2xf32> to vector<2xf32>
    %60 = vector.shape_cast %59 : vector<2xf32> to vector<1x2xf32>
    %cst_32 = arith.constant dense<0.000000e+00> : vector<1x2xf32>
    %61 = tpu.matmul %60, %4, %cst_32 {dimension_numbers = #tpu.dot_dimension_numbers<[1], [0], [0], [1], [0, 0, 1, 1], [], []>} : vector<1x2xf32>, vector<2x2xf32>, vector<1x2xf32> -> vector<1x2xf32>
    %cst_33 = arith.constant 3.906250e-03 : f32
    %62 = vector.broadcast %cst_33 : f32 to vector<1x2xf32>
    %63 = arith.mulf %61, %62 : vector<1x2xf32>
    %64 = arith.mulf %57, %57 : vector<1x2xf32>
    %65 = arith.subf %63, %64 : vector<1x2xf32>
    %66 = vector.broadcast %57 : vector<1x2xf32> to vector<256x2xf32>
    %67 = arith.subf %50, %66 : vector<256x2xf32>
    %cst_34 = arith.constant 9.99999974E-6 : f32
    %68 = vector.broadcast %cst_34 : f32 to vector<1x2xf32>
    %69 = arith.addf %65, %68 : vector<1x2xf32>
    %70 = math.rsqrt %69 : vector<1x2xf32>
    %71 = vector.broadcast %70 : vector<1x2xf32> to vector<256x2xf32>
    %72 = arith.mulf %67, %71 : vector<256x2xf32>
    %73 = vector.broadcast %51 : vector<1x2xf32> to vector<256x2xf32>
    %74 = arith.mulf %72, %73 : vector<256x2xf32>
    %75 = vector.broadcast %52 : vector<1x2xf32> to vector<256x2xf32>
    %76 = arith.addf %74, %75 : vector<256x2xf32>
    %77 = arith.negf %76 : vector<256x2xf32>
    %78 = math.exp %77 : vector<256x2xf32>
    %cst_35 = arith.constant 1.000000e+00 : f32
    %79 = vector.broadcast %cst_35 : f32 to vector<256x2xf32>
    %80 = arith.addf %79, %78 : vector<256x2xf32>
    %81 = arith.divf %79, %80 : vector<256x2xf32>
    %82 = arith.mulf %76, %81 : vector<256x2xf32>
    %83 = arith.addf %82, %15 : vector<256x2xf32>
    %c0_36 = arith.constant 0 : index
    %c0_37 = arith.constant 0 : index
    %c0_38 = arith.constant 0 : index
    %84 = vector.load %arg9[%c0_36, %c0_37, %c0_38] : memref<1x256x2xf32, #tpu.memory_space<vmem>>, vector<1x256x2xf32>
    %85 = vector.shape_cast %84 : vector<1x256x2xf32> to vector<256x2xf32>
    %86 = vector.shape_cast %83 : vector<256x2xf32> to vector<1x256x2xf32>
    tpu.vector_store %arg9[%c0_36, %c0_37, %c0_38], %86 {strides = array<i32>} : memref<1x256x2xf32, #tpu.memory_space<vmem>>, vector<1x256x2xf32>,
    return
  }
  func.func @transform_0(%arg0: i32) -> (i32, i32, i32) {
    %c0_i32 = arith.constant 0 : i32
    %c0_i32_0 = arith.constant 0 : i32
    %c0_i32_1 = arith.constant 0 : i32
    return %arg0, %c0_i32, %c0_i32_0 : i32, i32, i32
  }
  func.func @transform_1(%arg0: i32) -> (i32, i32) {
    %c0_i32 = arith.constant 0 : i32
    %c0_i32_0 = arith.constant 0 : i32
    %c0_i32_1 = arith.constant 0 : i32
    return %c0_i32, %c0_i32_0 : i32, i32
  }
  func.func @transform_2(%arg0: i32) -> (i32, i32, i32) {
    %c0_i32 = arith.constant 0 : i32
    %c0_i32_0 = arith.constant 0 : i32
    %c0_i32_1 = arith.constant 0 : i32
    return %arg0, %c0_i32, %c0_i32_0 : i32, i32, i32
  }
  func.func @transform_3(%arg0: i32) -> (i32, i32) {
    %c0_i32 = arith.constant 0 : i32
    %c0_i32_0 = arith.constant 0 : i32
    %c0_i32_1 = arith.constant 0 : i32
    return %c0_i32, %c0_i32_0 : i32, i32
  }
  func.func @transform_4(%arg0: i32) -> (i32, i32, i32) {
    %c0_i32 = arith.constant 0 : i32
    %c0_i32_0 = arith.constant 0 : i32
    %c0_i32_1 = arith.constant 0 : i32
    return %arg0, %c0_i32, %c0_i32_0 : i32, i32, i32
  }
  func.func @transform_5(%arg0: i32) -> (i32, i32) {
    %c0_i32 = arith.constant 0 : i32
    %c0_i32_0 = arith.constant 0 : i32
    %c0_i32_1 = arith.constant 0 : i32
    return %c0_i32, %c0_i32_0 : i32, i32
  }
  func.func @transform_6(%arg0: i32) -> (i32, i32) {
    %c0_i32 = arith.constant 0 : i32
    %c0_i32_0 = arith.constant 0 : i32
    %c0_i32_1 = arith.constant 0 : i32
    return %c0_i32, %c0_i32_0 : i32, i32
  }
  func.func @transform_7(%arg0: i32) -> (i32, i32) {
    %c0_i32 = arith.constant 0 : i32
    %c0_i32_0 = arith.constant 0 : i32
    %c0_i32_1 = arith.constant 0 : i32
    return %c0_i32, %c0_i32_0 : i32, i32
  }
  func.func @transform_8(%arg0: i32) -> (i32, i32, i32) {
    %c0_i32 = arith.constant 0 : i32
    %c0_i32_0 = arith.constant 0 : i32
    %c0_i32_1 = arith.constant 0 : i32
    return %arg0, %c0_i32, %c0_i32_0 : i32, i32, i32
  }
}

</mosaic_0001>

<bundles_post_ra>
// kernel: _lambda_.6
= control target key start
LH: loop header
LB: loop body
LE: loop exit
PB: predicated region body
PF: predicated region fallthrough
CT: control target
= control target key end

     0   :  { %s1568_s21 = smov 0   ;;  %s1856_s0 = inlined_call_operand.vmem [shape: f32[2,64,16], index: 0, kind: input, shape index: {}]   ;;  %s1857_s1 = inlined_call_operand.vmem [shape: f32[16,32], index: 1, kind: input, shape index: {}]   ;;  %s1858_s2 = inlined_call_operand.vmem [shape: f32[2,1,16], index: 2, kind: input, shape index: {}]   ;;  %s1859_s3 = inlined_call_operand.vmem [shape: f32[16,16], index: 3, kind: input, shape index: {}]   ;;  %s1860_s4 = inlined_call_operand.vmem [shape: f32[4,16], index: 4, kind: input, shape index: {}]   ;;  %s1861_s5 = inlined_call_operand.vmem [shape: f32[16,16], index: 5, kind: input, shape index: {}]   ;;  %s1862_s6 = inlined_call_operand.vmem [shape: f32[2,64,16], index: 6, kind: output, shape index: {}]  }
   0x1 LB: > { %s1279_s22 = sadd.s32 4294967295, %s1527_s21   ;;  %p1283_p0 = scmp.ge.s32.totalorder %s1527_s21, 1  ;;  %s1527_s21 = sphi %s1568_s21, %s16_s21  }
   0x2   : > { %p220_p1 = scmp.lt.s32.totalorder %s1527_s21, 3 }
   0x4   : > { %p221_p2 = pnand %p1283_p0, %p220_p1 }
   0x5   : > { %v266_v0 = vld [vmem:[%s1857_s1] sm:$0xff] (!%p221_p2)  ;;  %v267_v1 = vld [vmem:[%s1857_s1 + $0x8] sm:$0xff] (!%p221_p2)  ;;  %p253_p3 = scmp.lt.s32.totalorder (!%p221_p2), %s1279_s22, 1  ;;  %vm282_vm0 = vcmask (!%p221_p2), 130048   ;;  %v1529_v13 = vmov (!%p221_p2), 0.0|0.0   ;;  %vm1530_vm1 = vmmov (!%p221_p2), 0  }
   0x6   : > { %224 = sbr.rel (%p221_p2) target bundleno = 1055 (0x41f), region = 44  ;;  %v1421_v2 = vpack.c.bf16 (!%p221_p2), %v267_v1, %v266_v0  ;;  %v269_v11 = vld [vmem:[%s1859_s3] sm:$0xff] (!%p221_p2)  ;;  %v270_v12 = vld [vmem:[%s1859_s3 + $0x8] sm:$0xff] (!%p221_p2)  ;;  %1425 = vmatprep.subr.bf16.mxu1 (!%p221_p2), %v1529_v13  ;;  %v1531_v15 = vmov (!%p221_p2), 0.0   ;;  %s1532_s11 = smov (!%p221_p2), 112  }
   0x7   : > { %v1604_v14 = vpack.c.bf16 (!%p221_p2), %v270_v12, %v269_v11  ;;  %1381 = vmatprep.mubr.msk.f32.mxu1 (!%p221_p2), %vm1530_vm1, %v1531_v15 }
   0x8   : > { %1422 = vmatprep.subr.bf16.mxu0 (!%p221_p2), %v1421_v2 }
   0x9   : > { %1424 = vmatpush3.bf16.msra.mxu0 (!%p221_p2), %v1421_v2  ;;  %1427 = vmatpush3.bf16.msra.mxu1 (!%p221_p2), %v1604_v14 }
   0xa   : > { %1435 = vmatprep.subr.bf16.mxu0 (!%p221_p2), %v1529_v13  ;;  %1428 = vmatprep.subr.bf16.mxu1 (!%p221_p2), %v1529_v13 }
   0xd   : > { %s1864_s22 = smov (!%p253_p3, %s1279_s22), 1 }
   0xe   : > { %s1327_s27 = sshll.u32 %s1864_s22, 6  ;;  %s260_s20 = scalar_lea.vmem %s1858_s2, %s1864_s22 }
   0xf   : > { %s257_s30 = scalar_lea.vmem %s1856_s0, %s1327_s27  ;;  %s1831_s25 = scalar_lea.vmem %s1862_s6, %s1327_s27 }
  0x10   : > { %v274_v3 = vld [vmem:[%s257_s30] sm:$0xff]  ;;  %v275_v4 = vld [vmem:[%s257_s30 + $0x8] sm:$0xff]  ;;  %v276_v5 = vld [vmem:[%s257_s30 + $0x10] sm:$0xff] }
  0x11   : > { %1365 = vmatprep.mubr.msk.f32.mxu0 %vm282_vm0, %v274_v3  ;;  %v277_v6 = vld [vmem:[%s257_s30 + $0x18] sm:$0xff]  ;;  %v278_v7 = vld [vmem:[%s257_s30 + $0x20] sm:$0xff]  ;;  %v279_v8 = vld [vmem:[%s257_s30 + $0x28] sm:$0xff] }
  0x12   : > { %1366 = vmatmul.mubr.msk.f32.vlgmr.msra.gmra.mrb[0].mxu0 %vm282_vm0, %v275_v4  ;;  %v280_v9 = vld [vmem:[%s257_s30 + $0x30] sm:$0xff]  ;;  %v281_v10 = vld [vmem:[%s257_s30 + $0x38] sm:$0xff] }
  0x13   : > { %1368 = vmatprep.mubr.msk.f32.mxu0 %vm282_vm0, %v276_v5  ;;  %1437 = vmatpush3.bf16.msra.mxu0 %v1604_v14 }
  0x14   : > { %1438 = vmatprep.subr.bf16.mxu0 %v1529_v13 }
  0x16   : > { %1369 = vmatmul.mubr.msk.f32.gmra.mrb[2].mxu0 %vm282_vm0, %v277_v6 }
  0x17   : > { %1371 = vmatprep.mubr.msk.f32.mxu0 %vm282_vm0, %v278_v7 }
  0x1a   : > { %1372 = vmatmul.mubr.msk.f32.gmra.mrb[4].mxu0 %vm282_vm0, %v279_v8 }
  0x1b   : > { %1374 = vmatprep.mubr.msk.f32.mxu0 %vm282_vm0, %v280_v9 }
  0x1e   : > { %1375 = vmatmul.mubr.msk.f32.gmra.mrb[6].mxu0 %vm282_vm0, %v281_v10  ;;  %v612_v10 = vlaneseq }
  0x1f   : > { %1411 = vmatprep.mubr.msk.f32.mxu0 %vm1530_vm1, %v1531_v15 }
  0x20   : > { %v613_v11 = vshrl.u32 %v612_v10, 7 }
  0x22   : > { %v1089_v12 = vsub.s32 2, %v613_v11  ;;  %v1101_v13 = vsub.s32 3, %v613_v11 }
  0xe5   : > { %v1612_v16 = vpop.f32.mrb[0].mxu0 }
  0xe6   : > { %v413_v17 = vsel %vm282_vm0, %v1612_v16, 0.0  ;;  %v508_v18 = vmul.f32 %v1612_v16, %v1612_v16  ;;  %1177 = vrot.lane.b32.xlu0 %v1612_v16, %s1532_s11  ;;  %v1620_v19 = vpop.f32.mrb[1].mxu0 }
  0xe7   : > { %v412_v20 = vsel %vm282_vm0, %v1620_v19, 0.0  ;;  %v507_v21 = vmul.f32 %v1620_v19, %v1620_v19 }
  0xe8   : > { %v516_v22 = vsel %vm282_vm0, %v508_v18, 0.0  ;;  %v414_v23 = vadd.f32 %v413_v17, %v412_v20  ;;  %v271_v17 = vld [vmem:[%s1860_s4] sm:$0xf] }
  0xe9   : > { %v515_v24 = vsel %vm282_vm0, %v507_v21, 0.0  ;;  %v1628_v25 = vpop.f32.mrb[2].mxu0  ;;  %v1692_v18 = vrot.slane %v271_v17, %v1089_v12  ;;  %v1694_v20 = vrot.slane %v271_v17, %v1101_v13  ;;  %v272_v21 = vld [vmem:[%s1861_s5] sm:$0xff] }
  0xea   : > { %v517_v26 = vadd.f32 %v516_v22, %v515_v24  ;;  %1175 = vrot.lane.b32.xlu0 %v1620_v19, %s1532_s11  ;;  %1181 = vrot.lane.b32.xlu1 %v1628_v25, %s1532_s11  ;;  %v1634_v27 = vpop.f32.mrb[3].mxu0  ;;  %v510_v28 = vmul.f32 %v1628_v25, %v1628_v25  ;;  %v417_v32 = vsel %vm282_vm0, %v1628_v25, 0.0  ;;  %v273_v22 = vld [vmem:[%s1861_s5 + $0x8] sm:$0xff]  ;;  %v1702_v24 = vsub.s32 0, %v613_v11 }
  0xeb   : > { %v415_v29 = vsel %vm282_vm0, %v1634_v27, 0.0  ;;  %v509_v30 = vmul.f32 %v1634_v27, %v1634_v27 }
  0xec   : > { %v416_v31 = vadd.f32 %v415_v29, %v414_v23  ;;  %v520_v38 = vsel %vm282_vm0, %v510_v28, 0.0  ;;  %v1431_v23 = vpack.c.bf16 %v273_v22, %v272_v21 }
  0xed   : > { %v518_v33 = vsel %vm282_vm0, %v509_v30, 0.0  ;;  %v1645_v34 = vpop.f32.mrb[4].mxu0 }
  0xee   : > { %v519_v35 = vadd.f32 %v518_v33, %v517_v26  ;;  %1179 = vrot.lane.b32.xlu1 %v1634_v27, %s1532_s11  ;;  %v1649_v36 = vpop.f32.mrb[5].mxu0  ;;  %v418_v37 = vadd.f32 %v417_v32, %v416_v31  ;;  %v512_v39 = vmul.f32 %v1645_v34, %v1645_v34  ;;  %v421_v44 = vsel %vm282_vm0, %v1645_v34, 0.0 }
  0xef   : > { %v419_v40 = vsel %vm282_vm0, %v1649_v36, 0.0  ;;  %v511_v41 = vmul.f32 %v1649_v36, %v1649_v36  ;;  %1183 = vrot.lane.b32.xlu0 %v1649_v36, %s1532_s11 }
  0xf0   : > { %v420_v42 = vadd.f32 %v419_v40, %v418_v37  ;;  %v521_v43 = vadd.f32 %v520_v38, %v519_v35  ;;  %v524_v50 = vsel %vm282_vm0, %v512_v39, 0.0 }
  0xf1   : > { %v522_v45 = vsel %vm282_vm0, %v511_v41, 0.0  ;;  %v1663_v46 = vpop.f32.mrb[6].mxu0 }
  0xf2   : > { %v523_v47 = vadd.f32 %v522_v45, %v521_v43  ;;  %1185 = vrot.lane.b32.xlu1 %v1645_v34, %s1532_s11  ;;  %v1667_v48 = vpop.f32.mrb[7].mxu0  ;;  %v422_v49 = vadd.f32 %v421_v44, %v420_v42  ;;  %v514_v51 = vmul.f32 %v1663_v46, %v1663_v46  ;;  %v425_v56 = vsel %vm282_vm0, %v1663_v46, 0.0 }
  0xf3   : > { %v423_v52 = vsel %vm282_vm0, %v1667_v48, 0.0  ;;  %v513_v53 = vmul.f32 %v1667_v48, %v1667_v48  ;;  %1187 = vrot.lane.b32.xlu0 %v1667_v48, %s1532_s11 }
  0xf4   : > { %v424_v54 = vadd.f32 %v423_v52, %v422_v49  ;;  %v525_v55 = vadd.f32 %v524_v50, %v523_v47  ;;  %v528_v60 = vsel %vm282_vm0, %v514_v51, 0.0  ;;  %v652_v49 = vsub.s32 1, %v613_v11 }
  0xf5   : > { %v526_v57 = vsel %vm282_vm0, %v513_v53, 0.0 }
  0xf6   : > { %v426_v58 = vadd.f32 %v425_v56, %v424_v54  ;;  %v527_v59 = vadd.f32 %v526_v57, %v525_v55  ;;  %1189 = vrot.lane.b32.xlu1 %v1663_v46, %s1532_s11 }
  0xf8   : > { %v427_v61 = vrot.slane %v426_v58, 4  ;;  %v529_v62 = vadd.f32 %v528_v60, %v527_v59 }
  0xfa   : > { %v428_v63 = vadd.f32 %v427_v61, %v426_v58  ;;  %v530_v0 = vrot.slane %v529_v62, 4 }
  0xfc   : > { %v531_v1 = vadd.f32 %v530_v0, %v529_v62  ;;  %v429_v2 = vrot.slane %v428_v63, 2 }
  0xfe   : > { %v532_v3 = vrot.slane %v531_v1, 2  ;;  %v430_v4 = vadd.f32 %v429_v2, %v428_v63 }
 0x100   : > { %v431_v5 = vrot.slane %v430_v4, 1  ;;  %v533_v6 = vadd.f32 %v532_v3, %v531_v1 }
 0x102   : > { %v432_v7 = vadd.f32 %v431_v5, %v430_v4  ;;  %v534_v8 = vrot.slane %v533_v6, 1 }
 0x104   : > { %1382 = vmatmul.mubr.msk.f32.vlgmr.msra.gmra.mrb[0].mxu1 %vm282_vm0, %v432_v7  ;;  %v535_v9 = vadd.f32 %v534_v8, %v533_v6 }
 0x105   : > { %1430 = vmatpush3.bf16.msra.mxu1 %v1604_v14  ;;  %1388 = vmatprep.mubr.msk.f32.mxu1 %vm1530_vm1, %v1531_v15 }
 0x106   : > { %1432 = vmatprep.subr.bf16.mxu1 %v1431_v23 }
 0x108   : > { %1389 = vmatmul.mubr.msk.f32.vlgmr.msra.gmra.mrb[2].mxu1 %vm282_vm0, %v535_v9 }
 0x109   : > { %1434 = vmatpush3.bf16.msra.mxu1 %v1431_v23 }
 0x1d7   : > { %v502_v26 = vpop.f32.mrb[0].mxu1 }
 0x1d8   : > { %v506_v28 = vmul.f32 0.015625, %v502_v26  ;;  %v1383_v29 = vpop.f32.mrb[1].mxu1 }
 0x1da   : > { %v615_v30 = vrot.slane %v506_v28, %v1702_v24  ;;  %v610_v31 = vmul.f32 %v506_v28, %v506_v28 }
 0x1db   : > { %v605_v32 = vpop.f32.mrb[2].mxu1 }
 0x1dc   : > { %v609_v33 = vmul.f32 0.015625, %v605_v32  ;;  %v1390_v35 = vpop.f32.mrb[3].mxu1  ;;  %v616_v37 = vsub.f32 %v1620_v19, %v615_v30  ;;  %v617_v38 = vsub.f32 %v1612_v16, %v615_v30  ;;  %v618_v39 = vsub.f32 %v1634_v27, %v615_v30 }
 0x1dd   : > { %v619_v40 = vsub.f32 %v1628_v25, %v615_v30  ;;  %v620_v41 = vsub.f32 %v1649_v36, %v615_v30  ;;  %v621_v42 = vsub.f32 %v1645_v34, %v615_v30  ;;  %v622_v43 = vsub.f32 %v1667_v48, %v615_v30 }
 0x1de   : > { %v611_v44 = vsub.f32 %v609_v33, %v610_v31  ;;  %v623_v45 = vsub.f32 %v1663_v46, %v615_v30  ;;  %v641_v19 = vrot.slane %v271_v17, %v1702_v24  ;;  %v653_v27 = vrot.slane %v271_v17, %v652_v49 }
 0x1e0   : > { %v624_v47 = vadd.f32 1e-05, %v611_v44 }
 0x1e2   : > { %1453 = vrsqrt.f32 %v624_v47 }
 0x1ec   : > { %v1454_v50 = vpop.eup %1453 }
 0x1ed   : > { %v629_v16 = vrot.slane %v1454_v50, %v1702_v24 }
 0x1ef   : > { %v630_v51 = vmul.f32 %v629_v16, %v616_v37  ;;  %v631_v25 = vmul.f32 %v629_v16, %v617_v38  ;;  %v632_v52 = vmul.f32 %v629_v16, %v618_v39  ;;  %v633_v36 = vmul.f32 %v629_v16, %v619_v40 }
 0x1f0   : > { %v634_v53 = vmul.f32 %v629_v16, %v620_v41  ;;  %v635_v34 = vmul.f32 %v629_v16, %v621_v42  ;;  %v636_v54 = vmul.f32 %v629_v16, %v622_v43  ;;  %v637_v48 = vmul.f32 %v629_v16, %v623_v45  ;;  %v1306_v42 = vld [vmem:[%s260_s20] ss:$0 sm:$0xff] }
 0x1f1   : > { %v642_v55 = vmul.f32 %v641_v19, %v630_v51  ;;  %v643_v56 = vmul.f32 %v641_v19, %v631_v25  ;;  %v644_v46 = vmul.f32 %v641_v19, %v632_v52  ;;  %v645_v57 = vmul.f32 %v641_v19, %v633_v36 }
 0x1f2   : > { %v646_v58 = vmul.f32 %v641_v19, %v634_v53  ;;  %v647_v59 = vmul.f32 %v641_v19, %v635_v34  ;;  %v648_v60 = vmul.f32 %v641_v19, %v636_v54  ;;  %v649_v61 = vmul.f32 %v641_v19, %v637_v48 }
 0x1f3   : > { %v654_v62 = vadd.f32 %v653_v27, %v642_v55  ;;  %v655_v63 = vadd.f32 %v653_v27, %v643_v56  ;;  %v656_v0 = vadd.f32 %v653_v27, %v644_v46  ;;  %v657_v1 = vadd.f32 %v653_v27, %v645_v57 }
 0x1f4   : > { %v658_v2 = vadd.f32 %v653_v27, %v646_v58  ;;  %v1715_v3 = vadd.f32 %v653_v27, %v647_v59  ;;  %v1717_v7 = vadd.f32 %v653_v27, %v648_v60  ;;  %v1719_v9 = vadd.f32 %v653_v27, %v649_v61 }
 0x1f5   : > { %v1298_v4 = vmul.f32 -1.442695, %v654_v62  ;;  %v1299_v5 = vmul.f32 -1.442695, %v655_v63  ;;  %v1300_v6 = vmul.f32 -1.442695, %v656_v0 }
 0x1f6   : > { %v1301_v8 = vmul.f32 -1.442695, %v657_v1  ;;  %v1302_v10 = vmul.f32 -1.442695, %v658_v2  ;;  %v1303_v11 = vmul.f32 -1.442695, %v1715_v3 }
 0x1f7   : > { %1455 = vpow2.f32 %v1298_v4  ;;  %v1304_v12 = vmul.f32 -1.442695, %v1717_v7  ;;  %v1305_v13 = vmul.f32 -1.442695, %v1719_v9 }
 0x1f8   : > { %1457 = vpow2.f32 %v1299_v5 }
 0x1f9   : > { %1459 = vpow2.f32 %v1300_v6 }
 0x1fa   : > { %1461 = vpow2.f32 %v1301_v8 }
 0x1fb   : > { %1463 = vpow2.f32 %v1302_v10 }
 0x1fc   : > { %1465 = vpow2.f32 %v1303_v11 }
 0x1fd   : > { %1467 = vpow2.f32 %v1304_v12 }
 0x1fe   : > { %1469 = vpow2.f32 %v1305_v13 }
 0x201   : > { %v1456_v17 = vpop.eup %1455 }
 0x202   : > { %v1458_v21 = vpop.eup %1457  ;;  %v686_v22 = vadd.f32 1.0, %v1456_v17 }
 0x203   : > { %v1460_v23 = vpop.eup %1459  ;;  %v687_v26 = vadd.f32 1.0, %v1458_v21 }
 0x204   : > { %v1462_v28 = vpop.eup %1461  ;;  %1471 = vrcp.f32 %v686_v22  ;;  %v688_v29 = vadd.f32 1.0, %v1460_v23 }
 0x205   : > { %v1464_v30 = vpop.eup %1463  ;;  %1473 = vrcp.f32 %v687_v26  ;;  %v689_v31 = vadd.f32 1.0, %v1462_v28 }
 0x206   : > { %v1466_v32 = vpop.eup %1465  ;;  %1475 = vrcp.f32 %v688_v29  ;;  %v690_v33 = vadd.f32 1.0, %v1464_v30 }
 0x207   : > { %v1468_v35 = vpop.eup %1467  ;;  %1477 = vrcp.f32 %v689_v31  ;;  %v691_v37 = vadd.f32 1.0, %v1466_v32 }
 0x208   : > { %v1470_v38 = vpop.eup %1469  ;;  %1479 = vrcp.f32 %v690_v33  ;;  %v692_v39 = vadd.f32 1.0, %v1468_v35 }
 0x209   : > { %1481 = vrcp.f32 %v691_v37  ;;  %v693_v40 = vadd.f32 1.0, %v1470_v38 }
 0x20a   : > { %1483 = vrcp.f32 %v692_v39 }
 0x20b   : > { %1485 = vrcp.f32 %v693_v40 }
 0x20e   : > { %v1472_v41 = vpop.eup %1471 }
 0x20f   : > { %v1474_v43 = vpop.eup %1473  ;;  %v710_v44 = vmul.f32 %v1472_v41, %v654_v62 }
 0x210   : > { %v1476_v45 = vpop.eup %1475  ;;  %v711_v47 = vmul.f32 %v1474_v43, %v655_v63 }
 0x211   : > { %v1478_v49 = vpop.eup %1477  ;;  %v724_v50 = vadd.f32 %v1306_v42, %v710_v44  ;;  %v712_v19 = vmul.f32 %v1476_v45, %v656_v0 }
 0x212   : > { %v1480_v16 = vpop.eup %1479  ;;  %v725_v27 = vadd.f32 %v1306_v42, %v711_v47  ;;  %v713_v51 = vmul.f32 %v1478_v49, %v657_v1 }
 0x213   : > { %v1482_v25 = vpop.eup %1481  ;;  %1395 = vmatprep.mubr.msk.f32.mxu1 %vm282_vm0, %v724_v50  ;;  %v726_v52 = vadd.f32 %v1306_v42, %v712_v19  ;;  %v714_v36 = vmul.f32 %v1480_v16, %v658_v2 }
 0x214   : > { %v1484_v53 = vpop.eup %1483  ;;  %1396 = vmatmul.mubr.msk.f32.vlgmr.msra.gmra.mrb[4].mxu1 %vm282_vm0, %v725_v27  ;;  %v727_v34 = vadd.f32 %v1306_v42, %v713_v51  ;;  %v715_v54 = vmul.f32 %v1482_v25, %v1715_v3 }
 0x215   : > { %v1486_v48 = vpop.eup %1485  ;;  %1398 = vmatprep.mubr.msk.f32.mxu1 %vm282_vm0, %v726_v52  ;;  %v728_v55 = vadd.f32 %v1306_v42, %v714_v36  ;;  %v716_v56 = vmul.f32 %v1484_v53, %v1717_v7 }
 0x216   : > { %v729_v46 = vadd.f32 %v1306_v42, %v715_v54  ;;  %v717_v57 = vmul.f32 %v1486_v48, %v1719_v9 }
 0x217   : > { %v730_v58 = vadd.f32 %v1306_v42, %v716_v56 }
 0x218   : > { %1399 = vmatmul.mubr.msk.f32.gmra.mrb[6].mxu1 %vm282_vm0, %v727_v34  ;;  %v731_v59 = vadd.f32 %v1306_v42, %v717_v57 }
 0x219   : > { %1401 = vmatprep.mubr.msk.f32.mxu1 %vm282_vm0, %v728_v55 }
 0x21c   : > { %1402 = vmatmul.mubr.msk.f32.gmra.mrb[8].mxu1 %vm282_vm0, %v729_v46 }
 0x21d   : > { %1404 = vmatprep.mubr.msk.f32.mxu1 %vm282_vm0, %v730_v58 }
 0x220   : > { %1405 = vmatmul.mubr.msk.f32.gmra.mrb[10].mxu1 %vm282_vm0, %v731_v59 }
 0x2e7   : > { %v1739_v60 = vpop.f32.mrb[4].mxu1 }
 0x2e8   : > { %v862_v61 = vsel %vm282_vm0, %v1739_v60, 0.0  ;;  %v957_v62 = vmul.f32 %v1739_v60, %v1739_v60  ;;  %v1745_v63 = vpop.f32.mrb[5].mxu1 }
 0x2e9   : > { %v861_v0 = vsel %vm282_vm0, %v1745_v63, 0.0  ;;  %v956_v1 = vmul.f32 %v1745_v63, %v1745_v63 }
 0x2ea   : > { %v965_v2 = vsel %vm282_vm0, %v957_v62, 0.0  ;;  %v863_v3 = vadd.f32 %v862_v61, %v861_v0 }
 0x2eb   : > { %v964_v4 = vsel %vm282_vm0, %v956_v1, 0.0  ;;  %v1753_v5 = vpop.f32.mrb[6].mxu1 }
 0x2ec   : > { %v966_v6 = vadd.f32 %v965_v2, %v964_v4  ;;  %v1755_v7 = vpop.f32.mrb[7].mxu1  ;;  %v959_v8 = vmul.f32 %v1753_v5, %v1753_v5  ;;  %v866_v12 = vsel %vm282_vm0, %v1753_v5, 0.0 }
 0x2ed   : > { %v864_v9 = vsel %vm282_vm0, %v1755_v7, 0.0  ;;  %v958_v10 = vmul.f32 %v1755_v7, %v1755_v7 }
 0x2ee   : > { %v865_v11 = vadd.f32 %v864_v9, %v863_v3  ;;  %v969_v26 = vsel %vm282_vm0, %v959_v8, 0.0 }
 0x2ef   : > { %v967_v13 = vsel %vm282_vm0, %v958_v10, 0.0  ;;  %v1766_v17 = vpop.f32.mrb[8].mxu1 }
 0x2f0   : > { %v968_v21 = vadd.f32 %v967_v13, %v966_v6  ;;  %v1768_v22 = vpop.f32.mrb[9].mxu1  ;;  %v867_v23 = vadd.f32 %v866_v12, %v865_v11  ;;  %v961_v28 = vmul.f32 %v1766_v17, %v1766_v17  ;;  %v870_v33 = vsel %vm282_vm0, %v1766_v17, 0.0 }
 0x2f1   : > { %v868_v29 = vsel %vm282_vm0, %v1768_v22, 0.0  ;;  %v960_v30 = vmul.f32 %v1768_v22, %v1768_v22 }
 0x2f2   : > { %v869_v31 = vadd.f32 %v868_v29, %v867_v23  ;;  %v970_v32 = vadd.f32 %v969_v26, %v968_v21  ;;  %v973_v41 = vsel %vm282_vm0, %v961_v28, 0.0 }
 0x2f3   : > { %v971_v35 = vsel %vm282_vm0, %v960_v30, 0.0  ;;  %v1406_v37 = vpop.f32.mrb[10].mxu1 }
 0x2f4   : > { %v972_v38 = vadd.f32 %v971_v35, %v970_v32  ;;  %v852_v39 = vpop.f32.mrb[11].mxu1  ;;  %v871_v40 = vadd.f32 %v870_v33, %v869_v31  ;;  %v963_v42 = vmul.f32 %v1406_v37, %v1406_v37  ;;  %v874_v49 = vsel %vm282_vm0, %v1406_v37, 0.0 }
 0x2f5   : > { %v872_v43 = vsel %vm282_vm0, %v852_v39, 0.0  ;;  %v962_v44 = vmul.f32 %v852_v39, %v852_v39 }
 0x2f6   : > { %v873_v45 = vadd.f32 %v872_v43, %v871_v40  ;;  %v974_v47 = vadd.f32 %v973_v41, %v972_v38  ;;  %v977_v27 = vsel %vm282_vm0, %v963_v42, 0.0 }
 0x2f7   : > { %v975_v50 = vsel %vm282_vm0, %v962_v44, 0.0 }
 0x2f8   : > { %v875_v19 = vadd.f32 %v874_v49, %v873_v45  ;;  %v976_v16 = vadd.f32 %v975_v50, %v974_v47 }
 0x2fa   : > { %v876_v51 = vrot.slane %v875_v19, 4  ;;  %v978_v25 = vadd.f32 %v977_v27, %v976_v16 }
 0x2fc   : > { %v877_v52 = vadd.f32 %v876_v51, %v875_v19  ;;  %v979_v36 = vrot.slane %v978_v25, 4 }
 0x2fe   : > { %v878_v53 = vrot.slane %v877_v52, 2  ;;  %v980_v34 = vadd.f32 %v979_v36, %v978_v25 }
 0x300   : > { %v879_v54 = vadd.f32 %v878_v53, %v877_v52  ;;  %v981_v48 = vrot.slane %v980_v34, 2 }
 0x302   : > { %v880_v55 = vrot.slane %v879_v54, 1  ;;  %v982_v56 = vadd.f32 %v981_v48, %v980_v34  ;;  %v1178_v48 = vpop.permute.xlu0 %1177 }
 0x304   : > { %v881_v46 = vadd.f32 %v880_v55, %v879_v54  ;;  %v983_v57 = vrot.slane %v982_v56, 1 }
 0x306   : > { %1412 = vmatmul.mubr.msk.f32.vlgmr.msra.gmra.mrb[8].mxu0 %vm282_vm0, %v881_v46  ;;  %v984_v58 = vadd.f32 %v983_v57, %v982_v56  ;;  %v1182_v46 = vpop.permute.xlu1 %1181 }
 0x307   : > { %1440 = vmatpush3.bf16.msra.mxu0 %v1604_v14  ;;  %1418 = vmatprep.mubr.msk.f32.mxu0 %vm1530_vm1, %v1531_v15 }
 0x30a   : > { %1419 = vmatmul.mubr.msk.f32.vlgmr.msra.gmra.mrb[10].mxu0 %vm282_vm0, %v984_v58 }
 0x3d9   : > { %v951_v59 = vpop.f32.mrb[8].mxu0 }
 0x3da   : > { %v955_v61 = vmul.f32 0.015625, %v951_v59  ;;  %v1413_v62 = vpop.f32.mrb[9].mxu0 }
 0x3dc   : > { %v1064_v0 = vrot.slane %v955_v61, %v1702_v24  ;;  %v1059_v11 = vmul.f32 %v955_v61, %v955_v61 }
 0x3dd   : > { %v1054_v1 = vpop.f32.mrb[10].mxu0 }
 0x3de   : > { %v1065_v2 = vsub.f32 %v1745_v63, %v1064_v0  ;;  %v1066_v3 = vsub.f32 %v1739_v60, %v1064_v0  ;;  %v1067_v4 = vsub.f32 %v1755_v7, %v1064_v0  ;;  %v1068_v14 = vsub.f32 %v1753_v5, %v1064_v0  ;;  %v1420_v6 = vpop.f32.mrb[11].mxu0 }
 0x3df   : > { %v1069_v15 = vsub.f32 %v1768_v22, %v1064_v0  ;;  %v1070_v8 = vsub.f32 %v1766_v17, %v1064_v0  ;;  %v1071_v9 = vsub.f32 %v852_v39, %v1064_v0  ;;  %v1072_v10 = vsub.f32 %v1406_v37, %v1064_v0 }
 0x3e0   : > { %v1058_v12 = vmul.f32 0.015625, %v1054_v1 }
 0x3e2   : > { %v1060_v13 = vsub.f32 %v1058_v12, %v1059_v11 }
 0x3e4   : > { %v1073_v21 = vadd.f32 1e-05, %v1060_v13 }
 0x3e6   : > { %1487 = vrsqrt.f32 %v1073_v21 }
 0x3f0   : > { %v1488_v23 = vpop.eup %1487 }
 0x3f1   : > { %v1078_v63 = vrot.slane %v1488_v23, %v1702_v24 }
 0x3f3   : > { %v1079_v60 = vmul.f32 %v1078_v63, %v1065_v2  ;;  %v1080_v26 = vmul.f32 %v1078_v63, %v1066_v3  ;;  %v1081_v7 = vmul.f32 %v1078_v63, %v1067_v4  ;;  %v1082_v28 = vmul.f32 %v1078_v63, %v1068_v14  ;;  %v1176_v3 = vpop.permute.xlu0 %1175  ;;  %v1180_v4 = vpop.permute.xlu1 %1179 }
 0x3f4   : > { %v1083_v5 = vmul.f32 %v1078_v63, %v1069_v15  ;;  %v1084_v29 = vmul.f32 %v1078_v63, %v1070_v8  ;;  %v1085_v30 = vmul.f32 %v1078_v63, %v1071_v9  ;;  %v1086_v22 = vmul.f32 %v1078_v63, %v1072_v10 }
 0x3f5   : > { %v1091_v17 = vmul.f32 %v1692_v18, %v1079_v60  ;;  %v1092_v31 = vmul.f32 %v1692_v18, %v1080_v26  ;;  %v1093_v32 = vmul.f32 %v1692_v18, %v1081_v7  ;;  %v1094_v33 = vmul.f32 %v1692_v18, %v1082_v28 }
 0x3f6   : > { %v1095_v35 = vmul.f32 %v1692_v18, %v1083_v5  ;;  %v1096_v24 = vmul.f32 %v1692_v18, %v1084_v29  ;;  %v1097_v37 = vmul.f32 %v1692_v18, %v1085_v30  ;;  %v1098_v38 = vmul.f32 %v1692_v18, %v1086_v22 }
 0x3f7   : > { %v1103_v39 = vadd.f32 %v1694_v20, %v1091_v17  ;;  %v1104_v40 = vadd.f32 %v1694_v20, %v1092_v31  ;;  %v1105_v41 = vadd.f32 %v1694_v20, %v1093_v32  ;;  %v1106_v42 = vadd.f32 %v1694_v20, %v1094_v33  ;;  %v1184_v9 = vpop.permute.xlu0 %1183  ;;  %v1186_v12 = vpop.permute.xlu1 %1185 }
 0x3f8   : > { %v1811_v43 = vadd.f32 %v1694_v20, %v1095_v35  ;;  %v1814_v44 = vadd.f32 %v1694_v20, %v1096_v24  ;;  %v1817_v45 = vadd.f32 %v1694_v20, %v1097_v37  ;;  %v1820_v47 = vadd.f32 %v1694_v20, %v1098_v38 }
 0x3f9   : > { %v1317_v18 = vmul.f32 -1.442695, %v1103_v39  ;;  %v1318_v49 = vmul.f32 -1.442695, %v1104_v40  ;;  %v1319_v50 = vmul.f32 -1.442695, %v1105_v41 }
 0x3fa   : > { %v1320_v19 = vmul.f32 -1.442695, %v1106_v42  ;;  %v1321_v16 = vmul.f32 -1.442695, %v1811_v43  ;;  %v1322_v27 = vmul.f32 -1.442695, %v1814_v44 }
 0x3fb   : > { %1489 = vpow2.f32 %v1317_v18  ;;  %v1323_v51 = vmul.f32 -1.442695, %v1817_v45  ;;  %v1324_v25 = vmul.f32 -1.442695, %v1820_v47  ;;  %v1188_v32 = vpop.permute.xlu0 %1187  ;;  %v1190_v24 = vpop.permute.xlu1 %1189 }
 0x3fc   : > { %1491 = vpow2.f32 %v1318_v49 }
 0x3fd   : > { %1493 = vpow2.f32 %v1319_v50 }
 0x3fe   : > { %1495 = vpow2.f32 %v1320_v19 }
 0x3ff   : > { %1497 = vpow2.f32 %v1321_v16 }
 0x400   : > { %1499 = vpow2.f32 %v1322_v27 }
 0x401   : > { %1501 = vpow2.f32 %v1323_v51 }
 0x402   : > { %1503 = vpow2.f32 %v1324_v25 }
 0x405   : > { %v1490_v20 = vpop.eup %1489 }
 0x406   : > { %v1492_v52 = vpop.eup %1491  ;;  %v1135_v36 = vadd.f32 1.0, %v1490_v20 }
 0x407   : > { %v1494_v53 = vpop.eup %1493  ;;  %v1136_v34 = vadd.f32 1.0, %v1492_v52 }
 0x408   : > { %v1496_v54 = vpop.eup %1495  ;;  %v1137_v55 = vadd.f32 1.0, %v1494_v53  ;;  %1505 = vrcp.f32 %v1135_v36 }
 0x409   : > { %v1498_v56 = vpop.eup %1497  ;;  %v1138_v57 = vadd.f32 1.0, %v1496_v54  ;;  %1507 = vrcp.f32 %v1136_v34 }
 0x40a   : > { %v1500_v58 = vpop.eup %1499  ;;  %v1139_v59 = vadd.f32 1.0, %v1498_v56  ;;  %1509 = vrcp.f32 %v1137_v55 }
 0x40b   : > { %v1502_v61 = vpop.eup %1501  ;;  %v1140_v62 = vadd.f32 1.0, %v1500_v58  ;;  %1511 = vrcp.f32 %v1138_v57 }
 0x40c   : > { %v1504_v0 = vpop.eup %1503  ;;  %v1141_v1 = vadd.f32 1.0, %v1502_v61  ;;  %1513 = vrcp.f32 %v1139_v59 }
 0x40d   : > { %v1142_v2 = vadd.f32 1.0, %v1504_v0  ;;  %1515 = vrcp.f32 %v1140_v62 }
 0x40e   : > { %1517 = vrcp.f32 %v1141_v1 }
 0x40f   : > { %1519 = vrcp.f32 %v1142_v2 }
 0x412   : > { %v1506_v14 = vpop.eup %1505 }
 0x413   : > { %v1508_v6 = vpop.eup %1507  ;;  %v1159_v15 = vmul.f32 %v1506_v14, %v1103_v39 }
 0x414   : > { %v1510_v8 = vpop.eup %1509  ;;  %v1160_v10 = vmul.f32 %v1508_v6, %v1104_v40 }
 0x415   : > { %v1512_v11 = vpop.eup %1511  ;;  %v1161_v13 = vmul.f32 %v1510_v8, %v1105_v41  ;;  %v1199_v21 = vadd.f32 %v1176_v3, %v1159_v15 }
 0x416   : > { %v1514_v23 = vpop.eup %1513  ;;  %v1162_v63 = vmul.f32 %v1512_v11, %v1106_v42  ;;  %v1200_v60 = vadd.f32 %v1178_v48, %v1160_v10 }
 0x417   : > { %v1516_v26 = vpop.eup %1515  ;;  %v1163_v7 = vmul.f32 %v1514_v23, %v1811_v43  ;;  %v1201_v28 = vadd.f32 %v1180_v4, %v1161_v13  ;;  %1207 = vst.msk [vmem:[%s1831_s25] sm:$0xff] %vm282_vm0, %v1199_v21 }
 0x418   : > { %v1518_v5 = vpop.eup %1517  ;;  %v1164_v29 = vmul.f32 %v1516_v26, %v1814_v44  ;;  %v1202_v30 = vadd.f32 %v1182_v46, %v1162_v63  ;;  %1208 = vst.msk [vmem:[%s1831_s25 + $0x8] sm:$0xff] %vm282_vm0, %v1200_v60 }
 0x419   : > { %v1520_v22 = vpop.eup %1519  ;;  %v1165_v17 = vmul.f32 %v1518_v5, %v1817_v45  ;;  %v1203_v31 = vadd.f32 %v1184_v9, %v1163_v7  ;;  %1209 = vst.msk [vmem:[%s1831_s25 + $0x10] sm:$0xff] %vm282_vm0, %v1201_v28 }
 0x41a   : > { %v1166_v33 = vmul.f32 %v1520_v22, %v1820_v47  ;;  %v1204_v35 = vadd.f32 %v1186_v12, %v1164_v29  ;;  %1210 = vst.msk [vmem:[%s1831_s25 + $0x18] sm:$0xff] %vm282_vm0, %v1202_v30 }
 0x41b   : > { %v1205_v37 = vadd.f32 %v1188_v32, %v1165_v17  ;;  %1211 = vst.msk [vmem:[%s1831_s25 + $0x20] sm:$0xff] %vm282_vm0, %v1203_v31 }
 0x41c   : > { %v1206_v38 = vadd.f32 %v1190_v24, %v1166_v33  ;;  %1212 = vst.msk [vmem:[%s1831_s25 + $0x28] sm:$0xff] %vm282_vm0, %v1204_v35 }
 0x41d   : > { %1213 = vst.msk [vmem:[%s1831_s25 + $0x30] sm:$0xff] %vm282_vm0, %v1205_v37 }
 0x41e   : > { %1214 = vst.msk [vmem:[%s1831_s25 + $0x38] sm:$0xff] %vm282_vm0, %v1206_v38 }
 0x41f PF: > { %s16_s21 = sadd.s32 1, %s1527_s21  }
 0x420   : > { %p13_p4 = scmp.ge.s32.totalorder %s16_s21, 4  }
 0x422   :  { %15 = sbr.rel (!%p13_p4) target bundleno = 1 (0x1), region = 77 }

// kernel: _lambda_.9
= control target key start
LH: loop header
LB: loop body
LE: loop exit
PB: predicated region body
PF: predicated region fallthrough
CT: control target
= control target key end

     0   :  { %s1293_s21 = smov 0   ;;  %s1481_s0 = inlined_call_operand.vmem [shape: f32[2,16,32], index: 0, kind: input, shape index: {}]   ;;  %s1482_s1 = inlined_call_operand.vmem [shape: f32[32,128], index: 1, kind: input, shape index: {}]   ;;  %s1483_s2 = inlined_call_operand.vmem [shape: f32[2,1,64], index: 2, kind: input, shape index: {}]   ;;  %s1484_s3 = inlined_call_operand.vmem [shape: f32[64,64], index: 3, kind: input, shape index: {}]   ;;  %s1485_s4 = inlined_call_operand.vmem [shape: f32[4,64], index: 4, kind: input, shape index: {}]   ;;  %s1486_s5 = inlined_call_operand.vmem [shape: f32[64,64], index: 5, kind: input, shape index: {}]   ;;  %s1487_s6 = inlined_call_operand.vmem [shape: f32[2,16,64], index: 6, kind: output, shape index: {}]  }
   0x1 LB: > { %s958_s22 = sadd.s32 4294967295, %s1252_s21   ;;  %p962_p0 = scmp.ge.s32.totalorder %s1252_s21, 1  ;;  %s1252_s21 = sphi %s1293_s21, %s16_s21  }
   0x2   : > { %p220_p1 = scmp.lt.s32.totalorder %s1252_s21, 3 }
   0x4   : > { %p221_p2 = pnand %p962_p0, %p220_p1 }
   0x5   : > { %v266_v0 = vld [vmem:[%s1482_s1] sm:$0xff] (!%p221_p2)  ;;  %v267_v1 = vld [vmem:[%s1482_s1 + $0x8] sm:$0xff] (!%p221_p2)  ;;  %v268_v2 = vld [vmem:[%s1482_s1 + $0x10] sm:$0xff] (!%p221_p2)  ;;  %p253_p3 = scmp.lt.s32.totalorder (!%p221_p2), %s958_s22, 1  ;;  %vm290_vm0 = vcmask (!%p221_p2), 261120   ;;  %v1254_v11 = vmov (!%p221_p2), 0.0|0.0   ;;  %v543_v56 = vlaneseq (!%p221_p2) }
   0x6   : > { %224 = sbr.rel (%p221_p2) target bundleno = 1015 (0x3f7), region = 44  ;;  %v1142_v3 = vpack.c.bf16 (!%p221_p2), %v267_v1, %v266_v0  ;;  %v269_v4 = vld [vmem:[%s1482_s1 + $0x18] sm:$0xff] (!%p221_p2)  ;;  %v271_v8 = vld [vmem:[%s1484_s3] sm:$0xff] (!%p221_p2)  ;;  %v272_v9 = vld [vmem:[%s1484_s3 + $0x8] sm:$0xff] (!%p221_p2)  ;;  %1150 = vmatprep.subr.bf16.mxu1 (!%p221_p2), %v1254_v11  ;;  %vm1255_vm1 = vmmov (!%p221_p2), 0   ;;  %v1256_v21 = vmov (!%p221_p2), 0.0  }
   0x7   : > { %v1146_v5 = vpack.c.bf16 (!%p221_p2), %v269_v4, %v268_v2  ;;  %v1327_v10 = vpack.c.bf16 (!%p221_p2), %v272_v9, %v271_v8  ;;  %v273_v12 = vld [vmem:[%s1484_s3 + $0x10] sm:$0xff] (!%p221_p2)  ;;  %v274_v13 = vld [vmem:[%s1484_s3 + $0x18] sm:$0xff] (!%p221_p2)  ;;  %v275_v15 = vld [vmem:[%s1484_s3 + $0x20] sm:$0xff] (!%p221_p2)  ;;  %1063 = vmatprep.mubr.msk.f32.mxu1 (!%p221_p2), %vm1255_vm1, %v1256_v21  ;;  %vm372_vm2 = vcmask (!%p221_p2), 523264   ;;  %s1257_s29 = smov (!%p221_p2), 64   ;;  %v1426_v57 = vshrl.u32 (!%p221_p2), %v543_v56, 7 }
   0x8   : > { %1143 = vmatprep.subr.bf16.mxu0 (!%p221_p2), %v1142_v3  ;;  %v1341_v14 = vpack.c.bf16 (!%p221_p2), %v274_v13, %v273_v12  ;;  %v276_v16 = vld [vmem:[%s1484_s3 + $0x28] sm:$0xff] (!%p221_p2)  ;;  %v277_v18 = vld [vmem:[%s1484_s3 + $0x30] sm:$0xff] (!%p221_p2)  ;;  %v278_v19 = vld [vmem:[%s1484_s3 + $0x38] sm:$0xff] (!%p221_p2) }
   0x9   : > { %1145 = vmatpush3.bf16.msra.mxu0 (!%p221_p2), %v1142_v3  ;;  %1152 = vmatpush3.bf16.msra.mxu1 (!%p221_p2), %v1327_v10  ;;  %v1353_v17 = vpack.c.bf16 (!%p221_p2), %v276_v16, %v275_v15  ;;  %v1365_v20 = vpack.c.bf16 (!%p221_p2), %v278_v19, %v277_v18  ;;  %v280_v44 = vld [vmem:[%s1486_s5] sm:$0xff] (!%p221_p2)  ;;  %v281_v45 = vld [vmem:[%s1486_s5 + $0x8] sm:$0xff] (!%p221_p2)  ;;  %v282_v46 = vld [vmem:[%s1486_s5 + $0x10] sm:$0xff] (!%p221_p2)  ;;  %v1429_v58 = vsub.s32 (!%p221_p2), 0, %v1426_v57  ;;  %v565_v8 = vsub.s32 (!%p221_p2), 1, %v1426_v57 }
   0xa   : > { %1147 = vmatprep.subr.bf16.mxu0 (!%p221_p2), %v1146_v5  ;;  %1153 = vmatprep.subr.bf16.mxu1 (!%p221_p2), %v1254_v11  ;;  %v1174_v47 = vpack.c.bf16 (!%p221_p2), %v281_v45, %v280_v44  ;;  %v283_v48 = vld [vmem:[%s1486_s5 + $0x18] sm:$0xff] (!%p221_p2)  ;;  %v284_v50 = vld [vmem:[%s1486_s5 + $0x20] sm:$0xff] (!%p221_p2)  ;;  %v285_v51 = vld [vmem:[%s1486_s5 + $0x28] sm:$0xff] (!%p221_p2) }
   0xb   : > { %v1178_v49 = vpack.c.bf16 (!%p221_p2), %v283_v48, %v282_v46  ;;  %v1182_v52 = vpack.c.bf16 (!%p221_p2), %v285_v51, %v284_v50  ;;  %v286_v53 = vld [vmem:[%s1486_s5 + $0x30] sm:$0xff] (!%p221_p2)  ;;  %v287_v54 = vld [vmem:[%s1486_s5 + $0x38] sm:$0xff] (!%p221_p2) }
   0xc   : > { %v1186_v55 = vpack.c.bf16 (!%p221_p2), %v287_v54, %v286_v53 }
   0xd   : > { %s1489_s22 = smov (!%p253_p3, %s958_s22), 1  ;;  %1149 = vmatpush3.bf16.msra.mxu0 %v1146_v5  ;;  %1155 = vmatpush3.bf16.msra.mxu1 %v1341_v14 }
   0xe   : > { %s982_s7 = sshll.u32 %s1489_s22, 4  ;;  %1162 = vmatprep.subr.bf16.mxu0 %v1254_v11  ;;  %1156 = vmatprep.subr.bf16.mxu1 %v1254_v11 }
   0xf   : > { %s257_s10 = scalar_lea.vmem %s1481_s0, %s982_s7  ;;  %s265_s9 = scalar_lea.vmem %s1487_s6, %s982_s7 }
  0x10   : > { %v288_v6 = vld [vmem:[%s257_s10] sm:$0xff]  ;;  %v289_v7 = vld [vmem:[%s257_s10 + $0x8] sm:$0xff] }
  0x11   : > { %1044 = vmatprep.mubr.msk.f32.mxu0 %vm290_vm0, %v288_v6  ;;  %1158 = vmatpush3.bf16.msra.mxu1 %v1353_v17 }
  0x12   : > { %1045 = vmatmul.mubr.msk.f32.vlgmr.msra.gmra.mrb[0].mxu0 %vm290_vm0, %v289_v7  ;;  %1159 = vmatprep.subr.bf16.mxu1 %v1254_v11  ;;  %v1437_v7 = vld [vmem:[%s1485_s4] sm:$0xf] }
  0x13   : > { %1164 = vmatpush3.bf16.msra.mxu0 %v1327_v10  ;;  %1082 = vmatprep.mubr.msk.f32.mxu0 %vm1255_vm1, %v1256_v21  ;;  %v560_v13 = vrot.slane %v1437_v7, %v1429_v58  ;;  %v566_v18 = vrot.slane %v1437_v7, %v565_v8 }
  0x14   : > { %1165 = vmatprep.subr.bf16.mxu0 %v1254_v11 }
  0x15   : > { %1161 = vmatpush3.bf16.msra.mxu1 %v1365_v20 }
  0x16   : > { %1175 = vmatprep.subr.bf16.mxu1 %v1174_v47 }
  0x17   : > { %1167 = vmatpush3.bf16.msra.mxu0 %v1341_v14 }
  0x18   : > { %1168 = vmatprep.subr.bf16.mxu0 %v1254_v11 }
  0x1b   : > { %1170 = vmatpush3.bf16.msra.mxu0 %v1353_v17 }
  0x1c   : > { %1171 = vmatprep.subr.bf16.mxu0 %v1254_v11 }
  0x1f   : > { %1173 = vmatpush3.bf16.msra.mxu0 %v1365_v20 }
  0x20   : > { %1190 = vmatprep.subr.bf16.mxu0 %v1254_v11 }
  0xe5   : > { %v1374_v22 = vpop.f32.mrb[0].mxu0 }
  0xe6   : > { %v374_v23 = vsel %vm372_vm2, %v1374_v22, 0.0  ;;  %v457_v24 = vmul.f32 %v1374_v22, %v1374_v22  ;;  %v1380_v25 = vpop.f32.mrb[1].mxu0 }
  0xe7   : > { %v373_v26 = vsel %vm372_vm2, %v1380_v25, 0.0  ;;  %v456_v27 = vmul.f32 %v1380_v25, %v1380_v25  ;;  %884 = vrot.lane.b32.xlu0 %v1380_v25, %s1257_s29 }
  0xe8   : > { %v459_v28 = vsel %vm372_vm2, %v457_v24, 0.0  ;;  %v375_v29 = vadd.f32 %v374_v23, %v373_v26 }
  0xe9   : > { %v458_v30 = vsel %vm372_vm2, %v456_v27, 0.0 }
  0xea   : > { %v376_v31 = vrot.slane %v375_v29, 4  ;;  %v460_v32 = vadd.f32 %v459_v28, %v458_v30 }
  0xeb   : > { %886 = vrot.lane.b32.xlu0 %v1374_v22, %s1257_s29  ;;  %s260_s29 = scalar_lea.vmem %s1483_s2, %s1489_s22 }
  0xec   : > { %v377_v33 = vadd.f32 %v376_v31, %v375_v29  ;;  %v461_v34 = vrot.slane %v460_v32, 4 }
  0xee   : > { %v378_v35 = vrot.slane %v377_v33, 2  ;;  %v462_v36 = vadd.f32 %v461_v34, %v460_v32  ;;  %v973_v32 = vld [vmem:[%s260_s29] ss:$0 sm:$0xff] }
  0xf0   : > { %v463_v37 = vrot.slane %v462_v36, 2  ;;  %v379_v38 = vadd.f32 %v378_v35, %v377_v33 }
  0xf2   : > { %v464_v39 = vadd.f32 %v463_v37, %v462_v36  ;;  %v380_v40 = vrot.slane %v379_v38, 1 }
  0xf4   : > { %v381_v41 = vadd.f32 %v380_v40, %v379_v38  ;;  %v465_v42 = vrot.slane %v464_v39, 1 }
  0xf6   : > { %1064 = vmatmul.mubr.msk.f32.vlgmr.msra.gmra.mrb[0].mxu1 %vm372_vm2, %v381_v41  ;;  %v466_v43 = vadd.f32 %v465_v42, %v464_v39 }
  0xf7   : > { %1177 = vmatpush3.bf16.msra.mxu1 %v1174_v47 }
  0xf8   : > { %1083 = vmatmul.mubr.msk.f32.vlgmr.msra.gmra.mrb[2].mxu0 %vm372_vm2, %v466_v43  ;;  %1179 = vmatprep.subr.bf16.mxu1 %v1178_v49 }
  0xf9   : > { %1192 = vmatpush3.bf16.msra.mxu0 %v1327_v10  ;;  %1120 = vmatprep.mubr.msk.f32.mxu0 %vm1255_vm1, %v1256_v21 }
  0xfa   : > { %1193 = vmatprep.subr.bf16.mxu0 %v1254_v11 }
  0xfb   : > { %1181 = vmatpush3.bf16.msra.mxu1 %v1178_v49 }
  0xfc   : > { %1183 = vmatprep.subr.bf16.mxu1 %v1182_v52 }
  0xfd   : > { %1195 = vmatpush3.bf16.msra.mxu0 %v1341_v14 }
  0xfe   : > { %1196 = vmatprep.subr.bf16.mxu0 %v1254_v11 }
  0xff   : > { %1185 = vmatpush3.bf16.msra.mxu1 %v1182_v52 }
 0x100   : > { %1187 = vmatprep.subr.bf16.mxu1 %v1186_v55 }
 0x101   : > { %1198 = vmatpush3.bf16.msra.mxu0 %v1353_v17 }
 0x102   : > { %1199 = vmatprep.subr.bf16.mxu0 %v1254_v11 }
 0x103   : > { %1189 = vmatpush3.bf16.msra.mxu1 %v1186_v55 }
 0x104   : > { %1202 = vmatprep.subr.bf16.mxu1 %v1254_v11 }
 0x105   : > { %1201 = vmatpush3.bf16.msra.mxu0 %v1365_v20 }
 0x1c9   : > { %v451_v59 = vpop.f32.mrb[0].mxu1 }
 0x1ca   : > { %v455_v60 = vmul.f32 0.0625, %v451_v59  ;;  %v1065_v61 = vpop.f32.mrb[1].mxu1 }
 0x1cb   : > { %v536_v62 = vpop.f32.mrb[2].mxu0 }
 0x1cc   : > { %v541_v63 = vmul.f32 %v455_v60, %v455_v60  ;;  %v546_v0 = vrot.slane %v455_v60, %v1429_v58  ;;  %v540_v1 = vmul.f32 0.0625, %v536_v62  ;;  %v1084_v2 = vpop.f32.mrb[3].mxu0 }
 0x1ce   : > { %v547_v3 = vsub.f32 %v1380_v25, %v546_v0  ;;  %v548_v4 = vsub.f32 %v1374_v22, %v546_v0  ;;  %v542_v5 = vsub.f32 %v540_v1, %v541_v63 }
 0x1d0   : > { %v549_v6 = vadd.f32 1e-05, %v542_v5  ;;  %v864_v5 = vsub.s32 3, %v1426_v57 }
 0x1d2   : > { %1226 = vrsqrt.f32 %v549_v6 }
 0x1dc   : > { %v1227_v9 = vpop.eup %1226 }
 0x1dd   : > { %v554_v12 = vrot.slane %v1227_v9, %v1429_v58 }
 0x1df   : > { %v556_v15 = vmul.f32 %v554_v12, %v548_v4  ;;  %v555_v16 = vmul.f32 %v554_v12, %v547_v3  ;;  %v858_v4 = vsub.s32 2, %v1426_v57  ;;  %v865_v12 = vrot.slane %v1437_v7, %v864_v5 }
 0x1e1   : > { %v561_v19 = vmul.f32 %v560_v13, %v555_v16  ;;  %v562_v22 = vmul.f32 %v560_v13, %v556_v15  ;;  %v859_v9 = vrot.slane %v1437_v7, %v858_v4 }
 0x1e3   : > { %v567_v23 = vadd.f32 %v566_v18, %v561_v19  ;;  %v568_v24 = vadd.f32 %v566_v18, %v562_v22 }
 0x1e5   : > { %v971_v25 = vmul.f32 -1.442695, %v567_v23  ;;  %v972_v26 = vmul.f32 -1.442695, %v568_v24 }
 0x1e7   : > { %1228 = vpow2.f32 %v971_v25 }
 0x1e8   : > { %1230 = vpow2.f32 %v972_v26 }
 0x1f1   : > { %v1229_v27 = vpop.eup %1228 }
 0x1f2   : > { %v1231_v28 = vpop.eup %1230  ;;  %v575_v29 = vadd.f32 1.0, %v1229_v27 }
 0x1f3   : > { %v576_v30 = vadd.f32 1.0, %v1231_v28 }
 0x1f4   : > { %1232 = vrcp.f32 %v575_v29 }
 0x1f5   : > { %1234 = vrcp.f32 %v576_v30 }
 0x1fe   : > { %v1233_v31 = vpop.eup %1232 }
 0x1ff   : > { %v1235_v33 = vpop.eup %1234  ;;  %v581_v34 = vmul.f32 %v1233_v31, %v567_v23 }
 0x200   : > { %v582_v35 = vmul.f32 %v1235_v33, %v568_v24 }
 0x201   : > { %v589_v36 = vadd.f32 %v973_v32, %v581_v34 }
 0x202   : > { %v590_v37 = vadd.f32 %v973_v32, %v582_v35 }
 0x203   : > { %1101 = vmatprep.mubr.msk.f32.mxu1 %vm372_vm2, %v589_v36 }
 0x204   : > { %1102 = vmatmul.mubr.msk.f32.vlgmr.msra.gmra.mrb[2].mxu1 %vm372_vm2, %v590_v37 }
 0x205   : > { %1204 = vmatpush3.bf16.msra.mxu1 %v1327_v10  ;;  %1139 = vmatprep.mubr.msk.f32.mxu1 %vm1255_vm1, %v1256_v21 }
 0x206   : > { %1205 = vmatprep.subr.bf16.mxu1 %v1254_v11 }
 0x209   : > { %1207 = vmatpush3.bf16.msra.mxu1 %v1341_v14 }
 0x20a   : > { %1208 = vmatprep.subr.bf16.mxu1 %v1254_v11 }
 0x20d   : > { %1210 = vmatpush3.bf16.msra.mxu1 %v1353_v17 }
 0x20e   : > { %1211 = vmatprep.subr.bf16.mxu1 %v1254_v11 }
 0x211   : > { %1213 = vmatpush3.bf16.msra.mxu1 %v1365_v20 }
 0x2d7   : > { %v1103_v38 = vpop.f32.mrb[2].mxu1 }
 0x2d8   : > { %v673_v39 = vsel %vm372_vm2, %v1103_v38, 0.0  ;;  %v756_v40 = vmul.f32 %v1103_v38, %v1103_v38  ;;  %v663_v10 = vpop.f32.mrb[3].mxu1 }
 0x2d9   : > { %v672_v41 = vsel %vm372_vm2, %v663_v10, 0.0  ;;  %v755_v21 = vmul.f32 %v663_v10, %v663_v10 }
 0x2da   : > { %v758_v42 = vsel %vm372_vm2, %v756_v40, 0.0  ;;  %v674_v43 = vadd.f32 %v673_v39, %v672_v41 }
 0x2db   : > { %v757_v14 = vsel %vm372_vm2, %v755_v21, 0.0 }
 0x2dc   : > { %v675_v44 = vrot.slane %v674_v43, 4  ;;  %v759_v45 = vadd.f32 %v758_v42, %v757_v14 }
 0x2de   : > { %v676_v17 = vadd.f32 %v675_v44, %v674_v43  ;;  %v760_v46 = vrot.slane %v759_v45, 4 }
 0x2e0   : > { %v677_v11 = vrot.slane %v676_v17, 2  ;;  %v761_v47 = vadd.f32 %v760_v46, %v759_v45 }
 0x2e2   : > { %v678_v20 = vadd.f32 %v677_v11, %v676_v17  ;;  %v762_v48 = vrot.slane %v761_v47, 2 }
 0x2e4   : > { %v679_v49 = vrot.slane %v678_v20, 1  ;;  %v763_v50 = vadd.f32 %v762_v48, %v761_v47 }
 0x2e6   : > { %v680_v51 = vadd.f32 %v679_v49, %v678_v20  ;;  %v764_v52 = vrot.slane %v763_v50, 1 }
 0x2e8   : > { %1121 = vmatmul.mubr.msk.f32.vlgmr.msra.gmra.mrb[4].mxu0 %vm372_vm2, %v680_v51  ;;  %v765_v53 = vadd.f32 %v764_v52, %v763_v50 }
 0x2ea   : > { %1140 = vmatmul.mubr.msk.f32.vlgmr.msra.gmra.mrb[4].mxu1 %vm372_vm2, %v765_v53 }
 0x3bb   : > { %v750_v54 = vpop.f32.mrb[4].mxu0 }
 0x3bc   : > { %v754_v55 = vmul.f32 0.0625, %v750_v54  ;;  %v1122_v56 = vpop.f32.mrb[5].mxu0 }
 0x3bd   : > { %v835_v59 = vpop.f32.mrb[4].mxu1 }
 0x3be   : > { %v840_v60 = vmul.f32 %v754_v55, %v754_v55  ;;  %v845_v61 = vrot.slane %v754_v55, %v1429_v58  ;;  %v839_v62 = vmul.f32 0.0625, %v835_v59  ;;  %v1141_v63 = vpop.f32.mrb[5].mxu1 }
 0x3c0   : > { %v846_v0 = vsub.f32 %v663_v10, %v845_v61  ;;  %v847_v1 = vsub.f32 %v1103_v38, %v845_v61  ;;  %v841_v2 = vsub.f32 %v839_v62, %v840_v60 }
 0x3c2   : > { %v848_v3 = vadd.f32 1e-05, %v841_v2 }
 0x3c4   : > { %1236 = vrsqrt.f32 %v848_v3 }
 0x3ce   : > { %v1237_v6 = vpop.eup %1236 }
 0x3cf   : > { %v853_v8 = vrot.slane %v1237_v6, %v1429_v58  ;;  %v885_v58 = vpop.permute.xlu0 %884 }
 0x3d1   : > { %v854_v13 = vmul.f32 %v853_v8, %v846_v0  ;;  %v855_v15 = vmul.f32 %v853_v8, %v847_v1 }
 0x3d3   : > { %v860_v16 = vmul.f32 %v859_v9, %v854_v13  ;;  %v861_v18 = vmul.f32 %v859_v9, %v855_v15  ;;  %v887_v31 = vpop.permute.xlu0 %886 }
 0x3d5   : > { %v866_v19 = vadd.f32 %v865_v12, %v860_v16  ;;  %v867_v22 = vadd.f32 %v865_v12, %v861_v18 }
 0x3d7   : > { %v978_v23 = vmul.f32 -1.442695, %v866_v19  ;;  %v979_v24 = vmul.f32 -1.442695, %v867_v22 }
 0x3d9   : > { %1238 = vpow2.f32 %v978_v23 }
 0x3da   : > { %1240 = vpow2.f32 %v979_v24 }
 0x3e3   : > { %v1239_v25 = vpop.eup %1238 }
 0x3e4   : > { %v1241_v57 = vpop.eup %1240  ;;  %v874_v26 = vadd.f32 1.0, %v1239_v25 }
 0x3e5   : > { %v875_v27 = vadd.f32 1.0, %v1241_v57 }
 0x3e6   : > { %1242 = vrcp.f32 %v874_v26 }
 0x3e7   : > { %1244 = vrcp.f32 %v875_v27 }
 0x3f0   : > { %v1243_v28 = vpop.eup %1242 }
 0x3f1   : > { %v1245_v7 = vpop.eup %1244  ;;  %v880_v29 = vmul.f32 %v1243_v28, %v866_v19 }
 0x3f2   : > { %v881_v30 = vmul.f32 %v1245_v7, %v867_v22 }
 0x3f3   : > { %v890_v32 = vadd.f32 %v885_v58, %v880_v29 }
 0x3f4   : > { %v891_v33 = vadd.f32 %v887_v31, %v881_v30 }
 0x3f5   : > { %892 = vst.msk [vmem:[%s265_s9] sm:$0xff] %vm372_vm2, %v890_v32 }
 0x3f6   : > { %893 = vst.msk [vmem:[%s265_s9 + $0x8] sm:$0xff] %vm372_vm2, %v891_v33 }
 0x3f7 PF: > { %s16_s21 = sadd.s32 1, %s1252_s21  }
 0x3f8   : > { %p13_p4 = scmp.ge.s32.totalorder %s16_s21, 4  }
 0x3fa   :  { %15 = sbr.rel (!%p13_p4) target bundleno = 1 (0x1), region = 77 }

// kernel: _lambda_.7
= control target key start
LH: loop header
LB: loop body
LE: loop exit
PB: predicated region body
PF: predicated region fallthrough
CT: control target
= control target key end

     0   :  { %s2973_s27 = smov 0   ;;  %s3381_s0 = inlined_call_operand.vmem [shape: f32[2,16,64], index: 0, kind: input, shape index: {}]   ;;  %s3382_s1 = inlined_call_operand.vmem [shape: f32[64,64], index: 1, kind: input, shape index: {}]   ;;  %s3383_s2 = inlined_call_operand.vmem [shape: f32[2,1,32], index: 2, kind: input, shape index: {}]   ;;  %s3384_s3 = inlined_call_operand.vmem [shape: f32[32,32], index: 3, kind: input, shape index: {}]   ;;  %s3385_s4 = inlined_call_operand.vmem [shape: f32[7,32], index: 4, kind: input, shape index: {}]   ;;  %s3386_s5 = inlined_call_operand.vmem [shape: f32[32,32], index: 5, kind: input, shape index: {}]   ;;  %s3387_s6 = inlined_call_operand.vmem [shape: f32[32,384], index: 6, kind: input, shape index: {}]   ;;  %s3388_s7 = inlined_call_operand.vmem [shape: f32[128,32], index: 7, kind: input, shape index: {}]   ;;  %s3389_s8 = inlined_call_operand.vmem [shape: f32[2,16,32], index: 8, kind: output, shape index: {}]  }
   0x1 LB: > { %s2297_s28 = sadd.s32 4294967295, %s2920_s27   ;;  %p2301_p0 = scmp.ge.s32.totalorder %s2920_s27, 1  ;;  %s2920_s27 = sphi %s2973_s27, %s18_s27  }
   0x2   : > { %p270_p1 = scmp.lt.s32.totalorder %s2920_s27, 3 }
   0x4   : > { %p271_p2 = pnand %p2301_p0, %p270_p1 }
   0x5   : > { %v320_v0 = vld [vmem:[%s3382_s1] sm:$0xff] (!%p271_p2)  ;;  %v321_v1 = vld [vmem:[%s3382_s1 + $0x8] sm:$0xff] (!%p271_p2)  ;;  %v322_v2 = vld [vmem:[%s3382_s1 + $0x10] sm:$0xff] (!%p271_p2)  ;;  %p307_p3 = scmp.lt.s32.totalorder (!%p271_p2), %s2297_s28, 1  ;;  %vm368_vm0 = vcmask (!%p271_p2), 523264   ;;  %v2922_v17 = vmov (!%p271_p2), 0.0|0.0   ;;  %v621_v50 = vlaneseq (!%p271_p2) }
   0x6   : > { %274 = sbr.rel (%p271_p2) target bundleno = 3784 (0xec8), region = 52  ;;  %v2653_v3 = vpack.c.bf16 (!%p271_p2), %v321_v1, %v320_v0  ;;  %v323_v4 = vld [vmem:[%s3382_s1 + $0x18] sm:$0xff] (!%p271_p2)  ;;  %v324_v6 = vld [vmem:[%s3382_s1 + $0x20] sm:$0xff] (!%p271_p2)  ;;  %v325_v7 = vld [vmem:[%s3382_s1 + $0x28] sm:$0xff] (!%p271_p2)  ;;  %vm2923_vm1 = vmmov (!%p271_p2), 0   ;;  %v2924_v21 = vmov (!%p271_p2), 0.0  }
   0x7   : > { %v2657_v5 = vpack.c.bf16 (!%p271_p2), %v323_v4, %v322_v2  ;;  %v2661_v8 = vpack.c.bf16 (!%p271_p2), %v325_v7, %v324_v6  ;;  %v326_v9 = vld [vmem:[%s3382_s1 + $0x30] sm:$0xff] (!%p271_p2)  ;;  %v327_v10 = vld [vmem:[%s3382_s1 + $0x38] sm:$0xff] (!%p271_p2)  ;;  %v329_v14 = vld [vmem:[%s3384_s3] sm:$0xff] (!%p271_p2)  ;;  %vm450_vm2 = vcmask (!%p271_p2), 261120   ;;  %s2925_s15 = smov (!%p271_p2), 96   ;;  %v3083_v51 = vshrl.u32 (!%p271_p2), %v621_v50, 7 }
   0x8   : > { %2654 = vmatprep.subr.bf16.mxu1 (!%p271_p2), %v2653_v3  ;;  %v2665_v12 = vpack.c.bf16 (!%p271_p2), %v327_v10, %v326_v9  ;;  %v330_v15 = vld [vmem:[%s3384_s3 + $0x8] sm:$0xff] (!%p271_p2)  ;;  %v331_v18 = vld [vmem:[%s3384_s3 + $0x10] sm:$0xff] (!%p271_p2)  ;;  %v332_v19 = vld [vmem:[%s3384_s3 + $0x18] sm:$0xff] (!%p271_p2)  ;;  %vm1413_vm4 = vcmask (!%p271_p2), 130048   ;;  %s2926_s17 = smov (!%p271_p2), 64   ;;  %s2927_s18 = smov (!%p271_p2), 32  }
   0x9   : > { %2656 = vmatpush3.bf16.msra.mxu1 (!%p271_p2), %v2653_v3  ;;  %v3021_v16 = vpack.c.bf16 (!%p271_p2), %v330_v15, %v329_v14  ;;  %v3032_v20 = vpack.c.bf16 (!%p271_p2), %v332_v19, %v331_v18  ;;  %v334_v44 = vld [vmem:[%s3386_s5] sm:$0xff] (!%p271_p2)  ;;  %v335_v45 = vld [vmem:[%s3386_s5 + $0x8] sm:$0xff] (!%p271_p2)  ;;  %v336_v46 = vld [vmem:[%s3386_s5 + $0x10] sm:$0xff] (!%p271_p2)  ;;  %v3086_v52 = vsub.s32 (!%p271_p2), 0, %v3083_v51  ;;  %v643_v2 = vsub.s32 (!%p271_p2), 1, %v3083_v51 }
   0xa   : > { %2658 = vmatprep.subr.bf16.mxu1 (!%p271_p2), %v2657_v5  ;;  %v2681_v47 = vpack.c.bf16 (!%p271_p2), %v335_v45, %v334_v44  ;;  %v337_v48 = vld [vmem:[%s3386_s5 + $0x18] sm:$0xff] (!%p271_p2)  ;;  %v3094_v1 = vld [vmem:[%s3385_s4] sm:$0x7f] (!%p271_p2)  ;;  %vm3219_vm3 = vmpackc.low (!%p271_p2), %vm450_vm2, %vm450_vm2  ;;  %vm2147_vm5 = vcmask (!%p271_p2), 785408  }
   0xb   : > { %v2685_v49 = vpack.c.bf16 (!%p271_p2), %v337_v48, %v336_v46 }
   0xc   : > { %2682 = vmatprep.subr.bf16.mxu0 (!%p271_p2), %v2681_v47 }
   0xd   : > { %s3393_s28 = smov (!%p307_p3, %s2297_s28), 1  ;;  %2660 = vmatpush3.bf16.msra.mxu1 %v2657_v5  ;;  %2684 = vmatpush3.bf16.msra.mxu0 %v2681_v47  ;;  %v638_v5 = vrot.slane %v3094_v1, %v3086_v52 }
   0xe   : > { %s2351_s19 = sshll.u32 %s3393_s28, 4  ;;  %2662 = vmatprep.subr.bf16.mxu1 %v2661_v8  ;;  %2686 = vmatprep.subr.bf16.mxu0 %v2685_v49  ;;  %s314_s9 = scalar_lea.vmem %s3383_s2, %s3393_s28 }
   0xf   : > { %s311_s22 = scalar_lea.vmem %s3381_s0, %s2351_s19  ;;  %s319_s16 = scalar_lea.vmem %s3389_s8, %s2351_s19 }
  0x10   : > { %v366_v11 = vld [vmem:[%s311_s22] sm:$0xff]  ;;  %v367_v13 = vld [vmem:[%s311_s22 + $0x8] sm:$0xff] }
  0x11   : > { %2471 = vmatprep.mubr.msk.f32.mxu1 %vm368_vm0, %v366_v11  ;;  %2664 = vmatpush3.bf16.msra.mxu1 %v2661_v8  ;;  %v644_v8 = vrot.slane %v3094_v1, %v643_v2  ;;  %v942_v2 = vsub.s32 3, %v3083_v51 }
  0x12   : > { %2666 = vmatprep.subr.bf16.mxu1 %v2665_v12  ;;  %2688 = vmatpush3.bf16.msra.mxu0 %v2685_v49 }
  0x13   : > { %2695 = vmatprep.subr.bf16.mxu0 %v2922_v17 }
  0x15   : > { %2668 = vmatpush3.bf16.msra.mxu1 %v2665_v12 }
  0x16   : > { %2669 = vmatprep.subr.bf16.mxu1 %v2922_v17 }
  0x18   : > { %2472 = vmatmul.mubr.msk.f32.vlgmr.msra.gmra.mrb[0].mxu1 %vm368_vm0, %v367_v13 }
  0x19   : > { %2671 = vmatpush3.bf16.msra.mxu1 %v3021_v16  ;;  %2482 = vmatprep.mubr.msk.f32.mxu1 %vm2923_vm1, %v2924_v21 }
  0x1a   : > { %2672 = vmatprep.subr.bf16.mxu1 %v2922_v17 }
  0x1d   : > { %2674 = vmatpush3.bf16.msra.mxu1 %v3032_v20 }
  0x1e   : > { %2675 = vmatprep.subr.bf16.mxu1 %v2922_v17 }
  0xeb   : > { %v3038_v22 = vpop.f32.mrb[0].mxu1 }
  0xec   : > { %v452_v23 = vsel %vm450_vm2, %v3038_v22, 0.0  ;;  %v535_v24 = vmul.f32 %v3038_v22, %v3038_v22  ;;  %v3044_v25 = vpop.f32.mrb[1].mxu1 }
  0xed   : > { %v451_v26 = vsel %vm450_vm2, %v3044_v25, 0.0  ;;  %v534_v27 = vmul.f32 %v3044_v25, %v3044_v25  ;;  %962 = vrot.lane.b32.xlu0 %v3044_v25, %s2925_s15 }
  0xee   : > { %v537_v28 = vsel %vm450_vm2, %v535_v24, 0.0  ;;  %v453_v29 = vadd.f32 %v452_v23, %v451_v26  ;;  %v2312_v24 = vld [vmem:[%s314_s9] ss:$0 sm:$0xff] }
  0xef   : > { %v536_v30 = vsel %vm450_vm2, %v534_v27, 0.0 }
  0xf0   : > { %v454_v31 = vrot.slane %v453_v29, 4  ;;  %v538_v32 = vadd.f32 %v537_v28, %v536_v30 }
  0xf1   : > { %964 = vrot.lane.b32.xlu0 %v3038_v22, %s2925_s15 }
  0xf2   : > { %v455_v33 = vadd.f32 %v454_v31, %v453_v29  ;;  %v539_v34 = vrot.slane %v538_v32, 4 }
  0xf4   : > { %v456_v35 = vrot.slane %v455_v33, 2  ;;  %v540_v36 = vadd.f32 %v539_v34, %v538_v32 }
  0xf6   : > { %v457_v37 = vadd.f32 %v456_v35, %v455_v33  ;;  %v541_v38 = vrot.slane %v540_v36, 2 }
  0xf8   : > { %v458_v39 = vrot.slane %v457_v37, 1  ;;  %v542_v40 = vadd.f32 %v541_v38, %v540_v36 }
  0xfa   : > { %v459_v41 = vadd.f32 %v458_v39, %v457_v37  ;;  %v543_v42 = vrot.slane %v542_v40, 1 }
  0xfc   : > { %2483 = vmatmul.mubr.msk.f32.vlgmr.msra.gmra.mrb[2].mxu1 %vm450_vm2, %v459_v41  ;;  %v544_v43 = vadd.f32 %v543_v42, %v542_v40 }
  0xfd   : > { %2677 = vmatpush3.bf16.msra.mxu1 %v3021_v16  ;;  %2493 = vmatprep.mubr.msk.f32.mxu1 %vm2923_vm1, %v2924_v21 }
  0xfe   : > { %2678 = vmatprep.subr.bf16.mxu1 %v2922_v17 }
 0x101   : > { %2680 = vmatpush3.bf16.msra.mxu1 %v3032_v20 }
 0x102   : > { %2689 = vmatprep.subr.bf16.mxu1 %v2922_v17 }
 0x104   : > { %2494 = vmatmul.mubr.msk.f32.vlgmr.msra.gmra.mrb[4].mxu1 %vm450_vm2, %v544_v43 }
 0x105   : > { %2691 = vmatpush3.bf16.msra.mxu1 %v3021_v16  ;;  %2515 = vmatprep.mubr.msk.f32.mxu1 %vm2923_vm1, %v2924_v21 }
 0x106   : > { %2692 = vmatprep.subr.bf16.mxu1 %v2922_v17 }
 0x109   : > { %2694 = vmatpush3.bf16.msra.mxu1 %v3032_v20 }
 0x10a   : > { %2701 = vmatprep.subr.bf16.mxu1 %v2922_v17 }
 0x1cf   : > { %v529_v53 = vpop.f32.mrb[2].mxu1 }
 0x1d0   : > { %v533_v54 = vmul.f32 0.0625, %v529_v53  ;;  %v2484_v55 = vpop.f32.mrb[3].mxu1 }
 0x1d2   : > { %v624_v56 = vrot.slane %v533_v54, %v3086_v52  ;;  %v619_v60 = vmul.f32 %v533_v54, %v533_v54 }
 0x1d4   : > { %v625_v57 = vsub.f32 %v3044_v25, %v624_v56  ;;  %v626_v58 = vsub.f32 %v3038_v22, %v624_v56 }
 0x1d7   : > { %v614_v59 = vpop.f32.mrb[4].mxu1 }
 0x1d8   : > { %v618_v61 = vmul.f32 0.0625, %v614_v59  ;;  %v2495_v62 = vpop.f32.mrb[5].mxu1 }
 0x1da   : > { %v620_v63 = vsub.f32 %v618_v61, %v619_v60 }
 0x1dc   : > { %v627_v0 = vadd.f32 1e-05, %v620_v63 }
 0x1de   : > { %2860 = vrsqrt.f32 %v627_v0 }
 0x1e8   : > { %v2861_v3 = vpop.eup %2860 }
 0x1e9   : > { %v632_v4 = vrot.slane %v2861_v3, %v3086_v52 }
 0x1eb   : > { %v633_v6 = vmul.f32 %v632_v4, %v625_v57  ;;  %v634_v7 = vmul.f32 %v632_v4, %v626_v58 }
 0x1ed   : > { %v639_v9 = vmul.f32 %v638_v5, %v633_v6  ;;  %v640_v10 = vmul.f32 %v638_v5, %v634_v7  ;;  %v943_v7 = vrot.slane %v3094_v1, %v942_v2  ;;  %v349_v2 = vld [vmem:[%s3387_s6 + $0x58] sm:$0xff] }
 0x1ef   : > { %v645_v11 = vadd.f32 %v644_v8, %v639_v9  ;;  %v646_v12 = vadd.f32 %v644_v8, %v640_v10 }
 0x1f1   : > { %v2310_v13 = vmul.f32 -1.442695, %v645_v11  ;;  %v2311_v14 = vmul.f32 -1.442695, %v646_v12 }
 0x1f3   : > { %2862 = vpow2.f32 %v2310_v13 }
 0x1f4   : > { %2864 = vpow2.f32 %v2311_v14 }
 0x1fd   : > { %v2863_v15 = vpop.eup %2862 }
 0x1fe   : > { %v2865_v18 = vpop.eup %2864  ;;  %v653_v19 = vadd.f32 1.0, %v2863_v15 }
 0x1ff   : > { %v654_v22 = vadd.f32 1.0, %v2865_v18 }
 0x200   : > { %2866 = vrcp.f32 %v653_v19 }
 0x201   : > { %2868 = vrcp.f32 %v654_v22  ;;  %v963_v22 = vpop.permute.xlu0 %962 }
 0x20a   : > { %v2867_v23 = vpop.eup %2866 }
 0x20b   : > { %v2869_v25 = vpop.eup %2868  ;;  %v659_v26 = vmul.f32 %v2867_v23, %v645_v11 }
 0x20c   : > { %v660_v27 = vmul.f32 %v2869_v25, %v646_v12 }
 0x20d   : > { %v667_v28 = vadd.f32 %v2312_v24, %v659_v26 }
 0x20e   : > { %v668_v29 = vadd.f32 %v2312_v24, %v660_v27  ;;  %v965_v27 = vpop.permute.xlu0 %964 }
 0x20f   : > { %2504 = vmatprep.mubr.msk.f32.mxu0 %vm450_vm2, %v667_v28 }
 0x210   : > { %2505 = vmatmul.mubr.msk.f32.vlgmr.msra.gmra.mrb[0].mxu0 %vm450_vm2, %v668_v29 }
 0x211   : > { %2697 = vmatpush3.bf16.msra.mxu0 %v3021_v16  ;;  %2526 = vmatprep.mubr.msk.f32.mxu0 %vm2923_vm1, %v2924_v21 }
 0x212   : > { %2698 = vmatprep.subr.bf16.mxu0 %v2922_v17 }
 0x215   : > { %2700 = vmatpush3.bf16.msra.mxu0 %v3032_v20 }
 0x216   : > { %2707 = vmatprep.subr.bf16.mxu0 %v2922_v17 }
 0x2e3   : > { %v2506_v30 = vpop.f32.mrb[0].mxu0 }
 0x2e4   : > { %v751_v31 = vsel %vm450_vm2, %v2506_v30, 0.0  ;;  %v834_v32 = vmul.f32 %v2506_v30, %v2506_v30  ;;  %v741_v33 = vpop.f32.mrb[1].mxu0 }
 0x2e5   : > { %v750_v34 = vsel %vm450_vm2, %v741_v33, 0.0  ;;  %v833_v35 = vmul.f32 %v741_v33, %v741_v33 }
 0x2e6   : > { %v836_v36 = vsel %vm450_vm2, %v834_v32, 0.0  ;;  %v752_v37 = vadd.f32 %v751_v31, %v750_v34 }
 0x2e7   : > { %v835_v38 = vsel %vm450_vm2, %v833_v35, 0.0 }
 0x2e8   : > { %v753_v39 = vrot.slane %v752_v37, 4  ;;  %v837_v40 = vadd.f32 %v836_v36, %v835_v38 }
 0x2ea   : > { %v754_v41 = vadd.f32 %v753_v39, %v752_v37  ;;  %v838_v42 = vrot.slane %v837_v40, 4 }
 0x2ec   : > { %v755_v43 = vrot.slane %v754_v41, 2  ;;  %v839_v44 = vadd.f32 %v838_v42, %v837_v40 }
 0x2ee   : > { %v756_v45 = vadd.f32 %v755_v43, %v754_v41  ;;  %v840_v46 = vrot.slane %v839_v44, 2 }
 0x2f0   : > { %v757_v47 = vrot.slane %v756_v45, 1  ;;  %v841_v48 = vadd.f32 %v840_v46, %v839_v44 }
 0x2f2   : > { %v758_v49 = vadd.f32 %v757_v47, %v756_v45  ;;  %v842_v50 = vrot.slane %v841_v48, 1 }
 0x2f4   : > { %2516 = vmatmul.mubr.msk.f32.vlgmr.msra.gmra.mrb[6].mxu1 %vm450_vm2, %v758_v49  ;;  %v843_v53 = vadd.f32 %v842_v50, %v841_v48  ;;  %v339_v50 = vld [vmem:[%s3387_s6 + $0x8] sm:$0xff] }
 0x2f5   : > { %2703 = vmatpush3.bf16.msra.mxu1 %v3021_v16  ;;  %2537 = vmatprep.mubr.msk.f32.mxu1 %vm2923_vm1, %v2924_v21 }
 0x2f6   : > { %2527 = vmatmul.mubr.msk.f32.vlgmr.msra.gmra.mrb[2].mxu0 %vm450_vm2, %v843_v53  ;;  %2704 = vmatprep.subr.bf16.mxu1 %v2922_v17  ;;  %v342_v53 = vld [vmem:[%s3387_s6 + $0x20] sm:$0xff] }
 0x2f7   : > { %2709 = vmatpush3.bf16.msra.mxu0 %v3021_v16  ;;  %2548 = vmatprep.mubr.msk.f32.mxu0 %vm2923_vm1, %v2924_v21 }
 0x2f8   : > { %2710 = vmatprep.subr.bf16.mxu0 %v2922_v17  ;;  %v936_v17 = vsub.s32 2, %v3083_v51 }
 0x2f9   : > { %2706 = vmatpush3.bf16.msra.mxu1 %v3032_v20 }
 0x2fa   : > { %v937_v4 = vrot.slane %v3094_v1, %v936_v17  ;;  %v346_v17 = vld [vmem:[%s3387_s6 + $0x40] sm:$0xff] }
 0x2fb   : > { %2712 = vmatpush3.bf16.msra.mxu0 %v3032_v20 }
 0x3c7   : > { %v828_v54 = vpop.f32.mrb[6].mxu1 }
 0x3c8   : > { %v832_v55 = vmul.f32 0.0625, %v828_v54  ;;  %v2517_v56 = vpop.f32.mrb[7].mxu1  ;;  %v2713_v54 = vpack.c.bf16 %v342_v53, %v339_v50 }
 0x3c9   : > { %v913_v57 = vpop.f32.mrb[2].mxu0  ;;  %v341_v56 = vld [vmem:[%s3387_s6 + $0x18] sm:$0xff] }
 0x3ca   : > { %v918_v58 = vmul.f32 %v832_v55, %v832_v55  ;;  %v923_v59 = vrot.slane %v832_v55, %v3086_v52  ;;  %v917_v60 = vmul.f32 0.0625, %v913_v57  ;;  %v2528_v61 = vpop.f32.mrb[3].mxu0  ;;  %v338_v55 = vld [vmem:[%s3387_s6] sm:$0xff]  ;;  %v340_v57 = vld [vmem:[%s3387_s6 + $0x10] sm:$0xff]  ;;  %2714 = vmatprep.subr.bf16.mxu1 %v2713_v54 }
 0x3cb   : > { %v345_v61 = vld [vmem:[%s3387_s6 + $0x38] sm:$0xff] }
 0x3cc   : > { %v924_v62 = vsub.f32 %v741_v33, %v923_v59  ;;  %v925_v16 = vsub.f32 %v2506_v30, %v923_v59  ;;  %v919_v63 = vsub.f32 %v917_v60, %v918_v58  ;;  %v2715_v58 = vpack.c.bf16 %v341_v56, %v338_v55  ;;  %v343_v59 = vld [vmem:[%s3387_s6 + $0x28] sm:$0xff] }
 0x3cd   : > { %v2721_v60 = vpack.c.bf16 %v343_v59, %v340_v57 }
 0x3ce   : > { %v926_v0 = vadd.f32 1e-05, %v919_v63 }
 0x3cf   : > { %2722 = vmatprep.subr.bf16.mxu0 %v2721_v60 }
 0x3d0   : > { %2870 = vrsqrt.f32 %v926_v0  ;;  %v347_v0 = vld [vmem:[%s3387_s6 + $0x48] sm:$0xff] }
 0x3da   : > { %v2871_v3 = vpop.eup %2870 }
 0x3db   : > { %v931_v20 = vrot.slane %v2871_v3, %v3086_v52 }
 0x3dd   : > { %v932_v5 = vmul.f32 %v931_v20, %v924_v62  ;;  %v933_v6 = vmul.f32 %v931_v20, %v925_v16  ;;  %v348_v62 = vld [vmem:[%s3387_s6 + $0x50] sm:$0xff]  ;;  %v2725_v20 = vpack.c.bf16 %v349_v2, %v346_v17 }
 0x3de   : > { %v344_v16 = vld [vmem:[%s3387_s6 + $0x30] sm:$0xff]  ;;  %v2717_v63 = vpack.c.bf16 %v348_v62, %v345_v61 }
 0x3df   : > { %v938_v8 = vmul.f32 %v937_v4, %v932_v5  ;;  %v939_v9 = vmul.f32 %v937_v4, %v933_v6  ;;  %v2719_v3 = vpack.c.bf16 %v347_v0, %v344_v16 }
 0x3e1   : > { %v944_v10 = vadd.f32 %v943_v7, %v938_v8  ;;  %v945_v11 = vadd.f32 %v943_v7, %v939_v9 }
 0x3e3   : > { %v2317_v12 = vmul.f32 -1.442695, %v944_v10  ;;  %v2318_v13 = vmul.f32 -1.442695, %v945_v11 }
 0x3e5   : > { %2872 = vpow2.f32 %v2317_v12 }
 0x3e6   : > { %2874 = vpow2.f32 %v2318_v13 }
 0x3ef   : > { %v2873_v14 = vpop.eup %2872 }
 0x3f0   : > { %v2875_v15 = vpop.eup %2874  ;;  %v952_v18 = vadd.f32 1.0, %v2873_v14  ;;  %v1156_v14 = vsub.s32 4, %v3083_v51 }
 0x3f1   : > { %v953_v19 = vadd.f32 1.0, %v2875_v15  ;;  %v1162_v15 = vsub.s32 5, %v3083_v51 }
 0x3f2   : > { %2876 = vrcp.f32 %v952_v18 }
 0x3f3   : > { %2878 = vrcp.f32 %v953_v19 }
 0x3fc   : > { %v2877_v23 = vpop.eup %2876 }
 0x3fd   : > { %v2879_v24 = vpop.eup %2878  ;;  %v958_v25 = vmul.f32 %v2877_v23, %v944_v10 }
 0x3fe   : > { %v959_v26 = vmul.f32 %v2879_v24, %v945_v11  ;;  %v1157_v24 = vrot.slane %v3094_v1, %v1156_v14 }
 0x3ff   : > { %v3135_v28 = vadd.f32 %v963_v22, %v958_v25 }
 0x400   : > { %v3137_v29 = vadd.f32 %v965_v27, %v959_v26  ;;  %v1163_v26 = vrot.slane %v3094_v1, %v1162_v15 }
 0x401   : > { %v970_v30 = vsel %vm450_vm2, %v3135_v28, 0.0  ;;  %v1053_v31 = vmul.f32 %v3135_v28, %v3135_v28 }
 0x402   : > { %v971_v32 = vsel %vm450_vm2, %v3137_v29, 0.0  ;;  %v1054_v33 = vmul.f32 %v3137_v29, %v3137_v29 }
 0x403   : > { %v972_v34 = vadd.f32 %v971_v32, %v970_v30  ;;  %v1055_v35 = vsel %vm450_vm2, %v1053_v31, 0.0 }
 0x404   : > { %v1056_v36 = vsel %vm450_vm2, %v1054_v33, 0.0 }
 0x405   : > { %v973_v37 = vrot.slane %v972_v34, 4  ;;  %v1057_v38 = vadd.f32 %v1056_v36, %v1055_v35 }
 0x407   : > { %v974_v39 = vadd.f32 %v973_v37, %v972_v34  ;;  %v1058_v40 = vrot.slane %v1057_v38, 4 }
 0x409   : > { %v975_v41 = vrot.slane %v974_v39, 2  ;;  %v1059_v42 = vadd.f32 %v1058_v40, %v1057_v38 }
 0x40b   : > { %v976_v43 = vadd.f32 %v975_v41, %v974_v39  ;;  %v1060_v44 = vrot.slane %v1059_v42, 2 }
 0x40d   : > { %v977_v45 = vrot.slane %v976_v43, 1  ;;  %v1061_v46 = vadd.f32 %v1060_v44, %v1059_v42 }
 0x40f   : > { %v978_v47 = vadd.f32 %v977_v45, %v976_v43  ;;  %v1062_v48 = vrot.slane %v1061_v46, 1 }
 0x411   : > { %2538 = vmatmul.mubr.msk.f32.vlgmr.msra.gmra.mrb[8].mxu1 %vm450_vm2, %v978_v47  ;;  %v1063_v49 = vadd.f32 %v1062_v48, %v1061_v46 }
 0x412   : > { %1236 = vmatprep.mubr.f32.mxu1 %v2924_v21  ;;  %2716 = vmatpush1.bf16.msra.mxu1 %v2715_v58 }
 0x413   : > { %2549 = vmatmul.mubr.msk.f32.vlgmr.msra.gmra.mrb[4].mxu0 %vm450_vm2, %v1063_v49  ;;  %2718 = vmatprep.subr.bf16.mxu1 %v2717_v63 }
 0x414   : > { %2724 = vmatpush3.bf16.msra.mxu0 %v2721_v60 }
 0x415   : > { %2726 = vmatprep.subr.bf16.mxu0 %v2725_v20 }
 0x416   : > { %2720 = vmatpush1.bf16.msra.mxu1 %v2719_v3 }
 0x418   : > { %2728 = vmatpush3.bf16.msra.mxu0 %v2725_v20 }
 0x4e4   : > { %v1048_v4 = vpop.f32.mrb[8].mxu1 }
 0x4e5   : > { %v1052_v5 = vmul.f32 0.0625, %v1048_v4  ;;  %v2539_v6 = vpop.f32.mrb[9].mxu1 }
 0x4e6   : > { %v1133_v7 = vpop.f32.mrb[4].mxu0 }
 0x4e7   : > { %v1138_v8 = vmul.f32 %v1052_v5, %v1052_v5  ;;  %v1137_v9 = vmul.f32 0.0625, %v1133_v7  ;;  %v2550_v10 = vpop.f32.mrb[5].mxu0  ;;  %v1143_v13 = vrot.slane %v1052_v5, %v3086_v52 }
 0x4e9   : > { %v1139_v11 = vsub.f32 %v1137_v9, %v1138_v8  ;;  %v1144_v19 = vsub.f32 %v3135_v28, %v1143_v13  ;;  %v1145_v22 = vsub.f32 %v3137_v29, %v1143_v13 }
 0x4eb   : > { %v1146_v12 = vadd.f32 1e-05, %v1139_v11 }
 0x4ed   : > { %2880 = vrsqrt.f32 %v1146_v12 }
 0x4f7   : > { %v2881_v18 = vpop.eup %2880 }
 0x4f8   : > { %v1151_v23 = vrot.slane %v2881_v18, %v3086_v52 }
 0x4fa   : > { %v1152_v25 = vmul.f32 %v1151_v23, %v1144_v19  ;;  %v1153_v27 = vmul.f32 %v1151_v23, %v1145_v22 }
 0x4fc   : > { %v1158_v30 = vmul.f32 %v1157_v24, %v1152_v25  ;;  %v1159_v31 = vmul.f32 %v1157_v24, %v1153_v27 }
 0x4fe   : > { %v3196_v32 = vadd.f32 %v1163_v26, %v1158_v30  ;;  %v3198_v33 = vadd.f32 %v1163_v26, %v1159_v31 }
 0x500   : > { %2321 = vmatmul.mubr.msk.f32.vlgmr.msra.gmra.mrb[10].mxu1 %vm450_vm2, %v3196_v32  ;;  %2559 = vmatprep.mubr.msk.f32.mxu0 %vm450_vm2, %v3196_v32 }
 0x501   : > { %2560 = vmatmul.mubr.msk.f32.vlgmr.msra.gmra.mrb[6].mxu0 %vm450_vm2, %v3198_v33  ;;  %1242 = vmatprep.mubr.f32.mxu1 %v2924_v21 }
 0x504   : > { %2322 = vmatmul.mubr.msk.f32.gmra.mrb[12].mxu1 %vm450_vm2, %v3198_v33 }
 0x5d3   : > { %v1238_v52 = vpop.f32.mrb[10].mxu1 }
 0x5d4   : > { %v3209_v28 = vmul.f32 0.17677669, %v1238_v52  ;;  %v1240_v29 = vpop.f32.mrb[11].mxu1  ;;  %v2561_v34 = vpop.f32.mrb[6].mxu0 }
 0x5d5   : > { %v1315_v35 = vpop.f32.mrb[7].mxu0 }
 0x5d6   : > { %2566 = vmatprep.mubr.msk.f32.mxu1 %vm450_vm2, %v3209_v28  ;;  %v2735_v36 = vpack.c.bf16 %v2561_v34, %v1315_v35  ;;  %v3213_v37 = vpack.i.bf16 %v2561_v34, %v1315_v35 }
 0x5d7   : > { %v1244_v38 = vpop.f32.mrb[12].mxu1 }
 0x5d8   : > { %v3215_v39 = vmul.f32 0.17677669, %v1244_v38  ;;  %v1246_v40 = vpop.f32.mrb[13].mxu1  ;;  %2736 = vmatprep.subr.bf16.mxu0 %v2735_v36 }
 0x5d9   : > { %v2729_v41 = vpack.c.bf16 %v1246_v40, %v1240_v29  ;;  %2738 = vmatpush3.bf16.msra.mxu0 %v2735_v36  ;;  %v3223_v42 = vpack.i.bf16 %v1246_v40, %v1240_v29 }
 0x5da   : > { %1519 = vrot.lane.b32.xlu0 %v3215_v39, %s2925_s15 }
 0x5db   : > { %2816 = vrot.lane.b32.xlu1 %v3223_v42, %s2925_s15  ;;  %2731 = vmatprep.subr.msk.bf16.mxu1 %vm3219_vm3, %v2729_v41 }
 0x5dc   : > { %2734 = vmatpush3.bf16.xpose.msk.msra.mxu1 %vm3219_vm3, %v2729_v41 }
 0x5df   : > { %1517 = vrot.lane.b32.xlu1 %v3209_v28, %s2925_s15 }
 0x5e3   : > { %2567 = vmatmul.mubr.msk.f32.vlgmr.msra.gmra.mrb[14].mxu1 %vm450_vm2, %v3215_v39 }
 0x64c   : > { %v1520_v48 = vpop.permute.xlu0 %1519 }
 0x64d   : > { %v2817_v43 = vpop.permute.xlu1 %2816 }
 0x64e   : > { %v2819_v44 = vunpack.i.h.bf16 %v2817_v43  ;;  %v2818_v45 = vunpack.i.l.bf16 %v2817_v43 }
 0x650   : > { %v2739_v46 = vpack.c.bf16 %v2819_v44, %v2818_v45 }
 0x651   : > { %v1518_v47 = vpop.permute.xlu1 %1517 }
 0x652   : > { %2741 = vmatprep.subr.msk.bf16.mxu1 %vm3219_vm3, %v2739_v46  ;;  %2580 = vmatprep.mubr.msk.f32.mxu1 %vm450_vm2, %v1518_v47 }
 0x653   : > { %2744 = vmatpush3.bf16.xpose.msk.msra.mxu1 %vm3219_vm3, %v2739_v46 }
 0x65a   : > { %2581 = vmatmul.mubr.msk.f32.vlgmr.msra.gmra.mrb[16].mxu1 %vm450_vm2, %v1520_v48 }
 0x6b6   : > { %v2568_v49 = vpop.f32.mrb[14].mxu1 }
 0x6b7   : > { %v1404_v50 = vpop.f32.mrb[15].mxu1  ;;  %v1417_v53 = vsel %vm1413_vm4, %v2568_v49, -inf }
 0x6b8   : > { %1418 = vmax.xlane.f32.xlu0 %v1417_v53  ;;  %v1414_v54 = vsel %vm1413_vm4, %v1404_v50, -inf }
 0x6b9   : > { %1415 = vmax.xlane.f32.xlu1 %v1414_v54 }
 0x72d   : > { %v2582_v55 = vpop.f32.mrb[16].mxu1 }
 0x72e   : > { %v1599_v56 = vpop.f32.mrb[17].mxu1  ;;  %v1611_v57 = vsel %vm1413_vm4, %v2582_v55, -inf }
 0x72f   : > { %1612 = vmax.xlane.f32.xlu1 %v1611_v57  ;;  %v1608_v58 = vsel %vm1413_vm4, %v1599_v56, -inf }
 0x730   : > { %1609 = vmax.xlane.f32.xlu0 %v1608_v58 }
 0x745   : > { %v1419_v59 = vpop.xlane.xlu0 %1418 }
 0x746   : > { %v1421_v60 = vsub.f32 %v2568_v49, %v1419_v59  ;;  %v1416_v61 = vpop.xlane.xlu1 %1415 }
 0x747   : > { %v1420_v62 = vsub.f32 %v1404_v50, %v1416_v61 }
 0x748   : > { %v1424_v16 = vmul.f32 1.442695, %v1421_v60 }
 0x749   : > { %v1422_v63 = vmul.f32 1.442695, %v1420_v62 }
 0x74a   : > { %2882 = vpow2.f32 %v1424_v16 }
 0x74b   : > { %2884 = vpow2.f32 %v1422_v63 }
 0x754   : > { %v2883_v0 = vpop.eup %2882 }
 0x755   : > { %v2885_v17 = vpop.eup %2884  ;;  %v1429_v2 = vsel %vm1413_vm4, %v2883_v0, 0.0 }
 0x756   : > { %1430 = vadd.xlane.f32.xlu1 %v1429_v2  ;;  %v1426_v3 = vsel %vm1413_vm4, %v2885_v17, 0.0 }
 0x757   : > { %1427 = vadd.xlane.f32.xlu0 %v1426_v3 }
 0x7bc   : > { %v1613_v20 = vpop.xlane.xlu1 %1612 }
 0x7bd   : > { %v1615_v4 = vsub.f32 %v2582_v55, %v1613_v20  ;;  %v1610_v5 = vpop.xlane.xlu0 %1609 }
 0x7be   : > { %v1614_v6 = vsub.f32 %v1599_v56, %v1610_v5 }
 0x7bf   : > { %v1618_v7 = vmul.f32 1.442695, %v1615_v4 }
 0x7c0   : > { %v1616_v8 = vmul.f32 1.442695, %v1614_v6 }
 0x7c1   : > { %2886 = vpow2.f32 %v1618_v7 }
 0x7c2   : > { %2888 = vpow2.f32 %v1616_v8 }
 0x7cb   : > { %v2887_v9 = vpop.eup %2886 }
 0x7cc   : > { %v2889_v10 = vpop.eup %2888  ;;  %v1623_v11 = vsel %vm1413_vm4, %v2887_v9, 0.0 }
 0x7cd   : > { %1624 = vadd.xlane.f32.xlu1 %v1623_v11  ;;  %v1620_v12 = vsel %vm1413_vm4, %v2889_v10, 0.0 }
 0x7ce   : > { %1621 = vadd.xlane.f32.xlu0 %v1620_v12 }
 0x7de   : > { %2826 = vrot.lane.b32.xlu1 %v3223_v42, %s2926_s17 }
 0x7e2   : > { %1719 = vrot.lane.b32.xlu1 %v3209_v28, %s2926_s17 }
 0x7e3   : > { %v1431_v13 = vpop.xlane.xlu1 %1430 }
 0x7e4   : > { %2890 = vrcp.f32 %v1431_v13  ;;  %2821 = vrot.lane.b32.xlu0 %v3213_v37, %s2925_s15  ;;  %v1428_v14 = vpop.xlane.xlu0 %1427 }
 0x7e5   : > { %2892 = vrcp.f32 %v1428_v14 }
 0x7e8   : > { %1721 = vrot.lane.b32.xlu0 %v3215_v39, %s2926_s17 }
 0x7ee   : > { %v2891_v15 = vpop.eup %2890 }
 0x7ef   : > { %v2893_v18 = vpop.eup %2892  ;;  %v1435_v22 = vmul.f32 %v2891_v15, %v2883_v0 }
 0x7f0   : > { %v1433_v19 = vmul.f32 %v2893_v18, %v2885_v17 }
 0x7f2   : > { %2573 = vmatprep.mubr.msk.f32.mxu0 %vm1413_vm4, %v1433_v19 }
 0x7f3   : > { %2574 = vmatmul.mubr.msk.f32.vlgmr.msra.gmra.mrb[8].mxu0 %vm1413_vm4, %v1435_v22 }
 0x85a   : > { %v1625_v23 = vpop.xlane.xlu1 %1624 }
 0x85b   : > { %2894 = vrcp.f32 %v1625_v23  ;;  %v1622_v24 = vpop.xlane.xlu0 %1621 }
 0x85c   : > { %2896 = vrcp.f32 %v1622_v24 }
 0x85e   : > { %v2827_v25 = vpop.permute.xlu1 %2826 }
 0x85f   : > { %v2822_v26 = vpop.permute.xlu0 %2821  ;;  %v2829_v27 = vunpack.i.h.bf16 %v2827_v25  ;;  %v2828_v30 = vunpack.i.l.bf16 %v2827_v25 }
 0x860   : > { %v2824_v31 = vunpack.i.h.bf16 %v2822_v26  ;;  %v2823_v52 = vunpack.i.l.bf16 %v2822_v26 }
 0x861   : > { %v2749_v34 = vpack.c.bf16 %v2829_v27, %v2828_v30 }
 0x862   : > { %v2745_v29 = vpack.c.bf16 %v2824_v31, %v2823_v52  ;;  %v1720_v41 = vpop.permute.xlu1 %1719 }
 0x863   : > { %v1722_v43 = vpop.permute.xlu0 %1721 }
 0x864   : > { %2746 = vmatprep.subr.bf16.mxu0 %v2745_v29 }
 0x865   : > { %v2895_v35 = vpop.eup %2894  ;;  %2748 = vmatpush3.bf16.msra.mxu0 %v2745_v29 }
 0x866   : > { %v2897_v36 = vpop.eup %2896  ;;  %2751 = vmatprep.subr.msk.bf16.mxu0 %vm3219_vm3, %v2749_v34  ;;  %v1629_v40 = vmul.f32 %v2895_v35, %v2887_v9 }
 0x867   : > { %v1627_v38 = vmul.f32 %v2897_v36, %v2889_v10 }
 0x869   : > { %2587 = vmatprep.mubr.msk.f32.mxu0 %vm1413_vm4, %v1627_v38 }
 0x86a   : > { %2588 = vmatmul.mubr.msk.f32.vlgmr.msra.gmra.mrb[10].mxu0 %vm1413_vm4, %v1629_v40 }
 0x86b   : > { %2594 = vmatprep.mubr.msk.f32.mxu0 %vm450_vm2, %v1720_v41 }
 0x86e   : > { %2754 = vmatpush3.bf16.xpose.msk.msra.mxu0 %vm3219_vm3, %v2749_v34 }
 0x875   : > { %2595 = vmatmul.mubr.msk.f32.vlgmr.msra.gmra.mrb[12].mxu0 %vm450_vm2, %v1722_v43 }
 0x8c6   : > { %v3269_v44 = vpop.f32.mrb[8].mxu0 }
 0x8c7   : > { %v3271_v45 = vpop.f32.mrb[9].mxu0 }
 0x93d   : > { %v3273_v46 = vpop.f32.mrb[10].mxu0 }
 0x93e   : > { %v3275_v47 = vpop.f32.mrb[11].mxu0 }
 0x93f   : > { %v2845_v48 = vpack.i.bf16 %v3273_v46, %v3275_v47  ;;  %v351_v47 = vld [vmem:[%s3388_s7 + $0x8] sm:$0xff] }
 0x948   : > { %v2596_v49 = vpop.f32.mrb[12].mxu0 }
 0x949   : > { %v1801_v50 = vpop.f32.mrb[13].mxu0  ;;  %v1813_v53 = vsel %vm1413_vm4, %v2596_v49, -inf }
 0x94a   : > { %1814 = vmax.xlane.f32.xlu0 %v1813_v53  ;;  %v1810_v54 = vsel %vm1413_vm4, %v1801_v50, -inf }
 0x94b   : > { %1811 = vmax.xlane.f32.xlu1 %v1810_v54  ;;  %v353_v54 = vld [vmem:[%s3388_s7 + $0x18] sm:$0xff] }
 0x9d7   : > { %v1815_v55 = vpop.xlane.xlu0 %1814 }
 0x9d8   : > { %v1817_v56 = vsub.f32 %v2596_v49, %v1815_v55  ;;  %v1812_v57 = vpop.xlane.xlu1 %1811 }
 0x9d9   : > { %v1816_v58 = vsub.f32 %v1801_v50, %v1812_v57  ;;  %v355_v57 = vld [vmem:[%s3388_s7 + $0x28] sm:$0xff] }
 0x9da   : > { %v1820_v59 = vmul.f32 1.442695, %v1817_v56  ;;  %v354_v56 = vld [vmem:[%s3388_s7 + $0x20] sm:$0xff] }
 0x9db   : > { %v1818_v60 = vmul.f32 1.442695, %v1816_v58  ;;  %v2777_v58 = vpack.c.bf16 %v355_v57, %v354_v56 }
 0x9dc   : > { %2898 = vpow2.f32 %v1820_v59  ;;  %v356_v59 = vld [vmem:[%s3388_s7 + $0x30] sm:$0xff] }
 0x9dd   : > { %2900 = vpow2.f32 %v1818_v60  ;;  %v357_v60 = vld [vmem:[%s3388_s7 + $0x38] sm:$0xff] }
 0x9e6   : > { %v2899_v61 = vpop.eup %2898 }
 0x9e7   : > { %v2901_v62 = vpop.eup %2900  ;;  %v1825_v16 = vsel %vm1413_vm4, %v2899_v61, 0.0 }
 0x9e8   : > { %1826 = vadd.xlane.f32.xlu1 %v1825_v16  ;;  %v1822_v63 = vsel %vm1413_vm4, %v2901_v62, 0.0  ;;  %v359_v16 = vld [vmem:[%s3388_s7 + $0x48] sm:$0xff] }
 0x9e9   : > { %1823 = vadd.xlane.f32.xlu0 %v1822_v63 }
 0x9f9   : > { %2836 = vrot.lane.b32.xlu1 %v3223_v42, %s2927_s18 }
 0x9fd   : > { %1919 = vrot.lane.b32.xlu1 %v3209_v28, %s2927_s18 }
 0x9ff   : > { %2831 = vrot.lane.b32.xlu0 %v3213_v37, %s2926_s17 }
 0xa03   : > { %1921 = vrot.lane.b32.xlu0 %v3215_v39, %s2927_s18 }
 0xa75   : > { %v1827_v0 = vpop.xlane.xlu1 %1826 }
 0xa76   : > { %2902 = vrcp.f32 %v1827_v0  ;;  %v1824_v17 = vpop.xlane.xlu0 %1823  ;;  %v360_v0 = vld [vmem:[%s3388_s7 + $0x50] sm:$0xff] }
 0xa77   : > { %2904 = vrcp.f32 %v1824_v17  ;;  %v361_v17 = vld [vmem:[%s3388_s7 + $0x58] sm:$0xff] }
 0xa79   : > { %v2837_v2 = vpop.permute.xlu1 %2836 }
 0xa7a   : > { %v2832_v3 = vpop.permute.xlu0 %2831  ;;  %v2839_v20 = vunpack.i.h.bf16 %v2837_v2  ;;  %v2838_v4 = vunpack.i.l.bf16 %v2837_v2  ;;  %v2789_v2 = vpack.c.bf16 %v361_v17, %v360_v0 }
 0xa7b   : > { %v2834_v5 = vunpack.i.h.bf16 %v2832_v3  ;;  %v2833_v6 = vunpack.i.l.bf16 %v2832_v3  ;;  %v362_v3 = vld [vmem:[%s3388_s7 + $0x60] sm:$0xff] }
 0xa7c   : > { %v2759_v7 = vpack.c.bf16 %v2839_v20, %v2838_v4  ;;  %v363_v20 = vld [vmem:[%s3388_s7 + $0x68] sm:$0xff] }
 0xa7d   : > { %v2755_v42 = vpack.c.bf16 %v2834_v5, %v2833_v6  ;;  %v1920_v10 = vpop.permute.xlu1 %1919  ;;  %v2793_v4 = vpack.c.bf16 %v363_v20, %v362_v3  ;;  %v364_v5 = vld [vmem:[%s3388_s7 + $0x70] sm:$0xff]  ;;  %v365_v6 = vld [vmem:[%s3388_s7 + $0x78] sm:$0xff] }
 0xa7e   : > { %v1922_v11 = vpop.permute.xlu0 %1921 }
 0xa7f   : > { %2756 = vmatprep.subr.bf16.mxu1 %v2755_v42 }
 0xa80   : > { %v2903_v28 = vpop.eup %2902  ;;  %2758 = vmatpush3.bf16.msra.mxu1 %v2755_v42  ;;  %v2797_v42 = vpack.c.bf16 %v365_v6, %v364_v5 }
 0xa81   : > { %v2905_v8 = vpop.eup %2904  ;;  %2761 = vmatprep.subr.msk.bf16.mxu1 %vm3219_vm3, %v2759_v7  ;;  %v1831_v9 = vmul.f32 %v2903_v28, %v2899_v61  ;;  %v2781_v61 = vpack.c.bf16 %v357_v60, %v356_v59 }
 0xa82   : > { %v1829_v39 = vmul.f32 %v2905_v8, %v2901_v62  ;;  %v358_v62 = vld [vmem:[%s3388_s7 + $0x40] sm:$0xff] }
 0xa83   : > { %v2785_v63 = vpack.c.bf16 %v359_v16, %v358_v62 }
 0xa84   : > { %2601 = vmatprep.mubr.msk.f32.mxu1 %vm1413_vm4, %v1829_v39 }
 0xa85   : > { %2602 = vmatmul.mubr.msk.f32.vlgmr.msra.gmra.mrb[18].mxu1 %vm1413_vm4, %v1831_v9 }
 0xa86   : > { %2608 = vmatprep.mubr.msk.f32.mxu1 %vm450_vm2, %v1920_v10 }
 0xa89   : > { %2764 = vmatpush3.bf16.xpose.msk.msra.mxu1 %vm3219_vm3, %v2759_v7 }
 0xa90   : > { %2609 = vmatmul.mubr.msk.f32.vlgmr.msra.gmra.mrb[20].mxu1 %vm450_vm2, %v1922_v11 }
 0xb58   : > { %v2603_v12 = vpop.f32.mrb[18].mxu1 }
 0xb59   : > { %v1910_v13 = vpop.f32.mrb[19].mxu1 }
 0xb5a   : > { %v2850_v14 = vpack.i.bf16 %v2603_v12, %v1910_v13 }
 0xb63   : > { %v2610_v15 = vpop.f32.mrb[20].mxu1 }
 0xb64   : > { %v2001_v18 = vpop.f32.mrb[21].mxu1  ;;  %v2013_v19 = vsel %vm1413_vm4, %v2610_v15, -inf }
 0xb65   : > { %2014 = vmax.xlane.f32.xlu0 %v2013_v19  ;;  %v2010_v22 = vsel %vm1413_vm4, %v2001_v18, -inf }
 0xb66   : > { %2011 = vmax.xlane.f32.xlu1 %v2010_v22 }
 0xbf2   : > { %v2015_v23 = vpop.xlane.xlu0 %2014 }
 0xbf3   : > { %v2017_v24 = vsub.f32 %v2610_v15, %v2015_v23  ;;  %v2012_v25 = vpop.xlane.xlu1 %2011 }
 0xbf4   : > { %v2016_v26 = vsub.f32 %v2001_v18, %v2012_v25 }
 0xbf5   : > { %v2020_v21 = vmul.f32 1.442695, %v2017_v24 }
 0xbf6   : > { %v2018_v27 = vmul.f32 1.442695, %v2016_v26 }
 0xbf7   : > { %2906 = vpow2.f32 %v2020_v21  ;;  %v2152_v21 = vsub.s32 6, %v3083_v51 }
 0xbf8   : > { %2908 = vpow2.f32 %v2018_v27 }
 0xbf9   : > { %v2153_v27 = vrot.slane %v3094_v1, %v2152_v21 }
 0xc01   : > { %v2907_v30 = vpop.eup %2906 }
 0xc02   : > { %v2909_v31 = vpop.eup %2908  ;;  %v2025_v52 = vsel %vm1413_vm4, %v2907_v30, 0.0 }
 0xc03   : > { %2026 = vadd.xlane.f32.xlu1 %v2025_v52  ;;  %v2022_v29 = vsel %vm1413_vm4, %v2909_v31, 0.0 }
 0xc04   : > { %2023 = vadd.xlane.f32.xlu0 %v2022_v29 }
 0xc14   : > { %2846 = vrot.lane.b32.xlu1 %v2845_v48, %s2927_s18  ;;  %v352_v48 = vld [vmem:[%s3388_s7 + $0x10] sm:$0xff] }
 0xc15   : > { %v2773_v55 = vpack.c.bf16 %v353_v54, %v352_v48 }
 0xc18   : > { %2851 = vrot.lane.b32.xlu1 %v2850_v14, %s2926_s17 }
 0xc1a   : > { %2841 = vrot.lane.b32.xlu0 %v3213_v37, %s2927_s18  ;;  %v350_v37 = vld [vmem:[%s3388_s7] sm:$0xff] }
 0xc1b   : > { %v2769_v53 = vpack.c.bf16 %v351_v47, %v350_v37 }
 0xc90   : > { %v2027_v34 = vpop.xlane.xlu1 %2026 }
 0xc91   : > { %2910 = vrcp.f32 %v2027_v34  ;;  %v2024_v35 = vpop.xlane.xlu0 %2023 }
 0xc92   : > { %2912 = vrcp.f32 %v2024_v35 }
 0xc94   : > { %v2847_v39 = vpop.permute.xlu1 %2846 }
 0xc95   : > { %v2842_v36 = vpop.permute.xlu0 %2841  ;;  %v2849_v10 = vunpack.i.h.bf16 %v2847_v39  ;;  %v2848_v11 = vunpack.i.l.bf16 %v2847_v39 }
 0xc96   : > { %v2844_v38 = vunpack.i.h.bf16 %v2842_v36  ;;  %v2843_v40 = vunpack.i.l.bf16 %v2842_v36 }
 0xc97   : > { %v2144_v15 = vsel %vm450_vm2, %v3269_v44, %v2849_v10  ;;  %v2143_v22 = vsel %vm450_vm2, %v3271_v45, %v2848_v11 }
 0xc98   : > { %v2765_v41 = vpack.c.bf16 %v2844_v38, %v2843_v40  ;;  %v2852_v9 = vpop.permute.xlu1 %2851 }
 0xc99   : > { %v2854_v12 = vunpack.i.h.bf16 %v2852_v9  ;;  %v2853_v13 = vunpack.i.l.bf16 %v2852_v9 }
 0xc9a   : > { %2766 = vmatprep.subr.bf16.mxu0 %v2765_v41 }
 0xc9b   : > { %v2911_v43 = vpop.eup %2910  ;;  %2768 = vmatpush3.bf16.msra.mxu0 %v2765_v41  ;;  %v2146_v23 = vsel %vm368_vm0, %v2144_v15, %v2854_v12  ;;  %v2145_v24 = vsel %vm368_vm0, %v2143_v22, %v2853_v13 }
 0xc9c   : > { %v2913_v49 = vpop.eup %2912  ;;  %v2031_v46 = vmul.f32 %v2911_v43, %v2907_v30  ;;  %2770 = vmatprep.subr.bf16.mxu0 %v2769_v53 }
 0xc9d   : > { %v2029_v50 = vmul.f32 %v2913_v49, %v2909_v31 }
 0xc9f   : > { %2615 = vmatprep.mubr.msk.f32.mxu0 %vm1413_vm4, %v2029_v50 }
 0xca0   : > { %2616 = vmatmul.mubr.msk.f32.vlgmr.msra.gmra.mrb[14].mxu0 %vm1413_vm4, %v2031_v46 }
 0xca1   : > { %2772 = vmatpush3.bf16.msra.mxu0 %v2769_v53 }
 0xca2   : > { %2774 = vmatprep.subr.bf16.mxu0 %v2773_v55 }
 0xca5   : > { %2776 = vmatpush3.bf16.msra.mxu0 %v2773_v55 }
 0xca6   : > { %2778 = vmatprep.subr.bf16.mxu0 %v2777_v58 }
 0xca9   : > { %2780 = vmatpush3.bf16.msra.mxu0 %v2777_v58 }
 0xcaa   : > { %2782 = vmatprep.subr.bf16.mxu0 %v2781_v61 }
 0xcad   : > { %2784 = vmatpush3.bf16.msra.mxu0 %v2781_v61 }
 0xcae   : > { %2786 = vmatprep.subr.bf16.mxu0 %v2785_v63 }
 0xcb1   : > { %2788 = vmatpush3.bf16.msra.mxu0 %v2785_v63 }
 0xcb2   : > { %2790 = vmatprep.subr.bf16.mxu0 %v2789_v2 }
 0xcb5   : > { %2792 = vmatpush3.bf16.msra.mxu0 %v2789_v2 }
 0xcb6   : > { %2794 = vmatprep.subr.bf16.mxu0 %v2793_v4 }
 0xcb9   : > { %2796 = vmatpush3.bf16.msra.mxu0 %v2793_v4 }
 0xcba   : > { %2798 = vmatprep.subr.bf16.mxu0 %v2797_v42 }
 0xcbd   : > { %2800 = vmatpush3.bf16.msra.mxu0 %v2797_v42 }
 0xd73   : > { %v2617_v7 = vpop.f32.mrb[14].mxu0 }
 0xd74   : > { %v2110_v28 = vpop.f32.mrb[15].mxu0 }
 0xd75   : > { %v2855_v8 = vpack.i.bf16 %v2617_v7, %v2110_v28 }
 0xd77   : > { %2856 = vrot.lane.b32.xlu0 %v2855_v8, %s2925_s15 }
 0xde9   : > { %v2857_v14 = vpop.permute.xlu0 %2856 }
 0xdea   : > { %v2859_v18 = vunpack.i.h.bf16 %v2857_v14  ;;  %v2858_v19 = vunpack.i.l.bf16 %v2857_v14 }
 0xdec   : > { %v2148_v25 = vsel %vm2147_vm5, %v2145_v24, %v2858_v19  ;;  %v2149_v26 = vsel %vm2147_vm5, %v2146_v23, %v2859_v18 }
 0xded   : > { %2650 = vmatprep.mubr.f32.mxu0 %v2148_v25 }
 0xdee   : > { %2651 = vmatmul.mubr.f32.vlgmr.msra.gmra.mrb[16].mxu0 %v2149_v26 }
 0xec1   : > { %v2652_v30 = vpop.f32.mrb[16].mxu0 }
 0xec2   : > { %v2226_v31 = vadd.f32 %v2652_v30, %v2153_v27  ;;  %v2220_v44 = vpop.f32.mrb[17].mxu0 }
 0xec3   : > { %v2221_v45 = vadd.f32 %v2220_v44, %v2153_v27 }
 0xec4   : > { %v2230_v52 = vadd.f32 %v2226_v31, %v3198_v33 }
 0xec5   : > { %v2229_v29 = vadd.f32 %v2221_v45, %v3196_v32 }
 0xec6   : > { %2232 = vst.msk [vmem:[%s319_s16 + $0x8] sm:$0xff] %vm450_vm2, %v2230_v52 }
 0xec7   : > { %2231 = vst.msk [vmem:[%s319_s16] sm:$0xff] %vm450_vm2, %v2229_v29 }
 0xec8 PF: > { %s18_s27 = sadd.s32 1, %s2920_s27  }
 0xec9   : > { %p15_p4 = scmp.ge.s32.totalorder %s18_s27, 4  }
 0xecb   :  { %17 = sbr.rel (!%p15_p4) target bundleno = 1 (0x1), region = 85 }

// kernel: _lambda_.8
= control target key start
LH: loop header
LB: loop body
LE: loop exit
PB: predicated region body
PF: predicated region fallthrough
CT: control target
= control target key end

     0   :  { %s2941_s27 = smov 0   ;;  %s3327_s0 = inlined_call_operand.vmem [shape: f32[2,16,32], index: 0, kind: input, shape index: {}]   ;;  %s3328_s1 = inlined_call_operand.vmem [shape: f32[32,32], index: 1, kind: input, shape index: {}]   ;;  %s3329_s2 = inlined_call_operand.vmem [shape: f32[2,1,32], index: 2, kind: input, shape index: {}]   ;;  %s3330_s3 = inlined_call_operand.vmem [shape: f32[32,32], index: 3, kind: input, shape index: {}]   ;;  %s3331_s4 = inlined_call_operand.vmem [shape: f32[7,32], index: 4, kind: input, shape index: {}]   ;;  %s3332_s5 = inlined_call_operand.vmem [shape: f32[32,32], index: 5, kind: input, shape index: {}]   ;;  %s3333_s6 = inlined_call_operand.vmem [shape: f32[32,384], index: 6, kind: input, shape index: {}]   ;;  %s3334_s7 = inlined_call_operand.vmem [shape: f32[128,32], index: 7, kind: input, shape index: {}]   ;;  %s3335_s8 = inlined_call_operand.vmem [shape: f32[2,16,32], index: 8, kind: output, shape index: {}]  }
   0x1 LB: > { %s2285_s28 = sadd.s32 4294967295, %s2888_s27   ;;  %p2289_p0 = scmp.ge.s32.totalorder %s2888_s27, 1  ;;  %s2888_s27 = sphi %s2941_s27, %s18_s27  }
   0x2   : > { %p270_p1 = scmp.lt.s32.totalorder %s2888_s27, 3 }
   0x4   : > { %p271_p2 = pnand %p2289_p0, %p270_p1 }
   0x5   : > { %v320_v0 = vld [vmem:[%s3328_s1] sm:$0xff] (!%p271_p2)  ;;  %v321_v1 = vld [vmem:[%s3328_s1 + $0x8] sm:$0xff] (!%p271_p2)  ;;  %v322_v2 = vld [vmem:[%s3328_s1 + $0x10] sm:$0xff] (!%p271_p2)  ;;  %p307_p3 = scmp.lt.s32.totalorder (!%p271_p2), %s2285_s28, 1  ;;  %vm364_vm0 = vcmask (!%p271_p2), 261120   ;;  %v2890_v11 = vmov (!%p271_p2), 0.0|0.0   ;;  %v616_v44 = vlaneseq (!%p271_p2) }
   0x6   : > { %274 = sbr.rel (%p271_p2) target bundleno = 4206 (0x106e), region = 52  ;;  %v2629_v3 = vpack.c.bf16 (!%p271_p2), %v321_v1, %v320_v0  ;;  %v323_v4 = vld [vmem:[%s3328_s1 + $0x18] sm:$0xff] (!%p271_p2)  ;;  %v325_v8 = vld [vmem:[%s3330_s3] sm:$0xff] (!%p271_p2)  ;;  %v326_v9 = vld [vmem:[%s3330_s3 + $0x8] sm:$0xff] (!%p271_p2)  ;;  %2657 = vmatprep.subr.bf16.mxu0 (!%p271_p2), %v2890_v11  ;;  %vm2891_vm1 = vmmov (!%p271_p2), 0   ;;  %v2892_v15 = vmov (!%p271_p2), 0.0  }
   0x7   : > { %v2633_v5 = vpack.c.bf16 (!%p271_p2), %v323_v4, %v322_v2  ;;  %v2983_v10 = vpack.c.bf16 (!%p271_p2), %v326_v9, %v325_v8  ;;  %v327_v12 = vld [vmem:[%s3330_s3 + $0x10] sm:$0xff] (!%p271_p2)  ;;  %v328_v13 = vld [vmem:[%s3330_s3 + $0x18] sm:$0xff] (!%p271_p2)  ;;  %2491 = vmatprep.mubr.msk.f32.mxu0 (!%p271_p2), %vm2891_vm1, %v2892_v15  ;;  %v330_v38 = vld [vmem:[%s3332_s5] sm:$0xff] (!%p271_p2)  ;;  %v3031_v45 = vshrl.u32 (!%p271_p2), %v616_v44, 7  ;;  %s2893_s26 = smov (!%p271_p2), 96   ;;  %vm1400_vm3 = vcmask (!%p271_p2), 130048  }
   0x8   : > { %2630 = vmatprep.subr.bf16.mxu1 (!%p271_p2), %v2629_v3  ;;  %v2997_v14 = vpack.c.bf16 (!%p271_p2), %v328_v13, %v327_v12  ;;  %v331_v39 = vld [vmem:[%s3332_s5 + $0x8] sm:$0xff] (!%p271_p2)  ;;  %v332_v40 = vld [vmem:[%s3332_s5 + $0x10] sm:$0xff] (!%p271_p2)  ;;  %v333_v42 = vld [vmem:[%s3332_s5 + $0x18] sm:$0xff] (!%p271_p2)  ;;  %s2894_s29 = smov (!%p271_p2), 64   ;;  %s2895_s30 = smov (!%p271_p2), 32   ;;  %vm2132_vm4 = vcmask (!%p271_p2), 523264  }
   0x9   : > { %2632 = vmatpush3.bf16.msra.mxu1 (!%p271_p2), %v2629_v3  ;;  %2659 = vmatpush3.bf16.msra.mxu0 (!%p271_p2), %v2983_v10  ;;  %v2649_v41 = vpack.c.bf16 (!%p271_p2), %v331_v39, %v330_v38  ;;  %v2653_v43 = vpack.c.bf16 (!%p271_p2), %v333_v42, %v332_v40  ;;  %v3034_v46 = vsub.s32 (!%p271_p2), 0, %v3031_v45  ;;  %v3040_v59 = vld [vmem:[%s3331_s4] sm:$0x7f] (!%p271_p2)  ;;  %v638_v60 = vsub.s32 (!%p271_p2), 1, %v3031_v45  ;;  %vm3167_vm2 = vmpackc.low (!%p271_p2), %vm364_vm0, %vm364_vm0 }
   0xa   : > { %2634 = vmatprep.subr.bf16.mxu1 (!%p271_p2), %v2633_v5  ;;  %2660 = vmatprep.subr.bf16.mxu0 (!%p271_p2), %v2890_v11  ;;  %vm2135_vm5 = vcmask (!%p271_p2), 785408  }
   0xb   : > { %v633_v63 = vrot.slane (!%p271_p2), %v3040_v59, %v3034_v46  ;;  %v639_v2 = vrot.slane (!%p271_p2), %v3040_v59, %v638_v60 }
   0xd   : > { %s3339_s28 = smov (!%p307_p3, %s2285_s28), 1  ;;  %2636 = vmatpush3.bf16.msra.mxu1 %v2633_v5  ;;  %2662 = vmatpush3.bf16.msra.mxu0 %v2997_v14 }
   0xe   : > { %s2339_s15 = sshll.u32 %s3339_s28, 4  ;;  %2637 = vmatprep.subr.bf16.mxu1 %v2890_v11  ;;  %2669 = vmatprep.subr.bf16.mxu0 %v2890_v11  ;;  %s314_s20 = scalar_lea.vmem %s3329_s2, %s3339_s28 }
   0xf   : > { %s311_s18 = scalar_lea.vmem %s3327_s0, %s2339_s15  ;;  %s319_s25 = scalar_lea.vmem %s3335_s8, %s2339_s15 }
  0x10   : > { %v2969_v6 = vld [vmem:[%s311_s18] sm:$0xff]  ;;  %v2973_v7 = vld [vmem:[%s311_s18 + $0x8] sm:$0xff] }
  0x11   : > { %2447 = vmatprep.mubr.msk.f32.mxu1 %vm364_vm0, %v2969_v6 }
  0x12   : > { %2448 = vmatmul.mubr.msk.f32.vlgmr.msra.gmra.mrb[0].mxu1 %vm364_vm0, %v2973_v7 }
  0x13   : > { %2639 = vmatpush3.bf16.msra.mxu1 %v2983_v10  ;;  %2458 = vmatprep.mubr.msk.f32.mxu1 %vm2891_vm1, %v2892_v15 }
  0x14   : > { %2640 = vmatprep.subr.bf16.mxu1 %v2890_v11 }
  0x17   : > { %2642 = vmatpush3.bf16.msra.mxu1 %v2997_v14 }
  0x18   : > { %2643 = vmatprep.subr.bf16.mxu1 %v2890_v11 }
  0xe5   : > { %v2449_v16 = vpop.f32.mrb[0].mxu1 }
  0xe6   : > { %v447_v17 = vsel %vm364_vm0, %v2449_v16, 0.0  ;;  %v530_v18 = vmul.f32 %v2449_v16, %v2449_v16  ;;  %v437_v19 = vpop.f32.mrb[1].mxu1 }
  0xe7   : > { %v446_v20 = vsel %vm364_vm0, %v437_v19, 0.0  ;;  %v529_v21 = vmul.f32 %v437_v19, %v437_v19 }
  0xe8   : > { %v532_v22 = vsel %vm364_vm0, %v530_v18, 0.0  ;;  %v448_v23 = vadd.f32 %v447_v17, %v446_v20  ;;  %v2300_v20 = vld [vmem:[%s314_s20] ss:$0 sm:$0xff] }
  0xe9   : > { %v531_v24 = vsel %vm364_vm0, %v529_v21, 0.0 }
  0xea   : > { %v449_v25 = vrot.slane %v448_v23, 4  ;;  %v533_v26 = vadd.f32 %v532_v22, %v531_v24 }
  0xec   : > { %v450_v27 = vadd.f32 %v449_v25, %v448_v23  ;;  %v534_v28 = vrot.slane %v533_v26, 4 }
  0xee   : > { %v451_v29 = vrot.slane %v450_v27, 2  ;;  %v535_v30 = vadd.f32 %v534_v28, %v533_v26 }
  0xf0   : > { %v452_v31 = vadd.f32 %v451_v29, %v450_v27  ;;  %v536_v32 = vrot.slane %v535_v30, 2 }
  0xf2   : > { %v453_v33 = vrot.slane %v452_v31, 1  ;;  %v537_v35 = vadd.f32 %v536_v32, %v535_v30 }
  0xf4   : > { %v454_v34 = vadd.f32 %v453_v33, %v452_v31  ;;  %v538_v36 = vrot.slane %v537_v35, 1 }
  0xf6   : > { %2459 = vmatmul.mubr.msk.f32.vlgmr.msra.gmra.mrb[2].mxu1 %vm364_vm0, %v454_v34  ;;  %v539_v37 = vadd.f32 %v538_v36, %v537_v35 }
  0xf7   : > { %2645 = vmatpush3.bf16.msra.mxu1 %v2983_v10  ;;  %2469 = vmatprep.mubr.msk.f32.mxu1 %vm2891_vm1, %v2892_v15 }
  0xf8   : > { %2646 = vmatprep.subr.bf16.mxu1 %v2890_v11 }
  0xfb   : > { %2648 = vmatpush3.bf16.msra.mxu1 %v2997_v14 }
  0xfc   : > { %2650 = vmatprep.subr.bf16.mxu1 %v2649_v41 }
  0xfe   : > { %2470 = vmatmul.mubr.msk.f32.vlgmr.msra.gmra.mrb[4].mxu1 %vm364_vm0, %v539_v37 }
  0xff   : > { %2652 = vmatpush3.bf16.msra.mxu1 %v2649_v41 }
 0x100   : > { %2654 = vmatprep.subr.bf16.mxu1 %v2653_v43 }
 0x103   : > { %2656 = vmatpush3.bf16.msra.mxu1 %v2653_v43 }
 0x104   : > { %2663 = vmatprep.subr.bf16.mxu1 %v2890_v11 }
 0x1c9   : > { %v524_v47 = vpop.f32.mrb[2].mxu1 }
 0x1ca   : > { %v528_v48 = vmul.f32 0.0625, %v524_v47  ;;  %v2460_v49 = vpop.f32.mrb[3].mxu1 }
 0x1cc   : > { %v619_v50 = vrot.slane %v528_v48, %v3034_v46  ;;  %v614_v54 = vmul.f32 %v528_v48, %v528_v48 }
 0x1ce   : > { %v620_v51 = vsub.f32 %v437_v19, %v619_v50  ;;  %v621_v52 = vsub.f32 %v2449_v16, %v619_v50 }
 0x1d1   : > { %v609_v53 = vpop.f32.mrb[4].mxu1 }
 0x1d2   : > { %v613_v55 = vmul.f32 0.0625, %v609_v53  ;;  %v2471_v56 = vpop.f32.mrb[5].mxu1 }
 0x1d4   : > { %v615_v57 = vsub.f32 %v613_v55, %v614_v54 }
 0x1d6   : > { %v622_v58 = vadd.f32 1e-05, %v615_v57 }
 0x1d8   : > { %2828 = vrsqrt.f32 %v622_v58 }
 0x1e2   : > { %v2829_v61 = vpop.eup %2828 }
 0x1e3   : > { %v627_v62 = vrot.slane %v2829_v61, %v3034_v46 }
 0x1e5   : > { %v629_v0 = vmul.f32 %v627_v62, %v621_v52  ;;  %v628_v1 = vmul.f32 %v627_v62, %v620_v51  ;;  %v937_v62 = vsub.s32 3, %v3031_v45 }
 0x1e7   : > { %v634_v3 = vmul.f32 %v633_v63, %v628_v1  ;;  %v635_v4 = vmul.f32 %v633_v63, %v629_v0 }
 0x1e9   : > { %v640_v5 = vadd.f32 %v639_v2, %v634_v3  ;;  %v641_v8 = vadd.f32 %v639_v2, %v635_v4  ;;  %v938_v3 = vrot.slane %v3040_v59, %v937_v62 }
 0x1eb   : > { %v2298_v9 = vmul.f32 -1.442695, %v640_v5  ;;  %v2299_v12 = vmul.f32 -1.442695, %v641_v8 }
 0x1ed   : > { %2830 = vpow2.f32 %v2298_v9 }
 0x1ee   : > { %2832 = vpow2.f32 %v2299_v12 }
 0x1f7   : > { %v2831_v13 = vpop.eup %2830 }
 0x1f8   : > { %v2833_v16 = vpop.eup %2832  ;;  %v648_v17 = vadd.f32 1.0, %v2831_v13 }
 0x1f9   : > { %v649_v18 = vadd.f32 1.0, %v2833_v16 }
 0x1fa   : > { %2834 = vrcp.f32 %v648_v17 }
 0x1fb   : > { %2836 = vrcp.f32 %v649_v18 }
 0x204   : > { %v2835_v19 = vpop.eup %2834 }
 0x205   : > { %v2837_v21 = vpop.eup %2836  ;;  %v654_v22 = vmul.f32 %v2835_v19, %v640_v5 }
 0x206   : > { %v655_v23 = vmul.f32 %v2837_v21, %v641_v8 }
 0x207   : > { %v662_v24 = vadd.f32 %v2300_v20, %v654_v22 }
 0x208   : > { %v663_v25 = vadd.f32 %v2300_v20, %v655_v23 }
 0x209   : > { %2480 = vmatprep.mubr.msk.f32.mxu1 %vm364_vm0, %v662_v24 }
 0x20a   : > { %2481 = vmatmul.mubr.msk.f32.vlgmr.msra.gmra.mrb[6].mxu1 %vm364_vm0, %v663_v25 }
 0x20b   : > { %2665 = vmatpush3.bf16.msra.mxu1 %v2983_v10  ;;  %2502 = vmatprep.mubr.msk.f32.mxu1 %vm2891_vm1, %v2892_v15 }
 0x20c   : > { %2666 = vmatprep.subr.bf16.mxu1 %v2890_v11 }
 0x20f   : > { %2668 = vmatpush3.bf16.msra.mxu1 %v2997_v14 }
 0x210   : > { %2675 = vmatprep.subr.bf16.mxu1 %v2890_v11 }
 0x2dd   : > { %v2482_v26 = vpop.f32.mrb[6].mxu1 }
 0x2de   : > { %v746_v27 = vsel %vm364_vm0, %v2482_v26, 0.0  ;;  %v829_v28 = vmul.f32 %v2482_v26, %v2482_v26  ;;  %v736_v29 = vpop.f32.mrb[7].mxu1 }
 0x2df   : > { %v745_v30 = vsel %vm364_vm0, %v736_v29, 0.0  ;;  %v828_v31 = vmul.f32 %v736_v29, %v736_v29 }
 0x2e0   : > { %v831_v32 = vsel %vm364_vm0, %v829_v28, 0.0  ;;  %v747_v33 = vadd.f32 %v746_v27, %v745_v30 }
 0x2e1   : > { %v830_v34 = vsel %vm364_vm0, %v828_v31, 0.0 }
 0x2e2   : > { %v748_v35 = vrot.slane %v747_v33, 4  ;;  %v832_v36 = vadd.f32 %v831_v32, %v830_v34 }
 0x2e4   : > { %v749_v37 = vadd.f32 %v748_v35, %v747_v33  ;;  %v833_v38 = vrot.slane %v832_v36, 4 }
 0x2e6   : > { %v750_v39 = vrot.slane %v749_v37, 2  ;;  %v834_v40 = vadd.f32 %v833_v38, %v832_v36 }
 0x2e8   : > { %v751_v41 = vadd.f32 %v750_v39, %v749_v37  ;;  %v835_v42 = vrot.slane %v834_v40, 2 }
 0x2ea   : > { %v836_v43 = vadd.f32 %v835_v42, %v834_v40  ;;  %v752_v44 = vrot.slane %v751_v41, 1 }
 0x2ec   : > { %v837_v47 = vrot.slane %v836_v43, 1  ;;  %v753_v48 = vadd.f32 %v752_v44, %v751_v41  ;;  %v335_v44 = vld [vmem:[%s3333_s6 + $0x8] sm:$0xff] }
 0x2ee   : > { %2492 = vmatmul.mubr.msk.f32.vlgmr.msra.gmra.mrb[0].mxu0 %vm364_vm0, %v753_v48  ;;  %v838_v49 = vadd.f32 %v837_v47, %v836_v43  ;;  %v338_v47 = vld [vmem:[%s3333_s6 + $0x20] sm:$0xff] }
 0x2ef   : > { %2671 = vmatpush3.bf16.msra.mxu0 %v2983_v10  ;;  %2513 = vmatprep.mubr.msk.f32.mxu0 %vm2891_vm1, %v2892_v15  ;;  %v2681_v48 = vpack.c.bf16 %v338_v47, %v335_v44 }
 0x2f0   : > { %2503 = vmatmul.mubr.msk.f32.vlgmr.msra.gmra.mrb[8].mxu1 %vm364_vm0, %v838_v49  ;;  %2672 = vmatprep.subr.bf16.mxu0 %v2890_v11  ;;  %v334_v49 = vld [vmem:[%s3333_s6] sm:$0xff] }
 0x2f1   : > { %2677 = vmatpush3.bf16.msra.mxu1 %v2983_v10  ;;  %2524 = vmatprep.mubr.msk.f32.mxu1 %vm2891_vm1, %v2892_v15 }
 0x2f2   : > { %2678 = vmatprep.subr.bf16.mxu1 %v2890_v11  ;;  %v931_v11 = vsub.s32 2, %v3031_v45 }
 0x2f3   : > { %2674 = vmatpush3.bf16.msra.mxu0 %v2997_v14 }
 0x2f4   : > { %v932_v0 = vrot.slane %v3040_v59, %v931_v11  ;;  %2682 = vmatprep.subr.bf16.mxu0 %v2681_v48 }
 0x2f5   : > { %2680 = vmatpush3.bf16.msra.mxu1 %v2997_v14 }
 0x3c1   : > { %v823_v50 = vpop.f32.mrb[0].mxu0 }
 0x3c2   : > { %v827_v51 = vmul.f32 0.0625, %v823_v50  ;;  %v2493_v52 = vpop.f32.mrb[1].mxu0  ;;  %v337_v50 = vld [vmem:[%s3333_s6 + $0x18] sm:$0xff] }
 0x3c3   : > { %v908_v53 = vpop.f32.mrb[8].mxu1  ;;  %v2683_v52 = vpack.c.bf16 %v337_v50, %v334_v49 }
 0x3c4   : > { %v913_v54 = vmul.f32 %v827_v51, %v827_v51  ;;  %v918_v55 = vrot.slane %v827_v51, %v3034_v46  ;;  %v912_v56 = vmul.f32 0.0625, %v908_v53  ;;  %v2504_v57 = vpop.f32.mrb[9].mxu1  ;;  %v336_v51 = vld [vmem:[%s3333_s6 + $0x10] sm:$0xff]  ;;  %v339_v53 = vld [vmem:[%s3333_s6 + $0x28] sm:$0xff] }
 0x3c5   : > { %v340_v57 = vld [vmem:[%s3333_s6 + $0x30] sm:$0xff] }
 0x3c6   : > { %v919_v58 = vsub.f32 %v736_v29, %v918_v55  ;;  %v920_v10 = vsub.f32 %v2482_v26, %v918_v55  ;;  %v914_v60 = vsub.f32 %v912_v56, %v913_v54  ;;  %v2689_v54 = vpack.c.bf16 %v339_v53, %v336_v51  ;;  %v341_v55 = vld [vmem:[%s3333_s6 + $0x38] sm:$0xff]  ;;  %v344_v56 = vld [vmem:[%s3333_s6 + $0x50] sm:$0xff] }
 0x3c8   : > { %v921_v61 = vadd.f32 1e-05, %v914_v60  ;;  %v342_v60 = vld [vmem:[%s3333_s6 + $0x40] sm:$0xff]  ;;  %2690 = vmatprep.subr.bf16.mxu1 %v2689_v54 }
 0x3ca   : > { %2838 = vrsqrt.f32 %v921_v61  ;;  %v345_v61 = vld [vmem:[%s3333_s6 + $0x58] sm:$0xff] }
 0x3cb   : > { %v2693_v62 = vpack.c.bf16 %v345_v61, %v342_v60 }
 0x3d4   : > { %v2839_v63 = vpop.eup %2838 }
 0x3d5   : > { %v926_v14 = vrot.slane %v2839_v63, %v3034_v46 }
 0x3d7   : > { %v927_v1 = vmul.f32 %v926_v14, %v919_v58  ;;  %v928_v2 = vmul.f32 %v926_v14, %v920_v10  ;;  %v2685_v58 = vpack.c.bf16 %v344_v56, %v341_v55  ;;  %v343_v10 = vld [vmem:[%s3333_s6 + $0x48] sm:$0xff] }
 0x3d8   : > { %v2687_v11 = vpack.c.bf16 %v343_v10, %v340_v57 }
 0x3d9   : > { %v933_v4 = vmul.f32 %v932_v0, %v927_v1  ;;  %v934_v5 = vmul.f32 %v932_v0, %v928_v2 }
 0x3db   : > { %v939_v8 = vadd.f32 %v938_v3, %v933_v4  ;;  %v940_v9 = vadd.f32 %v938_v3, %v934_v5 }
 0x3dd   : > { %v2305_v12 = vmul.f32 -1.442695, %v939_v8  ;;  %v2306_v13 = vmul.f32 -1.442695, %v940_v9 }
 0x3df   : > { %2840 = vpow2.f32 %v2305_v12  ;;  %v1143_v12 = vsub.s32 4, %v3031_v45 }
 0x3e0   : > { %2842 = vpow2.f32 %v2306_v13  ;;  %v1149_v13 = vsub.s32 5, %v3031_v45 }
 0x3e9   : > { %v2841_v16 = vpop.eup %2840 }
 0x3ea   : > { %v2843_v17 = vpop.eup %2842  ;;  %v947_v18 = vadd.f32 1.0, %v2841_v16 }
 0x3eb   : > { %v948_v19 = vadd.f32 1.0, %v2843_v17 }
 0x3ec   : > { %2844 = vrcp.f32 %v947_v18 }
 0x3ed   : > { %2846 = vrcp.f32 %v948_v19 }
 0x3f6   : > { %v2845_v20 = vpop.eup %2844 }
 0x3f7   : > { %v2847_v21 = vpop.eup %2846  ;;  %v953_v22 = vmul.f32 %v2845_v20, %v939_v8  ;;  %v1144_v20 = vrot.slane %v3040_v59, %v1143_v12 }
 0x3f8   : > { %v954_v23 = vmul.f32 %v2847_v21, %v940_v9 }
 0x3f9   : > { %v3082_v24 = vadd.f32 %v953_v22, %v2969_v6  ;;  %v1150_v22 = vrot.slane %v3040_v59, %v1149_v13 }
 0x3fa   : > { %v3085_v25 = vadd.f32 %v954_v23, %v2973_v7 }
 0x3fb   : > { %v957_v26 = vsel %vm364_vm0, %v3082_v24, 0.0  ;;  %v1040_v27 = vmul.f32 %v3082_v24, %v3082_v24 }
 0x3fc   : > { %v958_v28 = vsel %vm364_vm0, %v3085_v25, 0.0  ;;  %v1041_v29 = vmul.f32 %v3085_v25, %v3085_v25 }
 0x3fd   : > { %v959_v30 = vadd.f32 %v958_v28, %v957_v26  ;;  %v1042_v31 = vsel %vm364_vm0, %v1040_v27, 0.0 }
 0x3fe   : > { %v1043_v6 = vsel %vm364_vm0, %v1041_v29, 0.0 }
 0x3ff   : > { %v960_v32 = vrot.slane %v959_v30, 4  ;;  %v1044_v7 = vadd.f32 %v1043_v6, %v1042_v31 }
 0x401   : > { %v961_v33 = vadd.f32 %v960_v32, %v959_v30  ;;  %v1045_v34 = vrot.slane %v1044_v7, 4 }
 0x403   : > { %v962_v35 = vrot.slane %v961_v33, 2  ;;  %v1046_v36 = vadd.f32 %v1045_v34, %v1044_v7 }
 0x405   : > { %v963_v37 = vadd.f32 %v962_v35, %v961_v33  ;;  %v1047_v38 = vrot.slane %v1046_v36, 2 }
 0x407   : > { %v964_v39 = vrot.slane %v963_v37, 1  ;;  %v1048_v40 = vadd.f32 %v1047_v38, %v1046_v36 }
 0x409   : > { %v965_v41 = vadd.f32 %v964_v39, %v963_v37  ;;  %v1049_v42 = vrot.slane %v1048_v40, 1 }
 0x40b   : > { %2514 = vmatmul.mubr.msk.f32.vlgmr.msra.gmra.mrb[2].mxu0 %vm364_vm0, %v965_v41  ;;  %v1050_v43 = vadd.f32 %v1049_v42, %v1048_v40 }
 0x40c   : > { %1223 = vmatprep.mubr.f32.mxu0 %v2892_v15  ;;  %2684 = vmatpush1.bf16.msra.mxu0 %v2683_v52 }
 0x40d   : > { %2525 = vmatmul.mubr.msk.f32.vlgmr.msra.gmra.mrb[10].mxu1 %vm364_vm0, %v1050_v43  ;;  %2686 = vmatprep.subr.bf16.mxu0 %v2685_v58 }
 0x40e   : > { %2692 = vmatpush3.bf16.msra.mxu1 %v2689_v54 }
 0x40f   : > { %2694 = vmatprep.subr.bf16.mxu1 %v2693_v62 }
 0x410   : > { %2688 = vmatpush1.bf16.msra.mxu0 %v2687_v11 }
 0x412   : > { %2696 = vmatpush3.bf16.msra.mxu1 %v2693_v62 }
 0x4de   : > { %v1035_v63 = vpop.f32.mrb[2].mxu0 }
 0x4df   : > { %v1039_v14 = vmul.f32 0.0625, %v1035_v63  ;;  %v2515_v0 = vpop.f32.mrb[3].mxu0 }
 0x4e0   : > { %v1120_v1 = vpop.f32.mrb[10].mxu1 }
 0x4e1   : > { %v1125_v2 = vmul.f32 %v1039_v14, %v1039_v14  ;;  %v1124_v3 = vmul.f32 0.0625, %v1120_v1  ;;  %v2526_v4 = vpop.f32.mrb[11].mxu1  ;;  %v1130_v9 = vrot.slane %v1039_v14, %v3034_v46 }
 0x4e3   : > { %v1126_v5 = vsub.f32 %v1124_v3, %v1125_v2  ;;  %v1131_v17 = vsub.f32 %v3082_v24, %v1130_v9  ;;  %v1132_v18 = vsub.f32 %v3085_v25, %v1130_v9 }
 0x4e5   : > { %v1133_v8 = vadd.f32 1e-05, %v1126_v5 }
 0x4e7   : > { %2848 = vrsqrt.f32 %v1133_v8 }
 0x4f1   : > { %v2849_v16 = vpop.eup %2848 }
 0x4f2   : > { %v1138_v19 = vrot.slane %v2849_v16, %v3034_v46 }
 0x4f4   : > { %v1139_v21 = vmul.f32 %v1138_v19, %v1131_v17  ;;  %v1140_v23 = vmul.f32 %v1138_v19, %v1132_v18 }
 0x4f6   : > { %v1145_v26 = vmul.f32 %v1144_v20, %v1139_v21  ;;  %v1146_v27 = vmul.f32 %v1144_v20, %v1140_v23 }
 0x4f8   : > { %v3144_v28 = vadd.f32 %v1150_v22, %v1145_v26  ;;  %v3146_v29 = vadd.f32 %v1150_v22, %v1146_v27 }
 0x4fa   : > { %2309 = vmatmul.mubr.msk.f32.vlgmr.msra.gmra.mrb[4].mxu0 %vm364_vm0, %v3144_v28  ;;  %2535 = vmatprep.mubr.msk.f32.mxu1 %vm364_vm0, %v3144_v28 }
 0x4fb   : > { %2536 = vmatmul.mubr.msk.f32.vlgmr.msra.gmra.mrb[12].mxu1 %vm364_vm0, %v3146_v29  ;;  %1229 = vmatprep.mubr.f32.mxu0 %v2892_v15 }
 0x4fe   : > { %2310 = vmatmul.mubr.msk.f32.gmra.mrb[6].mxu0 %vm364_vm0, %v3146_v29 }
 0x5cd   : > { %v1225_v46 = vpop.f32.mrb[4].mxu0 }
 0x5ce   : > { %v3157_v24 = vmul.f32 0.17677669, %v1225_v46  ;;  %v1227_v25 = vpop.f32.mrb[5].mxu0  ;;  %v2537_v30 = vpop.f32.mrb[12].mxu1 }
 0x5cf   : > { %v1302_v31 = vpop.f32.mrb[13].mxu1 }
 0x5d0   : > { %1504 = vrot.lane.b32.xlu1 %v3157_v24, %s2893_s26  ;;  %2542 = vmatprep.mubr.msk.f32.mxu0 %vm364_vm0, %v3157_v24  ;;  %v2703_v6 = vpack.c.bf16 %v2537_v30, %v1302_v31  ;;  %v3163_v32 = vpack.i.bf16 %v2537_v30, %v1302_v31 }
 0x5d1   : > { %v1231_v15 = vpop.f32.mrb[6].mxu0 }
 0x5d2   : > { %v1233_v7 = vpop.f32.mrb[7].mxu0  ;;  %2704 = vmatprep.subr.bf16.mxu1 %v2703_v6  ;;  %v3177_v36 = vmul.f32 0.17677669, %v1231_v15 }
 0x5d3   : > { %v2697_v34 = vpack.c.bf16 %v1233_v7, %v1227_v25  ;;  %2706 = vmatpush3.bf16.msra.mxu1 %v2703_v6  ;;  %v3171_v35 = vpack.i.bf16 %v1233_v7, %v1227_v25 }
 0x5d5   : > { %2699 = vmatprep.subr.msk.bf16.mxu0 %vm3167_vm2, %v2697_v34 }
 0x5d6   : > { %2702 = vmatpush3.bf16.xpose.msk.msra.mxu0 %vm3167_vm2, %v2697_v34 }
 0x5dd   : > { %2543 = vmatmul.mubr.msk.f32.vlgmr.msra.gmra.mrb[8].mxu0 %vm364_vm0, %v3177_v36 }
 0x642   : > { %v1505_v57 = vpop.permute.xlu1 %1504 }
 0x6b0   : > { %v2544_v37 = vpop.f32.mrb[8].mxu0 }
 0x6b1   : > { %v1391_v38 = vpop.f32.mrb[9].mxu0  ;;  %v1404_v40 = vsel %vm1400_vm3, %v2544_v37, -inf }
 0x6b2   : > { %v1401_v39 = vsel %vm1400_vm3, %v1391_v38, -inf }
 0x6b3   : > { %1402 = vmax.xlane.f32.xlu0 %v1401_v39 }
 0x6b7   : > { %1405 = vmax.xlane.f32.xlu0 %v1404_v40 }
 0x6cd   : > { %2784 = vrot.lane.b32.xlu0 %v3171_v35, %s2893_s26 }
 0x740   : > { %v1403_v41 = vpop.xlane.xlu0 %1402 }
 0x741   : > { %v1407_v42 = vsub.f32 %v1391_v38, %v1403_v41 }
 0x743   : > { %v1409_v47 = vmul.f32 1.442695, %v1407_v42 }
 0x744   : > { %v1406_v43 = vpop.xlane.xlu0 %1405 }
 0x745   : > { %v1408_v44 = vsub.f32 %v2544_v37, %v1406_v43 }
 0x747   : > { %v1411_v48 = vmul.f32 1.442695, %v1408_v44 }
 0x748   : > { %v2785_v49 = vpop.permute.xlu0 %2784 }
 0x749   : > { %2850 = vpow2.f32 %v1411_v48  ;;  %v2787_v50 = vunpack.i.h.bf16 %v2785_v49  ;;  %v2786_v51 = vunpack.i.l.bf16 %v2785_v49 }
 0x74a   : > { %2852 = vpow2.f32 %v1409_v47 }
 0x74b   : > { %v2707_v52 = vpack.c.bf16 %v2787_v50, %v2786_v51 }
 0x74d   : > { %2709 = vmatprep.subr.msk.bf16.mxu1 %vm3167_vm2, %v2707_v52 }
 0x753   : > { %v2851_v53 = vpop.eup %2850 }
 0x754   : > { %v1416_v54 = vsel %vm1400_vm3, %v2851_v53, 0.0  ;;  %v2853_v55 = vpop.eup %2852 }
 0x755   : > { %1417 = vadd.xlane.f32.xlu1 %v1416_v54  ;;  %v1413_v56 = vsel %vm1400_vm3, %v2853_v55, 0.0 }
 0x759   : > { %1414 = vadd.xlane.f32.xlu1 %v1413_v56 }
 0x76a   : > { %1506 = vrot.lane.b32.xlu1 %v3177_v36, %s2893_s26 }
 0x7e2   : > { %v1418_v58 = vpop.xlane.xlu1 %1417 }
 0x7e3   : > { %2854 = vrcp.f32 %v1418_v58 }
 0x7e6   : > { %v1415_v10 = vpop.xlane.xlu1 %1414 }
 0x7e7   : > { %2856 = vrcp.f32 %v1415_v10 }
 0x7ea   : > { %v1507_v63 = vpop.permute.xlu1 %1506 }
 0x7ed   : > { %v2855_v60 = vpop.eup %2854 }
 0x7ee   : > { %v1422_v62 = vmul.f32 %v2855_v60, %v2851_v53 }
 0x7f1   : > { %v2857_v61 = vpop.eup %2856 }
 0x7f2   : > { %v1420_v11 = vmul.f32 %v2857_v61, %v2853_v55 }
 0x7f4   : > { %2549 = vmatprep.mubr.msk.f32.mxu1 %vm1400_vm3, %v1420_v11 }
 0x7f5   : > { %2550 = vmatmul.mubr.msk.f32.vlgmr.msra.gmra.mrb[14].mxu1 %vm1400_vm3, %v1422_v62 }
 0x7f6   : > { %2712 = vmatpush3.bf16.xpose.msk.msra.mxu1 %vm3167_vm2, %v2707_v52  ;;  %2556 = vmatprep.mubr.msk.f32.mxu1 %vm364_vm0, %v1505_v57 }
 0x7fd   : > { %2557 = vmatmul.mubr.msk.f32.vlgmr.msra.gmra.mrb[16].mxu1 %vm364_vm0, %v1507_v63 }
 0x8c8   : > { %v3197_v14 = vpop.f32.mrb[14].mxu1 }
 0x8c9   : > { %v3199_v0 = vpop.f32.mrb[15].mxu1 }
 0x8d0   : > { %v2558_v1 = vpop.f32.mrb[16].mxu1 }
 0x8d1   : > { %v1586_v2 = vpop.f32.mrb[17].mxu1  ;;  %v1598_v3 = vsel %vm1400_vm3, %v2558_v1, -inf }
 0x8d2   : > { %1599 = vmax.xlane.f32.xlu0 %v1598_v3  ;;  %v1595_v4 = vsel %vm1400_vm3, %v1586_v2, -inf }
 0x8d3   : > { %1596 = vmax.xlane.f32.xlu1 %v1595_v4 }
 0x8e4   : > { %2789 = vrot.lane.b32.xlu1 %v3163_v32, %s2893_s26 }
 0x8e8   : > { %1706 = vrot.lane.b32.xlu1 %v3157_v24, %s2894_s29 }
 0x8ec   : > { %1708 = vrot.lane.b32.xlu1 %v3177_v36, %s2894_s29 }
 0x95f   : > { %v1600_v5 = vpop.xlane.xlu0 %1599 }
 0x960   : > { %v1602_v8 = vsub.f32 %v2558_v1, %v1600_v5  ;;  %v1597_v9 = vpop.xlane.xlu1 %1596 }
 0x961   : > { %v1601_v12 = vsub.f32 %v1586_v2, %v1597_v9 }
 0x962   : > { %v1605_v13 = vmul.f32 1.442695, %v1602_v8 }
 0x963   : > { %v1603_v16 = vmul.f32 1.442695, %v1601_v12 }
 0x964   : > { %2858 = vpow2.f32 %v1605_v13  ;;  %v2790_v17 = vpop.permute.xlu1 %2789 }
 0x965   : > { %v2792_v18 = vunpack.i.h.bf16 %v2790_v17  ;;  %v2791_v19 = vunpack.i.l.bf16 %v2790_v17  ;;  %2860 = vpow2.f32 %v1603_v16 }
 0x967   : > { %v2713_v20 = vpack.c.bf16 %v2792_v18, %v2791_v19 }
 0x968   : > { %v1707_v38 = vpop.permute.xlu1 %1706 }
 0x969   : > { %2714 = vmatprep.subr.bf16.mxu0 %v2713_v20 }
 0x96a   : > { %2716 = vmatpush3.bf16.msra.mxu0 %v2713_v20 }
 0x96c   : > { %v1709_v39 = vpop.permute.xlu1 %1708 }
 0x96e   : > { %v2859_v21 = vpop.eup %2858 }
 0x96f   : > { %v1610_v22 = vsel %vm1400_vm3, %v2859_v21, 0.0  ;;  %v2861_v23 = vpop.eup %2860 }
 0x970   : > { %1611 = vadd.xlane.f32.xlu0 %v1610_v22  ;;  %v1607_v26 = vsel %vm1400_vm3, %v2861_v23, 0.0 }
 0x974   : > { %1608 = vadd.xlane.f32.xlu0 %v1607_v26 }
 0x98a   : > { %2794 = vrot.lane.b32.xlu0 %v3171_v35, %s2894_s29 }
 0x9fd   : > { %v1612_v27 = vpop.xlane.xlu0 %1611 }
 0x9fe   : > { %2862 = vrcp.f32 %v1612_v27 }
 0xa01   : > { %v1609_v46 = vpop.xlane.xlu0 %1608 }
 0xa02   : > { %2864 = vrcp.f32 %v1609_v46 }
 0xa05   : > { %v2795_v25 = vpop.permute.xlu0 %2794 }
 0xa06   : > { %v2797_v30 = vunpack.i.h.bf16 %v2795_v25  ;;  %v2796_v31 = vunpack.i.l.bf16 %v2795_v25 }
 0xa08   : > { %v2717_v6 = vpack.c.bf16 %v2797_v30, %v2796_v31  ;;  %v2863_v15 = vpop.eup %2862 }
 0xa09   : > { %v1616_v37 = vmul.f32 %v2863_v15, %v2859_v21 }
 0xa0a   : > { %2719 = vmatprep.subr.msk.bf16.mxu0 %vm3167_vm2, %v2717_v6 }
 0xa0c   : > { %v2865_v7 = vpop.eup %2864 }
 0xa0d   : > { %v1614_v34 = vmul.f32 %v2865_v7, %v2861_v23 }
 0xa0f   : > { %2563 = vmatprep.mubr.msk.f32.mxu0 %vm1400_vm3, %v1614_v34 }
 0xa10   : > { %2564 = vmatmul.mubr.msk.f32.vlgmr.msra.gmra.mrb[10].mxu0 %vm1400_vm3, %v1616_v37 }
 0xa11   : > { %2722 = vmatpush3.bf16.xpose.msk.msra.mxu0 %vm3167_vm2, %v2717_v6  ;;  %2570 = vmatprep.mubr.msk.f32.mxu0 %vm364_vm0, %v1707_v38 }
 0xa18   : > { %2571 = vmatmul.mubr.msk.f32.vlgmr.msra.gmra.mrb[12].mxu0 %vm364_vm0, %v1709_v39 }
 0xae3   : > { %v3221_v40 = vpop.f32.mrb[10].mxu0 }
 0xae4   : > { %v3223_v41 = vpop.f32.mrb[11].mxu0 }
 0xae5   : > { %v2813_v42 = vpack.i.bf16 %v3221_v40, %v3223_v41  ;;  %v347_v40 = vld [vmem:[%s3334_s7 + $0x8] sm:$0xff]  ;;  %v348_v41 = vld [vmem:[%s3334_s7 + $0x10] sm:$0xff] }
 0xaeb   : > { %v2572_v43 = vpop.f32.mrb[12].mxu0 }
 0xaec   : > { %v1788_v44 = vpop.f32.mrb[13].mxu0  ;;  %v1800_v47 = vsel %vm1400_vm3, %v2572_v43, -inf }
 0xaed   : > { %1801 = vmax.xlane.f32.xlu0 %v1800_v47  ;;  %v1797_v48 = vsel %vm1400_vm3, %v1788_v44, -inf  ;;  %v346_v47 = vld [vmem:[%s3334_s7] sm:$0xff] }
 0xaee   : > { %1798 = vmax.xlane.f32.xlu1 %v1797_v48  ;;  %v349_v48 = vld [vmem:[%s3334_s7 + $0x18] sm:$0xff] }
 0xaff   : > { %2799 = vrot.lane.b32.xlu1 %v3163_v32, %s2894_s29 }
 0xb03   : > { %1906 = vrot.lane.b32.xlu1 %v3157_v24, %s2895_s30 }
 0xb07   : > { %1908 = vrot.lane.b32.xlu1 %v3177_v36, %s2895_s30 }
 0xb7a   : > { %v1802_v49 = vpop.xlane.xlu0 %1801 }
 0xb7b   : > { %v1804_v50 = vsub.f32 %v2572_v43, %v1802_v49  ;;  %v1799_v51 = vpop.xlane.xlu1 %1798  ;;  %v2741_v49 = vpack.c.bf16 %v349_v48, %v348_v41 }
 0xb7c   : > { %v1803_v52 = vsub.f32 %v1788_v44, %v1799_v51  ;;  %v351_v51 = vld [vmem:[%s3334_s7 + $0x28] sm:$0xff] }
 0xb7d   : > { %v1807_v53 = vmul.f32 1.442695, %v1804_v50  ;;  %v350_v50 = vld [vmem:[%s3334_s7 + $0x20] sm:$0xff] }
 0xb7e   : > { %v1805_v54 = vmul.f32 1.442695, %v1803_v52  ;;  %v2745_v52 = vpack.c.bf16 %v351_v51, %v350_v50 }
 0xb7f   : > { %2866 = vpow2.f32 %v1807_v53  ;;  %v2800_v55 = vpop.permute.xlu1 %2799  ;;  %v352_v53 = vld [vmem:[%s3334_s7 + $0x30] sm:$0xff] }
 0xb80   : > { %v2802_v56 = vunpack.i.h.bf16 %v2800_v55  ;;  %v2801_v57 = vunpack.i.l.bf16 %v2800_v55  ;;  %2868 = vpow2.f32 %v1805_v54  ;;  %v353_v54 = vld [vmem:[%s3334_s7 + $0x38] sm:$0xff] }
 0xb81   : > { %v2749_v55 = vpack.c.bf16 %v353_v54, %v352_v53 }
 0xb82   : > { %v2723_v58 = vpack.c.bf16 %v2802_v56, %v2801_v57  ;;  %v354_v56 = vld [vmem:[%s3334_s7 + $0x40] sm:$0xff]  ;;  %v355_v57 = vld [vmem:[%s3334_s7 + $0x48] sm:$0xff] }
 0xb83   : > { %v1907_v9 = vpop.permute.xlu1 %1906 }
 0xb84   : > { %2724 = vmatprep.subr.bf16.mxu1 %v2723_v58 }
 0xb85   : > { %2726 = vmatpush3.bf16.msra.mxu1 %v2723_v58  ;;  %v2753_v58 = vpack.c.bf16 %v355_v57, %v354_v56 }
 0xb89   : > { %v2867_v10 = vpop.eup %2866 }
 0xb8a   : > { %v1812_v24 = vsel %vm1400_vm3, %v2867_v10, 0.0  ;;  %v2869_v60 = vpop.eup %2868 }
 0xb8b   : > { %1813 = vadd.xlane.f32.xlu0 %v1812_v24  ;;  %v1809_v36 = vsel %vm1400_vm3, %v2869_v60, 0.0  ;;  %v357_v24 = vld [vmem:[%s3334_s7 + $0x58] sm:$0xff] }
 0xb8f   : > { %1810 = vadd.xlane.f32.xlu0 %v1809_v36  ;;  %v358_v36 = vld [vmem:[%s3334_s7 + $0x60] sm:$0xff] }
 0xba5   : > { %2804 = vrot.lane.b32.xlu0 %v3171_v35, %s2895_s30  ;;  %v1909_v35 = vpop.permute.xlu1 %1908 }
 0xc18   : > { %v1814_v61 = vpop.xlane.xlu0 %1813 }
 0xc19   : > { %2870 = vrcp.f32 %v1814_v61  ;;  %v359_v61 = vld [vmem:[%s3334_s7 + $0x68] sm:$0xff] }
 0xc1c   : > { %v1811_v11 = vpop.xlane.xlu0 %1810 }
 0xc1d   : > { %2872 = vrcp.f32 %v1811_v11  ;;  %v2761_v11 = vpack.c.bf16 %v359_v61, %v358_v36 }
 0xc20   : > { %v2805_v62 = vpop.permute.xlu0 %2804 }
 0xc21   : > { %v2807_v63 = vunpack.i.h.bf16 %v2805_v62  ;;  %v2806_v1 = vunpack.i.l.bf16 %v2805_v62  ;;  %v360_v62 = vld [vmem:[%s3334_s7 + $0x70] sm:$0xff] }
 0xc23   : > { %v2727_v2 = vpack.c.bf16 %v2807_v63, %v2806_v1  ;;  %v2871_v3 = vpop.eup %2870  ;;  %v361_v63 = vld [vmem:[%s3334_s7 + $0x78] sm:$0xff] }
 0xc24   : > { %v1818_v8 = vmul.f32 %v2871_v3, %v2867_v10  ;;  %v356_v10 = vld [vmem:[%s3334_s7 + $0x50] sm:$0xff]  ;;  %v2765_v1 = vpack.c.bf16 %v361_v63, %v360_v62 }
 0xc25   : > { %2729 = vmatprep.subr.msk.bf16.mxu1 %vm3167_vm2, %v2727_v2 }
 0xc27   : > { %v2873_v4 = vpop.eup %2872 }
 0xc28   : > { %v1816_v5 = vmul.f32 %v2873_v4, %v2869_v60  ;;  %v2757_v60 = vpack.c.bf16 %v357_v24, %v356_v10 }
 0xc2a   : > { %2577 = vmatprep.mubr.msk.f32.mxu1 %vm1400_vm3, %v1816_v5 }
 0xc2b   : > { %2578 = vmatmul.mubr.msk.f32.vlgmr.msra.gmra.mrb[18].mxu1 %vm1400_vm3, %v1818_v8 }
 0xc2c   : > { %2732 = vmatpush3.bf16.xpose.msk.msra.mxu1 %vm3167_vm2, %v2727_v2  ;;  %2584 = vmatprep.mubr.msk.f32.mxu1 %vm364_vm0, %v1907_v9 }
 0xc33   : > { %2585 = vmatmul.mubr.msk.f32.vlgmr.msra.gmra.mrb[20].mxu1 %vm364_vm0, %v1909_v35 }
 0xcfe   : > { %v2579_v12 = vpop.f32.mrb[18].mxu1 }
 0xcff   : > { %v1897_v13 = vpop.f32.mrb[19].mxu1 }
 0xd00   : > { %v2818_v16 = vpack.i.bf16 %v2579_v12, %v1897_v13 }
 0xd06   : > { %v2586_v17 = vpop.f32.mrb[20].mxu1 }
 0xd07   : > { %v1988_v18 = vpop.f32.mrb[21].mxu1  ;;  %v2000_v19 = vsel %vm1400_vm3, %v2586_v17, -inf }
 0xd08   : > { %2001 = vmax.xlane.f32.xlu0 %v2000_v19  ;;  %v1997_v20 = vsel %vm1400_vm3, %v1988_v18, -inf }
 0xd09   : > { %1998 = vmax.xlane.f32.xlu1 %v1997_v20 }
 0xd1a   : > { %2809 = vrot.lane.b32.xlu1 %v3163_v32, %s2895_s30 }
 0xd1e   : > { %2819 = vrot.lane.b32.xlu1 %v2818_v16, %s2894_s29 }
 0xd95   : > { %v2002_v33 = vpop.xlane.xlu0 %2001 }
 0xd96   : > { %v2004_v21 = vsub.f32 %v2586_v17, %v2002_v33  ;;  %v1999_v22 = vpop.xlane.xlu1 %1998 }
 0xd97   : > { %v2003_v23 = vsub.f32 %v1988_v18, %v1999_v22 }
 0xd98   : > { %v2007_v26 = vmul.f32 1.442695, %v2004_v21 }
 0xd99   : > { %v2005_v27 = vmul.f32 1.442695, %v2003_v23 }
 0xd9a   : > { %v2810_v46 = vpop.permute.xlu1 %2809 }
 0xd9b   : > { %2874 = vpow2.f32 %v2005_v27  ;;  %v2812_v25 = vunpack.i.h.bf16 %v2810_v46  ;;  %v2811_v30 = vunpack.i.l.bf16 %v2810_v46 }
 0xd9c   : > { %2876 = vpow2.f32 %v2007_v26  ;;  %v2140_v26 = vsub.s32 6, %v3031_v45 }
 0xd9d   : > { %v2733_v31 = vpack.c.bf16 %v2812_v25, %v2811_v30 }
 0xd9e   : > { %v2820_v35 = vpop.permute.xlu1 %2819 }
 0xd9f   : > { %2734 = vmatprep.subr.bf16.mxu0 %v2733_v31  ;;  %v2822_v16 = vunpack.i.h.bf16 %v2820_v35  ;;  %v2821_v17 = vunpack.i.l.bf16 %v2820_v35 }
 0xda0   : > { %2736 = vmatpush3.bf16.msra.mxu0 %v2733_v31 }
 0xda5   : > { %v2875_v6 = vpop.eup %2874 }
 0xda6   : > { %v2009_v15 = vsel %vm1400_vm3, %v2875_v6, 0.0  ;;  %v2877_v32 = vpop.eup %2876 }
 0xda7   : > { %2010 = vadd.xlane.f32.xlu0 %v2009_v15  ;;  %v2012_v7 = vsel %vm1400_vm3, %v2877_v32, 0.0 }
 0xdab   : > { %2013 = vadd.xlane.f32.xlu0 %v2012_v7 }
 0xdc1   : > { %2814 = vrot.lane.b32.xlu0 %v2813_v42, %s2895_s30  ;;  %v2737_v42 = vpack.c.bf16 %v347_v40, %v346_v47 }
 0xdc3   : > { %2738 = vmatprep.subr.bf16.mxu0 %v2737_v42 }
 0xe34   : > { %v2011_v34 = vpop.xlane.xlu0 %2010 }
 0xe35   : > { %2878 = vrcp.f32 %v2011_v34 }
 0xe38   : > { %v2014_v37 = vpop.xlane.xlu0 %2013 }
 0xe39   : > { %2880 = vrcp.f32 %v2014_v37 }
 0xe3c   : > { %v2815_v5 = vpop.permute.xlu0 %2814 }
 0xe3d   : > { %v2817_v8 = vunpack.i.h.bf16 %v2815_v5  ;;  %v2816_v9 = vunpack.i.l.bf16 %v2815_v5 }
 0xe3f   : > { %v2879_v38 = vpop.eup %2878  ;;  %v2131_v12 = vsel %vm364_vm0, %v3197_v14, %v2817_v8  ;;  %v2130_v13 = vsel %vm364_vm0, %v3199_v0, %v2816_v9  ;;  %v2141_v14 = vrot.slane %v3040_v59, %v2140_v26 }
 0xe40   : > { %v2016_v39 = vmul.f32 %v2879_v38, %v2875_v6  ;;  %v2133_v33 = vsel %vm2132_vm4, %v2130_v13, %v2821_v17  ;;  %v2134_v21 = vsel %vm2132_vm4, %v2131_v12, %v2822_v16 }
 0xe42   : > { %2591 = vmatprep.mubr.msk.f32.mxu0 %vm1400_vm3, %v2016_v39 }
 0xe43   : > { %v2881_v43 = vpop.eup %2880 }
 0xe44   : > { %v2018_v44 = vmul.f32 %v2881_v43, %v2877_v32 }
 0xe46   : > { %2592 = vmatmul.mubr.msk.f32.vlgmr.msra.gmra.mrb[14].mxu0 %vm1400_vm3, %v2018_v44 }
 0xe47   : > { %2740 = vmatpush3.bf16.msra.mxu0 %v2737_v42 }
 0xe48   : > { %2742 = vmatprep.subr.bf16.mxu0 %v2741_v49 }
 0xe4b   : > { %2744 = vmatpush3.bf16.msra.mxu0 %v2741_v49 }
 0xe4c   : > { %2746 = vmatprep.subr.bf16.mxu0 %v2745_v52 }
 0xe4f   : > { %2748 = vmatpush3.bf16.msra.mxu0 %v2745_v52 }
 0xe50   : > { %2750 = vmatprep.subr.bf16.mxu0 %v2749_v55 }
 0xe53   : > { %2752 = vmatpush3.bf16.msra.mxu0 %v2749_v55 }
 0xe54   : > { %2754 = vmatprep.subr.bf16.mxu0 %v2753_v58 }
 0xe57   : > { %2756 = vmatpush3.bf16.msra.mxu0 %v2753_v58 }
 0xe58   : > { %2758 = vmatprep.subr.bf16.mxu0 %v2757_v60 }
 0xe5b   : > { %2760 = vmatpush3.bf16.msra.mxu0 %v2757_v60 }
 0xe5c   : > { %2762 = vmatprep.subr.bf16.mxu0 %v2761_v11 }
 0xe5f   : > { %2764 = vmatpush3.bf16.msra.mxu0 %v2761_v11 }
 0xe60   : > { %2766 = vmatprep.subr.bf16.mxu0 %v2765_v1 }
 0xe63   : > { %2768 = vmatpush3.bf16.msra.mxu0 %v2765_v1 }
 0xf19   : > { %v2593_v2 = vpop.f32.mrb[14].mxu0 }
 0xf1a   : > { %v2097_v3 = vpop.f32.mrb[15].mxu0 }
 0xf1b   : > { %v2823_v4 = vpack.i.bf16 %v2593_v2, %v2097_v3 }
 0xf1d   : > { %2824 = vrot.lane.b32.xlu1 %v2823_v4, %s2893_s26 }
 0xf8f   : > { %v2825_v18 = vpop.permute.xlu1 %2824 }
 0xf90   : > { %v2827_v19 = vunpack.i.h.bf16 %v2825_v18  ;;  %v2826_v20 = vunpack.i.l.bf16 %v2825_v18 }
 0xf92   : > { %v2136_v22 = vsel %vm2135_vm5, %v2133_v33, %v2826_v20  ;;  %v2137_v23 = vsel %vm2135_vm5, %v2134_v21, %v2827_v19 }
 0xf93   : > { %2626 = vmatprep.mubr.f32.mxu0 %v2136_v22 }
 0xf94   : > { %2627 = vmatmul.mubr.f32.vlgmr.msra.gmra.mrb[16].mxu0 %v2137_v23 }
0x1067   : > { %v2628_v27 = vpop.f32.mrb[16].mxu0 }
0x1068   : > { %v2214_v0 = vadd.f32 %v2628_v27, %v2141_v14  ;;  %v2208_v46 = vpop.f32.mrb[17].mxu0 }
0x1069   : > { %v2209_v25 = vadd.f32 %v2208_v46, %v2141_v14 }
0x106a   : > { %v2218_v30 = vadd.f32 %v2214_v0, %v3146_v29 }
0x106b   : > { %v2217_v31 = vadd.f32 %v2209_v25, %v3144_v28 }
0x106c   : > { %2220 = vst.msk [vmem:[%s319_s25 + $0x8] sm:$0xff] %vm364_vm0, %v2218_v30 }
0x106d   : > { %2219 = vst.msk [vmem:[%s319_s25] sm:$0xff] %vm364_vm0, %v2217_v31 }
0x106e PF: > { %s18_s27 = sadd.s32 1, %s2888_s27  }
0x106f   : > { %p15_p4 = scmp.ge.s32.totalorder %s18_s27, 4  }
0x1071   :  { %17 = sbr.rel (!%p15_p4) target bundleno = 1 (0x1), region = 85 }

// kernel: _lambda_.10
= control target key start
LH: loop header
LB: loop body
LE: loop exit
PB: predicated region body
PF: predicated region fallthrough
CT: control target
= control target key end

     0   :  { %s1903_s27 = smov 0   ;;  %s2235_s0 = inlined_call_operand.vmem [shape: f32[2,64,16], index: 0, kind: input, shape index: {}]   ;;  %s2236_s1 = inlined_call_operand.vmem [shape: f32[16,64], index: 1, kind: input, shape index: {}]   ;;  %s2237_s2 = inlined_call_operand.vmem [shape: f32[2,64,16], index: 2, kind: input, shape index: {}]   ;;  %s2238_s3 = inlined_call_operand.vmem [shape: f32[16,64], index: 3, kind: input, shape index: {}]   ;;  %s2239_s4 = inlined_call_operand.vmem [shape: f32[2,1,32], index: 4, kind: input, shape index: {}]   ;;  %s2240_s5 = inlined_call_operand.vmem [shape: f32[32,32], index: 5, kind: input, shape index: {}]   ;;  %s2241_s6 = inlined_call_operand.vmem [shape: f32[4,32], index: 6, kind: input, shape index: {}]   ;;  %s2242_s7 = inlined_call_operand.vmem [shape: f32[32,32], index: 7, kind: input, shape index: {}]   ;;  %s2243_s8 = inlined_call_operand.vmem [shape: f32[2,64,32], index: 8, kind: output, shape index: {}]  }
   0x1 LB: > { %s1509_s28 = sadd.s32 4294967295, %s1852_s27   ;;  %p1513_p0 = scmp.ge.s32.totalorder %s1852_s27, 1  ;;  %s1852_s27 = sphi %s1903_s27, %s18_s27  }
   0x2   : > { %p280_p1 = scmp.lt.s32.totalorder %s1852_s27, 3 }
   0x4   : > { %p281_p2 = pnand %p1513_p0, %p280_p1 }
   0x5   : > { %v342_v0 = vld [vmem:[%s2238_s3] sm:$0xff] (!%p281_p2)  ;;  %v343_v1 = vld [vmem:[%s2238_s3 + $0x8] sm:$0xff] (!%p281_p2)  ;;  %p322_p3 = scmp.lt.s32.totalorder (!%p281_p2), %s1509_s28, 1  ;;  %vm370_vm0 = vcmask (!%p281_p2), 130048   ;;  %v1854_v25 = vmov (!%p281_p2), 0.0|0.0   ;;  %v347_v26 = vld [vmem:[%s2240_s5 + $0x10] sm:$0xff] (!%p281_p2) }
   0x6   : > { %284 = sbr.rel (%p281_p2) target bundleno = 1073 (0x431), region = 52  ;;  %v340_v2 = vld [vmem:[%s2236_s1] sm:$0xff] (!%p281_p2)  ;;  %v1718_v3 = vpack.c.bf16 (!%p281_p2), %v343_v1, %v342_v0  ;;  %v341_v4 = vld [vmem:[%s2236_s1 + $0x8] sm:$0xff] (!%p281_p2)  ;;  %1726 = vmatprep.subr.bf16.mxu1 (!%p281_p2), %v1854_v25  ;;  %v348_v27 = vld [vmem:[%s2240_s5 + $0x18] sm:$0xff] (!%p281_p2)  ;;  %vm1855_vm1 = vmmov (!%p281_p2), 0   ;;  %v1856_v29 = vmov (!%p281_p2), 0.0  }
   0x7   : > { %v1722_v5 = vpack.c.bf16 (!%p281_p2), %v341_v4, %v340_v2  ;;  %v345_v22 = vld [vmem:[%s2240_s5] sm:$0xff] (!%p281_p2)  ;;  %v346_v23 = vld [vmem:[%s2240_s5 + $0x8] sm:$0xff] (!%p281_p2)  ;;  %v1972_v28 = vpack.c.bf16 (!%p281_p2), %v348_v27, %v347_v26  ;;  %1662 = vmatprep.mubr.msk.f32.mxu1 (!%p281_p2), %vm1855_vm1, %v1856_v29  ;;  %vm629_vm2 = vcmask (!%p281_p2), 261120   ;;  %s1857_s10 = smov (!%p281_p2), 96   ;;  %v830_v26 = vlaneseq (!%p281_p2) }
   0x8   : > { %1719 = vmatprep.subr.bf16.mxu0 (!%p281_p2), %v1718_v3  ;;  %v1958_v24 = vpack.c.bf16 (!%p281_p2), %v346_v23, %v345_v22 }
   0x9   : > { %1721 = vmatpush3.bf16.msra.mxu0 (!%p281_p2), %v1718_v3  ;;  %v831_v27 = vshrl.u32 (!%p281_p2), %v830_v26, 7 }
   0xa   : > { %1723 = vmatprep.subr.bf16.mxu0 (!%p281_p2), %v1722_v5  ;;  %1728 = vmatpush3.bf16.msra.mxu1 (!%p281_p2), %v1958_v24 }
   0xb   : > { %1729 = vmatprep.subr.bf16.mxu1 (!%p281_p2), %v1854_v25 }
   0xd   : > { %s2245_s28 = smov (!%p322_p3, %s1509_s28), 1 }
   0xe   : > { %s1926_s15 = sshll.u32 %s2245_s28, 6  ;;  %1731 = vmatpush3.bf16.msra.mxu1 %v1972_v28  ;;  %s334_s24 = scalar_lea.vmem %s2239_s4, %s2245_s28 }
   0xf   : > { %s331_s18 = scalar_lea.vmem %s2237_s2, %s1926_s15  ;;  %s326_s21 = scalar_lea.vmem %s2235_s0, %s1926_s15  ;;  %1732 = vmatprep.subr.bf16.mxu1 %v1854_v25 }
  0x10   : > { %v362_v6 = vld [vmem:[%s331_s18] sm:$0xff]  ;;  %v363_v7 = vld [vmem:[%s331_s18 + $0x8] sm:$0xff]  ;;  %v364_v8 = vld [vmem:[%s331_s18 + $0x10] sm:$0xff]  ;;  %s2210_s26 = scalar_lea.vmem %s2243_s8, %s1926_s15 }
  0x11   : > { %1626 = vmatprep.mubr.msk.f32.mxu0 %vm370_vm0, %v362_v6  ;;  %v365_v9 = vld [vmem:[%s331_s18 + $0x18] sm:$0xff]  ;;  %v366_v10 = vld [vmem:[%s331_s18 + $0x20] sm:$0xff]  ;;  %v367_v11 = vld [vmem:[%s331_s18 + $0x28] sm:$0xff] }
  0x12   : > { %1627 = vmatmul.mubr.msk.f32.vlgmr.msra.gmra.mrb[0].mxu0 %vm370_vm0, %v363_v7  ;;  %v368_v12 = vld [vmem:[%s331_s18 + $0x30] sm:$0xff]  ;;  %v369_v13 = vld [vmem:[%s331_s18 + $0x38] sm:$0xff]  ;;  %v354_v14 = vld [vmem:[%s326_s21] sm:$0xff] }
  0x13   : > { %1725 = vmatpush3.bf16.msra.mxu0 %v1722_v5  ;;  %1629 = vmatprep.mubr.msk.f32.mxu0 %vm370_vm0, %v364_v8  ;;  %v355_v15 = vld [vmem:[%s326_s21 + $0x8] sm:$0xff]  ;;  %v356_v16 = vld [vmem:[%s326_s21 + $0x10] sm:$0xff]  ;;  %v357_v17 = vld [vmem:[%s326_s21 + $0x18] sm:$0xff] }
  0x14   : > { %v358_v18 = vld [vmem:[%s326_s21 + $0x20] sm:$0xff]  ;;  %v359_v19 = vld [vmem:[%s326_s21 + $0x28] sm:$0xff]  ;;  %v360_v20 = vld [vmem:[%s326_s21 + $0x30] sm:$0xff]  ;;  %1746 = vmatprep.subr.bf16.mxu0 %v1854_v25 }
  0x15   : > { %v361_v21 = vld [vmem:[%s326_s21 + $0x38] sm:$0xff] }
  0x16   : > { %1630 = vmatmul.mubr.msk.f32.gmra.mrb[2].mxu0 %vm370_vm0, %v365_v9 }
  0x17   : > { %1632 = vmatprep.mubr.msk.f32.mxu0 %vm370_vm0, %v366_v10 }
  0x1a   : > { %1633 = vmatmul.mubr.msk.f32.gmra.mrb[4].mxu0 %vm370_vm0, %v367_v11 }
  0x1b   : > { %1635 = vmatprep.mubr.msk.f32.mxu0 %vm370_vm0, %v368_v12 }
  0x1e   : > { %1636 = vmatmul.mubr.msk.f32.gmra.mrb[6].mxu0 %vm370_vm0, %v369_v13 }
  0x1f   : > { %1642 = vmatprep.mubr.msk.f32.mxu0 %vm370_vm0, %v354_v14 }
  0x22   : > { %1643 = vmatmul.mubr.msk.f32.vlgmr.msra.gmra.mrb[0].mxu0 %vm370_vm0, %v355_v15 }
  0x23   : > { %1645 = vmatprep.mubr.msk.f32.mxu0 %vm370_vm0, %v356_v16  ;;  %1748 = vmatpush3.bf16.msra.mxu0 %v1958_v24 }
  0x24   : > { %1749 = vmatprep.subr.bf16.mxu0 %v1854_v25 }
  0x26   : > { %1646 = vmatmul.mubr.msk.f32.gmra.mrb[2].mxu0 %vm370_vm0, %v357_v17 }
  0x27   : > { %1648 = vmatprep.mubr.msk.f32.mxu0 %vm370_vm0, %v358_v18  ;;  %1751 = vmatpush3.bf16.msra.mxu0 %v1972_v28 }
  0x2a   : > { %1649 = vmatmul.mubr.msk.f32.gmra.mrb[4].mxu0 %vm370_vm0, %v359_v19 }
  0x2b   : > { %1651 = vmatprep.mubr.msk.f32.mxu0 %vm370_vm0, %v360_v20 }
  0x2e   : > { %1652 = vmatmul.mubr.msk.f32.gmra.mrb[6].mxu0 %vm370_vm0, %v361_v21 }
  0x2f   : > { %1704 = vmatprep.mubr.msk.f32.mxu0 %vm1855_vm1, %v1856_v29 }
  0xf5   : > { %v1981_v30 = vpop.f32.mrb[0].mxu0 }
  0xf6   : > { %v631_v31 = vsel %vm629_vm2, %v1981_v30, 0.0  ;;  %v726_v32 = vmul.f32 %v1981_v30, %v1981_v30  ;;  %1395 = vrot.lane.b32.xlu0 %v1981_v30, %s1857_s10  ;;  %v1989_v33 = vpop.f32.mrb[1].mxu0 }
  0xf7   : > { %v630_v34 = vsel %vm629_vm2, %v1989_v33, 0.0  ;;  %v725_v35 = vmul.f32 %v1989_v33, %v1989_v33 }
  0xf8   : > { %v734_v36 = vsel %vm629_vm2, %v726_v32, 0.0  ;;  %v632_v37 = vadd.f32 %v631_v31, %v630_v34  ;;  %v1307_v31 = vsub.s32 2, %v831_v27  ;;  %v1319_v32 = vsub.s32 3, %v831_v27  ;;  %v349_v34 = vld [vmem:[%s2241_s6] sm:$0xf] }
  0xf9   : > { %v733_v38 = vsel %vm629_vm2, %v725_v35, 0.0  ;;  %v1997_v39 = vpop.f32.mrb[2].mxu0 }
  0xfa   : > { %v735_v40 = vadd.f32 %v734_v36, %v733_v38  ;;  %1393 = vrot.lane.b32.xlu0 %v1989_v33, %s1857_s10  ;;  %1399 = vrot.lane.b32.xlu1 %v1997_v39, %s1857_s10  ;;  %v2003_v41 = vpop.f32.mrb[3].mxu0  ;;  %v728_v42 = vmul.f32 %v1997_v39, %v1997_v39  ;;  %v635_v46 = vsel %vm629_vm2, %v1997_v39, 0.0  ;;  %v2063_v35 = vrot.slane %v349_v34, %v1307_v31  ;;  %v351_v38 = vld [vmem:[%s2242_s7 + $0x8] sm:$0xff] }
  0xfb   : > { %v633_v43 = vsel %vm629_vm2, %v2003_v41, 0.0  ;;  %v727_v44 = vmul.f32 %v2003_v41, %v2003_v41  ;;  %v2065_v36 = vrot.slane %v349_v34, %v1319_v32 }
  0xfc   : > { %v634_v45 = vadd.f32 %v633_v43, %v632_v37  ;;  %v738_v52 = vsel %vm629_vm2, %v728_v42, 0.0  ;;  %v350_v37 = vld [vmem:[%s2242_s7] sm:$0xff]  ;;  %v353_v43 = vld [vmem:[%s2242_s7 + $0x18] sm:$0xff] }
  0xfd   : > { %v736_v47 = vsel %vm629_vm2, %v727_v44, 0.0  ;;  %v2014_v48 = vpop.f32.mrb[4].mxu0  ;;  %v1738_v42 = vpack.c.bf16 %v351_v38, %v350_v37 }
  0xfe   : > { %v737_v49 = vadd.f32 %v736_v47, %v735_v40  ;;  %1397 = vrot.lane.b32.xlu1 %v2003_v41, %s1857_s10  ;;  %v2018_v50 = vpop.f32.mrb[5].mxu0  ;;  %v636_v51 = vadd.f32 %v635_v46, %v634_v45  ;;  %v730_v53 = vmul.f32 %v2014_v48, %v2014_v48  ;;  %v639_v58 = vsel %vm629_vm2, %v2014_v48, 0.0  ;;  %v352_v40 = vld [vmem:[%s2242_s7 + $0x10] sm:$0xff] }
  0xff   : > { %v637_v54 = vsel %vm629_vm2, %v2018_v50, 0.0  ;;  %v729_v55 = vmul.f32 %v2018_v50, %v2018_v50  ;;  %1401 = vrot.lane.b32.xlu0 %v2018_v50, %s1857_s10  ;;  %v1742_v44 = vpack.c.bf16 %v353_v43, %v352_v40  ;;  %v2080_v45 = vsub.s32 0, %v831_v27 }
 0x100   : > { %v638_v56 = vadd.f32 %v637_v54, %v636_v51  ;;  %v739_v57 = vadd.f32 %v738_v52, %v737_v49  ;;  %v742_v0 = vsel %vm629_vm2, %v730_v53, 0.0 }
 0x101   : > { %v740_v59 = vsel %vm629_vm2, %v729_v55, 0.0  ;;  %v2032_v60 = vpop.f32.mrb[6].mxu0 }
 0x102   : > { %v741_v61 = vadd.f32 %v740_v59, %v739_v57  ;;  %1403 = vrot.lane.b32.xlu1 %v2014_v48, %s1857_s10  ;;  %v2036_v62 = vpop.f32.mrb[7].mxu0  ;;  %v640_v63 = vadd.f32 %v639_v58, %v638_v56  ;;  %v732_v1 = vmul.f32 %v2032_v60, %v2032_v60  ;;  %v643_v6 = vsel %vm629_vm2, %v2032_v60, 0.0 }
 0x103   : > { %v641_v2 = vsel %vm629_vm2, %v2036_v62, 0.0  ;;  %v731_v3 = vmul.f32 %v2036_v62, %v2036_v62  ;;  %1405 = vrot.lane.b32.xlu0 %v2036_v62, %s1857_s10 }
 0x104   : > { %v642_v4 = vadd.f32 %v641_v2, %v640_v63  ;;  %v743_v5 = vadd.f32 %v742_v0, %v741_v61  ;;  %v746_v10 = vsel %vm629_vm2, %v732_v1, 0.0 }
 0x105   : > { %v744_v7 = vsel %vm629_vm2, %v731_v3, 0.0 }
 0x106   : > { %v644_v8 = vadd.f32 %v643_v6, %v642_v4  ;;  %v745_v9 = vadd.f32 %v744_v7, %v743_v5  ;;  %1407 = vrot.lane.b32.xlu1 %v2032_v60, %s1857_s10 }
 0x108   : > { %v645_v11 = vrot.slane %v644_v8, 4  ;;  %v747_v12 = vadd.f32 %v746_v10, %v745_v9 }
 0x10a   : > { %v646_v13 = vadd.f32 %v645_v11, %v644_v8  ;;  %v748_v14 = vrot.slane %v747_v12, 4 }
 0x10c   : > { %v749_v15 = vadd.f32 %v748_v14, %v747_v12  ;;  %v647_v16 = vrot.slane %v646_v13, 2 }
 0x10e   : > { %v750_v17 = vrot.slane %v749_v15, 2  ;;  %v648_v18 = vadd.f32 %v647_v16, %v646_v13 }
 0x110   : > { %v649_v19 = vrot.slane %v648_v18, 1  ;;  %v751_v21 = vadd.f32 %v750_v17, %v749_v15 }
 0x112   : > { %v650_v20 = vadd.f32 %v649_v19, %v648_v18  ;;  %v752_v22 = vrot.slane %v751_v21, 1 }
 0x114   : > { %1663 = vmatmul.mubr.msk.f32.vlgmr.msra.gmra.mrb[0].mxu1 %vm629_vm2, %v650_v20  ;;  %v753_v23 = vadd.f32 %v752_v22, %v751_v21 }
 0x115   : > { %1734 = vmatpush3.bf16.msra.mxu1 %v1958_v24  ;;  %1673 = vmatprep.mubr.msk.f32.mxu1 %vm1855_vm1, %v1856_v29 }
 0x116   : > { %1735 = vmatprep.subr.bf16.mxu1 %v1854_v25 }
 0x119   : > { %1737 = vmatpush3.bf16.msra.mxu1 %v1972_v28 }
 0x11a   : > { %1739 = vmatprep.subr.bf16.mxu1 %v1738_v42 }
 0x11c   : > { %1674 = vmatmul.mubr.msk.f32.vlgmr.msra.gmra.mrb[2].mxu1 %vm629_vm2, %v753_v23 }
 0x11d   : > { %1741 = vmatpush3.bf16.msra.mxu1 %v1738_v42 }
 0x11e   : > { %1743 = vmatprep.subr.bf16.mxu1 %v1742_v44 }
 0x121   : > { %1745 = vmatpush3.bf16.msra.mxu1 %v1742_v44 }
 0x122   : > { %1752 = vmatprep.subr.bf16.mxu1 %v1854_v25 }
 0x1e7   : > { %v720_v46 = vpop.f32.mrb[0].mxu1 }
 0x1e8   : > { %v724_v47 = vmul.f32 0.015625, %v720_v46  ;;  %v1664_v49 = vpop.f32.mrb[1].mxu1 }
 0x1ea   : > { %v833_v51 = vrot.slane %v724_v47, %v2080_v45  ;;  %v828_v63 = vmul.f32 %v724_v47, %v724_v47 }
 0x1ec   : > { %v834_v52 = vsub.f32 %v1989_v33, %v833_v51  ;;  %v835_v53 = vsub.f32 %v1981_v30, %v833_v51  ;;  %v836_v54 = vsub.f32 %v2003_v41, %v833_v51  ;;  %v837_v55 = vsub.f32 %v1997_v39, %v833_v51 }
 0x1ed   : > { %v838_v56 = vsub.f32 %v2018_v50, %v833_v51  ;;  %v839_v57 = vsub.f32 %v2014_v48, %v833_v51  ;;  %v840_v58 = vsub.f32 %v2036_v62, %v833_v51  ;;  %v841_v59 = vsub.f32 %v2032_v60, %v833_v51 }
 0x1ee   : > { %v870_v30 = vsub.s32 1, %v831_v27  ;;  %v859_v41 = vrot.slane %v349_v34, %v2080_v45 }
 0x1ef   : > { %v823_v61 = vpop.f32.mrb[2].mxu1 }
 0x1f0   : > { %v827_v0 = vmul.f32 0.015625, %v823_v61  ;;  %v1675_v1 = vpop.f32.mrb[3].mxu1  ;;  %v871_v50 = vrot.slane %v349_v34, %v870_v30 }
 0x1f1   : > { %v1546_v1 = vld [vmem:[%s334_s24] ss:$0 sm:$0xff] }
 0x1f2   : > { %v829_v2 = vsub.f32 %v827_v0, %v828_v63 }
 0x1f4   : > { %v842_v33 = vadd.f32 1e-05, %v829_v2 }
 0x1f6   : > { %1778 = vrsqrt.f32 %v842_v33 }
 0x200   : > { %v1779_v3 = vpop.eup %1778 }
 0x201   : > { %v847_v39 = vrot.slane %v1779_v3, %v2080_v45 }
 0x203   : > { %v848_v4 = vmul.f32 %v847_v39, %v834_v52  ;;  %v849_v48 = vmul.f32 %v847_v39, %v835_v53  ;;  %v850_v5 = vmul.f32 %v847_v39, %v836_v54  ;;  %v851_v62 = vmul.f32 %v847_v39, %v837_v55 }
 0x204   : > { %v852_v6 = vmul.f32 %v847_v39, %v838_v56  ;;  %v853_v60 = vmul.f32 %v847_v39, %v839_v57  ;;  %v854_v7 = vmul.f32 %v847_v39, %v840_v58  ;;  %v855_v8 = vmul.f32 %v847_v39, %v841_v59 }
 0x205   : > { %v860_v9 = vmul.f32 %v859_v41, %v848_v4  ;;  %v861_v10 = vmul.f32 %v859_v41, %v849_v48  ;;  %v862_v11 = vmul.f32 %v859_v41, %v850_v5  ;;  %v863_v12 = vmul.f32 %v859_v41, %v851_v62 }
 0x206   : > { %v864_v13 = vmul.f32 %v859_v41, %v852_v6  ;;  %v865_v14 = vmul.f32 %v859_v41, %v853_v60  ;;  %v866_v15 = vmul.f32 %v859_v41, %v854_v7  ;;  %v867_v16 = vmul.f32 %v859_v41, %v855_v8 }
 0x207   : > { %v872_v17 = vadd.f32 %v871_v50, %v860_v9  ;;  %v873_v18 = vadd.f32 %v871_v50, %v861_v10  ;;  %v874_v19 = vadd.f32 %v871_v50, %v862_v11  ;;  %v875_v20 = vadd.f32 %v871_v50, %v863_v12 }
 0x208   : > { %v876_v21 = vadd.f32 %v871_v50, %v864_v13  ;;  %v2093_v22 = vadd.f32 %v871_v50, %v865_v14  ;;  %v2095_v31 = vadd.f32 %v871_v50, %v866_v15  ;;  %v2097_v34 = vadd.f32 %v871_v50, %v867_v16 }
 0x209   : > { %v1538_v23 = vmul.f32 -1.442695, %v872_v17  ;;  %v1539_v26 = vmul.f32 -1.442695, %v873_v18  ;;  %v1540_v27 = vmul.f32 -1.442695, %v874_v19 }
 0x20a   : > { %v1541_v32 = vmul.f32 -1.442695, %v875_v20  ;;  %v1542_v37 = vmul.f32 -1.442695, %v876_v21  ;;  %v1543_v38 = vmul.f32 -1.442695, %v2093_v22 }
 0x20b   : > { %1780 = vpow2.f32 %v1538_v23  ;;  %v1544_v40 = vmul.f32 -1.442695, %v2095_v31  ;;  %v1545_v42 = vmul.f32 -1.442695, %v2097_v34 }
 0x20c   : > { %1782 = vpow2.f32 %v1539_v26 }
 0x20d   : > { %1784 = vpow2.f32 %v1540_v27 }
 0x20e   : > { %1786 = vpow2.f32 %v1541_v32 }
 0x20f   : > { %1788 = vpow2.f32 %v1542_v37 }
 0x210   : > { %1790 = vpow2.f32 %v1543_v38 }
 0x211   : > { %1792 = vpow2.f32 %v1544_v40 }
 0x212   : > { %1794 = vpow2.f32 %v1545_v42 }
 0x215   : > { %v1781_v43 = vpop.eup %1780 }
 0x216   : > { %v1783_v44 = vpop.eup %1782  ;;  %v904_v46 = vadd.f32 1.0, %v1781_v43 }
 0x217   : > { %v1785_v47 = vpop.eup %1784  ;;  %v905_v49 = vadd.f32 1.0, %v1783_v44 }
 0x218   : > { %v1787_v51 = vpop.eup %1786  ;;  %1796 = vrcp.f32 %v904_v46  ;;  %v906_v52 = vadd.f32 1.0, %v1785_v47 }
 0x219   : > { %v1789_v53 = vpop.eup %1788  ;;  %1798 = vrcp.f32 %v905_v49  ;;  %v907_v54 = vadd.f32 1.0, %v1787_v51 }
 0x21a   : > { %v1791_v55 = vpop.eup %1790  ;;  %1800 = vrcp.f32 %v906_v52  ;;  %v908_v56 = vadd.f32 1.0, %v1789_v53 }
 0x21b   : > { %v1793_v57 = vpop.eup %1792  ;;  %1802 = vrcp.f32 %v907_v54  ;;  %v909_v58 = vadd.f32 1.0, %v1791_v55 }
 0x21c   : > { %v1795_v59 = vpop.eup %1794  ;;  %1804 = vrcp.f32 %v908_v56  ;;  %v910_v61 = vadd.f32 1.0, %v1793_v57 }
 0x21d   : > { %1806 = vrcp.f32 %v909_v58  ;;  %v911_v63 = vadd.f32 1.0, %v1795_v59 }
 0x21e   : > { %1808 = vrcp.f32 %v910_v61 }
 0x21f   : > { %1810 = vrcp.f32 %v911_v63 }
 0x222   : > { %v1797_v0 = vpop.eup %1796 }
 0x223   : > { %v1799_v2 = vpop.eup %1798  ;;  %v928_v33 = vmul.f32 %v1797_v0, %v872_v17 }
 0x224   : > { %v1801_v30 = vpop.eup %1800  ;;  %v929_v3 = vmul.f32 %v1799_v2, %v873_v18 }
 0x225   : > { %v1803_v41 = vpop.eup %1802  ;;  %v942_v39 = vadd.f32 %v1546_v1, %v928_v33  ;;  %v930_v50 = vmul.f32 %v1801_v30, %v874_v19 }
 0x226   : > { %v1805_v4 = vpop.eup %1804  ;;  %v943_v48 = vadd.f32 %v1546_v1, %v929_v3  ;;  %v931_v5 = vmul.f32 %v1803_v41, %v875_v20 }
 0x227   : > { %v1807_v62 = vpop.eup %1806  ;;  %1684 = vmatprep.mubr.msk.f32.mxu1 %vm629_vm2, %v942_v39  ;;  %v944_v6 = vadd.f32 %v1546_v1, %v930_v50  ;;  %v932_v60 = vmul.f32 %v1805_v4, %v876_v21 }
 0x228   : > { %v1809_v7 = vpop.eup %1808  ;;  %1685 = vmatmul.mubr.msk.f32.vlgmr.msra.gmra.mrb[4].mxu1 %vm629_vm2, %v943_v48  ;;  %v945_v8 = vadd.f32 %v1546_v1, %v931_v5  ;;  %v933_v9 = vmul.f32 %v1807_v62, %v2093_v22 }
 0x229   : > { %v1811_v10 = vpop.eup %1810  ;;  %1687 = vmatprep.mubr.msk.f32.mxu1 %vm629_vm2, %v944_v6  ;;  %v946_v11 = vadd.f32 %v1546_v1, %v932_v60  ;;  %v934_v12 = vmul.f32 %v1809_v7, %v2095_v31  ;;  %1754 = vmatpush3.bf16.msra.mxu1 %v1958_v24 }
 0x22a   : > { %v947_v13 = vadd.f32 %v1546_v1, %v933_v9  ;;  %v935_v14 = vmul.f32 %v1811_v10, %v2097_v34  ;;  %1755 = vmatprep.subr.bf16.mxu1 %v1854_v25 }
 0x22b   : > { %v948_v15 = vadd.f32 %v1546_v1, %v934_v12 }
 0x22c   : > { %1688 = vmatmul.mubr.msk.f32.gmra.mrb[6].mxu1 %vm629_vm2, %v945_v8  ;;  %v949_v16 = vadd.f32 %v1546_v1, %v935_v14 }
 0x22d   : > { %1690 = vmatprep.mubr.msk.f32.mxu1 %vm629_vm2, %v946_v11  ;;  %1757 = vmatpush3.bf16.msra.mxu1 %v1972_v28 }
 0x230   : > { %1691 = vmatmul.mubr.msk.f32.gmra.mrb[8].mxu1 %vm629_vm2, %v947_v13 }
 0x231   : > { %1693 = vmatprep.mubr.msk.f32.mxu1 %vm629_vm2, %v948_v15 }
 0x234   : > { %1694 = vmatmul.mubr.msk.f32.gmra.mrb[10].mxu1 %vm629_vm2, %v949_v16 }
 0x235   : > { %1715 = vmatprep.mubr.msk.f32.mxu1 %vm1855_vm1, %v1856_v29 }
 0x2fb   : > { %v2122_v24 = vpop.f32.mrb[4].mxu1 }
 0x2fc   : > { %v1080_v25 = vsel %vm629_vm2, %v2122_v24, 0.0  ;;  %v1175_v17 = vmul.f32 %v2122_v24, %v2122_v24  ;;  %v2128_v18 = vpop.f32.mrb[5].mxu1 }
 0x2fd   : > { %v1079_v28 = vsel %vm629_vm2, %v2128_v18, 0.0  ;;  %v1174_v19 = vmul.f32 %v2128_v18, %v2128_v18 }
 0x2fe   : > { %v1183_v20 = vsel %vm629_vm2, %v1175_v17, 0.0  ;;  %v1081_v21 = vadd.f32 %v1080_v25, %v1079_v28 }
 0x2ff   : > { %v1182_v29 = vsel %vm629_vm2, %v1174_v19, 0.0  ;;  %v2136_v22 = vpop.f32.mrb[6].mxu1 }
 0x300   : > { %v1184_v23 = vadd.f32 %v1183_v20, %v1182_v29  ;;  %v2138_v26 = vpop.f32.mrb[7].mxu1  ;;  %v1177_v27 = vmul.f32 %v2136_v22, %v2136_v22  ;;  %v1084_v37 = vsel %vm629_vm2, %v2136_v22, 0.0 }
 0x301   : > { %v1082_v31 = vsel %vm629_vm2, %v2138_v26, 0.0  ;;  %v1176_v32 = vmul.f32 %v2138_v26, %v2138_v26 }
 0x302   : > { %v1083_v34 = vadd.f32 %v1082_v31, %v1081_v21  ;;  %v1187_v46 = vsel %vm629_vm2, %v1177_v27, 0.0 }
 0x303   : > { %v1185_v38 = vsel %vm629_vm2, %v1176_v32, 0.0  ;;  %v2149_v40 = vpop.f32.mrb[8].mxu1 }
 0x304   : > { %v1186_v42 = vadd.f32 %v1185_v38, %v1184_v23  ;;  %v2151_v43 = vpop.f32.mrb[9].mxu1  ;;  %v1085_v44 = vadd.f32 %v1084_v37, %v1083_v34  ;;  %v1179_v47 = vmul.f32 %v2149_v40, %v2149_v40  ;;  %v1088_v54 = vsel %vm629_vm2, %v2149_v40, 0.0 }
 0x305   : > { %v1086_v49 = vsel %vm629_vm2, %v2151_v43, 0.0  ;;  %v1178_v51 = vmul.f32 %v2151_v43, %v2151_v43 }
 0x306   : > { %v1087_v52 = vadd.f32 %v1086_v49, %v1085_v44  ;;  %v1188_v53 = vadd.f32 %v1187_v46, %v1186_v42  ;;  %v1191_v61 = vsel %vm629_vm2, %v1179_v47, 0.0 }
 0x307   : > { %v1189_v55 = vsel %vm629_vm2, %v1178_v51, 0.0  ;;  %v1695_v56 = vpop.f32.mrb[10].mxu1 }
 0x308   : > { %v1190_v57 = vadd.f32 %v1189_v55, %v1188_v53  ;;  %v1070_v58 = vpop.f32.mrb[11].mxu1  ;;  %v1089_v59 = vadd.f32 %v1088_v54, %v1087_v52  ;;  %v1181_v63 = vmul.f32 %v1695_v56, %v1695_v56  ;;  %v1092_v30 = vsel %vm629_vm2, %v1695_v56, 0.0 }
 0x309   : > { %v1090_v0 = vsel %vm629_vm2, %v1070_v58, 0.0  ;;  %v1180_v1 = vmul.f32 %v1070_v58, %v1070_v58 }
 0x30a   : > { %v1091_v2 = vadd.f32 %v1090_v0, %v1089_v59  ;;  %v1192_v33 = vadd.f32 %v1191_v61, %v1190_v57  ;;  %v1195_v50 = vsel %vm629_vm2, %v1181_v63, 0.0 }
 0x30b   : > { %v1193_v3 = vsel %vm629_vm2, %v1180_v1, 0.0 }
 0x30c   : > { %v1093_v41 = vadd.f32 %v1092_v30, %v1091_v2  ;;  %v1194_v39 = vadd.f32 %v1193_v3, %v1192_v33 }
 0x30e   : > { %v1094_v4 = vrot.slane %v1093_v41, 4  ;;  %v1196_v48 = vadd.f32 %v1195_v50, %v1194_v39 }
 0x310   : > { %v1095_v5 = vadd.f32 %v1094_v4, %v1093_v41  ;;  %v1197_v62 = vrot.slane %v1196_v48, 4 }
 0x312   : > { %v1096_v6 = vrot.slane %v1095_v5, 2  ;;  %v1198_v60 = vadd.f32 %v1197_v62, %v1196_v48 }
 0x314   : > { %v1097_v7 = vadd.f32 %v1096_v6, %v1095_v5  ;;  %v1199_v8 = vrot.slane %v1198_v60, 2 }
 0x316   : > { %v1098_v9 = vrot.slane %v1097_v7, 1  ;;  %v1200_v10 = vadd.f32 %v1199_v8, %v1198_v60  ;;  %v1396_v8 = vpop.permute.xlu0 %1395 }
 0x318   : > { %v1099_v11 = vadd.f32 %v1098_v9, %v1097_v7  ;;  %v1201_v12 = vrot.slane %v1200_v10, 1 }
 0x31a   : > { %v1202_v13 = vadd.f32 %v1201_v12, %v1200_v10  ;;  %1705 = vmatmul.mubr.msk.f32.vlgmr.msra.gmra.mrb[8].mxu0 %vm629_vm2, %v1099_v11  ;;  %v1400_v11 = vpop.permute.xlu1 %1399 }
 0x31c   : > { %1716 = vmatmul.mubr.msk.f32.vlgmr.msra.gmra.mrb[12].mxu1 %vm629_vm2, %v1202_v13 }
 0x3ed   : > { %v1169_v14 = vpop.f32.mrb[8].mxu0 }
 0x3ee   : > { %v1173_v15 = vmul.f32 0.015625, %v1169_v14  ;;  %v1706_v16 = vpop.f32.mrb[9].mxu0 }
 0x3ef   : > { %v1272_v25 = vpop.f32.mrb[12].mxu1 }
 0x3f0   : > { %v1277_v17 = vmul.f32 %v1173_v15, %v1173_v15  ;;  %v1282_v28 = vrot.slane %v1173_v15, %v2080_v45  ;;  %v1276_v19 = vmul.f32 0.015625, %v1272_v25  ;;  %v1717_v20 = vpop.f32.mrb[13].mxu1 }
 0x3f1   : > { %v1398_v20 = vpop.permute.xlu1 %1397 }
 0x3f2   : > { %v1283_v21 = vsub.f32 %v2128_v18, %v1282_v28  ;;  %v1284_v29 = vsub.f32 %v2122_v24, %v1282_v28  ;;  %v1285_v23 = vsub.f32 %v2138_v26, %v1282_v28  ;;  %v1286_v27 = vsub.f32 %v2136_v22, %v1282_v28 }
 0x3f3   : > { %v1287_v31 = vsub.f32 %v2151_v43, %v1282_v28  ;;  %v1288_v32 = vsub.f32 %v2149_v40, %v1282_v28  ;;  %v1289_v34 = vsub.f32 %v1070_v58, %v1282_v28  ;;  %v1290_v37 = vsub.f32 %v1695_v56, %v1282_v28 }
 0x3f4   : > { %v1278_v38 = vsub.f32 %v1276_v19, %v1277_v17  ;;  %v1394_v19 = vpop.permute.xlu0 %1393 }
 0x3f6   : > { %v1291_v42 = vadd.f32 1e-05, %v1278_v38 }
 0x3f8   : > { %1812 = vrsqrt.f32 %v1291_v42 }
 0x402   : > { %v1813_v44 = vpop.eup %1812 }
 0x403   : > { %v1296_v46 = vrot.slane %v1813_v44, %v2080_v45 }
 0x405   : > { %v1297_v47 = vmul.f32 %v1296_v46, %v1283_v21  ;;  %v1298_v18 = vmul.f32 %v1296_v46, %v1284_v29  ;;  %v1299_v49 = vmul.f32 %v1296_v46, %v1285_v23  ;;  %v1300_v24 = vmul.f32 %v1296_v46, %v1286_v27 }
 0x406   : > { %v1301_v51 = vmul.f32 %v1296_v46, %v1287_v31  ;;  %v1302_v26 = vmul.f32 %v1296_v46, %v1288_v32  ;;  %v1303_v52 = vmul.f32 %v1296_v46, %v1289_v34  ;;  %v1304_v22 = vmul.f32 %v1296_v46, %v1290_v37  ;;  %v1402_v31 = vpop.permute.xlu0 %1401  ;;  %v1404_v37 = vpop.permute.xlu1 %1403 }
 0x407   : > { %v1309_v43 = vmul.f32 %v2063_v35, %v1297_v47  ;;  %v1310_v40 = vmul.f32 %v2063_v35, %v1298_v18  ;;  %v1311_v53 = vmul.f32 %v2063_v35, %v1299_v49  ;;  %v1312_v54 = vmul.f32 %v2063_v35, %v1300_v24 }
 0x408   : > { %v1313_v55 = vmul.f32 %v2063_v35, %v1301_v51  ;;  %v1314_v45 = vmul.f32 %v2063_v35, %v1302_v26  ;;  %v1315_v56 = vmul.f32 %v2063_v35, %v1303_v52  ;;  %v1316_v57 = vmul.f32 %v2063_v35, %v1304_v22 }
 0x409   : > { %v1321_v58 = vadd.f32 %v2065_v36, %v1309_v43  ;;  %v1322_v59 = vadd.f32 %v2065_v36, %v1310_v40  ;;  %v1323_v61 = vadd.f32 %v2065_v36, %v1311_v53  ;;  %v1324_v63 = vadd.f32 %v2065_v36, %v1312_v54 }
 0x40a   : > { %v2191_v0 = vadd.f32 %v2065_v36, %v1313_v55  ;;  %v2194_v1 = vadd.f32 %v2065_v36, %v1314_v45  ;;  %v2197_v2 = vadd.f32 %v2065_v36, %v1315_v56  ;;  %v2200_v33 = vadd.f32 %v2065_v36, %v1316_v57  ;;  %v1406_v53 = vpop.permute.xlu0 %1405  ;;  %v1408_v45 = vpop.permute.xlu1 %1407 }
 0x40b   : > { %v1557_v35 = vmul.f32 -1.442695, %v1321_v58  ;;  %v1558_v30 = vmul.f32 -1.442695, %v1322_v59  ;;  %v1559_v3 = vmul.f32 -1.442695, %v1323_v61 }
 0x40c   : > { %v1560_v41 = vmul.f32 -1.442695, %v1324_v63  ;;  %v1561_v39 = vmul.f32 -1.442695, %v2191_v0  ;;  %v1562_v50 = vmul.f32 -1.442695, %v2194_v1 }
 0x40d   : > { %1814 = vpow2.f32 %v1557_v35  ;;  %v1563_v4 = vmul.f32 -1.442695, %v2197_v2  ;;  %v1564_v48 = vmul.f32 -1.442695, %v2200_v33 }
 0x40e   : > { %1816 = vpow2.f32 %v1558_v30 }
 0x40f   : > { %1818 = vpow2.f32 %v1559_v3 }
 0x410   : > { %1820 = vpow2.f32 %v1560_v41 }
 0x411   : > { %1822 = vpow2.f32 %v1561_v39 }
 0x412   : > { %1824 = vpow2.f32 %v1562_v50 }
 0x413   : > { %1826 = vpow2.f32 %v1563_v4 }
 0x414   : > { %1828 = vpow2.f32 %v1564_v48 }
 0x417   : > { %v1815_v36 = vpop.eup %1814 }
 0x418   : > { %v1817_v5 = vpop.eup %1816  ;;  %v1353_v62 = vadd.f32 1.0, %v1815_v36 }
 0x419   : > { %v1819_v6 = vpop.eup %1818  ;;  %v1354_v60 = vadd.f32 1.0, %v1817_v5 }
 0x41a   : > { %v1821_v7 = vpop.eup %1820  ;;  %v1355_v9 = vadd.f32 1.0, %v1819_v6  ;;  %1830 = vrcp.f32 %v1353_v62 }
 0x41b   : > { %v1823_v10 = vpop.eup %1822  ;;  %v1356_v12 = vadd.f32 1.0, %v1821_v7  ;;  %1832 = vrcp.f32 %v1354_v60 }
 0x41c   : > { %v1825_v13 = vpop.eup %1824  ;;  %v1357_v14 = vadd.f32 1.0, %v1823_v10  ;;  %1834 = vrcp.f32 %v1355_v9 }
 0x41d   : > { %v1827_v15 = vpop.eup %1826  ;;  %v1358_v16 = vadd.f32 1.0, %v1825_v13  ;;  %1836 = vrcp.f32 %v1356_v12 }
 0x41e   : > { %v1829_v25 = vpop.eup %1828  ;;  %v1359_v17 = vadd.f32 1.0, %v1827_v15  ;;  %1838 = vrcp.f32 %v1357_v14 }
 0x41f   : > { %v1360_v28 = vadd.f32 1.0, %v1829_v25  ;;  %1840 = vrcp.f32 %v1358_v16 }
 0x420   : > { %1842 = vrcp.f32 %v1359_v17 }
 0x421   : > { %1844 = vrcp.f32 %v1360_v28 }
 0x424   : > { %v1831_v21 = vpop.eup %1830 }
 0x425   : > { %v1833_v29 = vpop.eup %1832  ;;  %v1377_v23 = vmul.f32 %v1831_v21, %v1321_v58 }
 0x426   : > { %v1835_v27 = vpop.eup %1834  ;;  %v1378_v32 = vmul.f32 %v1833_v29, %v1322_v59 }
 0x427   : > { %v1837_v34 = vpop.eup %1836  ;;  %v1379_v38 = vmul.f32 %v1835_v27, %v1323_v61  ;;  %v1417_v42 = vadd.f32 %v1394_v19, %v1377_v23 }
 0x428   : > { %v1839_v44 = vpop.eup %1838  ;;  %v1380_v46 = vmul.f32 %v1837_v34, %v1324_v63  ;;  %v1418_v47 = vadd.f32 %v1396_v8, %v1378_v32 }
 0x429   : > { %v1841_v18 = vpop.eup %1840  ;;  %v1381_v49 = vmul.f32 %v1839_v44, %v2191_v0  ;;  %v1419_v24 = vadd.f32 %v1398_v20, %v1379_v38  ;;  %1425 = vst.msk [vmem:[%s2210_s26] sm:$0xff] %vm629_vm2, %v1417_v42 }
 0x42a   : > { %v1843_v51 = vpop.eup %1842  ;;  %v1382_v26 = vmul.f32 %v1841_v18, %v2194_v1  ;;  %v1420_v52 = vadd.f32 %v1400_v11, %v1380_v46  ;;  %1426 = vst.msk [vmem:[%s2210_s26 + $0x8] sm:$0xff] %vm629_vm2, %v1418_v47 }
 0x42b   : > { %v1845_v22 = vpop.eup %1844  ;;  %v1383_v43 = vmul.f32 %v1843_v51, %v2197_v2  ;;  %v1421_v40 = vadd.f32 %v1402_v31, %v1381_v49  ;;  %1427 = vst.msk [vmem:[%s2210_s26 + $0x10] sm:$0xff] %vm629_vm2, %v1419_v24 }
 0x42c   : > { %v1384_v54 = vmul.f32 %v1845_v22, %v2200_v33  ;;  %v1422_v55 = vadd.f32 %v1404_v37, %v1382_v26  ;;  %1428 = vst.msk [vmem:[%s2210_s26 + $0x18] sm:$0xff] %vm629_vm2, %v1420_v52 }
 0x42d   : > { %v1423_v56 = vadd.f32 %v1406_v53, %v1383_v43  ;;  %1429 = vst.msk [vmem:[%s2210_s26 + $0x20] sm:$0xff] %vm629_vm2, %v1421_v40 }
 0x42e   : > { %v1424_v57 = vadd.f32 %v1408_v45, %v1384_v54  ;;  %1430 = vst.msk [vmem:[%s2210_s26 + $0x28] sm:$0xff] %vm629_vm2, %v1422_v55 }
 0x42f   : > { %1431 = vst.msk [vmem:[%s2210_s26 + $0x30] sm:$0xff] %vm629_vm2, %v1423_v56 }
 0x430   : > { %1432 = vst.msk [vmem:[%s2210_s26 + $0x38] sm:$0xff] %vm629_vm2, %v1424_v57 }
 0x431 PF: > { %s18_s27 = sadd.s32 1, %s1852_s27  }
 0x432   : > { %p15_p4 = scmp.ge.s32.totalorder %s18_s27, 4  }
 0x434   :  { %17 = sbr.rel (!%p15_p4) target bundleno = 1 (0x1), region = 88 }

// kernel: _lambda_.11
= control target key start
LH: loop header
LB: loop body
LE: loop exit
PB: predicated region body
PF: predicated region fallthrough
CT: control target
= control target key end

     0   :  { %s3900_s27 = smov 0   ;;  %s5614_s0 = inlined_call_operand.vmem [shape: f32[2,256,8], index: 0, kind: input, shape index: {}]   ;;  %s5615_s1 = inlined_call_operand.vmem [shape: f32[8,4], index: 1, kind: input, shape index: {}]   ;;  %s5616_s2 = inlined_call_operand.vmem [shape: f32[2,256,4], index: 2, kind: input, shape index: {}]   ;;  %s5617_s3 = inlined_call_operand.vmem [shape: f32[4,4], index: 3, kind: input, shape index: {}]   ;;  %s5618_s4 = inlined_call_operand.vmem [shape: f32[2,1,2], index: 4, kind: input, shape index: {}]   ;;  %s5619_s5 = inlined_call_operand.vmem [shape: f32[2,2], index: 5, kind: input, shape index: {}]   ;;  %s5620_s6 = inlined_call_operand.vmem [shape: f32[4,2], index: 6, kind: input, shape index: {}]   ;;  %s5621_s7 = inlined_call_operand.vmem [shape: f32[2,2], index: 7, kind: input, shape index: {}]   ;;  %s5622_s8 = inlined_call_operand.vmem [shape: f32[2,256,2], index: 8, kind: output, shape index: {}]  }
   0x1 LB: > { %s3073_s28 = sadd.s32 4294967295, %s3850_s27   ;;  %p3077_p0 = scmp.ge.s32.totalorder %s3850_s27, 1  ;;  %s3850_s27 = sphi %s3900_s27, %s18_s27  }
   0x2   : > { %p280_p1 = scmp.lt.s32.totalorder %s3850_s27, 3 }
   0x4   : > { %p281_p2 = pnand %p3077_p0, %p280_p1 }
   0x6   : > { %284 = sbr.rel (%p281_p2) target bundleno = 1268 (0x4f4), region = 52 }
   0xd   : > { %v341_v0 = vld [vmem:[%s5617_s3] sm:$0xf]  ;;  %vm507_vm0 = vcmask 1043456   ;;  %p322_p3 = scmp.lt.s32.totalorder %s3073_s28, 1  ;;  %vm410_vm1 = vcmask 31744   ;;  %vm736_vm2 = vcmask 64512  }
   0xe   : > { %v340_v1 = vld [vmem:[%s5615_s1] sm:$0xff]  ;;  %3367 = vmatprep.subr.msk.mxu0 %vm507_vm0, %v341_v0  ;;  %3537 = vmatprep.subr.msk.mxu1 %vm507_vm0, %v341_v0  ;;  %vm1131_vm3 = vcmask 1041408   ;;  %vm3853_vm4 = vmmov 0   ;;  %vm1058_vm5 = vcmask 15360   ;;  %s3854_s20 = smov 126  }
   0xf   : > { %3368 = vmatpush3.msk.msra.mxu0 %vm507_vm0, %v341_v0  ;;  %s5679_s28 = smov (!%p322_p3, %s3073_s28), 1  ;;  %3538 = vmatpush3.msk.msra.mxu1 %vm507_vm0, %v341_v0 }
  0x10   : > { %3417 = vmatprep.subr.mxu0 %v340_v1  ;;  %s3917_s11 = sshll.u32 %s5679_s28, 8  ;;  %s334_s29 = scalar_lea.vmem %s5618_s4, %s5679_s28 }
  0x11   : > { %s3923_s14 = scalar_lea.vmem %s5616_s2, %s3917_s11  ;;  %s3988_s17 = scalar_lea.vmem %s5614_s0, %s3917_s11 }
  0x12   : > { %v378_v2 = vld [vmem:[%s3923_s14] sm:$0xff]  ;;  %v379_v3 = vld [vmem:[%s3923_s14 + $0x8] sm:$0xff]  ;;  %v380_v4 = vld [vmem:[%s3923_s14 + $0x10] sm:$0xff] }
  0x13   : > { %3369 = vmatprep.mubr.msk.f32.mxu0 %vm410_vm1, %v378_v2  ;;  %v381_v5 = vld [vmem:[%s3923_s14 + $0x18] sm:$0xff]  ;;  %v382_v6 = vld [vmem:[%s3923_s14 + $0x20] sm:$0xff]  ;;  %v383_v7 = vld [vmem:[%s3923_s14 + $0x28] sm:$0xff] }
  0x14   : > { %3370 = vmatmul.mubr.msk.f32.vlgmr.msra.gmra.mrb[0].mxu0 %vm410_vm1, %v379_v3  ;;  %v384_v8 = vld [vmem:[%s3923_s14 + $0x30] sm:$0xff]  ;;  %v385_v9 = vld [vmem:[%s3923_s14 + $0x38] sm:$0xff]  ;;  %v386_v10 = vld [vmem:[%s3923_s14 + $0x40] sm:$0xff]  ;;  %v3852_v3 = vmov 0.0  }
  0x15   : > { %3418 = vmatpush3.msra.mxu0 %v340_v1  ;;  %3372 = vmatprep.mubr.msk.f32.mxu0 %vm410_vm1, %v380_v4  ;;  %v398_v11 = vld [vmem:[%s3923_s14 + $0xa0] sm:$0xff]  ;;  %v399_v12 = vld [vmem:[%s3923_s14 + $0xa8] sm:$0xff]  ;;  %v400_v13 = vld [vmem:[%s3923_s14 + $0xb0] sm:$0xff] }
  0x16   : > { %3399 = vmatprep.mubr.msk.f32.mxu1 %vm410_vm1, %v398_v11  ;;  %v387_v14 = vld [vmem:[%s3923_s14 + $0x48] sm:$0xff]  ;;  %v388_v15 = vld [vmem:[%s3923_s14 + $0x50] sm:$0xff]  ;;  %v401_v16 = vld [vmem:[%s3923_s14 + $0xb8] sm:$0xff]  ;;  %3467 = vmatprep.subr.mxu1 %v3852_v3 }
  0x17   : > { %3400 = vmatmul.mubr.msk.f32.vlgmr.msra.gmra.mrb[0].mxu1 %vm410_vm1, %v399_v12  ;;  %v402_v17 = vld [vmem:[%s3923_s14 + $0xc0] sm:$0xff]  ;;  %v389_v18 = vld [vmem:[%s3923_s14 + $0x58] sm:$0xff]  ;;  %v403_v20 = vld [vmem:[%s3923_s14 + $0xc8] sm:$0xff] }
  0x18   : > { %3373 = vmatmul.mubr.msk.f32.gmra.mrb[2].mxu0 %vm410_vm1, %v381_v5  ;;  %3402 = vmatprep.mubr.msk.f32.mxu1 %vm410_vm1, %v400_v13  ;;  %v390_v19 = vld [vmem:[%s3923_s14 + $0x60] sm:$0xff]  ;;  %v404_v21 = vld [vmem:[%s3923_s14 + $0xd0] sm:$0xff]  ;;  %v391_v22 = vld [vmem:[%s3923_s14 + $0x68] sm:$0xff] }
  0x19   : > { %3375 = vmatprep.mubr.msk.f32.mxu0 %vm410_vm1, %v382_v6  ;;  %v392_v23 = vld [vmem:[%s3923_s14 + $0x70] sm:$0xff]  ;;  %v405_v24 = vld [vmem:[%s3923_s14 + $0xd8] sm:$0xff]  ;;  %v406_v25 = vld [vmem:[%s3923_s14 + $0xe0] sm:$0xff] }
  0x1a   : > { %v393_v26 = vld [vmem:[%s3923_s14 + $0x78] sm:$0xff]  ;;  %v394_v27 = vld [vmem:[%s3923_s14 + $0x80] sm:$0xff]  ;;  %v407_v28 = vld [vmem:[%s3923_s14 + $0xe8] sm:$0xff] }
  0x1b   : > { %3403 = vmatmul.mubr.msk.f32.gmra.mrb[2].mxu1 %vm410_vm1, %v401_v16  ;;  %v408_v29 = vld [vmem:[%s3923_s14 + $0xf0] sm:$0xff]  ;;  %v395_v30 = vld [vmem:[%s3923_s14 + $0x88] sm:$0xff]  ;;  %v409_v32 = vld [vmem:[%s3923_s14 + $0xf8] sm:$0xff] }
  0x1c   : > { %3376 = vmatmul.mubr.msk.f32.gmra.mrb[4].mxu0 %vm410_vm1, %v383_v7  ;;  %3405 = vmatprep.mubr.msk.f32.mxu1 %vm410_vm1, %v402_v17  ;;  %v396_v31 = vld [vmem:[%s3923_s14 + $0x90] sm:$0xff]  ;;  %v397_v33 = vld [vmem:[%s3923_s14 + $0x98] sm:$0xff]  ;;  %v346_v34 = vld [vmem:[%s3988_s17] sm:$0xff]  ;;  %s5460_s14 = scalar_lea.vmem %s5622_s8, %s3917_s11 }
  0x1d   : > { %3378 = vmatprep.mubr.msk.f32.mxu0 %vm410_vm1, %v384_v8  ;;  %v347_v35 = vld [vmem:[%s3988_s17 + $0x8] sm:$0xff]  ;;  %v348_v36 = vld [vmem:[%s3988_s17 + $0x10] sm:$0xff]  ;;  %v349_v37 = vld [vmem:[%s3988_s17 + $0x18] sm:$0xff] }
  0x1e   : > { %v350_v38 = vld [vmem:[%s3988_s17 + $0x20] sm:$0xff]  ;;  %v351_v39 = vld [vmem:[%s3988_s17 + $0x28] sm:$0xff]  ;;  %v352_v40 = vld [vmem:[%s3988_s17 + $0x30] sm:$0xff] }
  0x1f   : > { %3406 = vmatmul.mubr.msk.f32.gmra.mrb[4].mxu1 %vm410_vm1, %v403_v20  ;;  %v353_v41 = vld [vmem:[%s3988_s17 + $0x38] sm:$0xff]  ;;  %v354_v42 = vld [vmem:[%s3988_s17 + $0x40] sm:$0xff]  ;;  %v355_v43 = vld [vmem:[%s3988_s17 + $0x48] sm:$0xff] }
  0x20   : > { %3379 = vmatmul.mubr.msk.f32.gmra.mrb[6].mxu0 %vm410_vm1, %v385_v9  ;;  %3408 = vmatprep.mubr.msk.f32.mxu1 %vm410_vm1, %v404_v21  ;;  %v356_v44 = vld [vmem:[%s3988_s17 + $0x50] sm:$0xff]  ;;  %v357_v45 = vld [vmem:[%s3988_s17 + $0x58] sm:$0xff]  ;;  %v358_v46 = vld [vmem:[%s3988_s17 + $0x60] sm:$0xff] }
  0x21   : > { %3381 = vmatprep.mubr.msk.f32.mxu0 %vm410_vm1, %v386_v10  ;;  %v359_v47 = vld [vmem:[%s3988_s17 + $0x68] sm:$0xff]  ;;  %v360_v48 = vld [vmem:[%s3988_s17 + $0x70] sm:$0xff]  ;;  %v361_v49 = vld [vmem:[%s3988_s17 + $0x78] sm:$0xff] }
  0x22   : > { %v362_v50 = vld [vmem:[%s3988_s17 + $0x80] sm:$0xff]  ;;  %v363_v51 = vld [vmem:[%s3988_s17 + $0x88] sm:$0xff]  ;;  %v364_v52 = vld [vmem:[%s3988_s17 + $0x90] sm:$0xff] }
  0x23   : > { %3409 = vmatmul.mubr.msk.f32.gmra.mrb[6].mxu1 %vm410_vm1, %v405_v24  ;;  %v365_v53 = vld [vmem:[%s3988_s17 + $0x98] sm:$0xff]  ;;  %v366_v54 = vld [vmem:[%s3988_s17 + $0xa0] sm:$0xff]  ;;  %v367_v55 = vld [vmem:[%s3988_s17 + $0xa8] sm:$0xff] }
  0x24   : > { %3382 = vmatmul.mubr.msk.f32.gmra.mrb[8].mxu0 %vm410_vm1, %v387_v14  ;;  %3411 = vmatprep.mubr.msk.f32.mxu1 %vm410_vm1, %v406_v25  ;;  %v368_v56 = vld [vmem:[%s3988_s17 + $0xb0] sm:$0xff]  ;;  %v369_v57 = vld [vmem:[%s3988_s17 + $0xb8] sm:$0xff]  ;;  %v370_v58 = vld [vmem:[%s3988_s17 + $0xc0] sm:$0xff] }
  0x25   : > { %3384 = vmatprep.mubr.msk.f32.mxu0 %vm410_vm1, %v388_v15  ;;  %v371_v59 = vld [vmem:[%s3988_s17 + $0xc8] sm:$0xff]  ;;  %v372_v60 = vld [vmem:[%s3988_s17 + $0xd0] sm:$0xff]  ;;  %v373_v61 = vld [vmem:[%s3988_s17 + $0xd8] sm:$0xff] }
  0x26   : > { %v374_v62 = vld [vmem:[%s3988_s17 + $0xe0] sm:$0xff]  ;;  %v375_v63 = vld [vmem:[%s3988_s17 + $0xe8] sm:$0xff]  ;;  %v376_v0 = vld [vmem:[%s3988_s17 + $0xf0] sm:$0xff] }
  0x27   : > { %3412 = vmatmul.mubr.msk.f32.gmra.mrb[8].mxu1 %vm410_vm1, %v407_v28  ;;  %v377_v1 = vld [vmem:[%s3988_s17 + $0xf8] sm:$0xff]  ;;  %v4062_v2 = vld [vmem:[%s5619_s5] sm:$0x3] }
  0x28   : > { %3385 = vmatmul.mubr.msk.f32.gmra.mrb[10].mxu0 %vm410_vm1, %v389_v18  ;;  %3414 = vmatprep.mubr.msk.f32.mxu1 %vm410_vm1, %v408_v29 }
  0x29   : > { %3387 = vmatprep.mubr.msk.f32.mxu0 %vm410_vm1, %v390_v19  ;;  %3468 = vmatpush3.msk.msra.mxu1 %vm1131_vm3, %v4062_v2 }
  0x2a   : > { %3472 = vmatprep.subr.mxu1 %v3852_v3 }
  0x2b   : > { %3415 = vmatmul.mubr.msk.f32.gmra.mrb[10].mxu1 %vm410_vm1, %v409_v32 }
  0x2c   : > { %3388 = vmatmul.mubr.msk.f32.gmra.mrb[12].mxu0 %vm410_vm1, %v391_v22  ;;  %3469 = vmatprep.mubr.msk.f32.mxu1 %vm3853_vm4, %v3852_v3 }
  0x2d   : > { %3390 = vmatprep.mubr.msk.f32.mxu0 %vm410_vm1, %v392_v23 }
  0x30   : > { %3391 = vmatmul.mubr.msk.f32.gmra.mrb[14].mxu0 %vm410_vm1, %v393_v26 }
  0x31   : > { %3393 = vmatprep.mubr.msk.f32.mxu0 %vm410_vm1, %v394_v27 }
  0x34   : > { %3394 = vmatmul.mubr.msk.f32.gmra.mrb[16].mxu0 %vm410_vm1, %v395_v30 }
  0x35   : > { %3396 = vmatprep.mubr.msk.f32.mxu0 %vm410_vm1, %v396_v31 }
  0x38   : > { %3397 = vmatmul.mubr.msk.f32.gmra.mrb[18].mxu0 %vm410_vm1, %v397_v33 }
  0x39   : > { %3419 = vmatprep.mubr.msk.f32.mxu0 %vm736_vm2, %v346_v34 }
  0x3c   : > { %3420 = vmatmul.mubr.msk.f32.vlgmr.msra.gmra.mrb[0].mxu0 %vm736_vm2, %v347_v35 }
  0x3d   : > { %3422 = vmatprep.mubr.msk.f32.mxu0 %vm736_vm2, %v348_v36 }
  0x40   : > { %3423 = vmatmul.mubr.msk.f32.gmra.mrb[2].mxu0 %vm736_vm2, %v349_v37 }
  0x41   : > { %3425 = vmatprep.mubr.msk.f32.mxu0 %vm736_vm2, %v350_v38 }
  0x44   : > { %3426 = vmatmul.mubr.msk.f32.gmra.mrb[4].mxu0 %vm736_vm2, %v351_v39 }
  0x45   : > { %3428 = vmatprep.mubr.msk.f32.mxu0 %vm736_vm2, %v352_v40 }
  0x48   : > { %3429 = vmatmul.mubr.msk.f32.gmra.mrb[6].mxu0 %vm736_vm2, %v353_v41 }
  0x49   : > { %3431 = vmatprep.mubr.msk.f32.mxu0 %vm736_vm2, %v354_v42 }
  0x4c   : > { %3432 = vmatmul.mubr.msk.f32.gmra.mrb[8].mxu0 %vm736_vm2, %v355_v43 }
  0x4d   : > { %3434 = vmatprep.mubr.msk.f32.mxu0 %vm736_vm2, %v356_v44 }
  0x50   : > { %3435 = vmatmul.mubr.msk.f32.gmra.mrb[10].mxu0 %vm736_vm2, %v357_v45 }
  0x51   : > { %3437 = vmatprep.mubr.msk.f32.mxu0 %vm736_vm2, %v358_v46 }
  0x54   : > { %3438 = vmatmul.mubr.msk.f32.gmra.mrb[12].mxu0 %vm736_vm2, %v359_v47 }
  0x55   : > { %3440 = vmatprep.mubr.msk.f32.mxu0 %vm736_vm2, %v360_v48 }
  0x58   : > { %3441 = vmatmul.mubr.msk.f32.gmra.mrb[14].mxu0 %vm736_vm2, %v361_v49 }
  0x59   : > { %3443 = vmatprep.mubr.msk.f32.mxu0 %vm736_vm2, %v362_v50 }
  0x5c   : > { %3444 = vmatmul.mubr.msk.f32.gmra.mrb[16].mxu0 %vm736_vm2, %v363_v51 }
  0x5d   : > { %3446 = vmatprep.mubr.msk.f32.mxu0 %vm736_vm2, %v364_v52 }
  0x60   : > { %3447 = vmatmul.mubr.msk.f32.gmra.mrb[18].mxu0 %vm736_vm2, %v365_v53 }
  0x61   : > { %3449 = vmatprep.mubr.msk.f32.mxu0 %vm736_vm2, %v366_v54 }
  0x64   : > { %3450 = vmatmul.mubr.msk.f32.gmra.mrb[20].mxu0 %vm736_vm2, %v367_v55 }
  0x65   : > { %3452 = vmatprep.mubr.msk.f32.mxu0 %vm736_vm2, %v368_v56 }
  0x68   : > { %3453 = vmatmul.mubr.msk.f32.gmra.mrb[22].mxu0 %vm736_vm2, %v369_v57 }
  0x69   : > { %3455 = vmatprep.mubr.msk.f32.mxu0 %vm736_vm2, %v370_v58 }
  0x6c   : > { %3456 = vmatmul.mubr.msk.f32.gmra.mrb[24].mxu0 %vm736_vm2, %v371_v59 }
  0x6d   : > { %3458 = vmatprep.mubr.msk.f32.mxu0 %vm736_vm2, %v372_v60 }
  0x70   : > { %3459 = vmatmul.mubr.msk.f32.gmra.mrb[26].mxu0 %vm736_vm2, %v373_v61 }
  0x71   : > { %3461 = vmatprep.mubr.msk.f32.mxu0 %vm736_vm2, %v374_v62 }
  0x74   : > { %3462 = vmatmul.mubr.msk.f32.gmra.mrb[28].mxu0 %vm736_vm2, %v375_v63 }
  0x75   : > { %3464 = vmatprep.mubr.msk.f32.mxu0 %vm736_vm2, %v376_v0 }
  0x78   : > { %3465 = vmatmul.mubr.msk.f32.gmra.mrb[30].mxu0 %vm736_vm2, %v377_v1 }
  0xea   : > { %v4070_v4 = vpop.f32.mrb[0].mxu1 }
  0xeb   : > { %v4072_v5 = vpop.f32.mrb[1].mxu1 }
  0xee   : > { %v4074_v6 = vpop.f32.mrb[2].mxu1 }
  0xef   : > { %v4076_v7 = vpop.f32.mrb[3].mxu1 }
  0xf2   : > { %v4078_v8 = vpop.f32.mrb[4].mxu1 }
  0xf3   : > { %v4080_v9 = vpop.f32.mrb[5].mxu1 }
  0xf6   : > { %v4082_v10 = vpop.f32.mrb[6].mxu1 }
  0xf7   : > { %v4084_v11 = vpop.f32.mrb[7].mxu1 }
  0xfa   : > { %v4086_v12 = vpop.f32.mrb[8].mxu1 }
  0xfb   : > { %v4088_v13 = vpop.f32.mrb[9].mxu1 }
  0xfe   : > { %v4090_v14 = vpop.f32.mrb[10].mxu1 }
  0xff   : > { %v4092_v15 = vpop.f32.mrb[11].mxu1 }
 0x10f   : > { %v4094_v16 = vpop.f32.mrb[0].mxu0 }
 0x110   : > { %v1060_v17 = vsel %vm1058_vm5, %v4094_v16, 0.0  ;;  %v1207_v18 = vmul.f32 %v4094_v16, %v4094_v16  ;;  %2839 = vrot.lane.b32.xlu0 %v4094_v16, %s3854_s20  ;;  %v4102_v19 = vpop.f32.mrb[1].mxu0 }
 0x111   : > { %v1059_v20 = vsel %vm1058_vm5, %v4102_v19, 0.0  ;;  %v1206_v21 = vmul.f32 %v4102_v19, %v4102_v19 }
 0x112   : > { %v1239_v22 = vsel %vm1058_vm5, %v1207_v18, 0.0  ;;  %v1061_v23 = vadd.f32 %v1060_v17, %v1059_v20 }
 0x113   : > { %v1238_v24 = vsel %vm1058_vm5, %v1206_v21, 0.0  ;;  %v4110_v25 = vpop.f32.mrb[2].mxu0 }
 0x114   : > { %v1240_v26 = vadd.f32 %v1239_v22, %v1238_v24  ;;  %2837 = vrot.lane.b32.xlu0 %v4102_v19, %s3854_s20  ;;  %2843 = vrot.lane.b32.xlu1 %v4110_v25, %s3854_s20  ;;  %v4116_v27 = vpop.f32.mrb[3].mxu0  ;;  %v1209_v28 = vmul.f32 %v4110_v25, %v4110_v25  ;;  %v1064_v32 = vsel %vm1058_vm5, %v4110_v25, 0.0 }
 0x115   : > { %v1062_v29 = vsel %vm1058_vm5, %v4116_v27, 0.0  ;;  %v1208_v30 = vmul.f32 %v4116_v27, %v4116_v27 }
 0x116   : > { %v1063_v31 = vadd.f32 %v1062_v29, %v1061_v23  ;;  %v1243_v38 = vsel %vm1058_vm5, %v1209_v28, 0.0 }
 0x117   : > { %v1241_v33 = vsel %vm1058_vm5, %v1208_v30, 0.0  ;;  %v4127_v34 = vpop.f32.mrb[4].mxu0 }
 0x118   : > { %v1242_v35 = vadd.f32 %v1241_v33, %v1240_v26  ;;  %2841 = vrot.lane.b32.xlu1 %v4116_v27, %s3854_s20  ;;  %v4131_v36 = vpop.f32.mrb[5].mxu0  ;;  %v1065_v37 = vadd.f32 %v1064_v32, %v1063_v31  ;;  %v1211_v39 = vmul.f32 %v4127_v34, %v4127_v34  ;;  %v1068_v44 = vsel %vm1058_vm5, %v4127_v34, 0.0 }
 0x119   : > { %v1066_v40 = vsel %vm1058_vm5, %v4131_v36, 0.0  ;;  %v1210_v41 = vmul.f32 %v4131_v36, %v4131_v36  ;;  %2845 = vrot.lane.b32.xlu0 %v4131_v36, %s3854_s20 }
 0x11a   : > { %v1067_v42 = vadd.f32 %v1066_v40, %v1065_v37  ;;  %v1244_v43 = vadd.f32 %v1243_v38, %v1242_v35  ;;  %v1247_v50 = vsel %vm1058_vm5, %v1211_v39, 0.0 }
 0x11b   : > { %v1245_v45 = vsel %vm1058_vm5, %v1210_v41, 0.0  ;;  %v4145_v46 = vpop.f32.mrb[6].mxu0 }
 0x11c   : > { %v1246_v47 = vadd.f32 %v1245_v45, %v1244_v43  ;;  %2847 = vrot.lane.b32.xlu1 %v4127_v34, %s3854_s20  ;;  %v4149_v48 = vpop.f32.mrb[7].mxu0  ;;  %v1069_v49 = vadd.f32 %v1068_v44, %v1067_v42  ;;  %v1213_v51 = vmul.f32 %v4145_v46, %v4145_v46  ;;  %v1072_v56 = vsel %vm1058_vm5, %v4145_v46, 0.0 }
 0x11d   : > { %v1070_v52 = vsel %vm1058_vm5, %v4149_v48, 0.0  ;;  %v1212_v53 = vmul.f32 %v4149_v48, %v4149_v48  ;;  %2849 = vrot.lane.b32.xlu0 %v4149_v48, %s3854_s20 }
 0x11e   : > { %v1071_v54 = vadd.f32 %v1070_v52, %v1069_v49  ;;  %v1248_v55 = vadd.f32 %v1247_v50, %v1246_v47  ;;  %v1251_v62 = vsel %vm1058_vm5, %v1213_v51, 0.0 }
 0x11f   : > { %v1249_v57 = vsel %vm1058_vm5, %v1212_v53, 0.0  ;;  %v4163_v58 = vpop.f32.mrb[8].mxu0 }
 0x120   : > { %v1250_v59 = vadd.f32 %v1249_v57, %v1248_v55  ;;  %2851 = vrot.lane.b32.xlu1 %v4145_v46, %s3854_s20  ;;  %v4167_v60 = vpop.f32.mrb[9].mxu0  ;;  %v1073_v61 = vadd.f32 %v1072_v56, %v1071_v54  ;;  %v1215_v63 = vmul.f32 %v4163_v58, %v4163_v58  ;;  %v1076_v20 = vsel %vm1058_vm5, %v4163_v58, 0.0 }
 0x121   : > { %v1074_v0 = vsel %vm1058_vm5, %v4167_v60, 0.0  ;;  %v1214_v1 = vmul.f32 %v4167_v60, %v4167_v60  ;;  %2853 = vrot.lane.b32.xlu0 %v4167_v60, %s3854_s20 }
 0x122   : > { %v1075_v17 = vadd.f32 %v1074_v0, %v1073_v61  ;;  %v1252_v18 = vadd.f32 %v1251_v62, %v1250_v59  ;;  %v1255_v28 = vsel %vm1058_vm5, %v1215_v63, 0.0 }
 0x123   : > { %v1253_v21 = vsel %vm1058_vm5, %v1214_v1, 0.0  ;;  %v4181_v22 = vpop.f32.mrb[10].mxu0 }
 0x124   : > { %v1254_v23 = vadd.f32 %v1253_v21, %v1252_v18  ;;  %2855 = vrot.lane.b32.xlu1 %v4163_v58, %s3854_s20  ;;  %v4185_v24 = vpop.f32.mrb[11].mxu0  ;;  %v1077_v26 = vadd.f32 %v1076_v20, %v1075_v17  ;;  %v1217_v29 = vmul.f32 %v4181_v22, %v4181_v22  ;;  %v1080_v35 = vsel %vm1058_vm5, %v4181_v22, 0.0 }
 0x125   : > { %v1078_v30 = vsel %vm1058_vm5, %v4185_v24, 0.0  ;;  %v1216_v31 = vmul.f32 %v4185_v24, %v4185_v24  ;;  %2857 = vrot.lane.b32.xlu0 %v4185_v24, %s3854_s20 }
 0x126   : > { %v1079_v32 = vadd.f32 %v1078_v30, %v1077_v26  ;;  %v1256_v33 = vadd.f32 %v1255_v28, %v1254_v23  ;;  %v1259_v42 = vsel %vm1058_vm5, %v1217_v29, 0.0 }
 0x127   : > { %v1257_v37 = vsel %vm1058_vm5, %v1216_v31, 0.0  ;;  %v4199_v38 = vpop.f32.mrb[12].mxu0 }
 0x128   : > { %v1258_v39 = vadd.f32 %v1257_v37, %v1256_v33  ;;  %2859 = vrot.lane.b32.xlu1 %v4181_v22, %s3854_s20  ;;  %v4203_v40 = vpop.f32.mrb[13].mxu0  ;;  %v1081_v41 = vadd.f32 %v1080_v35, %v1079_v32  ;;  %v1219_v43 = vmul.f32 %v4199_v38, %v4199_v38  ;;  %v1084_v50 = vsel %vm1058_vm5, %v4199_v38, 0.0 }
 0x129   : > { %v1082_v44 = vsel %vm1058_vm5, %v4203_v40, 0.0  ;;  %v1218_v45 = vmul.f32 %v4203_v40, %v4203_v40  ;;  %2861 = vrot.lane.b32.xlu0 %v4203_v40, %s3854_s20 }
 0x12a   : > { %v1083_v47 = vadd.f32 %v1082_v44, %v1081_v41  ;;  %v1260_v49 = vadd.f32 %v1259_v42, %v1258_v39  ;;  %v1263_v56 = vsel %vm1058_vm5, %v1219_v43, 0.0 }
 0x12b   : > { %v1261_v51 = vsel %vm1058_vm5, %v1218_v45, 0.0  ;;  %v4217_v52 = vpop.f32.mrb[14].mxu0 }
 0x12c   : > { %v1262_v53 = vadd.f32 %v1261_v51, %v1260_v49  ;;  %2863 = vrot.lane.b32.xlu1 %v4199_v38, %s3854_s20  ;;  %v4221_v54 = vpop.f32.mrb[15].mxu0  ;;  %v1085_v55 = vadd.f32 %v1084_v50, %v1083_v47  ;;  %v1221_v57 = vmul.f32 %v4217_v52, %v4217_v52  ;;  %v1088_v0 = vsel %vm1058_vm5, %v4217_v52, 0.0 }
 0x12d   : > { %v1086_v59 = vsel %vm1058_vm5, %v4221_v54, 0.0  ;;  %v1220_v61 = vmul.f32 %v4221_v54, %v4221_v54  ;;  %2865 = vrot.lane.b32.xlu0 %v4221_v54, %s3854_s20 }
 0x12e   : > { %v1087_v62 = vadd.f32 %v1086_v59, %v1085_v55  ;;  %v1264_v63 = vadd.f32 %v1263_v56, %v1262_v53  ;;  %v1267_v23 = vsel %vm1058_vm5, %v1221_v57, 0.0 }
 0x12f   : > { %v1265_v1 = vsel %vm1058_vm5, %v1220_v61, 0.0  ;;  %v4235_v17 = vpop.f32.mrb[16].mxu0 }
 0x130   : > { %v1266_v18 = vadd.f32 %v1265_v1, %v1264_v63  ;;  %2867 = vrot.lane.b32.xlu1 %v4217_v52, %s3854_s20  ;;  %v4239_v20 = vpop.f32.mrb[17].mxu0  ;;  %v1089_v21 = vadd.f32 %v1088_v0, %v1087_v62  ;;  %v1223_v26 = vmul.f32 %v4235_v17, %v4235_v17  ;;  %v1092_v32 = vsel %vm1058_vm5, %v4235_v17, 0.0 }
 0x131   : > { %v1090_v28 = vsel %vm1058_vm5, %v4239_v20, 0.0  ;;  %v1222_v29 = vmul.f32 %v4239_v20, %v4239_v20  ;;  %2869 = vrot.lane.b32.xlu0 %v4239_v20, %s3854_s20 }
 0x132   : > { %v1091_v30 = vadd.f32 %v1090_v28, %v1089_v21  ;;  %v1268_v31 = vadd.f32 %v1267_v23, %v1266_v18  ;;  %v1271_v42 = vsel %vm1058_vm5, %v1223_v26, 0.0 }
 0x133   : > { %v1269_v33 = vsel %vm1058_vm5, %v1222_v29, 0.0  ;;  %v4253_v35 = vpop.f32.mrb[18].mxu0 }
 0x134   : > { %v1270_v37 = vadd.f32 %v1269_v33, %v1268_v31  ;;  %2871 = vrot.lane.b32.xlu1 %v4235_v17, %s3854_s20  ;;  %v4257_v39 = vpop.f32.mrb[19].mxu0  ;;  %v1093_v41 = vadd.f32 %v1092_v32, %v1091_v30  ;;  %v1225_v43 = vmul.f32 %v4253_v35, %v4253_v35  ;;  %v1096_v50 = vsel %vm1058_vm5, %v4253_v35, 0.0 }
 0x135   : > { %v1094_v44 = vsel %vm1058_vm5, %v4257_v39, 0.0  ;;  %v1224_v45 = vmul.f32 %v4257_v39, %v4257_v39  ;;  %2873 = vrot.lane.b32.xlu0 %v4257_v39, %s3854_s20 }
 0x136   : > { %v1095_v47 = vadd.f32 %v1094_v44, %v1093_v41  ;;  %v1272_v49 = vadd.f32 %v1271_v42, %v1270_v37  ;;  %v1275_v61 = vsel %vm1058_vm5, %v1225_v43, 0.0 }
 0x137   : > { %v1273_v51 = vsel %vm1058_vm5, %v1224_v45, 0.0  ;;  %v3451_v53 = vpop.f32.mrb[20].mxu0 }
 0x138   : > { %v1097_v55 = vadd.f32 %v1096_v50, %v1095_v47  ;;  %v1274_v56 = vadd.f32 %v1273_v51, %v1272_v49  ;;  %v4272_v57 = vadd.f32 %v3451_v53, %v4070_v4  ;;  %2875 = vrot.lane.b32.xlu1 %v4253_v35, %s3854_s20  ;;  %v999_v59 = vpop.f32.mrb[21].mxu0 }
 0x139   : > { %v4278_v62 = vadd.f32 %v999_v59, %v4072_v5 }
 0x13a   : > { %v1276_v63 = vadd.f32 %v1275_v61, %v1274_v56  ;;  %v1227_v0 = vmul.f32 %v4272_v57, %v4272_v57  ;;  %v1100_v26 = vsel %vm1058_vm5, %v4272_v57, 0.0 }
 0x13b   : > { %v1098_v1 = vsel %vm1058_vm5, %v4278_v62, 0.0  ;;  %v1226_v4 = vmul.f32 %v4278_v62, %v4278_v62  ;;  %v3454_v18 = vpop.f32.mrb[22].mxu0  ;;  %2877 = vrot.lane.b32.xlu0 %v4278_v62, %s3854_s20 }
 0x13c   : > { %v1099_v21 = vadd.f32 %v1098_v1, %v1097_v55  ;;  %v4289_v23 = vadd.f32 %v3454_v18, %v4074_v6  ;;  %2879 = vrot.lane.b32.xlu1 %v4272_v57, %s3854_s20  ;;  %v1009_v5 = vpop.f32.mrb[23].mxu0  ;;  %v1279_v32 = vsel %vm1058_vm5, %v1227_v0, 0.0 }
 0x13d   : > { %v1277_v28 = vsel %vm1058_vm5, %v1226_v4, 0.0  ;;  %v4297_v29 = vadd.f32 %v1009_v5, %v4076_v7 }
 0x13e   : > { %v1278_v30 = vadd.f32 %v1277_v28, %v1276_v63  ;;  %v1101_v31 = vadd.f32 %v1100_v26, %v1099_v21  ;;  %v1229_v6 = vmul.f32 %v4289_v23, %v4289_v23  ;;  %v1104_v45 = vsel %vm1058_vm5, %v4289_v23, 0.0 }
 0x13f   : > { %v1102_v33 = vsel %vm1058_vm5, %v4297_v29, 0.0  ;;  %v1228_v37 = vmul.f32 %v4297_v29, %v4297_v29  ;;  %v3457_v41 = vpop.f32.mrb[24].mxu0  ;;  %2881 = vrot.lane.b32.xlu0 %v4297_v29, %s3854_s20 }
 0x140   : > { %v1103_v42 = vadd.f32 %v1102_v33, %v1101_v31  ;;  %v1280_v7 = vadd.f32 %v1279_v32, %v1278_v30  ;;  %v4309_v43 = vadd.f32 %v3457_v41, %v4078_v8  ;;  %2883 = vrot.lane.b32.xlu1 %v4289_v23, %s3854_s20  ;;  %v1019_v44 = vpop.f32.mrb[25].mxu0  ;;  %v1283_v53 = vsel %vm1058_vm5, %v1229_v6, 0.0 }
 0x141   : > { %v1281_v47 = vsel %vm1058_vm5, %v1228_v37, 0.0  ;;  %v4317_v49 = vadd.f32 %v1019_v44, %v4080_v9 }
 0x142   : > { %v1282_v50 = vadd.f32 %v1281_v47, %v1280_v7  ;;  %v1105_v51 = vadd.f32 %v1104_v45, %v1103_v42  ;;  %v1231_v8 = vmul.f32 %v4309_v43, %v4309_v43  ;;  %v1108_v1 = vsel %vm1058_vm5, %v4309_v43, 0.0 }
 0x143   : > { %v1106_v55 = vsel %vm1058_vm5, %v4317_v49, 0.0  ;;  %v1230_v56 = vmul.f32 %v4317_v49, %v4317_v49  ;;  %v3460_v59 = vpop.f32.mrb[26].mxu0  ;;  %2885 = vrot.lane.b32.xlu0 %v4317_v49, %s3854_s20 }
 0x144   : > { %v1107_v61 = vadd.f32 %v1106_v55, %v1105_v51  ;;  %v1284_v9 = vadd.f32 %v1283_v53, %v1282_v50  ;;  %v4329_v63 = vadd.f32 %v3460_v59, %v4082_v10  ;;  %2887 = vrot.lane.b32.xlu1 %v4309_v43, %s3854_s20  ;;  %v1029_v0 = vpop.f32.mrb[27].mxu0  ;;  %v1287_v26 = vsel %vm1058_vm5, %v1231_v8, 0.0 }
 0x145   : > { %v1285_v4 = vsel %vm1058_vm5, %v1230_v56, 0.0  ;;  %v4337_v18 = vadd.f32 %v1029_v0, %v4084_v11 }
 0x146   : > { %v1286_v21 = vadd.f32 %v1285_v4, %v1284_v9  ;;  %v1109_v5 = vadd.f32 %v1108_v1, %v1107_v61  ;;  %v1233_v10 = vmul.f32 %v4329_v63, %v4329_v63  ;;  %v1112_v37 = vsel %vm1058_vm5, %v4329_v63, 0.0 }
 0x147   : > { %v1110_v28 = vsel %vm1058_vm5, %v4337_v18, 0.0  ;;  %v1232_v30 = vmul.f32 %v4337_v18, %v4337_v18  ;;  %v3463_v31 = vpop.f32.mrb[28].mxu0  ;;  %2889 = vrot.lane.b32.xlu0 %v4337_v18, %s3854_s20 }
 0x148   : > { %v1111_v32 = vadd.f32 %v1110_v28, %v1109_v5  ;;  %v1288_v11 = vadd.f32 %v1287_v26, %v1286_v21  ;;  %v4349_v6 = vadd.f32 %v3463_v31, %v4086_v12  ;;  %2891 = vrot.lane.b32.xlu1 %v4329_v63, %s3854_s20  ;;  %v1039_v33 = vpop.f32.mrb[29].mxu0  ;;  %v1291_v45 = vsel %vm1058_vm5, %v1233_v10, 0.0 }
 0x149   : > { %v1289_v41 = vsel %vm1058_vm5, %v1232_v30, 0.0  ;;  %v4357_v42 = vadd.f32 %v1039_v33, %v4088_v13 }
 0x14a   : > { %v1290_v7 = vadd.f32 %v1289_v41, %v1288_v11  ;;  %v1113_v44 = vadd.f32 %v1112_v37, %v1111_v32  ;;  %v1235_v12 = vmul.f32 %v4349_v6, %v4349_v6  ;;  %v1116_v56 = vsel %vm1058_vm5, %v4349_v6, 0.0 }
 0x14b   : > { %v1114_v47 = vsel %vm1058_vm5, %v4357_v42, 0.0  ;;  %v1234_v50 = vmul.f32 %v4357_v42, %v4357_v42  ;;  %v3466_v51 = vpop.f32.mrb[30].mxu0  ;;  %2893 = vrot.lane.b32.xlu0 %v4357_v42, %s3854_s20 }
 0x14c   : > { %v1115_v53 = vadd.f32 %v1114_v47, %v1113_v44  ;;  %v1292_v13 = vadd.f32 %v1291_v45, %v1290_v7  ;;  %v4369_v8 = vadd.f32 %v3466_v51, %v4090_v14  ;;  %2895 = vrot.lane.b32.xlu1 %v4349_v6, %s3854_s20  ;;  %v1049_v55 = vpop.f32.mrb[31].mxu0  ;;  %v1295_v1 = vsel %vm1058_vm5, %v1235_v12, 0.0 }
 0x14d   : > { %v1293_v59 = vsel %vm1058_vm5, %v1234_v50, 0.0  ;;  %v4377_v61 = vadd.f32 %v1049_v55, %v4092_v15  ;;  %v1383_v55 = vlaneseq }
 0x14e   : > { %v1294_v9 = vadd.f32 %v1293_v59, %v1292_v13  ;;  %v1117_v0 = vadd.f32 %v1116_v56, %v1115_v53  ;;  %v1237_v14 = vmul.f32 %v4369_v8, %v4369_v8  ;;  %v1120_v15 = vsel %vm1058_vm5, %v4369_v8, 0.0  ;;  %v345_v13 = vld [vmem:[%s5621_s7] sm:$0x3] }
 0x14f   : > { %v1118_v4 = vsel %vm1058_vm5, %v4377_v61, 0.0  ;;  %v1236_v21 = vmul.f32 %v4377_v61, %v4377_v61  ;;  %2897 = vrot.lane.b32.xlu0 %v4377_v61, %s3854_s20  ;;  %v4406_v56 = vshrl.u32 %v1383_v55, 7 }
 0x150   : > { %v1119_v5 = vadd.f32 %v1118_v4, %v1117_v0  ;;  %v1296_v26 = vadd.f32 %v1295_v1, %v1294_v9  ;;  %2899 = vrot.lane.b32.xlu1 %v4369_v8, %s3854_s20  ;;  %v1299_v31 = vsel %vm1058_vm5, %v1237_v14, 0.0 }
 0x151   : > { %v1297_v10 = vsel %vm1058_vm5, %v1236_v21, 0.0 }
 0x152   : > { %v1121_v28 = vadd.f32 %v1120_v15, %v1119_v5  ;;  %v1298_v30 = vadd.f32 %v1297_v10, %v1296_v26 }
 0x154   : > { %v1122_v32 = vrot.slane %v1121_v28, 4  ;;  %v1300_v11 = vadd.f32 %v1299_v31, %v1298_v30 }
 0x156   : > { %v1123_v33 = vadd.f32 %v1122_v32, %v1121_v28  ;;  %v1301_v37 = vrot.slane %v1300_v11, 4 }
 0x158   : > { %v1124_v41 = vrot.slane %v1123_v33, 2  ;;  %v1302_v7 = vadd.f32 %v1301_v37, %v1300_v11 }
 0x15a   : > { %v1125_v44 = vadd.f32 %v1124_v41, %v1123_v33  ;;  %v1303_v45 = vrot.slane %v1302_v7, 2 }
 0x15c   : > { %v1126_v12 = vrot.slane %v1125_v44, 1  ;;  %v1304_v47 = vadd.f32 %v1303_v45, %v1302_v7 }
 0x15e   : > { %v1127_v50 = vadd.f32 %v1126_v12, %v1125_v44  ;;  %v1305_v51 = vrot.slane %v1304_v47, 1 }
 0x160   : > { %3470 = vmatmul.mubr.msk.f32.vlgmr.msra.gmra.mrb[12].mxu1 %vm1058_vm5, %v1127_v50  ;;  %v1306_v53 = vadd.f32 %v1305_v51, %v1304_v47 }
 0x161   : > { %3473 = vmatpush3.msk.msra.mxu1 %vm1131_vm3, %v4062_v2  ;;  %3474 = vmatprep.mubr.msk.f32.mxu1 %vm3853_vm4, %v3852_v3  ;;  %v4409_v2 = vsub.s32 0, %v4406_v56 }
 0x162   : > { %3477 = vmatprep.subr.msk.mxu1 %vm1131_vm3, %v345_v13 }
 0x164   : > { %3475 = vmatmul.mubr.msk.f32.vlgmr.msra.gmra.mrb[14].mxu1 %vm1058_vm5, %v1306_v53 }
 0x165   : > { %3478 = vmatpush3.msk.msra.mxu1 %vm1131_vm3, %v345_v13 }
 0x166   : > { %3527 = vmatprep.subr.mxu1 %v3852_v3 }
 0x233   : > { %v1201_v59 = vpop.f32.mrb[12].mxu1 }
 0x234   : > { %v1205_v9 = vmul.f32 0.00390625, %v1201_v59  ;;  %v3471_v0 = vpop.f32.mrb[13].mxu1 }
 0x236   : > { %v4412_v1 = vrot.slane %v1205_v9, %v4409_v2  ;;  %v1381_v31 = vmul.f32 %v1205_v9, %v1205_v9 }
 0x237   : > { %v1376_v14 = vpop.f32.mrb[14].mxu1 }
 0x238   : > { %v1387_v4 = vsub.f32 %v4102_v19, %v4412_v1  ;;  %v1388_v21 = vsub.f32 %v4094_v16, %v4412_v1  ;;  %v1389_v5 = vsub.f32 %v4116_v27, %v4412_v1  ;;  %v1390_v26 = vsub.f32 %v4110_v25, %v4412_v1  ;;  %v3476_v15 = vpop.f32.mrb[15].mxu1 }
 0x239   : > { %v1391_v10 = vsub.f32 %v4131_v36, %v4412_v1  ;;  %v1392_v28 = vsub.f32 %v4127_v34, %v4412_v1  ;;  %v1393_v30 = vsub.f32 %v4149_v48, %v4412_v1  ;;  %v1394_v19 = vsub.f32 %v4145_v46, %v4412_v1 }
 0x23a   : > { %v1395_v16 = vsub.f32 %v4167_v60, %v4412_v1  ;;  %v1396_v27 = vsub.f32 %v4163_v58, %v4412_v1  ;;  %v1397_v25 = vsub.f32 %v4185_v24, %v4412_v1  ;;  %v1398_v36 = vsub.f32 %v4181_v22, %v4412_v1 }
 0x23b   : > { %v1399_v34 = vsub.f32 %v4203_v40, %v4412_v1  ;;  %v1400_v48 = vsub.f32 %v4199_v38, %v4412_v1  ;;  %v1401_v46 = vsub.f32 %v4221_v54, %v4412_v1  ;;  %v1402_v60 = vsub.f32 %v4217_v52, %v4412_v1 }
 0x23c   : > { %v1403_v58 = vsub.f32 %v4239_v20, %v4412_v1  ;;  %v1404_v24 = vsub.f32 %v4235_v17, %v4412_v1  ;;  %v1405_v22 = vsub.f32 %v4257_v39, %v4412_v1  ;;  %v1406_v40 = vsub.f32 %v4253_v35, %v4412_v1 }
 0x23d   : > { %v1380_v38 = vmul.f32 0.00390625, %v1376_v14  ;;  %v1495_v54 = vsub.s32 1, %v4406_v56  ;;  %v1407_v52 = vsub.f32 %v4278_v62, %v4412_v1  ;;  %v1408_v17 = vsub.f32 %v4272_v57, %v4412_v1  ;;  %v344_v14 = vld [vmem:[%s5620_s6] sm:$0xf] }
 0x23e   : > { %v1409_v39 = vsub.f32 %v4297_v29, %v4412_v1  ;;  %v1410_v35 = vsub.f32 %v4289_v23, %v4412_v1  ;;  %v1411_v33 = vsub.f32 %v4317_v49, %v4412_v1  ;;  %v1412_v37 = vsub.f32 %v4309_v43, %v4412_v1 }
 0x23f   : > { %v1382_v32 = vsub.f32 %v1380_v38, %v1381_v31  ;;  %v1413_v41 = vsub.f32 %v4337_v18, %v4412_v1  ;;  %v1414_v62 = vsub.f32 %v4329_v63, %v4412_v1  ;;  %v1415_v29 = vsub.f32 %v4357_v42, %v4412_v1 }
 0x240   : > { %v1416_v23 = vsub.f32 %v4349_v6, %v4412_v1  ;;  %v1417_v49 = vsub.f32 %v4377_v61, %v4412_v1  ;;  %v1418_v43 = vsub.f32 %v4369_v8, %v4412_v1 }
 0x241   : > { %v1419_v11 = vadd.f32 1e-05, %v1382_v32 }
 0x243   : > { %3582 = vrsqrt.f32 %v1419_v11 }
 0x24d   : > { %v3583_v20 = vpop.eup %3582 }
 0x24e   : > { %v1424_v57 = vrot.slane %v3583_v20, %v4409_v2 }
 0x250   : > { %v1425_v7 = vmul.f32 %v1424_v57, %v1387_v4  ;;  %v1426_v44 = vmul.f32 %v1424_v57, %v1388_v21  ;;  %v1427_v18 = vmul.f32 %v1424_v57, %v1389_v5  ;;  %v1428_v45 = vmul.f32 %v1424_v57, %v1390_v26 }
 0x251   : > { %v1429_v12 = vmul.f32 %v1424_v57, %v1391_v10  ;;  %v1430_v63 = vmul.f32 %v1424_v57, %v1392_v28  ;;  %v1431_v47 = vmul.f32 %v1424_v57, %v1393_v30  ;;  %v1432_v50 = vmul.f32 %v1424_v57, %v1394_v19 }
 0x252   : > { %v1433_v51 = vmul.f32 %v1424_v57, %v1395_v16  ;;  %v1434_v53 = vmul.f32 %v1424_v57, %v1396_v27  ;;  %v1435_v42 = vmul.f32 %v1424_v57, %v1397_v25  ;;  %v1436_v13 = vmul.f32 %v1424_v57, %v1398_v36 }
 0x253   : > { %v1437_v55 = vmul.f32 %v1424_v57, %v1399_v34  ;;  %v4480_v6 = vmul.f32 %v1424_v57, %v1400_v48  ;;  %v4482_v59 = vmul.f32 %v1424_v57, %v1401_v46  ;;  %v4484_v61 = vmul.f32 %v1424_v57, %v1402_v60 }
 0x254   : > { %v4486_v8 = vmul.f32 %v1424_v57, %v1403_v58  ;;  %v4488_v9 = vmul.f32 %v1424_v57, %v1404_v24  ;;  %v4490_v0 = vmul.f32 %v1424_v57, %v1405_v22  ;;  %v4492_v1 = vmul.f32 %v1424_v57, %v1406_v40 }
 0x255   : > { %v4497_v4 = vmul.f32 %v1424_v57, %v1407_v52  ;;  %v4499_v21 = vmul.f32 %v1424_v57, %v1408_v17  ;;  %v4501_v5 = vmul.f32 %v1424_v57, %v1409_v39  ;;  %v4503_v26 = vmul.f32 %v1424_v57, %v1410_v35 }
 0x256   : > { %v4505_v15 = vmul.f32 %v1424_v57, %v1411_v33  ;;  %v4507_v10 = vmul.f32 %v1424_v57, %v1412_v37  ;;  %v4509_v28 = vmul.f32 %v1424_v57, %v1413_v41  ;;  %v4511_v30 = vmul.f32 %v1424_v57, %v1414_v62 }
 0x257   : > { %v4513_v19 = vmul.f32 %v1424_v57, %v1415_v29  ;;  %v4515_v16 = vmul.f32 %v1424_v57, %v1416_v23  ;;  %v4517_v27 = vmul.f32 %v1424_v57, %v1417_v49  ;;  %v4519_v25 = vmul.f32 %v1424_v57, %v1418_v43 }
 0x258   : > { %v4522_v36 = vrot.slane %v344_v14, %v4409_v2  ;;  %v4524_v34 = vrot.slane %v344_v14, %v1495_v54 }
 0x25a   : > { %v1461_v48 = vmul.f32 %v4522_v36, %v1425_v7  ;;  %v1462_v46 = vmul.f32 %v4522_v36, %v1426_v44  ;;  %v1463_v60 = vmul.f32 %v4522_v36, %v1427_v18  ;;  %v1464_v58 = vmul.f32 %v4522_v36, %v1428_v45 }
 0x25b   : > { %v1465_v24 = vmul.f32 %v4522_v36, %v1429_v12  ;;  %v1466_v22 = vmul.f32 %v4522_v36, %v1430_v63  ;;  %v1467_v40 = vmul.f32 %v4522_v36, %v1431_v47  ;;  %v1468_v31 = vmul.f32 %v4522_v36, %v1432_v50 }
 0x25c   : > { %v1469_v38 = vmul.f32 %v4522_v36, %v1433_v51  ;;  %v4536_v32 = vadd.f32 %v4524_v34, %v1462_v46  ;;  %v4539_v11 = vadd.f32 %v4524_v34, %v1461_v48  ;;  %v4542_v54 = vadd.f32 %v4524_v34, %v1463_v60 }
 0x25d   : > { %v4545_v52 = vadd.f32 %v4524_v34, %v1464_v58  ;;  %v1470_v20 = vmul.f32 %v4522_v36, %v1434_v53  ;;  %v1471_v17 = vmul.f32 %v4522_v36, %v1435_v42  ;;  %v4550_v39 = vadd.f32 %v4524_v34, %v1465_v24 }
 0x25e   : > { %v4553_v35 = vadd.f32 %v4524_v34, %v1466_v22  ;;  %v3154_v33 = vmul.f32 -1.442695, %v4536_v32  ;;  %v3153_v37 = vmul.f32 -1.442695, %v4539_v11  ;;  %v3155_v41 = vmul.f32 -1.442695, %v4542_v54 }
 0x25f   : > { %v4559_v62 = vadd.f32 %v4524_v34, %v1467_v40  ;;  %v1472_v57 = vmul.f32 %v4522_v36, %v1436_v13  ;;  %v3156_v29 = vmul.f32 -1.442695, %v4545_v52  ;;  %v4564_v23 = vadd.f32 %v4524_v34, %v1468_v31 }
 0x260   : > { %v1473_v49 = vmul.f32 %v4522_v36, %v1437_v55  ;;  %3584 = vpow2.f32 %v3154_v33  ;;  %v3157_v43 = vmul.f32 -1.442695, %v4550_v39  ;;  %v4569_v7 = vadd.f32 %v4524_v34, %v1469_v38 }
 0x261   : > { %3586 = vpow2.f32 %v3153_v37  ;;  %v3158_v44 = vmul.f32 -1.442695, %v4553_v35  ;;  %v4573_v18 = vadd.f32 %v4524_v34, %v1470_v20  ;;  %v3159_v45 = vmul.f32 -1.442695, %v4559_v62 }
 0x262   : > { %3588 = vpow2.f32 %v3155_v41  ;;  %v4577_v12 = vadd.f32 %v4524_v34, %v1471_v17  ;;  %v3160_v63 = vmul.f32 -1.442695, %v4564_v23  ;;  %v4581_v47 = vadd.f32 %v4524_v34, %v1472_v57 }
 0x263   : > { %3590 = vpow2.f32 %v3156_v29  ;;  %v3161_v50 = vmul.f32 -1.442695, %v4569_v7  ;;  %v4585_v51 = vadd.f32 %v4524_v34, %v1473_v49  ;;  %v3162_v53 = vmul.f32 -1.442695, %v4573_v18 }
 0x264   : > { %3592 = vpow2.f32 %v3157_v43  ;;  %v3163_v42 = vmul.f32 -1.442695, %v4577_v12  ;;  %v3164_v13 = vmul.f32 -1.442695, %v4581_v47  ;;  %v1474_v46 = vmul.f32 %v4522_v36, %v4480_v6 }
 0x265   : > { %3594 = vpow2.f32 %v3158_v44  ;;  %v3165_v55 = vmul.f32 -1.442695, %v4585_v51  ;;  %v1475_v60 = vmul.f32 %v4522_v36, %v4482_v59  ;;  %v1476_v22 = vmul.f32 %v4522_v36, %v4484_v61 }
 0x266   : > { %3596 = vpow2.f32 %v3159_v45  ;;  %v1477_v40 = vmul.f32 %v4522_v36, %v4486_v8  ;;  %v1478_v20 = vmul.f32 %v4522_v36, %v4488_v9  ;;  %v1479_v6 = vmul.f32 %v4522_v36, %v4490_v0 }
 0x267   : > { %3598 = vpow2.f32 %v3160_v63  ;;  %v1480_v33 = vmul.f32 %v4522_v36, %v4492_v1  ;;  %v1481_v61 = vmul.f32 %v4522_v36, %v4497_v4  ;;  %v1482_v41 = vmul.f32 %v4522_v36, %v4499_v21 }
 0x268   : > { %3600 = vpow2.f32 %v3161_v50  ;;  %v4610_v57 = vadd.f32 %v4524_v34, %v1474_v46  ;;  %v1483_v29 = vmul.f32 %v4522_v36, %v4501_v5  ;;  %v4616_v1 = vmul.f32 %v4522_v36, %v4503_v26 }
 0x269   : > { %3602 = vpow2.f32 %v3162_v53  ;;  %v4620_v21 = vmul.f32 %v4522_v36, %v4505_v15  ;;  %v4624_v43 = vmul.f32 %v4522_v36, %v4507_v10  ;;  %v4627_v63 = vadd.f32 %v4524_v34, %v1475_v60 }
 0x26a   : > { %v3585_v14 = vpop.eup %3584  ;;  %3604 = vpow2.f32 %v3163_v42  ;;  %v4630_v26 = vadd.f32 %v4524_v34, %v1476_v22  ;;  %v3166_v10 = vmul.f32 -1.442695, %v4610_v57  ;;  %v4638_v53 = vadd.f32 %v4524_v34, %v1477_v40  ;;  %v4652_v22 = vld [vmem:[%s334_s29] ss:$0 sm:$0xff] }
 0x26b   : > { %v3587_v48 = vpop.eup %3586  ;;  %v1626_v58 = vadd.f32 1.0, %v3585_v14  ;;  %3606 = vpow2.f32 %v3164_v13  ;;  %v4644_v14 = vadd.f32 %v4524_v34, %v1479_v6  ;;  %v4647_v60 = vadd.f32 %v4524_v34, %v1480_v33 }
 0x26c   : > { %v3589_v24 = vpop.eup %3588  ;;  %v1625_v31 = vadd.f32 1.0, %v3587_v48  ;;  %3608 = vpow2.f32 %v3165_v55  ;;  %v4641_v55 = vadd.f32 %v4524_v34, %v1478_v20 }
 0x26d   : > { %v3591_v38 = vpop.eup %3590  ;;  %3610 = vrcp.f32 %v1626_v58  ;;  %v1627_v59 = vadd.f32 1.0, %v3589_v24  ;;  %v4650_v58 = vadd.f32 %v4524_v34, %v1481_v61 }
 0x26e   : > { %v3593_v17 = vpop.eup %3592  ;;  %3612 = vrcp.f32 %v1625_v31  ;;  %v1628_v8 = vadd.f32 1.0, %v3591_v38  ;;  %v3167_v31 = vmul.f32 -1.442695, %v4627_v63  ;;  %v4656_v38 = vadd.f32 %v4524_v34, %v1482_v41 }
 0x26f   : > { %v3595_v37 = vpop.eup %3594  ;;  %3614 = vrcp.f32 %v1627_v59  ;;  %v1629_v9 = vadd.f32 1.0, %v3593_v17  ;;  %v3168_v59 = vmul.f32 -1.442695, %v4630_v26  ;;  %v3169_v17 = vmul.f32 -1.442695, %v4638_v53 }
 0x270   : > { %v3597_v0 = vpop.eup %3596  ;;  %3616 = vrcp.f32 %v1628_v8  ;;  %v1630_v4 = vadd.f32 1.0, %v3595_v37  ;;  %v3170_v8 = vmul.f32 -1.442695, %v4641_v55  ;;  %v3171_v37 = vmul.f32 -1.442695, %v4644_v14 }
 0x271   : > { %v3599_v49 = vpop.eup %3598  ;;  %3618 = vrcp.f32 %v1629_v9  ;;  %v1631_v44 = vadd.f32 1.0, %v3597_v0  ;;  %v3172_v41 = vmul.f32 -1.442695, %v4647_v60 }
 0x272   : > { %v3601_v45 = vpop.eup %3600  ;;  %3620 = vrcp.f32 %v1630_v4  ;;  %v1632_v5 = vadd.f32 1.0, %v3599_v49  ;;  %v3173_v4 = vmul.f32 -1.442695, %v4650_v58 }
 0x273   : > { %v3603_v50 = vpop.eup %3602  ;;  %3622 = vrcp.f32 %v1631_v44  ;;  %v1633_v15 = vadd.f32 1.0, %v3601_v45 }
 0x274   : > { %v3605_v42 = vpop.eup %3604  ;;  %3624 = vrcp.f32 %v1632_v5  ;;  %v1634_v13 = vadd.f32 1.0, %v3603_v50 }
 0x275   : > { %v3607_v48 = vpop.eup %3606  ;;  %3626 = vrcp.f32 %v1633_v15  ;;  %v1635_v46 = vadd.f32 1.0, %v3605_v42 }
 0x276   : > { %v3609_v24 = vpop.eup %3608  ;;  %3628 = vrcp.f32 %v1634_v13  ;;  %v1636_v40 = vadd.f32 1.0, %v3607_v48 }
 0x277   : > { %v3611_v20 = vpop.eup %3610  ;;  %3630 = vrcp.f32 %v1635_v46  ;;  %v1637_v6 = vadd.f32 1.0, %v3609_v24 }
 0x278   : > { %v3613_v33 = vpop.eup %3612  ;;  %v1722_v61 = vmul.f32 %v3611_v20, %v4536_v32  ;;  %3632 = vrcp.f32 %v1636_v40  ;;  %v3174_v32 = vmul.f32 -1.442695, %v4656_v38  ;;  %v4692_v40 = vadd.f32 %v4524_v34, %v4624_v43 }
 0x279   : > { %v3615_v9 = vpop.eup %3614  ;;  %v1721_v0 = vmul.f32 %v3613_v33, %v4539_v11  ;;  %3634 = vrcp.f32 %v1637_v6  ;;  %v4672_v11 = vadd.f32 %v4524_v34, %v1483_v29  ;;  %v4685_v29 = vadd.f32 %v4524_v34, %v4620_v21  ;;  %v4701_v6 = vld [vmem:[%s5619_s5] sm:$0x3] }
 0x27a   : > { %v3617_v49 = vpop.eup %3616  ;;  %v1760_v44 = vadd.f32 %v4652_v22, %v1722_v61  ;;  %v1723_v45 = vmul.f32 %v3615_v9, %v4542_v54  ;;  %3636 = vpow2.f32 %v3166_v10  ;;  %v4678_v54 = vadd.f32 %v4524_v34, %v4616_v1 }
 0x27b   : > { %v3619_v5 = vpop.eup %3618  ;;  %v1759_v50 = vadd.f32 %v4652_v22, %v1721_v0  ;;  %v1724_v15 = vmul.f32 %v3617_v49, %v4545_v52  ;;  %3638 = vpow2.f32 %v3167_v31  ;;  %v3175_v20 = vmul.f32 -1.442695, %v4672_v11 }
 0x27c   : > { %v3621_v42 = vpop.eup %3620  ;;  %v1761_v13 = vadd.f32 %v4652_v22, %v1723_v45  ;;  %v1725_v48 = vmul.f32 %v3619_v5, %v4550_v39  ;;  %3640 = vpow2.f32 %v3168_v59  ;;  %v3178_v0 = vmul.f32 -1.442695, %v4692_v40 }
 0x27d   : > { %v3623_v10 = vpop.eup %3622  ;;  %3479 = vmatprep.mubr.msk.f32.mxu1 %vm1058_vm5, %v1759_v50  ;;  %v1762_v46 = vadd.f32 %v4652_v22, %v1724_v15  ;;  %v1726_v52 = vmul.f32 %v3621_v42, %v4553_v35  ;;  %3642 = vpow2.f32 %v3169_v17  ;;  %v3176_v17 = vmul.f32 -1.442695, %v4678_v54 }
 0x27e   : > { %v3625_v24 = vpop.eup %3624  ;;  %3480 = vmatmul.mubr.msk.f32.vlgmr.msra.gmra.mrb[16].mxu1 %vm1058_vm5, %v1760_v44  ;;  %v1763_v39 = vadd.f32 %v4652_v22, %v1725_v48  ;;  %v1727_v1 = vmul.f32 %v3623_v10, %v4559_v62  ;;  %3644 = vpow2.f32 %v3170_v8  ;;  %v3177_v8 = vmul.f32 -1.442695, %v4685_v29 }
 0x27f   : > { %v3627_v31 = vpop.eup %3626  ;;  %3482 = vmatprep.mubr.msk.f32.mxu1 %vm1058_vm5, %v1761_v13  ;;  %v1764_v35 = vadd.f32 %v4652_v22, %v1726_v52  ;;  %v1728_v21 = vmul.f32 %v3625_v24, %v4564_v23  ;;  %3646 = vpow2.f32 %v3171_v37  ;;  %3528 = vmatpush3.msk.msra.mxu1 %vm1131_vm3, %v4701_v6  ;;  %v1488_v52 = vmul.f32 %v4522_v36, %v4511_v30 }
 0x280   : > { %v3629_v62 = vpop.eup %3628  ;;  %v1765_v43 = vadd.f32 %v4652_v22, %v1727_v1  ;;  %v1729_v59 = vmul.f32 %v3627_v31, %v4569_v7  ;;  %3648 = vpow2.f32 %v3172_v41  ;;  %3532 = vmatprep.subr.mxu1 %v3852_v3  ;;  %v1489_v1 = vmul.f32 %v4522_v36, %v4513_v19 }
 0x281   : > { %v3631_v23 = vpop.eup %3630  ;;  %v1766_v33 = vadd.f32 %v4652_v22, %v1728_v21  ;;  %v1730_v61 = vmul.f32 %v3629_v62, %v4573_v18  ;;  %3650 = vpow2.f32 %v3173_v4  ;;  %v1491_v30 = vmul.f32 %v4522_v36, %v4517_v27 }
 0x282   : > { %v3633_v37 = vpop.eup %3632  ;;  %3483 = vmatmul.mubr.msk.f32.gmra.mrb[18].mxu1 %vm1058_vm5, %v1762_v46  ;;  %v1767_v9 = vadd.f32 %v4652_v22, %v1729_v59  ;;  %v1731_v7 = vmul.f32 %v3631_v23, %v4577_v12  ;;  %3652 = vpow2.f32 %v3174_v32  ;;  %v1492_v59 = vmul.f32 %v4522_v36, %v4519_v25 }
 0x283   : > { %v3635_v41 = vpop.eup %3634  ;;  %3485 = vmatprep.mubr.msk.f32.mxu1 %vm1058_vm5, %v1763_v39  ;;  %v1768_v49 = vadd.f32 %v4652_v22, %v1730_v61  ;;  %v1732_v18 = vmul.f32 %v3633_v37, %v4581_v47  ;;  %3654 = vpow2.f32 %v3175_v20  ;;  %v4747_v27 = vadd.f32 %v4524_v34, %v1489_v1 }
 0x284   : > { %v3637_v4 = vpop.eup %3636  ;;  %v1769_v44 = vadd.f32 %v4652_v22, %v1731_v7  ;;  %v1733_v45 = vmul.f32 %v3635_v41, %v4585_v51  ;;  %3656 = vpow2.f32 %v3176_v17  ;;  %v1487_v51 = vmul.f32 %v4522_v36, %v4509_v28 }
 0x285   : > { %v3639_v5 = vpop.eup %3638  ;;  %v1770_v12 = vadd.f32 %v4652_v22, %v1732_v18  ;;  %v1638_v32 = vadd.f32 1.0, %v3637_v4  ;;  %3658 = vpow2.f32 %v3177_v8  ;;  %v1490_v28 = vmul.f32 %v4522_v36, %v4515_v16 }
 0x286   : > { %v3641_v50 = vpop.eup %3640  ;;  %3486 = vmatmul.mubr.msk.f32.gmra.mrb[20].mxu1 %vm1058_vm5, %v1764_v35  ;;  %v1771_v15 = vadd.f32 %v4652_v22, %v1733_v45  ;;  %v1639_v42 = vadd.f32 1.0, %v3639_v5  ;;  %3660 = vpow2.f32 %v3178_v0  ;;  %v4738_v19 = vadd.f32 %v4524_v34, %v1487_v51 }
 0x287   : > { %v3643_v47 = vpop.eup %3642  ;;  %3488 = vmatprep.mubr.msk.f32.mxu1 %vm1058_vm5, %v1765_v43  ;;  %3662 = vrcp.f32 %v1638_v32  ;;  %v1640_v13 = vadd.f32 1.0, %v3641_v50  ;;  %v4743_v16 = vadd.f32 %v4524_v34, %v1488_v52  ;;  %v4751_v25 = vadd.f32 %v4524_v34, %v1490_v28 }
 0x288   : > { %v3645_v48 = vpop.eup %3644  ;;  %3664 = vrcp.f32 %v1639_v42  ;;  %v1641_v10 = vadd.f32 1.0, %v3643_v47  ;;  %v4755_v7 = vadd.f32 %v4524_v34, %v1491_v30  ;;  %v4759_v18 = vadd.f32 %v4524_v34, %v1492_v59 }
 0x289   : > { %v3647_v46 = vpop.eup %3646  ;;  %3666 = vrcp.f32 %v1640_v13  ;;  %v1642_v24 = vadd.f32 1.0, %v3645_v48  ;;  %v3181_v45 = vmul.f32 -1.442695, %v4747_v27  ;;  %v3182_v50 = vmul.f32 -1.442695, %v4751_v25 }
 0x28a   : > { %v3649_v39 = vpop.eup %3648  ;;  %3489 = vmatmul.mubr.msk.f32.gmra.mrb[22].mxu1 %vm1058_vm5, %v1766_v33  ;;  %3668 = vrcp.f32 %v1641_v10  ;;  %v1643_v31 = vadd.f32 1.0, %v3647_v46 }
 0x28b   : > { %v3651_v35 = vpop.eup %3650  ;;  %3491 = vmatprep.mubr.msk.f32.mxu1 %vm1058_vm5, %v1767_v9  ;;  %3670 = vrcp.f32 %v1642_v24  ;;  %v1644_v21 = vadd.f32 1.0, %v3649_v39  ;;  %v3179_v9 = vmul.f32 -1.442695, %v4738_v19 }
 0x28c   : > { %v3653_v20 = vpop.eup %3652  ;;  %3672 = vrcp.f32 %v1643_v31  ;;  %v1645_v62 = vadd.f32 1.0, %v3651_v35 }
 0x28d   : > { %v3655_v43 = vpop.eup %3654  ;;  %3674 = vrcp.f32 %v1644_v21  ;;  %v1646_v17 = vadd.f32 1.0, %v3653_v20 }
 0x28e   : > { %v3657_v23 = vpop.eup %3656  ;;  %3492 = vmatmul.mubr.msk.f32.gmra.mrb[24].mxu1 %vm1058_vm5, %v1768_v49  ;;  %3676 = vrcp.f32 %v1645_v62  ;;  %v1647_v33 = vadd.f32 1.0, %v3655_v43  ;;  %v3180_v49 = vmul.f32 -1.442695, %v4743_v16 }
 0x28f   : > { %v3659_v61 = vpop.eup %3658  ;;  %3494 = vmatprep.mubr.msk.f32.mxu1 %vm1058_vm5, %v1769_v44  ;;  %3678 = vrcp.f32 %v1646_v17  ;;  %v1648_v8 = vadd.f32 1.0, %v3657_v23 }
 0x290   : > { %v3661_v36 = vpop.eup %3660  ;;  %3680 = vrcp.f32 %v1647_v33  ;;  %v1649_v37 = vadd.f32 1.0, %v3659_v61 }
 0x291   : > { %v3663_v0 = vpop.eup %3662  ;;  %3682 = vrcp.f32 %v1648_v8  ;;  %v1650_v41 = vadd.f32 1.0, %v3661_v36 }
 0x292   : > { %v3665_v4 = vpop.eup %3664  ;;  %3495 = vmatmul.mubr.msk.f32.gmra.mrb[26].mxu1 %vm1058_vm5, %v1770_v12  ;;  %v1734_v44 = vmul.f32 %v3663_v0, %v4610_v57  ;;  %3684 = vrcp.f32 %v1649_v37  ;;  %v3183_v12 = vmul.f32 -1.442695, %v4755_v7 }
 0x293   : > { %v3667_v5 = vpop.eup %3666  ;;  %3497 = vmatprep.mubr.msk.f32.mxu1 %vm1058_vm5, %v1771_v15  ;;  %v1735_v32 = vmul.f32 %v3665_v4, %v4627_v63  ;;  %3686 = vrcp.f32 %v1650_v41  ;;  %v3184_v15 = vmul.f32 -1.442695, %v4759_v18 }
 0x294   : > { %v3669_v42 = vpop.eup %3668  ;;  %v1772_v34 = vadd.f32 %v4652_v22, %v1734_v44  ;;  %v1736_v47 = vmul.f32 %v3667_v5, %v4630_v26  ;;  %3688 = vpow2.f32 %v3179_v9 }
 0x295   : > { %v3671_v57 = vpop.eup %3670  ;;  %v1773_v13 = vadd.f32 %v4652_v22, %v1735_v32  ;;  %v1737_v48 = vmul.f32 %v3669_v42, %v4638_v53  ;;  %3690 = vpow2.f32 %v3180_v49 }
 0x296   : > { %v3673_v63 = vpop.eup %3672  ;;  %3498 = vmatmul.mubr.msk.f32.gmra.mrb[28].mxu1 %vm1058_vm5, %v1772_v34  ;;  %v1774_v51 = vadd.f32 %v4652_v22, %v1736_v47  ;;  %v1738_v10 = vmul.f32 %v3671_v57, %v4641_v55  ;;  %3692 = vpow2.f32 %v3181_v45 }
 0x297   : > { %v3675_v26 = vpop.eup %3674  ;;  %3500 = vmatprep.mubr.msk.f32.mxu1 %vm1058_vm5, %v1773_v13  ;;  %v1775_v46 = vadd.f32 %v4652_v22, %v1737_v48  ;;  %v1739_v52 = vmul.f32 %v3673_v63, %v4644_v14  ;;  %3694 = vpow2.f32 %v3182_v50 }
 0x298   : > { %v3677_v53 = vpop.eup %3676  ;;  %v1776_v24 = vadd.f32 %v4652_v22, %v1738_v10  ;;  %v1740_v39 = vmul.f32 %v3675_v26, %v4647_v60  ;;  %3696 = vpow2.f32 %v3183_v12 }
 0x299   : > { %v3679_v1 = vpop.eup %3678  ;;  %v1777_v31 = vadd.f32 %v4652_v22, %v1739_v52  ;;  %v1741_v55 = vmul.f32 %v3677_v53, %v4650_v58  ;;  %3698 = vpow2.f32 %v3184_v15 }
 0x29a   : > { %v3681_v35 = vpop.eup %3680  ;;  %3501 = vmatmul.mubr.msk.f32.gmra.mrb[30].mxu1 %vm1058_vm5, %v1774_v51  ;;  %v1778_v28 = vadd.f32 %v4652_v22, %v1740_v39  ;;  %v1742_v14 = vmul.f32 %v3679_v1, %v4656_v38 }
 0x29b   : > { %v3683_v21 = vpop.eup %3682  ;;  %3503 = vmatprep.mubr.msk.f32.mxu1 %vm1058_vm5, %v1775_v46  ;;  %v1779_v20 = vadd.f32 %v4652_v22, %v1741_v55  ;;  %v1743_v60 = vmul.f32 %v3681_v35, %v4672_v11 }
 0x29c   : > { %v3685_v30 = vpop.eup %3684  ;;  %v1780_v62 = vadd.f32 %v4652_v22, %v1742_v14  ;;  %v1744_v58 = vmul.f32 %v3683_v21, %v4678_v54 }
 0x29d   : > { %v3687_v43 = vpop.eup %3686  ;;  %v1781_v59 = vadd.f32 %v4652_v22, %v1743_v60  ;;  %v1745_v17 = vmul.f32 %v3685_v30, %v4685_v29 }
 0x29e   : > { %v3689_v23 = vpop.eup %3688  ;;  %3504 = vmatmul.mubr.msk.f32.gmra.mrb[32].mxu1 %vm1058_vm5, %v1776_v24  ;;  %v1782_v38 = vadd.f32 %v4652_v22, %v1744_v58  ;;  %v1746_v33 = vmul.f32 %v3687_v43, %v4692_v40 }
 0x29f   : > { %v3691_v61 = vpop.eup %3690  ;;  %3506 = vmatprep.mubr.msk.f32.mxu1 %vm1058_vm5, %v1777_v31  ;;  %v1783_v11 = vadd.f32 %v4652_v22, %v1745_v17  ;;  %v1651_v8 = vadd.f32 1.0, %v3689_v23 }
 0x2a0   : > { %v3693_v36 = vpop.eup %3692  ;;  %v1784_v54 = vadd.f32 %v4652_v22, %v1746_v33  ;;  %v1652_v37 = vadd.f32 1.0, %v3691_v61 }
 0x2a1   : > { %v3695_v9 = vpop.eup %3694  ;;  %3700 = vrcp.f32 %v1651_v8  ;;  %v1653_v29 = vadd.f32 1.0, %v3693_v36 }
 0x2a2   : > { %v3697_v0 = vpop.eup %3696  ;;  %3507 = vmatmul.mubr.msk.f32.gmra.mrb[34].mxu1 %vm1058_vm5, %v1778_v28  ;;  %3702 = vrcp.f32 %v1652_v37  ;;  %v1654_v41 = vadd.f32 1.0, %v3695_v9 }
 0x2a3   : > { %v3699_v49 = vpop.eup %3698  ;;  %3509 = vmatprep.mubr.msk.f32.mxu1 %vm1058_vm5, %v1779_v20  ;;  %3704 = vrcp.f32 %v1653_v29  ;;  %v1655_v40 = vadd.f32 1.0, %v3697_v0 }
 0x2a4   : > { %3706 = vrcp.f32 %v1654_v41  ;;  %v1656_v4 = vadd.f32 1.0, %v3699_v49 }
 0x2a5   : > { %3708 = vrcp.f32 %v1655_v40 }
 0x2a6   : > { %3510 = vmatmul.mubr.msk.f32.gmra.mrb[36].mxu1 %vm1058_vm5, %v1780_v62  ;;  %3710 = vrcp.f32 %v1656_v4 }
 0x2a7   : > { %3512 = vmatprep.mubr.msk.f32.mxu1 %vm1058_vm5, %v1781_v59 }
 0x2aa   : > { %3513 = vmatmul.mubr.msk.f32.gmra.mrb[38].mxu1 %vm1058_vm5, %v1782_v38 }
 0x2ab   : > { %v3701_v44 = vpop.eup %3700  ;;  %3515 = vmatprep.mubr.msk.f32.mxu1 %vm1058_vm5, %v1783_v11 }
 0x2ac   : > { %v3703_v45 = vpop.eup %3702  ;;  %v1747_v5 = vmul.f32 %v3701_v44, %v4738_v19 }
 0x2ad   : > { %v3705_v32 = vpop.eup %3704  ;;  %v1748_v50 = vmul.f32 %v3703_v45, %v4743_v16 }
 0x2ae   : > { %v3707_v42 = vpop.eup %3706  ;;  %3516 = vmatmul.mubr.msk.f32.gmra.mrb[40].mxu1 %vm1058_vm5, %v1784_v54  ;;  %v1785_v34 = vadd.f32 %v4652_v22, %v1747_v5  ;;  %v1749_v47 = vmul.f32 %v3705_v32, %v4747_v27 }
 0x2af   : > { %v3709_v12 = vpop.eup %3708  ;;  %v1786_v57 = vadd.f32 %v4652_v22, %v1748_v50  ;;  %v1750_v13 = vmul.f32 %v3707_v42, %v4751_v25 }
 0x2b0   : > { %v3711_v48 = vpop.eup %3710  ;;  %3518 = vmatprep.mubr.msk.f32.mxu1 %vm1058_vm5, %v1785_v34  ;;  %v1787_v19 = vadd.f32 %v4652_v22, %v1749_v47  ;;  %v1751_v15 = vmul.f32 %v3709_v12, %v4755_v7 }
 0x2b1   : > { %v1788_v16 = vadd.f32 %v4652_v22, %v1750_v13  ;;  %v1752_v63 = vmul.f32 %v3711_v48, %v4759_v18 }
 0x2b2   : > { %3519 = vmatmul.mubr.msk.f32.gmra.mrb[42].mxu1 %vm1058_vm5, %v1786_v57  ;;  %v1789_v27 = vadd.f32 %v4652_v22, %v1751_v15 }
 0x2b3   : > { %3521 = vmatprep.mubr.msk.f32.mxu1 %vm1058_vm5, %v1787_v19  ;;  %v1790_v51 = vadd.f32 %v4652_v22, %v1752_v63 }
 0x2b6   : > { %3522 = vmatmul.mubr.msk.f32.gmra.mrb[44].mxu1 %vm1058_vm5, %v1788_v16 }
 0x2b7   : > { %3524 = vmatprep.mubr.msk.f32.mxu1 %vm1058_vm5, %v1789_v27 }
 0x2ba   : > { %3525 = vmatmul.mubr.msk.f32.gmra.mrb[46].mxu1 %vm1058_vm5, %v1790_v51 }
 0x2bb   : > { %3529 = vmatprep.mubr.msk.f32.mxu1 %vm3853_vm4, %v3852_v3 }
 0x351   : > { %v4826_v25 = vpop.f32.mrb[16].mxu1 }
 0x352   : > { %v2116_v7 = vsel %vm1058_vm5, %v4826_v25, 0.0  ;;  %v2259_v18 = vmul.f32 %v4826_v25, %v4826_v25  ;;  %v4832_v10 = vpop.f32.mrb[17].mxu1 }
 0x353   : > { %v2115_v22 = vsel %vm1058_vm5, %v4832_v10, 0.0  ;;  %v2258_v26 = vmul.f32 %v4832_v10, %v4832_v10 }
 0x354   : > { %v2291_v46 = vsel %vm1058_vm5, %v2259_v18, 0.0  ;;  %v2117_v52 = vadd.f32 %v2116_v7, %v2115_v22 }
 0x355   : > { %v2290_v53 = vsel %vm1058_vm5, %v2258_v26, 0.0  ;;  %v4840_v24 = vpop.f32.mrb[18].mxu1 }
 0x356   : > { %v2292_v39 = vadd.f32 %v2291_v46, %v2290_v53  ;;  %v4842_v1 = vpop.f32.mrb[19].mxu1  ;;  %v2261_v31 = vmul.f32 %v4840_v24, %v4840_v24  ;;  %v2120_v14 = vsel %vm1058_vm5, %v4840_v24, 0.0 }
 0x357   : > { %v2118_v55 = vsel %vm1058_vm5, %v4842_v1, 0.0  ;;  %v2260_v35 = vmul.f32 %v4842_v1, %v4842_v1 }
 0x358   : > { %v2119_v28 = vadd.f32 %v2118_v55, %v2117_v52  ;;  %v2295_v58 = vsel %vm1058_vm5, %v2261_v31, 0.0 }
 0x359   : > { %v2293_v21 = vsel %vm1058_vm5, %v2260_v35, 0.0  ;;  %v4853_v20 = vpop.f32.mrb[20].mxu1 }
 0x35a   : > { %v2294_v60 = vadd.f32 %v2293_v21, %v2292_v39  ;;  %v4855_v30 = vpop.f32.mrb[21].mxu1  ;;  %v2121_v62 = vadd.f32 %v2120_v14, %v2119_v28  ;;  %v2263_v43 = vmul.f32 %v4853_v20, %v4853_v20  ;;  %v2124_v33 = vsel %vm1058_vm5, %v4853_v20, 0.0 }
 0x35b   : > { %v2122_v59 = vsel %vm1058_vm5, %v4855_v30, 0.0  ;;  %v2262_v17 = vmul.f32 %v4855_v30, %v4855_v30 }
 0x35c   : > { %v2123_v23 = vadd.f32 %v2122_v59, %v2121_v62  ;;  %v2296_v38 = vadd.f32 %v2295_v58, %v2294_v60  ;;  %v2299_v37 = vsel %vm1058_vm5, %v2263_v43, 0.0 }
 0x35d   : > { %v2297_v61 = vsel %vm1058_vm5, %v2262_v17, 0.0  ;;  %v4867_v11 = vpop.f32.mrb[22].mxu1 }
 0x35e   : > { %v2298_v8 = vadd.f32 %v2297_v61, %v2296_v38  ;;  %v4869_v36 = vpop.f32.mrb[23].mxu1  ;;  %v2125_v54 = vadd.f32 %v2124_v33, %v2123_v23  ;;  %v2265_v9 = vmul.f32 %v4867_v11, %v4867_v11  ;;  %v2128_v40 = vsel %vm1058_vm5, %v4867_v11, 0.0 }
 0x35f   : > { %v2126_v29 = vsel %vm1058_vm5, %v4869_v36, 0.0  ;;  %v2264_v0 = vmul.f32 %v4869_v36, %v4869_v36 }
 0x360   : > { %v2127_v41 = vadd.f32 %v2126_v29, %v2125_v54  ;;  %v2300_v49 = vadd.f32 %v2299_v37, %v2298_v8  ;;  %v2303_v50 = vsel %vm1058_vm5, %v2265_v9, 0.0 }
 0x361   : > { %v2301_v4 = vsel %vm1058_vm5, %v2264_v0, 0.0  ;;  %v4881_v44 = vpop.f32.mrb[24].mxu1 }
 0x362   : > { %v2302_v45 = vadd.f32 %v2301_v4, %v2300_v49  ;;  %v4883_v5 = vpop.f32.mrb[25].mxu1  ;;  %v2129_v32 = vadd.f32 %v2128_v40, %v2127_v41  ;;  %v2267_v42 = vmul.f32 %v4881_v44, %v4881_v44  ;;  %v2132_v13 = vsel %vm1058_vm5, %v4881_v44, 0.0 }
 0x363   : > { %v2130_v34 = vsel %vm1058_vm5, %v4883_v5, 0.0  ;;  %v2266_v47 = vmul.f32 %v4883_v5, %v4883_v5 }
 0x364   : > { %v2131_v12 = vadd.f32 %v2130_v34, %v2129_v32  ;;  %v2304_v57 = vadd.f32 %v2303_v50, %v2302_v45  ;;  %v2307_v27 = vsel %vm1058_vm5, %v2267_v42, 0.0 }
 0x365   : > { %v2305_v48 = vsel %vm1058_vm5, %v2266_v47, 0.0  ;;  %v4895_v19 = vpop.f32.mrb[26].mxu1 }
 0x366   : > { %v2306_v15 = vadd.f32 %v2305_v48, %v2304_v57  ;;  %v4897_v16 = vpop.f32.mrb[27].mxu1  ;;  %v2133_v63 = vadd.f32 %v2132_v13, %v2131_v12  ;;  %v2269_v51 = vmul.f32 %v4895_v19, %v4895_v19  ;;  %v2136_v46 = vsel %vm1058_vm5, %v4895_v19, 0.0 }
 0x367   : > { %v2134_v7 = vsel %vm1058_vm5, %v4897_v16, 0.0  ;;  %v2268_v18 = vmul.f32 %v4897_v16, %v4897_v16 }
 0x368   : > { %v2135_v22 = vadd.f32 %v2134_v7, %v2133_v63  ;;  %v2308_v26 = vadd.f32 %v2307_v27, %v2306_v15  ;;  %v2311_v35 = vsel %vm1058_vm5, %v2269_v51, 0.0 }
 0x369   : > { %v2309_v52 = vsel %vm1058_vm5, %v2268_v18, 0.0  ;;  %v4909_v53 = vpop.f32.mrb[28].mxu1 }
 0x36a   : > { %v2310_v39 = vadd.f32 %v2309_v52, %v2308_v26  ;;  %v4911_v31 = vpop.f32.mrb[29].mxu1  ;;  %v2137_v55 = vadd.f32 %v2136_v46, %v2135_v22  ;;  %v2271_v28 = vmul.f32 %v4909_v53, %v4909_v53  ;;  %v2140_v58 = vsel %vm1058_vm5, %v4909_v53, 0.0 }
 0x36b   : > { %v2138_v14 = vsel %vm1058_vm5, %v4911_v31, 0.0  ;;  %v2270_v21 = vmul.f32 %v4911_v31, %v4911_v31 }
 0x36c   : > { %v2139_v60 = vadd.f32 %v2138_v14, %v2137_v55  ;;  %v2312_v62 = vadd.f32 %v2311_v35, %v2310_v39  ;;  %v2315_v33 = vsel %vm1058_vm5, %v2271_v28, 0.0 }
 0x36d   : > { %v2313_v43 = vsel %vm1058_vm5, %v2270_v21, 0.0  ;;  %v4923_v59 = vpop.f32.mrb[30].mxu1 }
 0x36e   : > { %v2314_v17 = vadd.f32 %v2313_v43, %v2312_v62  ;;  %v4925_v23 = vpop.f32.mrb[31].mxu1  ;;  %v2141_v38 = vadd.f32 %v2140_v58, %v2139_v60  ;;  %v2273_v61 = vmul.f32 %v4923_v59, %v4923_v59  ;;  %v2144_v29 = vsel %vm1058_vm5, %v4923_v59, 0.0 }
 0x36f   : > { %v2142_v8 = vsel %vm1058_vm5, %v4925_v23, 0.0  ;;  %v2272_v54 = vmul.f32 %v4925_v23, %v4925_v23 }
 0x370   : > { %v2143_v37 = vadd.f32 %v2142_v8, %v2141_v38  ;;  %v2316_v9 = vadd.f32 %v2315_v33, %v2314_v17  ;;  %v2319_v45 = vsel %vm1058_vm5, %v2273_v61, 0.0 }
 0x371   : > { %v2317_v0 = vsel %vm1058_vm5, %v2272_v54, 0.0  ;;  %v4937_v41 = vpop.f32.mrb[32].mxu1 }
 0x372   : > { %v2318_v49 = vadd.f32 %v2317_v0, %v2316_v9  ;;  %v4939_v40 = vpop.f32.mrb[33].mxu1  ;;  %v2145_v4 = vadd.f32 %v2144_v29, %v2143_v37  ;;  %v2275_v32 = vmul.f32 %v4937_v41, %v4937_v41  ;;  %v2148_v12 = vsel %vm1058_vm5, %v4937_v41, 0.0 }
 0x373   : > { %v2146_v50 = vsel %vm1058_vm5, %v4939_v40, 0.0  ;;  %v2274_v42 = vmul.f32 %v4939_v40, %v4939_v40 }
 0x374   : > { %v2147_v34 = vadd.f32 %v2146_v50, %v2145_v4  ;;  %v2320_v47 = vadd.f32 %v2319_v45, %v2318_v49  ;;  %v2323_v27 = vsel %vm1058_vm5, %v2275_v32, 0.0 }
 0x375   : > { %v2321_v57 = vsel %vm1058_vm5, %v2274_v42, 0.0  ;;  %v4951_v13 = vpop.f32.mrb[34].mxu1 }
 0x376   : > { %v2322_v48 = vadd.f32 %v2321_v57, %v2320_v47  ;;  %v4953_v15 = vpop.f32.mrb[35].mxu1  ;;  %v2149_v63 = vadd.f32 %v2148_v12, %v2147_v34  ;;  %v2277_v51 = vmul.f32 %v4951_v13, %v4951_v13  ;;  %v2152_v46 = vsel %vm1058_vm5, %v4951_v13, 0.0 }
 0x377   : > { %v2150_v7 = vsel %vm1058_vm5, %v4953_v15, 0.0  ;;  %v2276_v18 = vmul.f32 %v4953_v15, %v4953_v15 }
 0x378   : > { %v2151_v22 = vadd.f32 %v2150_v7, %v2149_v63  ;;  %v2324_v26 = vadd.f32 %v2323_v27, %v2322_v48  ;;  %v2327_v14 = vsel %vm1058_vm5, %v2277_v51, 0.0 }
 0x379   : > { %v2325_v52 = vsel %vm1058_vm5, %v2276_v18, 0.0  ;;  %v4965_v39 = vpop.f32.mrb[36].mxu1 }
 0x37a   : > { %v2326_v55 = vadd.f32 %v2325_v52, %v2324_v26  ;;  %v4967_v35 = vpop.f32.mrb[37].mxu1  ;;  %v2153_v28 = vadd.f32 %v2152_v46, %v2151_v22  ;;  %v2279_v21 = vmul.f32 %v4965_v39, %v4965_v39  ;;  %v2156_v17 = vsel %vm1058_vm5, %v4965_v39, 0.0 }
 0x37b   : > { %v2154_v60 = vsel %vm1058_vm5, %v4967_v35, 0.0  ;;  %v2278_v62 = vmul.f32 %v4967_v35, %v4967_v35 }
 0x37c   : > { %v2155_v58 = vadd.f32 %v2154_v60, %v2153_v28  ;;  %v2328_v43 = vadd.f32 %v2327_v14, %v2326_v55  ;;  %v2331_v37 = vsel %vm1058_vm5, %v2279_v21, 0.0 }
 0x37d   : > { %v2329_v38 = vsel %vm1058_vm5, %v2278_v62, 0.0  ;;  %v4979_v33 = vpop.f32.mrb[38].mxu1 }
 0x37e   : > { %v2330_v61 = vadd.f32 %v2329_v38, %v2328_v43  ;;  %v4981_v8 = vpop.f32.mrb[39].mxu1  ;;  %v2157_v54 = vadd.f32 %v2156_v17, %v2155_v58  ;;  %v2281_v9 = vmul.f32 %v4979_v33, %v4979_v33  ;;  %v2160_v45 = vsel %vm1058_vm5, %v4979_v33, 0.0 }
 0x37f   : > { %v2158_v29 = vsel %vm1058_vm5, %v4981_v8, 0.0  ;;  %v2280_v0 = vmul.f32 %v4981_v8, %v4981_v8 }
 0x380   : > { %v2159_v49 = vadd.f32 %v2158_v29, %v2157_v54  ;;  %v2332_v4 = vadd.f32 %v2331_v37, %v2330_v61  ;;  %v2335_v12 = vsel %vm1058_vm5, %v2281_v9, 0.0 }
 0x381   : > { %v2333_v32 = vsel %vm1058_vm5, %v2280_v0, 0.0  ;;  %v4993_v50 = vpop.f32.mrb[40].mxu1 }
 0x382   : > { %v2334_v42 = vadd.f32 %v2333_v32, %v2332_v4  ;;  %v4995_v34 = vpop.f32.mrb[41].mxu1  ;;  %v2161_v47 = vadd.f32 %v2160_v45, %v2159_v49  ;;  %v2283_v57 = vmul.f32 %v4993_v50, %v4993_v50  ;;  %v2164_v7 = vsel %vm1058_vm5, %v4993_v50, 0.0 }
 0x383   : > { %v2162_v48 = vsel %vm1058_vm5, %v4995_v34, 0.0  ;;  %v2282_v63 = vmul.f32 %v4995_v34, %v4995_v34 }
 0x384   : > { %v2163_v27 = vadd.f32 %v2162_v48, %v2161_v47  ;;  %v2336_v51 = vadd.f32 %v2335_v12, %v2334_v42  ;;  %v2339_v55 = vsel %vm1058_vm5, %v2283_v57, 0.0 }
 0x385   : > { %v2337_v18 = vsel %vm1058_vm5, %v2282_v63, 0.0  ;;  %v5007_v22 = vpop.f32.mrb[42].mxu1 }
 0x386   : > { %v2338_v26 = vadd.f32 %v2337_v18, %v2336_v51  ;;  %v5009_v46 = vpop.f32.mrb[43].mxu1  ;;  %v2165_v52 = vadd.f32 %v2164_v7, %v2163_v27  ;;  %v2285_v28 = vmul.f32 %v5007_v22, %v5007_v22  ;;  %v2168_v58 = vsel %vm1058_vm5, %v5007_v22, 0.0 }
 0x387   : > { %v2166_v14 = vsel %vm1058_vm5, %v5009_v46, 0.0  ;;  %v2284_v21 = vmul.f32 %v5009_v46, %v5009_v46 }
 0x388   : > { %v2167_v60 = vadd.f32 %v2166_v14, %v2165_v52  ;;  %v2340_v62 = vadd.f32 %v2339_v55, %v2338_v26  ;;  %v2343_v37 = vsel %vm1058_vm5, %v2285_v28, 0.0 }
 0x389   : > { %v2341_v43 = vsel %vm1058_vm5, %v2284_v21, 0.0  ;;  %v5021_v17 = vpop.f32.mrb[44].mxu1 }
 0x38a   : > { %v2342_v38 = vadd.f32 %v2341_v43, %v2340_v62  ;;  %v5023_v61 = vpop.f32.mrb[45].mxu1  ;;  %v2169_v54 = vadd.f32 %v2168_v58, %v2167_v60  ;;  %v2287_v9 = vmul.f32 %v5021_v17, %v5021_v17  ;;  %v2172_v45 = vsel %vm1058_vm5, %v5021_v17, 0.0 }
 0x38b   : > { %v2170_v29 = vsel %vm1058_vm5, %v5023_v61, 0.0  ;;  %v2286_v0 = vmul.f32 %v5023_v61, %v5023_v61 }
 0x38c   : > { %v2171_v49 = vadd.f32 %v2170_v29, %v2169_v54  ;;  %v2344_v4 = vadd.f32 %v2343_v37, %v2342_v38  ;;  %v2347_v48 = vsel %vm1058_vm5, %v2287_v9, 0.0 }
 0x38d   : > { %v2345_v32 = vsel %vm1058_vm5, %v2286_v0, 0.0  ;;  %v5035_v42 = vpop.f32.mrb[46].mxu1 }
 0x38e   : > { %v2346_v47 = vadd.f32 %v2345_v32, %v2344_v4  ;;  %v5037_v12 = vpop.f32.mrb[47].mxu1  ;;  %v2173_v57 = vadd.f32 %v2172_v45, %v2171_v49  ;;  %v2289_v63 = vmul.f32 %v5035_v42, %v5035_v42  ;;  %v2176_v26 = vsel %vm1058_vm5, %v5035_v42, 0.0 }
 0x38f   : > { %v2174_v27 = vsel %vm1058_vm5, %v5037_v12, 0.0  ;;  %v2288_v51 = vmul.f32 %v5037_v12, %v5037_v12 }
 0x390   : > { %v2175_v7 = vadd.f32 %v2174_v27, %v2173_v57  ;;  %v2348_v18 = vadd.f32 %v2347_v48, %v2346_v47  ;;  %v2351_v14 = vsel %vm1058_vm5, %v2289_v63, 0.0 }
 0x391   : > { %v2349_v52 = vsel %vm1058_vm5, %v2288_v51, 0.0 }
 0x392   : > { %v2177_v55 = vadd.f32 %v2176_v26, %v2175_v7  ;;  %v2350_v28 = vadd.f32 %v2349_v52, %v2348_v18 }
 0x394   : > { %v2178_v21 = vrot.slane %v2177_v55, 4  ;;  %v2352_v60 = vadd.f32 %v2351_v14, %v2350_v28 }
 0x396   : > { %v2179_v62 = vadd.f32 %v2178_v21, %v2177_v55  ;;  %v2353_v58 = vrot.slane %v2352_v60, 4 }
 0x398   : > { %v2180_v43 = vrot.slane %v2179_v62, 2  ;;  %v2354_v38 = vadd.f32 %v2353_v58, %v2352_v60 }
 0x39a   : > { %v2181_v54 = vadd.f32 %v2180_v43, %v2179_v62  ;;  %v2355_v37 = vrot.slane %v2354_v38, 2 }
 0x39c   : > { %v2182_v9 = vrot.slane %v2181_v54, 1  ;;  %v2356_v29 = vadd.f32 %v2355_v37, %v2354_v38 }
 0x39e   : > { %v2183_v0 = vadd.f32 %v2182_v9, %v2181_v54  ;;  %v2357_v49 = vrot.slane %v2356_v29, 1 }
 0x3a0   : > { %3530 = vmatmul.mubr.msk.f32.vlgmr.msra.gmra.mrb[48].mxu1 %vm1058_vm5, %v2183_v0  ;;  %v2358_v4 = vadd.f32 %v2357_v49, %v2356_v29 }
 0x3a1   : > { %3533 = vmatpush3.msk.msra.mxu1 %vm1131_vm3, %v4701_v6  ;;  %3534 = vmatprep.mubr.msk.f32.mxu1 %vm3853_vm4, %v3852_v3 }
 0x3a4   : > { %3535 = vmatmul.mubr.msk.f32.vlgmr.msra.gmra.mrb[50].mxu1 %vm1058_vm5, %v2358_v4 }
 0x473   : > { %v2253_v45 = vpop.f32.mrb[48].mxu1 }
 0x474   : > { %v2257_v32 = vmul.f32 0.00390625, %v2253_v45  ;;  %v3531_v47 = vpop.f32.mrb[49].mxu1 }
 0x476   : > { %v5057_v57 = vrot.slane %v2257_v32, %v4409_v2  ;;  %v2433_v52 = vmul.f32 %v2257_v32, %v2257_v32 }
 0x477   : > { %v2428_v48 = vpop.f32.mrb[50].mxu1 }
 0x478   : > { %v2439_v63 = vsub.f32 %v4832_v10, %v5057_v57  ;;  %v2440_v27 = vsub.f32 %v4826_v25, %v5057_v57  ;;  %v2441_v6 = vsub.f32 %v4842_v1, %v5057_v57  ;;  %v2442_v3 = vsub.f32 %v4840_v24, %v5057_v57  ;;  %v3536_v51 = vpop.f32.mrb[51].mxu1 }
 0x479   : > { %v2443_v7 = vsub.f32 %v4855_v30, %v5057_v57  ;;  %v2444_v18 = vsub.f32 %v4853_v20, %v5057_v57  ;;  %v2445_v26 = vsub.f32 %v4869_v36, %v5057_v57  ;;  %v2446_v10 = vsub.f32 %v4867_v11, %v5057_v57 }
 0x47a   : > { %v2447_v25 = vsub.f32 %v4883_v5, %v5057_v57  ;;  %v2448_v1 = vsub.f32 %v4881_v44, %v5057_v57  ;;  %v2449_v24 = vsub.f32 %v4897_v16, %v5057_v57  ;;  %v2450_v30 = vsub.f32 %v4895_v19, %v5057_v57 }
 0x47b   : > { %v2451_v20 = vsub.f32 %v4911_v31, %v5057_v57  ;;  %v2452_v36 = vsub.f32 %v4909_v53, %v5057_v57  ;;  %v2453_v11 = vsub.f32 %v4925_v23, %v5057_v57  ;;  %v2454_v5 = vsub.f32 %v4923_v59, %v5057_v57 }
 0x47c   : > { %v2455_v44 = vsub.f32 %v4939_v40, %v5057_v57  ;;  %v2456_v16 = vsub.f32 %v4937_v41, %v5057_v57  ;;  %v2457_v19 = vsub.f32 %v4953_v15, %v5057_v57  ;;  %v2458_v31 = vsub.f32 %v4951_v13, %v5057_v57 }
 0x47d   : > { %v2459_v53 = vsub.f32 %v4967_v35, %v5057_v57  ;;  %v2460_v23 = vsub.f32 %v4965_v39, %v5057_v57  ;;  %v2461_v59 = vsub.f32 %v4981_v8, %v5057_v57  ;;  %v2462_v40 = vsub.f32 %v4979_v33, %v5057_v57 }
 0x47e   : > { %v2463_v41 = vsub.f32 %v4995_v34, %v5057_v57  ;;  %v2464_v15 = vsub.f32 %v4993_v50, %v5057_v57  ;;  %v2465_v13 = vsub.f32 %v5009_v46, %v5057_v57  ;;  %v2466_v35 = vsub.f32 %v5007_v22, %v5057_v57 }
 0x47f   : > { %v2467_v39 = vsub.f32 %v5023_v61, %v5057_v57  ;;  %v2468_v8 = vsub.f32 %v5021_v17, %v5057_v57  ;;  %v2469_v33 = vsub.f32 %v5037_v12, %v5057_v57  ;;  %v2470_v34 = vsub.f32 %v5035_v42, %v5057_v57 }
 0x480   : > { %v2432_v50 = vmul.f32 0.00390625, %v2428_v48 }
 0x482   : > { %v2434_v55 = vsub.f32 %v2432_v50, %v2433_v52 }
 0x484   : > { %v2471_v28 = vadd.f32 1e-05, %v2434_v55 }
 0x486   : > { %3712 = vrsqrt.f32 %v2471_v28 }
 0x490   : > { %v3713_v46 = vpop.eup %3712 }
 0x491   : > { %v2476_v22 = vrot.slane %v3713_v46, %v4409_v2 }
 0x493   : > { %v2477_v14 = vmul.f32 %v2476_v22, %v2439_v63  ;;  %v2478_v21 = vmul.f32 %v2476_v22, %v2440_v27  ;;  %v2479_v61 = vmul.f32 %v2476_v22, %v2441_v6  ;;  %v2480_v60 = vmul.f32 %v2476_v22, %v2442_v3 }
 0x494   : > { %v2481_v62 = vmul.f32 %v2476_v22, %v2443_v7  ;;  %v2482_v17 = vmul.f32 %v2476_v22, %v2444_v18  ;;  %v2483_v58 = vmul.f32 %v2476_v22, %v2445_v26  ;;  %v2484_v43 = vmul.f32 %v2476_v22, %v2446_v10 }
 0x495   : > { %v2485_v12 = vmul.f32 %v2476_v22, %v2447_v25  ;;  %v2486_v38 = vmul.f32 %v2476_v22, %v2448_v1  ;;  %v2487_v54 = vmul.f32 %v2476_v22, %v2449_v24  ;;  %v2488_v42 = vmul.f32 %v2476_v22, %v2450_v30  ;;  %v5159_v25 = vpop.permute.xlu1 %2843  ;;  %v5161_v1 = vpop.permute.xlu0 %2839  ;;  %v3843_v24 = vld [vmem:[%s5620_s6] sm:$0xf] }
 0x496   : > { %v2489_v37 = vmul.f32 %v2476_v22, %v2451_v20  ;;  %v2490_v9 = vmul.f32 %v2476_v22, %v2452_v36  ;;  %v2491_v29 = vmul.f32 %v2476_v22, %v2453_v11  ;;  %v5124_v0 = vmul.f32 %v2476_v22, %v2454_v5 }
 0x497   : > { %v5126_v49 = vmul.f32 %v2476_v22, %v2455_v44  ;;  %v5128_v2 = vmul.f32 %v2476_v22, %v2456_v16  ;;  %v5130_v4 = vmul.f32 %v2476_v22, %v2457_v19  ;;  %v5132_v45 = vmul.f32 %v2476_v22, %v2458_v31 }
 0x498   : > { %v5134_v32 = vmul.f32 %v2476_v22, %v2459_v53  ;;  %v5136_v47 = vmul.f32 %v2476_v22, %v2460_v23  ;;  %v5138_v57 = vmul.f32 %v2476_v22, %v2461_v59  ;;  %v5140_v48 = vmul.f32 %v2476_v22, %v2462_v40 }
 0x499   : > { %v5142_v63 = vmul.f32 %v2476_v22, %v2463_v41  ;;  %v5144_v27 = vmul.f32 %v2476_v22, %v2464_v15  ;;  %v5146_v6 = vmul.f32 %v2476_v22, %v2465_v13  ;;  %v5148_v3 = vmul.f32 %v2476_v22, %v2466_v35  ;;  %v5174_v16 = vpop.permute.xlu1 %2841  ;;  %v5177_v31 = vpop.permute.xlu0 %2837 }
 0x49a   : > { %v5150_v51 = vmul.f32 %v2476_v22, %v2467_v39  ;;  %v5152_v7 = vmul.f32 %v2476_v22, %v2468_v8  ;;  %v5154_v18 = vmul.f32 %v2476_v22, %v2469_v33  ;;  %v5156_v26 = vmul.f32 %v2476_v22, %v2470_v34 }
 0x49b   : > { %v2511_v10 = vsub.s32 2, %v4406_v56  ;;  %v2547_v20 = vsub.s32 3, %v4406_v56 }
 0x49d   : > { %v5166_v30 = vrot.slane %v3843_v24, %v2511_v10  ;;  %v5169_v36 = vrot.slane %v3843_v24, %v2547_v20  ;;  %v5199_v8 = vpop.permute.xlu1 %2847  ;;  %v5206_v50 = vpop.permute.xlu0 %2845 }
 0x49f   : > { %v2513_v11 = vmul.f32 %v5166_v30, %v2477_v14  ;;  %v2514_v5 = vmul.f32 %v5166_v30, %v2478_v21  ;;  %v2515_v44 = vmul.f32 %v5166_v30, %v2479_v61  ;;  %v2516_v19 = vmul.f32 %v5166_v30, %v2480_v60 }
 0x4a0   : > { %v2517_v53 = vmul.f32 %v5166_v30, %v2481_v62  ;;  %v2518_v23 = vmul.f32 %v5166_v30, %v2482_v17  ;;  %v2519_v56 = vmul.f32 %v5166_v30, %v2483_v58  ;;  %v2520_v15 = vmul.f32 %v5166_v30, %v2484_v43 }
 0x4a1   : > { %v5183_v59 = vadd.f32 %v5169_v36, %v2513_v11  ;;  %v5186_v40 = vadd.f32 %v5169_v36, %v2514_v5  ;;  %v5189_v41 = vadd.f32 %v5169_v36, %v2515_v44  ;;  %v5193_v13 = vadd.f32 %v5169_v36, %v2516_v19  ;;  %v5242_v20 = vpop.permute.xlu0 %2849 }
 0x4a2   : > { %v2521_v35 = vmul.f32 %v5166_v30, %v2485_v12  ;;  %v5197_v39 = vadd.f32 %v5169_v36, %v2517_v53  ;;  %v2522_v33 = vmul.f32 %v5166_v30, %v2486_v38  ;;  %v2523_v34 = vmul.f32 %v5166_v30, %v2487_v54 }
 0x4a3   : > { %v5204_v52 = vadd.f32 %v5169_v36, %v2518_v23  ;;  %v5209_v55 = vadd.f32 %v5169_v36, %v2519_v56  ;;  %v3223_v28 = vmul.f32 -1.442695, %v5183_v59  ;;  %v3224_v46 = vmul.f32 -1.442695, %v5186_v40 }
 0x4a4   : > { %v3225_v22 = vmul.f32 -1.442695, %v5189_v41  ;;  %v2524_v14 = vmul.f32 %v5166_v30, %v2488_v42  ;;  %v5216_v21 = vadd.f32 %v5169_v36, %v2520_v15  ;;  %v3226_v61 = vmul.f32 -1.442695, %v5193_v13 }
 0x4a5   : > { %v2525_v60 = vmul.f32 %v5166_v30, %v2489_v37  ;;  %v5221_v62 = vadd.f32 %v5169_v36, %v2521_v35  ;;  %3714 = vpow2.f32 %v3223_v28  ;;  %v3227_v17 = vmul.f32 -1.442695, %v5197_v39  ;;  %v5234_v37 = vpop.permute.xlu1 %2851 }
 0x4a6   : > { %v2526_v58 = vmul.f32 %v5166_v30, %v2490_v9  ;;  %v5226_v43 = vadd.f32 %v5169_v36, %v2522_v33  ;;  %3716 = vpow2.f32 %v3224_v46  ;;  %v3228_v12 = vmul.f32 -1.442695, %v5204_v52 }
 0x4a7   : > { %v2527_v38 = vmul.f32 %v5166_v30, %v2491_v29  ;;  %v5231_v54 = vadd.f32 %v5169_v36, %v2523_v34  ;;  %3718 = vpow2.f32 %v3225_v22  ;;  %v3229_v42 = vmul.f32 -1.442695, %v5209_v55 }
 0x4a8   : > { %v2528_v10 = vmul.f32 %v5166_v30, %v5124_v0  ;;  %v5239_v9 = vadd.f32 %v5169_v36, %v2524_v14  ;;  %3720 = vpow2.f32 %v3226_v61  ;;  %v3230_v24 = vmul.f32 -1.442695, %v5216_v21 }
 0x4a9   : > { %v2529_v29 = vmul.f32 %v5166_v30, %v5126_v49  ;;  %v5247_v11 = vadd.f32 %v5169_v36, %v2525_v60  ;;  %3722 = vpow2.f32 %v3227_v17  ;;  %v3231_v5 = vmul.f32 -1.442695, %v5221_v62  ;;  %v5274_v34 = vpop.permute.xlu1 %2855 }
 0x4aa   : > { %v2530_v0 = vmul.f32 %v5166_v30, %v5128_v2  ;;  %v5253_v44 = vadd.f32 %v5169_v36, %v2526_v58  ;;  %3724 = vpow2.f32 %v3228_v12  ;;  %v3232_v19 = vmul.f32 -1.442695, %v5226_v43 }
 0x4ab   : > { %v2531_v53 = vmul.f32 %v5166_v30, %v5130_v4  ;;  %v5259_v49 = vadd.f32 %v5169_v36, %v2527_v38  ;;  %3726 = vpow2.f32 %v3229_v42  ;;  %v3233_v23 = vmul.f32 -1.442695, %v5231_v54 }
 0x4ac   : > { %v2532_v56 = vmul.f32 %v5166_v30, %v5132_v45  ;;  %v5265_v2 = vadd.f32 %v5169_v36, %v2528_v10  ;;  %3728 = vpow2.f32 %v3230_v24  ;;  %v3234_v15 = vmul.f32 -1.442695, %v5239_v9 }
 0x4ad   : > { %v2533_v35 = vmul.f32 %v5166_v30, %v5134_v32  ;;  %v5271_v4 = vadd.f32 %v5169_v36, %v2529_v29  ;;  %3730 = vpow2.f32 %v3231_v5  ;;  %v3235_v33 = vmul.f32 -1.442695, %v5247_v11  ;;  %v5284_v32 = vpop.permute.xlu0 %2853 }
 0x4ae   : > { %v2534_v45 = vmul.f32 %v5166_v30, %v5136_v47  ;;  %v5279_v28 = vadd.f32 %v5169_v36, %v2530_v0  ;;  %3732 = vpow2.f32 %v3232_v19  ;;  %v3236_v46 = vmul.f32 -1.442695, %v5253_v44 }
 0x4af   : > { %v5282_v22 = vpop.eup %3714  ;;  %v2535_v14 = vmul.f32 %v5166_v30, %v5138_v57  ;;  %v5289_v61 = vadd.f32 %v5169_v36, %v2531_v53  ;;  %3734 = vpow2.f32 %v3233_v23  ;;  %v3237_v60 = vmul.f32 -1.442695, %v5259_v49 }
 0x4b0   : > { %5638 = vst [vmem:[#allocation2_spill] sm:$0xff] %v5279_v28  ;;  %v5292_v47 = vpop.eup %3716  ;;  %v2536_v17 = vmul.f32 %v5166_v30, %v5140_v48  ;;  %v5297_v58 = vadd.f32 %v5169_v36, %v2532_v56  ;;  %3736 = vpow2.f32 %v3234_v15  ;;  %v3238_v12 = vmul.f32 -1.442695, %v5265_v2 }
 0x4b1   : > { %5639 = vst [vmem:[#allocation3_spill] sm:$0xff] %v5289_v61  ;;  %v5300_v38 = vpop.eup %3718  ;;  %v2537_v57 = vmul.f32 %v5166_v30, %v5142_v63  ;;  %v5305_v42 = vadd.f32 %v5169_v36, %v2533_v35  ;;  %3738 = vpow2.f32 %v3235_v33  ;;  %v3239_v10 = vmul.f32 -1.442695, %v5271_v4  ;;  %v5336_v33 = vpop.permute.xlu0 %2857 }
 0x4b2   : > { %5640 = vst [vmem:[#allocation4_spill] sm:$0xff] %v5297_v58  ;;  %v5308_v24 = vpop.eup %3720  ;;  %v2538_v48 = vmul.f32 %v5166_v30, %v5144_v27  ;;  %v5313_v29 = vadd.f32 %v5169_v36, %v2534_v45  ;;  %3740 = vpow2.f32 %v3236_v46  ;;  %v3240_v5 = vmul.f32 -1.442695, %v5279_v28  ;;  %v5326_v27 = vpop.permute.xlu1 %2859 }
 0x4b3   : > { %5641 = vst [vmem:[#allocation5_spill] sm:$0xff] %v5305_v42  ;;  %v5316_v0 = vpop.eup %3722  ;;  %v2539_v63 = vmul.f32 %v5166_v30, %v5146_v6  ;;  %v5321_v19 = vadd.f32 %v5169_v36, %v2535_v14  ;;  %3742 = vpow2.f32 %v3237_v60  ;;  %v3241_v53 = vmul.f32 -1.442695, %v5289_v61 }
 0x4b4   : > { %5642 = vst [vmem:[#allocation6_spill] sm:$0xff] %v5313_v29  ;;  %v5324_v23 = vpop.eup %3724  ;;  %v2540_v56 = vmul.f32 %v5166_v30, %v5148_v3  ;;  %v5331_v15 = vadd.f32 %v5169_v36, %v2536_v17  ;;  %3744 = vpow2.f32 %v3238_v12  ;;  %v3242_v35 = vmul.f32 -1.442695, %v5297_v58 }
 0x4b5   : > { %5643 = vst [vmem:[#allocation7_spill] sm:$0xff] %v5321_v19  ;;  %v5334_v6 = vpop.eup %3726  ;;  %v2541_v45 = vmul.f32 %v5166_v30, %v5150_v51  ;;  %v5341_v46 = vadd.f32 %v5169_v36, %v2537_v57  ;;  %3746 = vpow2.f32 %v3239_v10  ;;  %v3243_v14 = vmul.f32 -1.442695, %v5305_v42 }
 0x4b6   : > { %5644 = vst [vmem:[#allocation8_spill] sm:$0xff] %v5331_v15  ;;  %v5344_v3 = vpop.eup %3728  ;;  %v2542_v60 = vmul.f32 %v5166_v30, %v5152_v7  ;;  %v5349_v17 = vadd.f32 %v5169_v36, %v2538_v48  ;;  %3748 = vpow2.f32 %v3240_v5  ;;  %v3244_v12 = vmul.f32 -1.442695, %v5313_v29 }
 0x4b7   : > { %5645 = vst [vmem:[#allocation9_spill] sm:$0xff] %v5341_v46  ;;  %v5352_v58 = vpop.eup %3730  ;;  %v2543_v51 = vmul.f32 %v5166_v30, %v5154_v18  ;;  %v5357_v57 = vadd.f32 %v5169_v36, %v2539_v63  ;;  %3750 = vpow2.f32 %v3241_v53  ;;  %v3245_v10 = vmul.f32 -1.442695, %v5321_v19  ;;  %v5376_v19 = vpop.permute.xlu1 %2863 }
 0x4b8   : > { %5646 = vst [vmem:[#allocation10_spill] sm:$0xff] %v5349_v17  ;;  %v5360_v42 = vpop.eup %3732  ;;  %v2544_v7 = vmul.f32 %v5166_v30, %v5156_v26  ;;  %v5365_v48 = vadd.f32 %v5169_v36, %v2540_v56  ;;  %3752 = vpow2.f32 %v3242_v35  ;;  %v3246_v5 = vmul.f32 -1.442695, %v5331_v15  ;;  %v5384_v35 = vpop.permute.xlu0 %2861 }
 0x4b9   : > { %5647 = vst [vmem:[#allocation11_spill] sm:$0xff] %v5357_v57  ;;  %v5368_v29 = vpop.eup %3734  ;;  %v5371_v18 = vadd.f32 %v5169_v36, %v2541_v45  ;;  %3754 = vpow2.f32 %v3243_v14  ;;  %v3247_v63 = vmul.f32 -1.442695, %v5341_v46  ;;  %v5379_v26 = vadd.f32 %v5169_v36, %v2542_v60 }
 0x4ba   : > { %5648 = vst [vmem:[#allocation12_spill] sm:$0xff] %v5365_v48  ;;  %v5374_v53 = vpop.eup %3736  ;;  %3756 = vpow2.f32 %v3244_v12  ;;  %v3248_v30 = vmul.f32 -1.442695, %v5349_v17  ;;  %v5387_v45 = vadd.f32 %v5169_v36, %v2543_v51  ;;  %v3249_v14 = vmul.f32 -1.442695, %v5357_v57 }
 0x4bb   : > { %5649 = vst [vmem:[#allocation13_spill] sm:$0xff] %v5371_v18  ;;  %5650 = vst [vmem:[#allocation14_spill] sm:$0xff] %v5379_v26  ;;  %v5382_v56 = vpop.eup %3738  ;;  %3758 = vpow2.f32 %v3245_v10  ;;  %v5391_v15 = vadd.f32 %v5169_v36, %v2544_v7  ;;  %v3250_v60 = vmul.f32 -1.442695, %v5365_v48  ;;  %v3251_v17 = vmul.f32 -1.442695, %v5371_v18  ;;  %v5401_v36 = vpop.permute.xlu1 %2867 }
 0x4bc   : > { %5651 = vst [vmem:[#allocation15_spill] sm:$0xff] %v5387_v45  ;;  %v3741_v46 = vpop.eup %3740  ;;  %3760 = vpow2.f32 %v3246_v5  ;;  %v3252_v28 = vmul.f32 -1.442695, %v5379_v26  ;;  %v3253_v10 = vmul.f32 -1.442695, %v5387_v45  ;;  %5653 = vst [vmem:[#allocation17_spill] sm:$0xff] %v5401_v36 }
 0x4bd   : > { %5652 = vst [vmem:[#allocation16_spill] sm:$0xff] %v5391_v15  ;;  %v3743_v12 = vpop.eup %3742  ;;  %3762 = vpow2.f32 %v3247_v63  ;;  %v3254_v7 = vmul.f32 -1.442695, %v5391_v15  ;;  %v5406_v63 = vpop.permute.xlu0 %2865  ;;  %v2679_v18 = vadd.f32 1.0, %v5300_v38  ;;  %v2680_v15 = vadd.f32 1.0, %v5308_v24 }
 0x4be   : > { %v3745_v61 = vpop.eup %3744  ;;  %3764 = vpow2.f32 %v3248_v30  ;;  %5654 = vst [vmem:[#allocation18_spill] sm:$0xff] %v5406_v63  ;;  %v2677_v30 = vadd.f32 1.0, %v5282_v22  ;;  %v2684_v36 = vadd.f32 1.0, %v5344_v3 }
 0x4bf   : > { %v5396_v51 = vpop.eup %3746  ;;  %3766 = vpow2.f32 %v3249_v14  ;;  %v2678_v14 = vadd.f32 1.0, %v5292_v47  ;;  %v2682_v47 = vadd.f32 1.0, %v5324_v23  ;;  %v2686_v23 = vadd.f32 1.0, %v5360_v42 }
 0x4c0   : > { %v5399_v57 = vpop.eup %3748  ;;  %3768 = vpow2.f32 %v3250_v60  ;;  %v2689_v42 = vadd.f32 1.0, %v5382_v56 }
 0x4c1   : > { %v5404_v5 = vpop.eup %3750  ;;  %3770 = vpow2.f32 %v3251_v17  ;;  %v2681_v17 = vadd.f32 1.0, %v5316_v0  ;;  %v5428_v38 = vpop.permute.xlu0 %2869 }
 0x4c2   : > { %v5409_v26 = vpop.eup %3752  ;;  %3772 = vpow2.f32 %v3252_v28  ;;  %v5423_v28 = vpop.permute.xlu1 %2871  ;;  %5656 = vst [vmem:[#allocation20_spill] sm:$0xff] %v5428_v38 }
 0x4c3   : > { %v5412_v45 = vpop.eup %3754  ;;  %3774 = vpow2.f32 %v3253_v10  ;;  %5655 = vst [vmem:[#allocation19_spill] sm:$0xff] %v5423_v28 }
 0x4c4   : > { %v5415_v60 = vpop.eup %3756  ;;  %3776 = vpow2.f32 %v3254_v7  ;;  %v2683_v7 = vadd.f32 1.0, %v5334_v6  ;;  %v2687_v6 = vadd.f32 1.0, %v5368_v29 }
 0x4c5   : > { %v5418_v48 = vpop.eup %3758  ;;  %3778 = vrcp.f32 %v2677_v30  ;;  %v2685_v30 = vadd.f32 1.0, %v5352_v58  ;;  %v5450_v3 = vpop.permute.xlu0 %2873 }
 0x4c6   : > { %v5421_v22 = vpop.eup %3760  ;;  %3780 = vrcp.f32 %v2678_v14  ;;  %v5445_v38 = vpop.permute.xlu1 %2875 }
 0x4c7   : > { %v5426_v10 = vpop.eup %3762  ;;  %3782 = vrcp.f32 %v2679_v18  ;;  %5657 = vst [vmem:[#allocation21_spill] sm:$0xff] %v5445_v38  ;;  %v2692_v38 = vadd.f32 1.0, %v3745_v61  ;;  %v2694_v61 = vadd.f32 1.0, %v5399_v57 }
 0x4c8   : > { %v5431_v24 = vpop.eup %3764  ;;  %3784 = vrcp.f32 %v2680_v15  ;;  %v2688_v15 = vadd.f32 1.0, %v5374_v53 }
 0x4c9   : > { %v5434_v0 = vpop.eup %3766  ;;  %3786 = vrcp.f32 %v2681_v17  ;;  %v5462_v56 = vpop.permute.xlu0 %2877 }
 0x4ca   : > { %v5437_v28 = vpop.eup %3768  ;;  %3788 = vrcp.f32 %v2682_v47  ;;  %v2690_v47 = vadd.f32 1.0, %v3741_v46 }
 0x4cb   : > { %v5440_v14 = vpop.eup %3770  ;;  %3790 = vrcp.f32 %v2683_v7  ;;  %v2691_v7 = vadd.f32 1.0, %v3743_v12 }
 0x4cc   : > { %v5443_v18 = vpop.eup %3772  ;;  %3792 = vrcp.f32 %v2684_v36 }
 0x4cd   : > { %v5448_v58 = vpop.eup %3774  ;;  %3794 = vrcp.f32 %v2685_v30  ;;  %v2693_v30 = vadd.f32 1.0, %v5396_v51 }
 0x4ce   : > { %v5453_v17 = vpop.eup %3776  ;;  %3796 = vrcp.f32 %v2686_v23  ;;  %v5466_v23 = vpop.permute.xlu1 %2879 }
 0x4cf   : > { %v3779_v29 = vpop.eup %3778  ;;  %3798 = vrcp.f32 %v2687_v6 }
 0x4d0   : > { %v3781_v63 = vpop.eup %3780  ;;  %3800 = vrcp.f32 %v2688_v15  ;;  %v2773_v53 = vmul.f32 %v3779_v29, %v5183_v59  ;;  %v2695_v29 = vadd.f32 1.0, %v5404_v5  ;;  %v2698_v5 = vadd.f32 1.0, %v5415_v60 }
 0x4d1   : > { %v3783_v36 = vpop.eup %3782  ;;  %3802 = vrcp.f32 %v2689_v42  ;;  %v2774_v46 = vmul.f32 %v3781_v63, %v5186_v40  ;;  %v2696_v42 = vadd.f32 1.0, %v5409_v26 }
 0x4d2   : > { %v3785_v12 = vpop.eup %3784  ;;  %3804 = vrcp.f32 %v2690_v47  ;;  %v2775_v59 = vmul.f32 %v3783_v36, %v5189_v41  ;;  %v2933_v6 = vadd.f32 %v5177_v31, %v2773_v53  ;;  %v2697_v47 = vadd.f32 1.0, %v5412_v45 }
 0x4d3   : > { %v3787_v15 = vpop.eup %3786  ;;  %3806 = vrcp.f32 %v2691_v7  ;;  %v2776_v51 = vmul.f32 %v3785_v12, %v5193_v13  ;;  %v2934_v40 = vadd.f32 %v5161_v1, %v2774_v46  ;;  %v2702_v46 = vadd.f32 1.0, %v5431_v24 }
 0x4d4   : > { %v3789_v63 = vpop.eup %3788  ;;  %3808 = vrcp.f32 %v2692_v38  ;;  %v2777_v57 = vmul.f32 %v3787_v15, %v5197_v39  ;;  %v2935_v41 = vadd.f32 %v5174_v16, %v2775_v59  ;;  %2965 = vst.msk [vmem:[%s5460_s14] sm:$0xff] %vm1058_vm5, %v2933_v6  ;;  %v5489_v38 = vpop.permute.xlu0 %2881  ;;  %v2703_v12 = vadd.f32 1.0, %v5434_v0 }
 0x4d5   : > { %v3791_v31 = vpop.eup %3790  ;;  %3810 = vrcp.f32 %v2693_v30  ;;  %v2778_v13 = vmul.f32 %v3789_v63, %v5204_v52  ;;  %v2936_v1 = vadd.f32 %v5159_v25, %v2776_v51  ;;  %2966 = vst.msk [vmem:[%s5460_s14 + $0x8] sm:$0xff] %vm1058_vm5, %v2934_v40  ;;  %v2699_v52 = vadd.f32 1.0, %v5418_v48 }
 0x4d6   : > { %v3793_v26 = vpop.eup %3792  ;;  %3812 = vrcp.f32 %v2694_v61  ;;  %v2779_v39 = vmul.f32 %v3791_v31, %v5209_v55  ;;  %v2937_v16 = vadd.f32 %v5206_v50, %v2777_v57  ;;  %2967 = vst.msk [vmem:[%s5460_s14 + $0x10] sm:$0xff] %vm1058_vm5, %v2935_v41  ;;  %v5496_v55 = vpop.permute.xlu1 %2883  ;;  %v2700_v50 = vadd.f32 1.0, %v5421_v22  ;;  %v5660_v57 = vld [vmem:[#allocation17_spill] sm:$0xff] }
 0x4d7   : > { %v3795_v45 = vpop.eup %3794  ;;  %3814 = vrcp.f32 %v2695_v29  ;;  %v2780_v25 = vmul.f32 %v3793_v26, %v5216_v21  ;;  %v2938_v7 = vadd.f32 %v5199_v8, %v2778_v13  ;;  %2968 = vst.msk [vmem:[%s5460_s14 + $0x18] sm:$0xff] %vm1058_vm5, %v2936_v1  ;;  %v2701_v21 = vadd.f32 1.0, %v5426_v10  ;;  %v5663_v26 = vld [vmem:[#allocation4_spill] sm:$0xff] }
 0x4d8   : > { %v3797_v60 = vpop.eup %3796  ;;  %3816 = vrcp.f32 %v2696_v42  ;;  %v2781_v53 = vmul.f32 %v3795_v45, %v5221_v62  ;;  %v2939_v36 = vadd.f32 %v5242_v20, %v2779_v39  ;;  %2969 = vst.msk [vmem:[%s5460_s14 + $0x20] sm:$0xff] %vm1058_vm5, %v2937_v16  ;;  %v2704_v61 = vadd.f32 1.0, %v5437_v28  ;;  %v5523_v59 = vpop.permute.xlu0 %2885  ;;  %v5659_v42 = vld [vmem:[#allocation2_spill] sm:$0xff]  ;;  %v5664_v39 = vld [vmem:[#allocation19_spill] sm:$0xff] }
 0x4d9   : > { %v3799_v48 = vpop.eup %3798  ;;  %3818 = vrcp.f32 %v2697_v47  ;;  %v2782_v8 = vmul.f32 %v3797_v60, %v5226_v43  ;;  %v2940_v30 = vadd.f32 %v5234_v37, %v2780_v25  ;;  %2970 = vst.msk [vmem:[%s5460_s14 + $0x28] sm:$0xff] %vm1058_vm5, %v2938_v7  ;;  %v2708_v40 = vadd.f32 1.0, %v5453_v17  ;;  %v5661_v17 = vld [vmem:[#allocation3_spill] sm:$0xff]  ;;  %v5662_v47 = vld [vmem:[#allocation20_spill] sm:$0xff]  ;;  %v5665_v25 = vld [vmem:[#allocation5_spill] sm:$0xff] }
 0x4da   : > { %v3801_v22 = vpop.eup %3800  ;;  %3820 = vrcp.f32 %v2698_v5  ;;  %v2783_v62 = vmul.f32 %v3799_v48, %v5231_v54  ;;  %v2941_v20 = vadd.f32 %v5284_v32, %v2781_v53  ;;  %2971 = vst.msk [vmem:[%s5460_s14 + $0x30] sm:$0xff] %vm1058_vm5, %v2939_v36  ;;  %v5666_v53 = vld [vmem:[#allocation6_spill] sm:$0xff]  ;;  %v5667_v48 = vld [vmem:[#allocation21_spill] sm:$0xff] }
 0x4db   : > { %v3803_v10 = vpop.eup %3802  ;;  %3822 = vrcp.f32 %v2699_v52  ;;  %v2784_v43 = vmul.f32 %v3801_v22, %v5239_v9  ;;  %v2942_v37 = vadd.f32 %v5274_v34, %v2782_v8  ;;  %2972 = vst.msk [vmem:[%s5460_s14 + $0x38] sm:$0xff] %vm1058_vm5, %v2940_v30  ;;  %v2705_v9 = vadd.f32 1.0, %v5440_v14  ;;  %v5668_v30 = vld [vmem:[#allocation7_spill] sm:$0xff] }
 0x4dc   : > { %v3805_v24 = vpop.eup %3804  ;;  %3824 = vrcp.f32 %v2700_v50  ;;  %v2785_v54 = vmul.f32 %v3803_v10, %v5247_v11  ;;  %v2943_v32 = vadd.f32 %v5336_v33, %v2783_v62  ;;  %2973 = vst.msk [vmem:[%s5460_s14 + $0x40] sm:$0xff] %vm1058_vm5, %v2941_v20  ;;  %v5530_v11 = vpop.permute.xlu1 %2887  ;;  %v2706_v33 = vadd.f32 1.0, %v5443_v18 }
 0x4dd   : > { %v3807_v0 = vpop.eup %3806  ;;  %3826 = vrcp.f32 %v2701_v21  ;;  %v2786_v34 = vmul.f32 %v3805_v24, %v5253_v44  ;;  %v2944_v6 = vadd.f32 %v5326_v27, %v2784_v43  ;;  %2974 = vst.msk [vmem:[%s5460_s14 + $0x48] sm:$0xff] %vm1058_vm5, %v2942_v37  ;;  %v2707_v44 = vadd.f32 1.0, %v5448_v58  ;;  %v2890_v1 = vpop.permute.xlu0 %2889  ;;  %v5670_v43 = vld [vmem:[#allocation9_spill] sm:$0xff] }
 0x4de   : > { %v3809_v28 = vpop.eup %3808  ;;  %3828 = vrcp.f32 %v2702_v46  ;;  %v2787_v15 = vmul.f32 %v3807_v0, %v5259_v49  ;;  %v2945_v29 = vadd.f32 %v5384_v35, %v2785_v54  ;;  %2975 = vst.msk [vmem:[%s5460_s14 + $0x50] sm:$0xff] %vm1058_vm5, %v2943_v32  ;;  %v5658_v35 = vld [vmem:[#allocation18_spill] sm:$0xff] }
 0x4df   : > { %v3811_v14 = vpop.eup %3810  ;;  %3830 = vrcp.f32 %v2703_v12  ;;  %v2788_v27 = vmul.f32 %v3809_v28, %v5265_v2  ;;  %v2946_v51 = vadd.f32 %v5376_v19, %v2786_v34  ;;  %2976 = vst.msk [vmem:[%s5460_s14 + $0x58] sm:$0xff] %vm1058_vm5, %v2944_v6  ;;  %v5671_v54 = vld [vmem:[#allocation10_spill] sm:$0xff]  ;;  %v5672_v34 = vld [vmem:[#allocation11_spill] sm:$0xff] }
 0x4e0   : > { %v3813_v18 = vpop.eup %3812  ;;  %3832 = vrcp.f32 %v2704_v61  ;;  %v2789_v49 = vmul.f32 %v3811_v14, %v5271_v4  ;;  %v2947_v63 = vadd.f32 %v5658_v35, %v2787_v15  ;;  %2977 = vst.msk [vmem:[%s5460_s14 + $0x60] sm:$0xff] %vm1058_vm5, %v2945_v29  ;;  %v2892_v52 = vpop.permute.xlu1 %2891  ;;  %v5674_v14 = vld [vmem:[#allocation13_spill] sm:$0xff] }
 0x4e1   : > { %v3815_v58 = vpop.eup %3814  ;;  %3834 = vrcp.f32 %v2705_v9  ;;  %v2790_v2 = vmul.f32 %v3813_v18, %v5659_v42  ;;  %v2948_v19 = vadd.f32 %v5660_v57, %v2788_v27  ;;  %2978 = vst.msk [vmem:[%s5460_s14 + $0x68] sm:$0xff] %vm1058_vm5, %v2946_v51  ;;  %v5677_v42 = vld [vmem:[#allocation16_spill] sm:$0xff] }
 0x4e2   : > { %v3817_v41 = vpop.eup %3816  ;;  %3836 = vrcp.f32 %v2706_v33  ;;  %v2791_v31 = vmul.f32 %v3815_v58, %v5661_v17  ;;  %v2949_v4 = vadd.f32 %v5662_v47, %v2789_v49  ;;  %2979 = vst.msk [vmem:[%s5460_s14 + $0x70] sm:$0xff] %vm1058_vm5, %v2947_v63  ;;  %v5673_v33 = vld [vmem:[#allocation12_spill] sm:$0xff]  ;;  %v5676_v49 = vld [vmem:[#allocation15_spill] sm:$0xff] }
 0x4e3   : > { %v3819_v13 = vpop.eup %3818  ;;  %3838 = vrcp.f32 %v2707_v44  ;;  %v2792_v5 = vmul.f32 %v3817_v41, %v5663_v26  ;;  %v2950_v16 = vadd.f32 %v5664_v39, %v2790_v2  ;;  %2980 = vst.msk [vmem:[%s5460_s14 + $0x78] sm:$0xff] %vm1058_vm5, %v2948_v19 }
 0x4e4   : > { %v3821_v45 = vpop.eup %3820  ;;  %3840 = vrcp.f32 %v2708_v40  ;;  %v2793_v7 = vmul.f32 %v3819_v13, %v5665_v25  ;;  %v2951_v60 = vadd.f32 %v5450_v3, %v2791_v31  ;;  %2981 = vst.msk [vmem:[%s5460_s14 + $0x80] sm:$0xff] %vm1058_vm5, %v2949_v4  ;;  %v5669_v3 = vld [vmem:[#allocation8_spill] sm:$0xff]  ;;  %v2896_v9 = vpop.permute.xlu1 %2895 }
 0x4e5   : > { %v3823_v50 = vpop.eup %3822  ;;  %v2794_v36 = vmul.f32 %v3821_v45, %v5666_v53  ;;  %v2952_v21 = vadd.f32 %v5667_v48, %v2792_v5  ;;  %2982 = vst.msk [vmem:[%s5460_s14 + $0x88] sm:$0xff] %vm1058_vm5, %v2950_v16 }
 0x4e6   : > { %v3825_v8 = vpop.eup %3824  ;;  %v2795_v22 = vmul.f32 %v3823_v50, %v5668_v30  ;;  %v2953_v46 = vadd.f32 %v5462_v56, %v2793_v7  ;;  %2983 = vst.msk [vmem:[%s5460_s14 + $0x90] sm:$0xff] %vm1058_vm5, %v2951_v60  ;;  %v2894_v56 = vpop.permute.xlu0 %2893 }
 0x4e7   : > { %v3827_v62 = vpop.eup %3826  ;;  %v2796_v20 = vmul.f32 %v3825_v8, %v5669_v3  ;;  %v2954_v10 = vadd.f32 %v5466_v23, %v2794_v36  ;;  %2984 = vst.msk [vmem:[%s5460_s14 + $0x98] sm:$0xff] %vm1058_vm5, %v2952_v21 }
 0x4e8   : > { %v3829_v12 = vpop.eup %3828  ;;  %v2797_v37 = vmul.f32 %v3827_v62, %v5670_v43  ;;  %v2955_v24 = vadd.f32 %v5489_v38, %v2795_v22  ;;  %2985 = vst.msk [vmem:[%s5460_s14 + $0xa0] sm:$0xff] %vm1058_vm5, %v2953_v46  ;;  %v2900_v19 = vpop.permute.xlu1 %2899 }
 0x4e9   : > { %v3831_v61 = vpop.eup %3830  ;;  %v2798_v32 = vmul.f32 %v3829_v12, %v5671_v54  ;;  %v2956_v0 = vadd.f32 %v5496_v55, %v2796_v20  ;;  %2986 = vst.msk [vmem:[%s5460_s14 + $0xa8] sm:$0xff] %vm1058_vm5, %v2954_v10 }
 0x4ea   : > { %v3833_v23 = vpop.eup %3832  ;;  %v2799_v6 = vmul.f32 %v3831_v61, %v5672_v34  ;;  %v2957_v28 = vadd.f32 %v5523_v59, %v2797_v37  ;;  %2987 = vst.msk [vmem:[%s5460_s14 + $0xb0] sm:$0xff] %vm1058_vm5, %v2955_v24  ;;  %v5675_v59 = vld [vmem:[#allocation14_spill] sm:$0xff]  ;;  %v2898_v58 = vpop.permute.xlu0 %2897 }
 0x4eb   : > { %v3835_v38 = vpop.eup %3834  ;;  %v2800_v15 = vmul.f32 %v3833_v23, %v5673_v33  ;;  %v2958_v29 = vadd.f32 %v5530_v11, %v2798_v32  ;;  %2988 = vst.msk [vmem:[%s5460_s14 + $0xb8] sm:$0xff] %vm1058_vm5, %v2956_v0 }
 0x4ec   : > { %v3837_v55 = vpop.eup %3836  ;;  %v2801_v44 = vmul.f32 %v3835_v38, %v5674_v14  ;;  %v2959_v27 = vadd.f32 %v2890_v1, %v2799_v6  ;;  %2989 = vst.msk [vmem:[%s5460_s14 + $0xc0] sm:$0xff] %vm1058_vm5, %v2957_v28 }
 0x4ed   : > { %v3839_v51 = vpop.eup %3838  ;;  %v2802_v18 = vmul.f32 %v3837_v55, %v5675_v59  ;;  %v2960_v40 = vadd.f32 %v2892_v52, %v2800_v15  ;;  %2990 = vst.msk [vmem:[%s5460_s14 + $0xc8] sm:$0xff] %vm1058_vm5, %v2958_v29 }
 0x4ee   : > { %v3841_v11 = vpop.eup %3840  ;;  %v2803_v35 = vmul.f32 %v3839_v51, %v5676_v49  ;;  %v2961_v63 = vadd.f32 %v2894_v56, %v2801_v44  ;;  %2991 = vst.msk [vmem:[%s5460_s14 + $0xd0] sm:$0xff] %vm1058_vm5, %v2959_v27 }
 0x4ef   : > { %v2804_v2 = vmul.f32 %v3841_v11, %v5677_v42  ;;  %v2962_v57 = vadd.f32 %v2896_v9, %v2802_v18  ;;  %2992 = vst.msk [vmem:[%s5460_s14 + $0xd8] sm:$0xff] %vm1058_vm5, %v2960_v40 }
 0x4f0   : > { %v2963_v41 = vadd.f32 %v2898_v58, %v2803_v35  ;;  %2993 = vst.msk [vmem:[%s5460_s14 + $0xe0] sm:$0xff] %vm1058_vm5, %v2961_v63 }
 0x4f1   : > { %v2964_v17 = vadd.f32 %v2900_v19, %v2804_v2  ;;  %2994 = vst.msk [vmem:[%s5460_s14 + $0xe8] sm:$0xff] %vm1058_vm5, %v2962_v57 }
 0x4f2   : > { %2995 = vst.msk [vmem:[%s5460_s14 + $0xf0] sm:$0xff] %vm1058_vm5, %v2963_v41 }
 0x4f3   : > { %2996 = vst.msk [vmem:[%s5460_s14 + $0xf8] sm:$0xff] %vm1058_vm5, %v2964_v17 }
 0x4f4 PF: > { %s18_s27 = sadd.s32 1, %s3850_s27  }
 0x4f5   : > { %p15_p4 = scmp.ge.s32.totalorder %s18_s27, 4  }
 0x4f7   :  { %17 = sbr.rel (!%p15_p4) target bundleno = 1 (0x1), region = 88 }

</bundles_post_ra>
